<compile_context>
chip_gen: v7x
topology: tpu7x:2x2x1
jax: 0.10.0
libtpu: 0.0.40
codegen_flags: <defaults>
</compile_context>

<pallas_src>
import jax
import jax.numpy as jnp
import numpy as np
from jax.experimental import pallas as pl
from jax.experimental.pallas import tpu as pltpu

# ---------------------------------------------------------------------------
# Small, module-consistent hyper-parameters
# ---------------------------------------------------------------------------
BATCH = 2
SEQLEN = 8            # x.shape[1]; must equal the `seqlen` ctor arg (lstmendconv in_channels)
N_VERTEX = 6
IN_CHANNELS = 5
RESIDUAL_CH = 16
DILATION_CH = 16      # must equal RESIDUAL_CH (residual add), as in the torch defaults
SKIP_CH = 32
END_CH = 16
OUT_CH = 1
LSTM_HIDDEN = 100     # hard-coded in the torch module
LSTM_HIDDEN_PAD = 128 # lane-aligned padded hidden size used inside the kernel
LSTM_LAYERS = 2       # hard-coded in the torch module
BLOCKS = 4
LAYERS = 2
KERNEL_SIZE = 2
BN_EPS = 1e-5


def _dilations_and_rf():
    dils, rf = [], 1
    for _ in range(BLOCKS):
        add, d = KERNEL_SIZE - 1, 1
        for _ in range(LAYERS):
            dils.append(d)
            rf += add
            add *= 2
            d *= 2
    return dils, rf


DILATIONS, RECEPTIVE_FIELD = _dilations_and_rf()
N_TCN_LAYERS = BLOCKS * LAYERS

# ---------------------------------------------------------------------------
# Pallas kernels
# ---------------------------------------------------------------------------
def _lstm_node_kernel(x_ref, wih0_ref, whh0_ref, b0_ref,
                      w1_ref, b1_ref,
                      hinit_ref, cinit_ref, wend_ref, wlin_ref, hbias_ref,
                      head_ref, hn_ref, cn_ref):
    """One 2-layer LSTM per grid step (= per graph node), with the output head
    (linear + lstmendconv over time) fused into the recurrence.

    Gate dim is padded to 4*128 so every gate slice is a 128-lane-aligned block.
    Padded weight/bias columns and padded h/c init lanes are zero, hence pad lanes of
    h/c stay exactly 0 for all timesteps and never contaminate real lanes.

    MXU work per timestep: 1 x (B,Hp)x(Hp,4Hp)  +  1 x (B,2Hp)x(2Hp,4Hp).
    Layer-0 input projections for all T steps are done in ONE matmul up-front.
    """
    B = hn_ref.shape[2]           # batch (2)
    TB = x_ref.shape[1]           # T * B
    T = TB // B
    Hp = whh0_ref.shape[1]        # padded hidden (128)
    H = hn_ref.shape[3]           # logical hidden (100)

    wih0 = wih0_ref[0]            # (C, 4Hp)
    whh0 = whh0_ref[0]            # (Hp, 4Hp)
    w1 = w1_ref[0]                # (2Hp, 4Hp)  == [W_ih1 ; W_hh1]
    b1 = b1_ref[0]                # (1, 4Hp)
    wlin = wlin_ref[...]          # (Hp, 1), rows >= H are zero

    # all T input projections of layer 0 in one matmul (bias folded in)
    gx0 = (jnp.dot(x_ref[0], wih0, preferred_element_type=jnp.float32)
           + b0_ref[0])                                          # (T*B, 4Hp)

    def cell(gates, c_prev):
        i = jax.nn.sigmoid(gates[:, 0 * Hp:1 * Hp])
        f = jax.nn.sigmoid(gates[:, 1 * Hp:2 * Hp])
        g = jnp.tanh(gates[:, 2 * Hp:3 * Hp])
        o = jax.nn.sigmoid(gates[:, 3 * Hp:4 * Hp])
        c = f * c_prev + i * g
        h = o * jnp.tanh(c)
        return h, c

    h0 = hinit_ref[0, 0]
    c0 = cinit_ref[0, 0]
    h1 = hinit_ref[0, 1]
    c1 = cinit_ref[0, 1]
    hacc = jnp.zeros((B, Hp), jnp.float32)

    for t in range(T):                                           # statically unrolled
        g0 = gx0[t * B:(t + 1) * B, :] + jnp.dot(
            h0, whh0, preferred_element_type=jnp.float32)
        h0, c0 = cell(g0, c0)
        g1 = (jnp.dot(jnp.concatenate([h0, h1], axis=1), w1,
                      preferred_element_type=jnp.float32) + b1)
        h1, c1 = cell(g1, c1)
        # fused lstmendconv: accumulate w_end[t] * h1_t (head = hacc @ w_lin + bias)
        hacc = hacc + wend_ref[t] * h1

    head_ref[0] = (jnp.dot(hacc, wlin, preferred_element_type=jnp.float32)
                   + hbias_ref[...])                             # (B, 1)
    hn_ref[0, 0] = h0[:, :H]
    hn_ref[0, 1] = h1[:, :H]
    cn_ref[0, 0] = c0[:, :H]
    cn_ref[0, 1] = c1[:, :H]


def _tcn_fused_kernel(x_ref, w_start_ref, b_start_ref, w_minor_ref, b_minor_ref,
                      w_fg_ref, b_fg_ref, w_sg_ref, b_sg_ref,
                      bn_scale_ref, bn_shift_ref,
                      w_end1_ref, b_end1_ref, w_end2_ref, b_end2_ref,
                      out_ref, h_sc, skip_sc):
    """Entire TCN branch in one kernel.

    Row layout of activations (VMEM scratch): row = t * (B*N) + b*N + n, so a dilated
    (1,2) temporal conv is  xl = rows[0:To*BN]  paired with  xr = rows[d*BN:(d+To)*BN],
    and `skip[..., -To:, :]` / `residual[..., -To:, :]` are static row windows.
    """
    BN = out_ref.shape[0]                       # B * N_VERTEX
    Cin = x_ref.shape[1]
    DC = DILATION_CH
    SC = SKIP_CH

    # start_conv on the "major" (last) channel + leaky_relu(minor_features_conv(...))
    x = x_ref[...]                              # (Tp*BN, Cin)
    major = x[:, Cin - 1:Cin]
    minor = x[:, :Cin - 1]
    a = major * w_start_ref[...] + b_start_ref[...]
    m = (jnp.dot(minor, w_minor_ref[...], preferred_element_type=jnp.float32)
         + b_minor_ref[...])
    h_sc[...] = a + jnp.where(m > 0, m, 0.01 * m)          # leaky_relu slope 0.01

    t_cur = RECEPTIVE_FIELD
    skip_len = 0
    for i in range(N_TCN_LAYERS):               # statically unrolled (8 layers)
        d = DILATIONS[i]
        t_out = t_cur - d
        rows = t_out * BN

        xl = h_sc[0:rows, :]                               # (rows, RC)
        xr = h_sc[d * BN:d * BN + rows, :]                 # (rows, RC) == residual tail

        # fused filter/gate conv: [f | g] = [xl | xr] @ [[wf0, wg0], [wf1, wg1]] + [bf | bg]
        fg = (jnp.dot(jnp.concatenate([xl, xr], axis=1), w_fg_ref[i],
                      preferred_element_type=jnp.float32) + b_fg_ref[i])
        gated = jnp.tanh(fg[:, :DC]) * jax.nn.sigmoid(fg[:, DC:])

        # fused skip conv + graph conv: [s | gc] = gated @ [wskip | wgc] + [bskip | bgc]
        sg = (jnp.dot(gated, w_sg_ref[i], preferred_element_type=jnp.float32)
              + b_sg_ref[i])
        s = sg[:, :SC]

        if i == 0:
            skip_sc[0:rows, :] = s
        else:
            off = (skip_len - t_out) * BN                  # == skip[..., -To:, :]
            skip_sc[0:rows, :] = s + skip_sc[off:off + rows, :]
        skip_len = t_out

        if i == N_TCN_LAYERS - 1:
            t_cur = t_out
            break

        gc = sg[:, SC:]
        y = gated + gc + xr                                # x + graph_conv(x) + residual tail
        h_sc[0:rows, :] = y * bn_scale_ref[i] + bn_shift_ref[i]   # BN (eval, running stats)
        t_cur = t_out

    # output layer: relu -> 1x1 conv -> relu -> 1x1 conv
    rows_f = t_cur * BN
    sk = jnp.maximum(skip_sc[0:rows_f, :], 0.0)
    e1 = jnp.maximum(jnp.dot(sk, w_end1_ref[...], preferred_element_type=jnp.float32)
                     + b_end1_ref[...], 0.0)
    out_ref[...] = (jnp.dot(e1, w_end2_ref[...], preferred_element_type=jnp.float32)
                    + b_end2_ref[...])


# ---------------------------------------------------------------------------
# pallas_call wrappers
# ---------------------------------------------------------------------------
def lstm_all_nodes(x_n2d, h_init_p, c_init_p, kp):
    N, TB, C = x_n2d.shape
    Hp = LSTM_HIDDEN_PAD
    H = LSTM_HIDDEN
    B = h_init_p.shape[2]
    n3 = lambda n: (n, 0, 0)
    n4 = lambda n: (n, 0, 0, 0)
    z2 = lambda n: (0, 0)
    return pl.pallas_call(
        _lstm_node_kernel,
        out_shape=(jax.ShapeDtypeStruct((N, B, 1), jnp.float32),    # fused head (incl. bias)
                   jax.ShapeDtypeStruct((N, 2, B, H), jnp.float32), # hn
                   jax.ShapeDtypeStruct((N, 2, B, H), jnp.float32)),# cn
        grid=(N,),
        in_specs=[
            pl.BlockSpec((1, TB, C), n3),
            pl.BlockSpec((1, C, 4 * Hp), n3),
            pl.BlockSpec((1, Hp, 4 * Hp), n3),
            pl.BlockSpec((1, 1, 4 * Hp), n3),
            pl.BlockSpec((1, 2 * Hp, 4 * Hp), n3),      # packed [W_ih1; W_hh1]
            pl.BlockSpec((1, 1, 4 * Hp), n3),
            pl.BlockSpec((1, 2, B, Hp), n4),
            pl.BlockSpec((1, 2, B, Hp), n4),
            pl.BlockSpec((SEQLEN, Hp), z2),             # w_end broadcast over lanes (shared)
            pl.BlockSpec((Hp, 1), z2),                  # w_lin padded (shared)
            pl.BlockSpec((1, 1), z2),                   # fused head bias (shared)
        ],
        out_specs=(pl.BlockSpec((1, B, 1), n3),
                   pl.BlockSpec((1, 2, B, H), n4),
                   pl.BlockSpec((1, 2, B, H), n4)),
        compiler_params=pltpu.CompilerParams(
            dimension_semantics=("parallel",),          # nodes independent -> both TCs on v7x
            vmem_limit_bytes=32 * 1024 * 1024),
    )(x_n2d, kp["w_ih0"], kp["w_hh0"], kp["b0"],
      kp["w1"], kp["b1"],
      h_init_p, c_init_p, kp["w_end_b"], kp["w_lin_p"], kp["head_bias"])


def tcn_fused(x_rows, kp):
    rows_in = x_rows.shape[0]                       # RECEPTIVE_FIELD * B * N
    BN = rows_in // RECEPTIVE_FIELD
    skip_rows = (RECEPTIVE_FIELD - DILATIONS[0]) * BN
    return pl.pallas_call(
        _tcn_fused_kernel,
        out_shape=jax.ShapeDtypeStruct((BN, OUT_CH), jnp.float32),
        scratch_shapes=[
            pltpu.VMEM((rows_in, RESIDUAL_CH), jnp.float32),   # h (activations)
            pltpu.VMEM((skip_rows, SKIP_CH), jnp.float32),     # skip accumulator
        ],
        compiler_params=pltpu.CompilerParams(vmem_limit_bytes=16 * 1024 * 1024),
    )(x_rows, kp["w_start"], kp["b_start"], kp["w_minor"], kp["b_minor"],
      kp["w_fg"], kp["b_fg"], kp["w_sg"], kp["b_sg"],
      kp["bn_scale"], kp["bn_shift"],
      kp["w_end1"], kp["b_end1"], kp["w_end2"], kp["b_end2"])


# ---------------------------------------------------------------------------
# Full forward pass (2 pallas_calls total)
# ---------------------------------------------------------------------------
def airspace_forward(kparams, x, h_init, c_init):
    B, T, N, C = x.shape
    H, Hp = LSTM_HIDDEN, LSTM_HIDDEN_PAD

    # ---- per-node LSTM branch with fused output head -----------------------
    x_n2d = jnp.transpose(x, (2, 1, 0, 3)).reshape(N, T * B, C)  # (N, T*B, C)
    pad_h = ((0, 0), (0, 0), (0, 0), (0, Hp - H))
    h_init_p = jnp.pad(h_init, pad_h)
    c_init_p = jnp.pad(c_init, pad_h)
    head_raw, hn, cn = lstm_all_nodes(x_n2d, h_init_p, c_init_p, kparams)
    lstm_head = jnp.transpose(head_raw[:, :, 0], (1, 0)).reshape(B, 1, N, 1)

    # ---- fused TCN branch (time-major rows: t*B*N + b*N + n) ----------------
    xt = jnp.transpose(x, (1, 0, 2, 3))                          # (T, B, N, C)
    if T < RECEPTIVE_FIELD:
        xt = jnp.pad(xt, ((RECEPTIVE_FIELD - T, 0), (0, 0), (0, 0), (0, 0)))
    Tp = xt.shape[0]
    x_rows = xt.reshape(Tp * B * N, C)
    out_tcn = tcn_fused(x_rows, kparams).reshape(B, 1, N, 1)     # final time length == 1

    return lstm_head + out_tcn, hn, cn


# ---------------------------------------------------------------------------
# One-time parameter packing / padding (done outside the per-call path)
# ---------------------------------------------------------------------------
def prepare_params(p):
    H, Hp, T = LSTM_HIDDEN, LSTM_HIDDEN_PAD, SEQLEN

    def pad_gate_cols(w):
        # (..., 4H) -> (..., 4Hp) with each of the i/f/g/o gates zero-padded to Hp cols
        parts = []
        for k in range(4):
            g = w[..., k * H:(k + 1) * H]
            parts.append(jnp.pad(g, [(0, 0)] * (w.ndim - 1) + [(0, Hp - H)]))
        return jnp.concatenate(parts, axis=-1)

    def pad_axis(w, axis):
        pad = [(0, 0)] * w.ndim
        pad[axis] = (0, Hp - H)
        return jnp.pad(w, pad)

    w_ih1p = pad_gate_cols(pad_axis(p["w_ih1"], 1))               # (N, Hp, 4Hp)
    w_hh1p = pad_gate_cols(pad_axis(p["w_hh1"], 1))               # (N, Hp, 4Hp)

    kp = {
        # LSTM (padded to 128-lane-aligned gates / hidden)
        "w_ih0": pad_gate_cols(p["w_ih0"]),                       # (N, C, 4Hp)
        "w_hh0": pad_gate_cols(pad_axis(p["w_hh0"], 1)),          # (N, Hp, 4Hp)
        "b0":    pad_gate_cols(p["b0"]),                          # (N, 1, 4Hp)
        "w1":    jnp.concatenate([w_ih1p, w_hh1p], axis=1),       # (N, 2Hp, 4Hp)
        "b1":    pad_gate_cols(p["b1"]),                          # (N, 1, 4Hp)
        "w_lin_p": pad_axis(p["w_lin"], 0),                       # (Hp, 1)
        "w_end_b": jnp.broadcast_to(p["w_end"], (T, Hp)).astype(jnp.float32),
        "head_bias": (p["b_lin"][0] * jnp.sum(p["w_end"])
                      + p["b_end"][0]).reshape(1, 1),
        # TCN
        "w_start": p["w_start"],
        "b_start": p["b_start"].reshape(1, -1),
        "w_minor": p["w_minor"],
        "b_minor": p["b_minor"].reshape(1, -1),
        "w_end1": p["w_end1"], "b_end1": p["b_end1"].reshape(1, -1),
        "w_end2": p["w_end2"], "b_end2": p["b_end2"].reshape(1, -1),
    }

    w_fg, b_fg, w_sg, b_sg, bn_scale, bn_shift = [], [], [], [], [], []
    for i in range(N_TCN_LAYERS):
        top = jnp.concatenate([p["wf0"][i], p["wg0"][i]], axis=1)     # (RC, 2DC)
        bot = jnp.concatenate([p["wf1"][i], p["wg1"][i]], axis=1)
        w_fg.append(jnp.concatenate([top, bot], axis=0))              # (2RC, 2DC)
        b_fg.append(jnp.concatenate([p["bf"][i], p["bg"][i]]).reshape(1, -1))
        w_sg.append(jnp.concatenate([p["wskip"][i], p["wgc"][i]], axis=1))  # (DC, SKIP+RC)
        b_sg.append(jnp.concatenate([p["bskip"][i], p["bgc"][i]]).reshape(1, -1))
        sc = p["bn_gamma"][i] / jnp.sqrt(p["bn_var"][i] + BN_EPS)
        bn_scale.append(sc.reshape(1, -1))
        bn_shift.append((p["bn_beta"][i] - p["bn_mean"][i] * sc).reshape(1, -1))
    kp["w_fg"] = jnp.stack(w_fg)
    kp["b_fg"] = jnp.stack(b_fg)
    kp["w_sg"] = jnp.stack(w_sg)
    kp["b_sg"] = jnp.stack(b_sg)
    kp["bn_scale"] = jnp.stack(bn_scale)
    kp["bn_shift"] = jnp.stack(bn_shift)
    return kp


# ---------------------------------------------------------------------------
# Pure-JAX reference (for correctness check)
# ---------------------------------------------------------------------------
_HP = jax.lax.Precision.HIGHEST
def _hdot(a, b):
    return jnp.dot(a, b, precision=_HP)


def reference_forward(params, x, h_init, c_init):
    B, T, N, C = x.shape
    H = LSTM_HIDDEN

    def lstm_node(x_tbc, Wi0, Wh0, B0, Wi1, Wh1, B1, hi, ci):
        def cell(g, c_prev):
            i = jax.nn.sigmoid(g[:, :H]); f = jax.nn.sigmoid(g[:, H:2 * H])
            gg = jnp.tanh(g[:, 2 * H:3 * H]); o = jax.nn.sigmoid(g[:, 3 * H:])
            c = f * c_prev + i * gg
            return o * jnp.tanh(c), c

        def step(carry, x_t):
            h0, c0, h1, c1 = carry
            h0, c0 = cell(_hdot(x_t, Wi0) + _hdot(h0, Wh0) + B0, c0)
            h1, c1 = cell(_hdot(h0, Wi1) + _hdot(h1, Wh1) + B1, c1)
            return (h0, c0, h1, c1), h1

        (h0, c0, h1, c1), outs = jax.lax.scan(step, (hi[0], ci[0], hi[1], ci[1]), x_tbc)
        return outs, jnp.stack([h0, h1]), jnp.stack([c0, c1])

    x_ntbc = jnp.transpose(x, (2, 1, 0, 3))
    outs, hn, cn = jax.vmap(lstm_node)(
        x_ntbc, params["w_ih0"], params["w_hh0"], params["b0"],
        params["w_ih1"], params["w_hh1"], params["b1"], h_init, c_init)
    lin = (_hdot(outs.reshape(N * T * B, H), params["w_lin"]) + params["b_lin"]).reshape(N, T, B)
    lin_bnt = jnp.transpose(lin, (2, 0, 1)).reshape(B * N, T)
    lstm_head = (_hdot(lin_bnt, params["w_end"]) + params["b_end"]).reshape(B, 1, N, 1)

    xt = jnp.transpose(x, (0, 2, 1, 3))
    if T < RECEPTIVE_FIELD:
        xt = jnp.pad(xt, ((0, 0), (0, 0), (RECEPTIVE_FIELD - T, 0), (0, 0)))
    major, minor = xt[..., -1:], xt[..., :-1]
    a = major * params["w_start"].reshape(-1) + params["b_start"]
    m = _hdot(minor, params["w_minor"]) + params["b_minor"]
    h = a + jnp.where(m > 0, m, 0.01 * m)

    skip = None
    for i in range(N_TCN_LAYERS):
        d = DILATIONS[i]
        To = h.shape[2] - d
        residual = h
        xl, xr = h[:, :, :To, :], h[:, :, d:, :]
        f = _hdot(xl, params["wf0"][i]) + _hdot(xr, params["wf1"][i]) + params["bf"][i]
        g = _hdot(xl, params["wg0"][i]) + _hdot(xr, params["wg1"][i]) + params["bg"][i]
        gated = jnp.tanh(f) * jax.nn.sigmoid(g)
        s = _hdot(gated, params["wskip"][i]) + params["bskip"][i]
        skip = s if skip is None else s + skip[:, :, -To:, :]
        if i == N_TCN_LAYERS - 1:
            break
        gc = _hdot(gated, params["wgc"][i]) + params["bgc"][i]
        y = gated + gc + residual[:, :, -To:, :]
        scale = params["bn_gamma"][i] / jnp.sqrt(params["bn_var"][i] + BN_EPS)
        h = (y - params["bn_mean"][i]) * scale + params["bn_beta"][i]

    sk = jnp.maximum(skip, 0.0)
    e1 = jnp.maximum(_hdot(sk, params["w_end1"]) + params["b_end1"], 0.0)
    out_tcn = _hdot(e1, params["w_end2"]) + params["b_end2"]
    out_tcn = jnp.transpose(out_tcn, (0, 3, 1, 2))
    return lstm_head + out_tcn, hn, cn


# ---------------------------------------------------------------------------
# Deterministic parameter init & driver
# ---------------------------------------------------------------------------
def init_params(key):
    keys = iter(jax.random.split(key, 512))
    def rnd(shape, scale=0.1):
        return (scale * jax.random.normal(next(keys), shape)).astype(jnp.float32)

    H = LSTM_HIDDEN
    p = {
        "w_ih0": rnd((N_VERTEX, IN_CHANNELS, 4 * H)),
        "w_hh0": rnd((N_VERTEX, H, 4 * H)),
        "b0":    rnd((N_VERTEX, 1, 4 * H)),
        "w_ih1": rnd((N_VERTEX, H, 4 * H)),
        "w_hh1": rnd((N_VERTEX, H, 4 * H)),
        "b1":    rnd((N_VERTEX, 1, 4 * H)),
        "w_lin": rnd((H, 1)), "b_lin": rnd((1,)),
        "w_end": rnd((SEQLEN, 1)), "b_end": rnd((1,)),            # lstmendconv (Conv2d(seqlen,1,1))
        "w_start": rnd((1, RESIDUAL_CH)), "b_start": rnd((RESIDUAL_CH,)),
        "w_minor": rnd((IN_CHANNELS - 1, RESIDUAL_CH)), "b_minor": rnd((RESIDUAL_CH,)),
        "w_end1": rnd((SKIP_CH, END_CH)), "b_end1": rnd((END_CH,)),
        "w_end2": rnd((END_CH, OUT_CH)), "b_end2": rnd((OUT_CH,)),
        "wf0": [], "wf1": [], "bf": [], "wg0": [], "wg1": [], "bg": [],
        "wskip": [], "bskip": [], "wgc": [], "bgc": [],
        "bn_gamma": [], "bn_beta": [], "bn_mean": [], "bn_var": [],
    }
    for _ in range(N_TCN_LAYERS):
        p["wf0"].append(rnd((RESIDUAL_CH, DILATION_CH)))
        p["wf1"].append(rnd((RESIDUAL_CH, DILATION_CH)))
        p["bf"].append(rnd((DILATION_CH,)))
        p["wg0"].append(rnd((RESIDUAL_CH, DILATION_CH)))
        p["wg1"].append(rnd((RESIDUAL_CH, DILATION_CH)))
        p["bg"].append(rnd((DILATION_CH,)))
        p["wskip"].append(rnd((DILATION_CH, SKIP_CH)))
        p["bskip"].append(rnd((SKIP_CH,)))
        p["wgc"].append(rnd((DILATION_CH, RESIDUAL_CH)))
        p["bgc"].append(rnd((RESIDUAL_CH,)))
        p["bn_gamma"].append(1.0 + rnd((RESIDUAL_CH,)))
        p["bn_beta"].append(rnd((RESIDUAL_CH,)))
        p["bn_mean"].append(rnd((RESIDUAL_CH,)))
        p["bn_var"].append(1.0 + jnp.abs(rnd((RESIDUAL_CH,))))     # BN running stats (eval mode)
    return p


if __name__ == "__main__":
    key = jax.random.PRNGKey(0)
    kprm, kx, kh, kc = jax.random.split(key, 4)
    params = init_params(kprm)
    kparams = prepare_params(params)          # one-time packing / padding

    # x follows the torch convention (batch, seq, n_vertex, in_channels)
    x = jax.random.normal(kx, (BATCH, SEQLEN, N_VERTEX, IN_CHANNELS), dtype=jnp.float32)
    # deterministic replacement for the torch.randn initial hidden/cell states
    h_init = jax.random.normal(kh, (N_VERTEX, LSTM_LAYERS, BATCH, LSTM_HIDDEN), dtype=jnp.float32)
    c_init = jax.random.normal(kc, (N_VERTEX, LSTM_LAYERS, BATCH, LSTM_HIDDEN), dtype=jnp.float32)

    fwd = jax.jit(airspace_forward)
    out, hn, cn = fwd(kparams, x, h_init, c_init)
    out = jax.block_until_ready(out)

    assert out.shape == (BATCH, 1, N_VERTEX, 1), out.shape
    assert hn.shape == (N_VERTEX, LSTM_LAYERS, BATCH, LSTM_HIDDEN)
    assert cn.shape == (N_VERTEX, LSTM_LAYERS, BATCH, LSTM_HIDDEN)

    ref_out, ref_hn, ref_cn = jax.jit(reference_forward)(params, x, h_init, c_init)
    np.testing.assert_allclose(np.asarray(out), np.asarray(ref_out), rtol=2e-2, atol=2e-2)
    np.testing.assert_allclose(np.asarray(hn), np.asarray(ref_hn), rtol=2e-2, atol=2e-2)
    np.testing.assert_allclose(np.asarray(cn), np.asarray(ref_cn), rtol=2e-2, atol=2e-2)

    print("KERNEL_OK")
</pallas_src>

<mosaic_0001>
module attributes {stable_mosaic.version = 11 : i64} {
  func.func @_lstm_node_kernel(%arg0: i32, %arg1: memref<1x16x5xf32, #tpu.memory_space<vmem>>, %arg2: memref<1x5x512xf32, #tpu.memory_space<vmem>>, %arg3: memref<1x128x512xf32, #tpu.memory_space<vmem>>, %arg4: memref<1x1x512xf32, #tpu.memory_space<vmem>>, %arg5: memref<1x256x512xf32, #tpu.memory_space<vmem>>, %arg6: memref<1x1x512xf32, #tpu.memory_space<vmem>>, %arg7: memref<1x2x2x128xf32, #tpu.memory_space<vmem>>, %arg8: memref<1x2x2x128xf32, #tpu.memory_space<vmem>>, %arg9: memref<8x128xf32, #tpu.memory_space<vmem>>, %arg10: memref<128x1xf32, #tpu.memory_space<vmem>>, %arg11: memref<1x1xf32, #tpu.memory_space<vmem>>, %arg12: memref<1x2x1xf32, #tpu.memory_space<vmem>>, %arg13: memref<1x2x2x100xf32, #tpu.memory_space<vmem>>, %arg14: memref<1x2x2x100xf32, #tpu.memory_space<vmem>>) attributes {dimension_semantics = [#tpu.dimension_semantics<parallel>], iteration_bounds = array<i64: 6>, scalar_prefetch = 0 : i64, scratch_operands = 0 : i64, tpu.core_type = #tpu.core_type<tc>, window_params = [{transform_indices = @transform_0, window_bounds = array<i64: 1, 16, 5>}, {transform_indices = @transform_1, window_bounds = array<i64: 1, 5, 512>}, {transform_indices = @transform_2, window_bounds = array<i64: 1, 128, 512>}, {transform_indices = @transform_3, window_bounds = array<i64: 1, 1, 512>}, {transform_indices = @transform_4, window_bounds = array<i64: 1, 256, 512>}, {transform_indices = @transform_5, window_bounds = array<i64: 1, 1, 512>}, {transform_indices = @transform_6, window_bounds = array<i64: 1, 2, 2, 128>}, {transform_indices = @transform_7, window_bounds = array<i64: 1, 2, 2, 128>}, {pipeline_mode = #tpu.pipeline_mode<synchronous>, transform_indices = @transform_8, window_bounds = array<i64: 8, 128>}, {pipeline_mode = #tpu.pipeline_mode<synchronous>, transform_indices = @transform_9, window_bounds = array<i64: 128, 1>}, {pipeline_mode = #tpu.pipeline_mode<synchronous>, transform_indices = @transform_10, window_bounds = array<i64: 1, 1>}, {transform_indices = @transform_11, window_bounds = array<i64: 1, 2, 1>}, {transform_indices = @transform_12, window_bounds = array<i64: 1, 2, 2, 100>}, {transform_indices = @transform_13, window_bounds = array<i64: 1, 2, 2, 100>}]} {
    %c0 = arith.constant 0 : index
    %c0_0 = arith.constant 0 : index
    %c0_1 = arith.constant 0 : index
    %0 = vector.load %arg2[%c0, %c0_0, %c0_1] : memref<1x5x512xf32, #tpu.memory_space<vmem>>, vector<1x5x512xf32>
    %1 = vector.shape_cast %0 : vector<1x5x512xf32> to vector<5x512xf32>
    %c0_2 = arith.constant 0 : index
    %c0_3 = arith.constant 0 : index
    %c0_4 = arith.constant 0 : index
    %2 = vector.load %arg3[%c0_2, %c0_3, %c0_4] : memref<1x128x512xf32, #tpu.memory_space<vmem>>, vector<1x128x512xf32>
    %3 = vector.shape_cast %2 : vector<1x128x512xf32> to vector<128x512xf32>
    %c0_5 = arith.constant 0 : index
    %c0_6 = arith.constant 0 : index
    %c0_7 = arith.constant 0 : index
    %4 = vector.load %arg5[%c0_5, %c0_6, %c0_7] : memref<1x256x512xf32, #tpu.memory_space<vmem>>, vector<1x256x512xf32>
    %5 = vector.shape_cast %4 : vector<1x256x512xf32> to vector<256x512xf32>
    %c0_8 = arith.constant 0 : index
    %c0_9 = arith.constant 0 : index
    %c0_10 = arith.constant 0 : index
    %6 = vector.load %arg6[%c0_8, %c0_9, %c0_10] : memref<1x1x512xf32, #tpu.memory_space<vmem>>, vector<1x1x512xf32>
    %7 = vector.shape_cast %6 : vector<1x1x512xf32> to vector<1x512xf32>
    %c0_11 = arith.constant 0 : index
    %c0_12 = arith.constant 0 : index
    %8 = vector.load %arg10[%c0_11, %c0_12] : memref<128x1xf32, #tpu.memory_space<vmem>>, vector<128x1xf32>
    %c0_13 = arith.constant 0 : index
    %c0_14 = arith.constant 0 : index
    %c0_15 = arith.constant 0 : index
    %9 = vector.load %arg1[%c0_13, %c0_14, %c0_15] : memref<1x16x5xf32, #tpu.memory_space<vmem>>, vector<1x16x5xf32>
    %10 = vector.shape_cast %9 : vector<1x16x5xf32> to vector<16x5xf32>
    %cst = arith.constant dense<0.000000e+00> : vector<16x512xf32>
    %11 = tpu.matmul %10, %1, %cst {dimension_numbers = #tpu.dot_dimension_numbers<[1], [0], [0], [1], [0, 0, 1, 1], [], []>} : vector<16x5xf32>, vector<5x512xf32>, vector<16x512xf32> -> vector<16x512xf32>
    %c0_16 = arith.constant 0 : index
    %c0_17 = arith.constant 0 : index
    %c0_18 = arith.constant 0 : index
    %12 = vector.load %arg4[%c0_16, %c0_17, %c0_18] : memref<1x1x512xf32, #tpu.memory_space<vmem>>, vector<1x1x512xf32>
    %13 = vector.shape_cast %12 : vector<1x1x512xf32> to vector<1x512xf32>
    %14 = vector.broadcast %13 : vector<1x512xf32> to vector<16x512xf32>
    %15 = arith.addf %11, %14 : vector<16x512xf32>
    %c0_19 = arith.constant 0 : index
    %c0_20 = arith.constant 0 : index
    %c0_21 = arith.constant 0 : index
    %c0_22 = arith.constant 0 : index
    %16 = vector.load %arg7[%c0_19, %c0_20, %c0_21, %c0_22] : memref<1x2x2x128xf32, #tpu.memory_space<vmem>>, vector<1x1x2x128xf32>
    %17 = vector.shape_cast %16 : vector<1x1x2x128xf32> to vector<2x128xf32>
    %c0_23 = arith.constant 0 : index
    %c0_24 = arith.constant 0 : index
    %c0_25 = arith.constant 0 : index
    %c0_26 = arith.constant 0 : index
    %18 = vector.load %arg8[%c0_23, %c0_24, %c0_25, %c0_26] : memref<1x2x2x128xf32, #tpu.memory_space<vmem>>, vector<1x1x2x128xf32>
    %19 = vector.shape_cast %18 : vector<1x1x2x128xf32> to vector<2x128xf32>
    %c0_27 = arith.constant 0 : index
    %c1 = arith.constant 1 : index
    %c0_28 = arith.constant 0 : index
    %c0_29 = arith.constant 0 : index
    %20 = vector.load %arg7[%c0_27, %c1, %c0_28, %c0_29] : memref<1x2x2x128xf32, #tpu.memory_space<vmem>>, vector<1x1x2x128xf32>
    %21 = vector.shape_cast %20 : vector<1x1x2x128xf32> to vector<2x128xf32>
    %c0_30 = arith.constant 0 : index
    %c1_31 = arith.constant 1 : index
    %c0_32 = arith.constant 0 : index
    %c0_33 = arith.constant 0 : index
    %22 = vector.load %arg8[%c0_30, %c1_31, %c0_32, %c0_33] : memref<1x2x2x128xf32, #tpu.memory_space<vmem>>, vector<1x1x2x128xf32>
    %23 = vector.shape_cast %22 : vector<1x1x2x128xf32> to vector<2x128xf32>
    %cst_34 = arith.constant 0.000000e+00 : f32
    %24 = vector.broadcast %cst_34 : f32 to vector<2x128xf32>
    %25 = vector.extract_strided_slice %15 {offsets = [0, 0], sizes = [2, 512], strides = [1, 1]} : vector<16x512xf32> to vector<2x512xf32>
    %cst_35 = arith.constant dense<0.000000e+00> : vector<2x512xf32>
    %26 = tpu.matmul %17, %3, %cst_35 {dimension_numbers = #tpu.dot_dimension_numbers<[1], [0], [0], [1], [0, 0, 1, 1], [], []>} : vector<2x128xf32>, vector<128x512xf32>, vector<2x512xf32> -> vector<2x512xf32>
    %27 = arith.addf %25, %26 : vector<2x512xf32>
    %28 = vector.extract_strided_slice %27 {offsets = [0, 0], sizes = [2, 128], strides = [1, 1]} : vector<2x512xf32> to vector<2x128xf32>
    %29 = arith.negf %28 : vector<2x128xf32>
    %30 = math.exp %29 : vector<2x128xf32>
    %cst_36 = arith.constant 1.000000e+00 : f32
    %31 = vector.broadcast %cst_36 : f32 to vector<2x128xf32>
    %32 = arith.addf %31, %30 : vector<2x128xf32>
    %33 = arith.divf %31, %32 : vector<2x128xf32>
    %34 = vector.extract_strided_slice %27 {offsets = [0, 128], sizes = [2, 128], strides = [1, 1]} : vector<2x512xf32> to vector<2x128xf32>
    %35 = arith.negf %34 : vector<2x128xf32>
    %36 = math.exp %35 : vector<2x128xf32>
    %cst_37 = arith.constant 1.000000e+00 : f32
    %37 = vector.broadcast %cst_37 : f32 to vector<2x128xf32>
    %38 = arith.addf %37, %36 : vector<2x128xf32>
    %39 = arith.divf %37, %38 : vector<2x128xf32>
    %40 = vector.extract_strided_slice %27 {offsets = [0, 256], sizes = [2, 128], strides = [1, 1]} : vector<2x512xf32> to vector<2x128xf32>
    %41 = math.tanh %40 : vector<2x128xf32>
    %42 = vector.extract_strided_slice %27 {offsets = [0, 384], sizes = [2, 128], strides = [1, 1]} : vector<2x512xf32> to vector<2x128xf32>
    %43 = arith.negf %42 : vector<2x128xf32>
    %44 = math.exp %43 : vector<2x128xf32>
    %cst_38 = arith.constant 1.000000e+00 : f32
    %45 = vector.broadcast %cst_38 : f32 to vector<2x128xf32>
    %46 = arith.addf %45, %44 : vector<2x128xf32>
    %47 = arith.divf %45, %46 : vector<2x128xf32>
    %48 = arith.mulf %39, %19 : vector<2x128xf32>
    %49 = arith.mulf %33, %41 : vector<2x128xf32>
    %50 = arith.addf %48, %49 : vector<2x128xf32>
    %51 = math.tanh %50 : vector<2x128xf32>
    %52 = arith.mulf %47, %51 : vector<2x128xf32>
    %53 = tpu.concatenate %52, %21 in 1 : vector<2x128xf32>, vector<2x128xf32> -> vector<2x256xf32>
    %cst_39 = arith.constant dense<0.000000e+00> : vector<2x512xf32>
    %54 = tpu.matmul %53, %5, %cst_39 {dimension_numbers = #tpu.dot_dimension_numbers<[1], [0], [0], [1], [0, 0, 1, 1], [], []>} : vector<2x256xf32>, vector<256x512xf32>, vector<2x512xf32> -> vector<2x512xf32>
    %55 = vector.broadcast %7 : vector<1x512xf32> to vector<2x512xf32>
    %56 = arith.addf %54, %55 : vector<2x512xf32>
    %57 = vector.extract_strided_slice %56 {offsets = [0, 0], sizes = [2, 128], strides = [1, 1]} : vector<2x512xf32> to vector<2x128xf32>
    %58 = arith.negf %57 : vector<2x128xf32>
    %59 = math.exp %58 : vector<2x128xf32>
    %cst_40 = arith.constant 1.000000e+00 : f32
    %60 = vector.broadcast %cst_40 : f32 to vector<2x128xf32>
    %61 = arith.addf %60, %59 : vector<2x128xf32>
    %62 = arith.divf %60, %61 : vector<2x128xf32>
    %63 = vector.extract_strided_slice %56 {offsets = [0, 128], sizes = [2, 128], strides = [1, 1]} : vector<2x512xf32> to vector<2x128xf32>
    %64 = arith.negf %63 : vector<2x128xf32>
    %65 = math.exp %64 : vector<2x128xf32>
    %cst_41 = arith.constant 1.000000e+00 : f32
    %66 = vector.broadcast %cst_41 : f32 to vector<2x128xf32>
    %67 = arith.addf %66, %65 : vector<2x128xf32>
    %68 = arith.divf %66, %67 : vector<2x128xf32>
    %69 = vector.extract_strided_slice %56 {offsets = [0, 256], sizes = [2, 128], strides = [1, 1]} : vector<2x512xf32> to vector<2x128xf32>
    %70 = math.tanh %69 : vector<2x128xf32>
    %71 = vector.extract_strided_slice %56 {offsets = [0, 384], sizes = [2, 128], strides = [1, 1]} : vector<2x512xf32> to vector<2x128xf32>
    %72 = arith.negf %71 : vector<2x128xf32>
    %73 = math.exp %72 : vector<2x128xf32>
    %cst_42 = arith.constant 1.000000e+00 : f32
    %74 = vector.broadcast %cst_42 : f32 to vector<2x128xf32>
    %75 = arith.addf %74, %73 : vector<2x128xf32>
    %76 = arith.divf %74, %75 : vector<2x128xf32>
    %77 = arith.mulf %68, %23 : vector<2x128xf32>
    %78 = arith.mulf %62, %70 : vector<2x128xf32>
    %79 = arith.addf %77, %78 : vector<2x128xf32>
    %80 = math.tanh %79 : vector<2x128xf32>
    %81 = arith.mulf %76, %80 : vector<2x128xf32>
    %c0_43 = arith.constant 0 : index
    %c0_44 = arith.constant 0 : index
    %82 = vector.load %arg9[%c0_43, %c0_44] : memref<8x128xf32, #tpu.memory_space<vmem>>, vector<1x128xf32>
    %83 = vector.shape_cast %82 : vector<1x128xf32> to vector<128xf32>
    %84 = vector.shape_cast %83 : vector<128xf32> to vector<1x128xf32>
    %85 = vector.broadcast %84 : vector<1x128xf32> to vector<2x128xf32>
    %86 = arith.mulf %85, %81 : vector<2x128xf32>
    %87 = arith.addf %24, %86 : vector<2x128xf32>
    %88 = vector.extract_strided_slice %15 {offsets = [2, 0], sizes = [2, 512], strides = [1, 1]} : vector<16x512xf32> to vector<2x512xf32>
    %cst_45 = arith.constant dense<0.000000e+00> : vector<2x512xf32>
    %89 = tpu.matmul %52, %3, %cst_45 {dimension_numbers = #tpu.dot_dimension_numbers<[1], [0], [0], [1], [0, 0, 1, 1], [], []>} : vector<2x128xf32>, vector<128x512xf32>, vector<2x512xf32> -> vector<2x512xf32>
    %90 = arith.addf %88, %89 : vector<2x512xf32>
    %91 = vector.extract_strided_slice %90 {offsets = [0, 0], sizes = [2, 128], strides = [1, 1]} : vector<2x512xf32> to vector<2x128xf32>
    %92 = arith.negf %91 : vector<2x128xf32>
    %93 = math.exp %92 : vector<2x128xf32>
    %cst_46 = arith.constant 1.000000e+00 : f32
    %94 = vector.broadcast %cst_46 : f32 to vector<2x128xf32>
    %95 = arith.addf %94, %93 : vector<2x128xf32>
    %96 = arith.divf %94, %95 : vector<2x128xf32>
    %97 = vector.extract_strided_slice %90 {offsets = [0, 128], sizes = [2, 128], strides = [1, 1]} : vector<2x512xf32> to vector<2x128xf32>
    %98 = arith.negf %97 : vector<2x128xf32>
    %99 = math.exp %98 : vector<2x128xf32>
    %cst_47 = arith.constant 1.000000e+00 : f32
    %100 = vector.broadcast %cst_47 : f32 to vector<2x128xf32>
    %101 = arith.addf %100, %99 : vector<2x128xf32>
    %102 = arith.divf %100, %101 : vector<2x128xf32>
    %103 = vector.extract_strided_slice %90 {offsets = [0, 256], sizes = [2, 128], strides = [1, 1]} : vector<2x512xf32> to vector<2x128xf32>
    %104 = math.tanh %103 : vector<2x128xf32>
    %105 = vector.extract_strided_slice %90 {offsets = [0, 384], sizes = [2, 128], strides = [1, 1]} : vector<2x512xf32> to vector<2x128xf32>
    %106 = arith.negf %105 : vector<2x128xf32>
    %107 = math.exp %106 : vector<2x128xf32>
    %cst_48 = arith.constant 1.000000e+00 : f32
    %108 = vector.broadcast %cst_48 : f32 to vector<2x128xf32>
    %109 = arith.addf %108, %107 : vector<2x128xf32>
    %110 = arith.divf %108, %109 : vector<2x128xf32>
    %111 = arith.mulf %102, %50 : vector<2x128xf32>
    %112 = arith.mulf %96, %104 : vector<2x128xf32>
    %113 = arith.addf %111, %112 : vector<2x128xf32>
    %114 = math.tanh %113 : vector<2x128xf32>
    %115 = arith.mulf %110, %114 : vector<2x128xf32>
    %116 = tpu.concatenate %115, %81 in 1 : vector<2x128xf32>, vector<2x128xf32> -> vector<2x256xf32>
    %cst_49 = arith.constant dense<0.000000e+00> : vector<2x512xf32>
    %117 = tpu.matmul %116, %5, %cst_49 {dimension_numbers = #tpu.dot_dimension_numbers<[1], [0], [0], [1], [0, 0, 1, 1], [], []>} : vector<2x256xf32>, vector<256x512xf32>, vector<2x512xf32> -> vector<2x512xf32>
    %118 = vector.broadcast %7 : vector<1x512xf32> to vector<2x512xf32>
    %119 = arith.addf %117, %118 : vector<2x512xf32>
    %120 = vector.extract_strided_slice %119 {offsets = [0, 0], sizes = [2, 128], strides = [1, 1]} : vector<2x512xf32> to vector<2x128xf32>
    %121 = arith.negf %120 : vector<2x128xf32>
    %122 = math.exp %121 : vector<2x128xf32>
    %cst_50 = arith.constant 1.000000e+00 : f32
    %123 = vector.broadcast %cst_50 : f32 to vector<2x128xf32>
    %124 = arith.addf %123, %122 : vector<2x128xf32>
    %125 = arith.divf %123, %124 : vector<2x128xf32>
    %126 = vector.extract_strided_slice %119 {offsets = [0, 128], sizes = [2, 128], strides = [1, 1]} : vector<2x512xf32> to vector<2x128xf32>
    %127 = arith.negf %126 : vector<2x128xf32>
    %128 = math.exp %127 : vector<2x128xf32>
    %cst_51 = arith.constant 1.000000e+00 : f32
    %129 = vector.broadcast %cst_51 : f32 to vector<2x128xf32>
    %130 = arith.addf %129, %128 : vector<2x128xf32>
    %131 = arith.divf %129, %130 : vector<2x128xf32>
    %132 = vector.extract_strided_slice %119 {offsets = [0, 256], sizes = [2, 128], strides = [1, 1]} : vector<2x512xf32> to vector<2x128xf32>
    %133 = math.tanh %132 : vector<2x128xf32>
    %134 = vector.extract_strided_slice %119 {offsets = [0, 384], sizes = [2, 128], strides = [1, 1]} : vector<2x512xf32> to vector<2x128xf32>
    %135 = arith.negf %134 : vector<2x128xf32>
    %136 = math.exp %135 : vector<2x128xf32>
    %cst_52 = arith.constant 1.000000e+00 : f32
    %137 = vector.broadcast %cst_52 : f32 to vector<2x128xf32>
    %138 = arith.addf %137, %136 : vector<2x128xf32>
    %139 = arith.divf %137, %138 : vector<2x128xf32>
    %140 = arith.mulf %131, %79 : vector<2x128xf32>
    %141 = arith.mulf %125, %133 : vector<2x128xf32>
    %142 = arith.addf %140, %141 : vector<2x128xf32>
    %143 = math.tanh %142 : vector<2x128xf32>
    %144 = arith.mulf %139, %143 : vector<2x128xf32>
    %c1_53 = arith.constant 1 : index
    %c0_54 = arith.constant 0 : index
    %145 = vector.load %arg9[%c1_53, %c0_54] : memref<8x128xf32, #tpu.memory_space<vmem>>, vector<1x128xf32>
    %146 = vector.shape_cast %145 : vector<1x128xf32> to vector<128xf32>
    %147 = vector.shape_cast %146 : vector<128xf32> to vector<1x128xf32>
    %148 = vector.broadcast %147 : vector<1x128xf32> to vector<2x128xf32>
    %149 = arith.mulf %148, %144 : vector<2x128xf32>
    %150 = arith.addf %87, %149 : vector<2x128xf32>
    %151 = vector.extract_strided_slice %15 {offsets = [4, 0], sizes = [2, 512], strides = [1, 1]} : vector<16x512xf32> to vector<2x512xf32>
    %cst_55 = arith.constant dense<0.000000e+00> : vector<2x512xf32>
    %152 = tpu.matmul %115, %3, %cst_55 {dimension_numbers = #tpu.dot_dimension_numbers<[1], [0], [0], [1], [0, 0, 1, 1], [], []>} : vector<2x128xf32>, vector<128x512xf32>, vector<2x512xf32> -> vector<2x512xf32>
    %153 = arith.addf %151, %152 : vector<2x512xf32>
    %154 = vector.extract_strided_slice %153 {offsets = [0, 0], sizes = [2, 128], strides = [1, 1]} : vector<2x512xf32> to vector<2x128xf32>
    %155 = arith.negf %154 : vector<2x128xf32>
    %156 = math.exp %155 : vector<2x128xf32>
    %cst_56 = arith.constant 1.000000e+00 : f32
    %157 = vector.broadcast %cst_56 : f32 to vector<2x128xf32>
    %158 = arith.addf %157, %156 : vector<2x128xf32>
    %159 = arith.divf %157, %158 : vector<2x128xf32>
    %160 = vector.extract_strided_slice %153 {offsets = [0, 128], sizes = [2, 128], strides = [1, 1]} : vector<2x512xf32> to vector<2x128xf32>
    %161 = arith.negf %160 : vector<2x128xf32>
    %162 = math.exp %161 : vector<2x128xf32>
    %cst_57 = arith.constant 1.000000e+00 : f32
    %163 = vector.broadcast %cst_57 : f32 to vector<2x128xf32>
    %164 = arith.addf %163, %162 : vector<2x128xf32>
    %165 = arith.divf %163, %164 : vector<2x128xf32>
    %166 = vector.extract_strided_slice %153 {offsets = [0, 256], sizes = [2, 128], strides = [1, 1]} : vector<2x512xf32> to vector<2x128xf32>
    %167 = math.tanh %166 : vector<2x128xf32>
    %168 = vector.extract_strided_slice %153 {offsets = [0, 384], sizes = [2, 128], strides = [1, 1]} : vector<2x512xf32> to vector<2x128xf32>
    %169 = arith.negf %168 : vector<2x128xf32>
    %170 = math.exp %169 : vector<2x128xf32>
    %cst_58 = arith.constant 1.000000e+00 : f32
    %171 = vector.broadcast %cst_58 : f32 to vector<2x128xf32>
    %172 = arith.addf %171, %170 : vector<2x128xf32>
    %173 = arith.divf %171, %172 : vector<2x128xf32>
    %174 = arith.mulf %165, %113 : vector<2x128xf32>
    %175 = arith.mulf %159, %167 : vector<2x128xf32>
    %176 = arith.addf %174, %175 : vector<2x128xf32>
    %177 = math.tanh %176 : vector<2x128xf32>
    %178 = arith.mulf %173, %177 : vector<2x128xf32>
    %179 = tpu.concatenate %178, %144 in 1 : vector<2x128xf32>, vector<2x128xf32> -> vector<2x256xf32>
    %cst_59 = arith.constant dense<0.000000e+00> : vector<2x512xf32>
    %180 = tpu.matmul %179, %5, %cst_59 {dimension_numbers = #tpu.dot_dimension_numbers<[1], [0], [0], [1], [0, 0, 1, 1], [], []>} : vector<2x256xf32>, vector<256x512xf32>, vector<2x512xf32> -> vector<2x512xf32>
    %181 = vector.broadcast %7 : vector<1x512xf32> to vector<2x512xf32>
    %182 = arith.addf %180, %181 : vector<2x512xf32>
    %183 = vector.extract_strided_slice %182 {offsets = [0, 0], sizes = [2, 128], strides = [1, 1]} : vector<2x512xf32> to vector<2x128xf32>
    %184 = arith.negf %183 : vector<2x128xf32>
    %185 = math.exp %184 : vector<2x128xf32>
    %cst_60 = arith.constant 1.000000e+00 : f32
    %186 = vector.broadcast %cst_60 : f32 to vector<2x128xf32>
    %187 = arith.addf %186, %185 : vector<2x128xf32>
    %188 = arith.divf %186, %187 : vector<2x128xf32>
    %189 = vector.extract_strided_slice %182 {offsets = [0, 128], sizes = [2, 128], strides = [1, 1]} : vector<2x512xf32> to vector<2x128xf32>
    %190 = arith.negf %189 : vector<2x128xf32>
    %191 = math.exp %190 : vector<2x128xf32>
    %cst_61 = arith.constant 1.000000e+00 : f32
    %192 = vector.broadcast %cst_61 : f32 to vector<2x128xf32>
    %193 = arith.addf %192, %191 : vector<2x128xf32>
    %194 = arith.divf %192, %193 : vector<2x128xf32>
    %195 = vector.extract_strided_slice %182 {offsets = [0, 256], sizes = [2, 128], strides = [1, 1]} : vector<2x512xf32> to vector<2x128xf32>
    %196 = math.tanh %195 : vector<2x128xf32>
    %197 = vector.extract_strided_slice %182 {offsets = [0, 384], sizes = [2, 128], strides = [1, 1]} : vector<2x512xf32> to vector<2x128xf32>
    %198 = arith.negf %197 : vector<2x128xf32>
    %199 = math.exp %198 : vector<2x128xf32>
    %cst_62 = arith.constant 1.000000e+00 : f32
    %200 = vector.broadcast %cst_62 : f32 to vector<2x128xf32>
    %201 = arith.addf %200, %199 : vector<2x128xf32>
    %202 = arith.divf %200, %201 : vector<2x128xf32>
    %203 = arith.mulf %194, %142 : vector<2x128xf32>
    %204 = arith.mulf %188, %196 : vector<2x128xf32>
    %205 = arith.addf %203, %204 : vector<2x128xf32>
    %206 = math.tanh %205 : vector<2x128xf32>
    %207 = arith.mulf %202, %206 : vector<2x128xf32>
    %c2 = arith.constant 2 : index
    %c0_63 = arith.constant 0 : index
    %208 = vector.load %arg9[%c2, %c0_63] : memref<8x128xf32, #tpu.memory_space<vmem>>, vector<1x128xf32>
    %209 = vector.shape_cast %208 : vector<1x128xf32> to vector<128xf32>
    %210 = vector.shape_cast %209 : vector<128xf32> to vector<1x128xf32>
    %211 = vector.broadcast %210 : vector<1x128xf32> to vector<2x128xf32>
    %212 = arith.mulf %211, %207 : vector<2x128xf32>
    %213 = arith.addf %150, %212 : vector<2x128xf32>
    %214 = vector.extract_strided_slice %15 {offsets = [6, 0], sizes = [2, 512], strides = [1, 1]} : vector<16x512xf32> to vector<2x512xf32>
    %cst_64 = arith.constant dense<0.000000e+00> : vector<2x512xf32>
    %215 = tpu.matmul %178, %3, %cst_64 {dimension_numbers = #tpu.dot_dimension_numbers<[1], [0], [0], [1], [0, 0, 1, 1], [], []>} : vector<2x128xf32>, vector<128x512xf32>, vector<2x512xf32> -> vector<2x512xf32>
    %216 = arith.addf %214, %215 : vector<2x512xf32>
    %217 = vector.extract_strided_slice %216 {offsets = [0, 0], sizes = [2, 128], strides = [1, 1]} : vector<2x512xf32> to vector<2x128xf32>
    %218 = arith.negf %217 : vector<2x128xf32>
    %219 = math.exp %218 : vector<2x128xf32>
    %cst_65 = arith.constant 1.000000e+00 : f32
    %220 = vector.broadcast %cst_65 : f32 to vector<2x128xf32>
    %221 = arith.addf %220, %219 : vector<2x128xf32>
    %222 = arith.divf %220, %221 : vector<2x128xf32>
    %223 = vector.extract_strided_slice %216 {offsets = [0, 128], sizes = [2, 128], strides = [1, 1]} : vector<2x512xf32> to vector<2x128xf32>
    %224 = arith.negf %223 : vector<2x128xf32>
    %225 = math.exp %224 : vector<2x128xf32>
    %cst_66 = arith.constant 1.000000e+00 : f32
    %226 = vector.broadcast %cst_66 : f32 to vector<2x128xf32>
    %227 = arith.addf %226, %225 : vector<2x128xf32>
    %228 = arith.divf %226, %227 : vector<2x128xf32>
    %229 = vector.extract_strided_slice %216 {offsets = [0, 256], sizes = [2, 128], strides = [1, 1]} : vector<2x512xf32> to vector<2x128xf32>
    %230 = math.tanh %229 : vector<2x128xf32>
    %231 = vector.extract_strided_slice %216 {offsets = [0, 384], sizes = [2, 128], strides = [1, 1]} : vector<2x512xf32> to vector<2x128xf32>
    %232 = arith.negf %231 : vector<2x128xf32>
    %233 = math.exp %232 : vector<2x128xf32>
    %cst_67 = arith.constant 1.000000e+00 : f32
    %234 = vector.broadcast %cst_67 : f32 to vector<2x128xf32>
    %235 = arith.addf %234, %233 : vector<2x128xf32>
    %236 = arith.divf %234, %235 : vector<2x128xf32>
    %237 = arith.mulf %228, %176 : vector<2x128xf32>
    %238 = arith.mulf %222, %230 : vector<2x128xf32>
    %239 = arith.addf %237, %238 : vector<2x128xf32>
    %240 = math.tanh %239 : vector<2x128xf32>
    %241 = arith.mulf %236, %240 : vector<2x128xf32>
    %242 = tpu.concatenate %241, %207 in 1 : vector<2x128xf32>, vector<2x128xf32> -> vector<2x256xf32>
    %cst_68 = arith.constant dense<0.000000e+00> : vector<2x512xf32>
    %243 = tpu.matmul %242, %5, %cst_68 {dimension_numbers = #tpu.dot_dimension_numbers<[1], [0], [0], [1], [0, 0, 1, 1], [], []>} : vector<2x256xf32>, vector<256x512xf32>, vector<2x512xf32> -> vector<2x512xf32>
    %244 = vector.broadcast %7 : vector<1x512xf32> to vector<2x512xf32>
    %245 = arith.addf %243, %244 : vector<2x512xf32>
    %246 = vector.extract_strided_slice %245 {offsets = [0, 0], sizes = [2, 128], strides = [1, 1]} : vector<2x512xf32> to vector<2x128xf32>
    %247 = arith.negf %246 : vector<2x128xf32>
    %248 = math.exp %247 : vector<2x128xf32>
    %cst_69 = arith.constant 1.000000e+00 : f32
    %249 = vector.broadcast %cst_69 : f32 to vector<2x128xf32>
    %250 = arith.addf %249, %248 : vector<2x128xf32>
    %251 = arith.divf %249, %250 : vector<2x128xf32>
    %252 = vector.extract_strided_slice %245 {offsets = [0, 128], sizes = [2, 128], strides = [1, 1]} : vector<2x512xf32> to vector<2x128xf32>
    %253 = arith.negf %252 : vector<2x128xf32>
    %254 = math.exp %253 : vector<2x128xf32>
    %cst_70 = arith.constant 1.000000e+00 : f32
    %255 = vector.broadcast %cst_70 : f32 to vector<2x128xf32>
    %256 = arith.addf %255, %254 : vector<2x128xf32>
    %257 = arith.divf %255, %256 : vector<2x128xf32>
    %258 = vector.extract_strided_slice %245 {offsets = [0, 256], sizes = [2, 128], strides = [1, 1]} : vector<2x512xf32> to vector<2x128xf32>
    %259 = math.tanh %258 : vector<2x128xf32>
    %260 = vector.extract_strided_slice %245 {offsets = [0, 384], sizes = [2, 128], strides = [1, 1]} : vector<2x512xf32> to vector<2x128xf32>
    %261 = arith.negf %260 : vector<2x128xf32>
    %262 = math.exp %261 : vector<2x128xf32>
    %cst_71 = arith.constant 1.000000e+00 : f32
    %263 = vector.broadcast %cst_71 : f32 to vector<2x128xf32>
    %264 = arith.addf %263, %262 : vector<2x128xf32>
    %265 = arith.divf %263, %264 : vector<2x128xf32>
    %266 = arith.mulf %257, %205 : vector<2x128xf32>
    %267 = arith.mulf %251, %259 : vector<2x128xf32>
    %268 = arith.addf %266, %267 : vector<2x128xf32>
    %269 = math.tanh %268 : vector<2x128xf32>
    %270 = arith.mulf %265, %269 : vector<2x128xf32>
    %c3 = arith.constant 3 : index
    %c0_72 = arith.constant 0 : index
    %271 = vector.load %arg9[%c3, %c0_72] : memref<8x128xf32, #tpu.memory_space<vmem>>, vector<1x128xf32>
    %272 = vector.shape_cast %271 : vector<1x128xf32> to vector<128xf32>
    %273 = vector.shape_cast %272 : vector<128xf32> to vector<1x128xf32>
    %274 = vector.broadcast %273 : vector<1x128xf32> to vector<2x128xf32>
    %275 = arith.mulf %274, %270 : vector<2x128xf32>
    %276 = arith.addf %213, %275 : vector<2x128xf32>
    %277 = vector.extract_strided_slice %15 {offsets = [8, 0], sizes = [2, 512], strides = [1, 1]} : vector<16x512xf32> to vector<2x512xf32>
    %cst_73 = arith.constant dense<0.000000e+00> : vector<2x512xf32>
    %278 = tpu.matmul %241, %3, %cst_73 {dimension_numbers = #tpu.dot_dimension_numbers<[1], [0], [0], [1], [0, 0, 1, 1], [], []>} : vector<2x128xf32>, vector<128x512xf32>, vector<2x512xf32> -> vector<2x512xf32>
    %279 = arith.addf %277, %278 : vector<2x512xf32>
    %280 = vector.extract_strided_slice %279 {offsets = [0, 0], sizes = [2, 128], strides = [1, 1]} : vector<2x512xf32> to vector<2x128xf32>
    %281 = arith.negf %280 : vector<2x128xf32>
    %282 = math.exp %281 : vector<2x128xf32>
    %cst_74 = arith.constant 1.000000e+00 : f32
    %283 = vector.broadcast %cst_74 : f32 to vector<2x128xf32>
    %284 = arith.addf %283, %282 : vector<2x128xf32>
    %285 = arith.divf %283, %284 : vector<2x128xf32>
    %286 = vector.extract_strided_slice %279 {offsets = [0, 128], sizes = [2, 128], strides = [1, 1]} : vector<2x512xf32> to vector<2x128xf32>
    %287 = arith.negf %286 : vector<2x128xf32>
    %288 = math.exp %287 : vector<2x128xf32>
    %cst_75 = arith.constant 1.000000e+00 : f32
    %289 = vector.broadcast %cst_75 : f32 to vector<2x128xf32>
    %290 = arith.addf %289, %288 : vector<2x128xf32>
    %291 = arith.divf %289, %290 : vector<2x128xf32>
    %292 = vector.extract_strided_slice %279 {offsets = [0, 256], sizes = [2, 128], strides = [1, 1]} : vector<2x512xf32> to vector<2x128xf32>
    %293 = math.tanh %292 : vector<2x128xf32>
    %294 = vector.extract_strided_slice %279 {offsets = [0, 384], sizes = [2, 128], strides = [1, 1]} : vector<2x512xf32> to vector<2x128xf32>
    %295 = arith.negf %294 : vector<2x128xf32>
    %296 = math.exp %295 : vector<2x128xf32>
    %cst_76 = arith.constant 1.000000e+00 : f32
    %297 = vector.broadcast %cst_76 : f32 to vector<2x128xf32>
    %298 = arith.addf %297, %296 : vector<2x128xf32>
    %299 = arith.divf %297, %298 : vector<2x128xf32>
    %300 = arith.mulf %291, %239 : vector<2x128xf32>
    %301 = arith.mulf %285, %293 : vector<2x128xf32>
    %302 = arith.addf %300, %301 : vector<2x128xf32>
    %303 = math.tanh %302 : vector<2x128xf32>
    %304 = arith.mulf %299, %303 : vector<2x128xf32>
    %305 = tpu.concatenate %304, %270 in 1 : vector<2x128xf32>, vector<2x128xf32> -> vector<2x256xf32>
    %cst_77 = arith.constant dense<0.000000e+00> : vector<2x512xf32>
    %306 = tpu.matmul %305, %5, %cst_77 {dimension_numbers = #tpu.dot_dimension_numbers<[1], [0], [0], [1], [0, 0, 1, 1], [], []>} : vector<2x256xf32>, vector<256x512xf32>, vector<2x512xf32> -> vector<2x512xf32>
    %307 = vector.broadcast %7 : vector<1x512xf32> to vector<2x512xf32>
    %308 = arith.addf %306, %307 : vector<2x512xf32>
    %309 = vector.extract_strided_slice %308 {offsets = [0, 0], sizes = [2, 128], strides = [1, 1]} : vector<2x512xf32> to vector<2x128xf32>
    %310 = arith.negf %309 : vector<2x128xf32>
    %311 = math.exp %310 : vector<2x128xf32>
    %cst_78 = arith.constant 1.000000e+00 : f32
    %312 = vector.broadcast %cst_78 : f32 to vector<2x128xf32>
    %313 = arith.addf %312, %311 : vector<2x128xf32>
    %314 = arith.divf %312, %313 : vector<2x128xf32>
    %315 = vector.extract_strided_slice %308 {offsets = [0, 128], sizes = [2, 128], strides = [1, 1]} : vector<2x512xf32> to vector<2x128xf32>
    %316 = arith.negf %315 : vector<2x128xf32>
    %317 = math.exp %316 : vector<2x128xf32>
    %cst_79 = arith.constant 1.000000e+00 : f32
    %318 = vector.broadcast %cst_79 : f32 to vector<2x128xf32>
    %319 = arith.addf %318, %317 : vector<2x128xf32>
    %320 = arith.divf %318, %319 : vector<2x128xf32>
    %321 = vector.extract_strided_slice %308 {offsets = [0, 256], sizes = [2, 128], strides = [1, 1]} : vector<2x512xf32> to vector<2x128xf32>
    %322 = math.tanh %321 : vector<2x128xf32>
    %323 = vector.extract_strided_slice %308 {offsets = [0, 384], sizes = [2, 128], strides = [1, 1]} : vector<2x512xf32> to vector<2x128xf32>
    %324 = arith.negf %323 : vector<2x128xf32>
    %325 = math.exp %324 : vector<2x128xf32>
    %cst_80 = arith.constant 1.000000e+00 : f32
    %326 = vector.broadcast %cst_80 : f32 to vector<2x128xf32>
    %327 = arith.addf %326, %325 : vector<2x128xf32>
    %328 = arith.divf %326, %327 : vector<2x128xf32>
    %329 = arith.mulf %320, %268 : vector<2x128xf32>
    %330 = arith.mulf %314, %322 : vector<2x128xf32>
    %331 = arith.addf %329, %330 : vector<2x128xf32>
    %332 = math.tanh %331 : vector<2x128xf32>
    %333 = arith.mulf %328, %332 : vector<2x128xf32>
    %c4 = arith.constant 4 : index
    %c0_81 = arith.constant 0 : index
    %334 = vector.load %arg9[%c4, %c0_81] : memref<8x128xf32, #tpu.memory_space<vmem>>, vector<1x128xf32>
    %335 = vector.shape_cast %334 : vector<1x128xf32> to vector<128xf32>
    %336 = vector.shape_cast %335 : vector<128xf32> to vector<1x128xf32>
    %337 = vector.broadcast %336 : vector<1x128xf32> to vector<2x128xf32>
    %338 = arith.mulf %337, %333 : vector<2x128xf32>
    %339 = arith.addf %276, %338 : vector<2x128xf32>
    %340 = vector.extract_strided_slice %15 {offsets = [10, 0], sizes = [2, 512], strides = [1, 1]} : vector<16x512xf32> to vector<2x512xf32>
    %cst_82 = arith.constant dense<0.000000e+00> : vector<2x512xf32>
    %341 = tpu.matmul %304, %3, %cst_82 {dimension_numbers = #tpu.dot_dimension_numbers<[1], [0], [0], [1], [0, 0, 1, 1], [], []>} : vector<2x128xf32>, vector<128x512xf32>, vector<2x512xf32> -> vector<2x512xf32>
    %342 = arith.addf %340, %341 : vector<2x512xf32>
    %343 = vector.extract_strided_slice %342 {offsets = [0, 0], sizes = [2, 128], strides = [1, 1]} : vector<2x512xf32> to vector<2x128xf32>
    %344 = arith.negf %343 : vector<2x128xf32>
    %345 = math.exp %344 : vector<2x128xf32>
    %cst_83 = arith.constant 1.000000e+00 : f32
    %346 = vector.broadcast %cst_83 : f32 to vector<2x128xf32>
    %347 = arith.addf %346, %345 : vector<2x128xf32>
    %348 = arith.divf %346, %347 : vector<2x128xf32>
    %349 = vector.extract_strided_slice %342 {offsets = [0, 128], sizes = [2, 128], strides = [1, 1]} : vector<2x512xf32> to vector<2x128xf32>
    %350 = arith.negf %349 : vector<2x128xf32>
    %351 = math.exp %350 : vector<2x128xf32>
    %cst_84 = arith.constant 1.000000e+00 : f32
    %352 = vector.broadcast %cst_84 : f32 to vector<2x128xf32>
    %353 = arith.addf %352, %351 : vector<2x128xf32>
    %354 = arith.divf %352, %353 : vector<2x128xf32>
    %355 = vector.extract_strided_slice %342 {offsets = [0, 256], sizes = [2, 128], strides = [1, 1]} : vector<2x512xf32> to vector<2x128xf32>
    %356 = math.tanh %355 : vector<2x128xf32>
    %357 = vector.extract_strided_slice %342 {offsets = [0, 384], sizes = [2, 128], strides = [1, 1]} : vector<2x512xf32> to vector<2x128xf32>
    %358 = arith.negf %357 : vector<2x128xf32>
    %359 = math.exp %358 : vector<2x128xf32>
    %cst_85 = arith.constant 1.000000e+00 : f32
    %360 = vector.broadcast %cst_85 : f32 to vector<2x128xf32>
    %361 = arith.addf %360, %359 : vector<2x128xf32>
    %362 = arith.divf %360, %361 : vector<2x128xf32>
    %363 = arith.mulf %354, %302 : vector<2x128xf32>
    %364 = arith.mulf %348, %356 : vector<2x128xf32>
    %365 = arith.addf %363, %364 : vector<2x128xf32>
    %366 = math.tanh %365 : vector<2x128xf32>
    %367 = arith.mulf %362, %366 : vector<2x128xf32>
    %368 = tpu.concatenate %367, %333 in 1 : vector<2x128xf32>, vector<2x128xf32> -> vector<2x256xf32>
    %cst_86 = arith.constant dense<0.000000e+00> : vector<2x512xf32>
    %369 = tpu.matmul %368, %5, %cst_86 {dimension_numbers = #tpu.dot_dimension_numbers<[1], [0], [0], [1], [0, 0, 1, 1], [], []>} : vector<2x256xf32>, vector<256x512xf32>, vector<2x512xf32> -> vector<2x512xf32>
    %370 = vector.broadcast %7 : vector<1x512xf32> to vector<2x512xf32>
    %371 = arith.addf %369, %370 : vector<2x512xf32>
    %372 = vector.extract_strided_slice %371 {offsets = [0, 0], sizes = [2, 128], strides = [1, 1]} : vector<2x512xf32> to vector<2x128xf32>
    %373 = arith.negf %372 : vector<2x128xf32>
    %374 = math.exp %373 : vector<2x128xf32>
    %cst_87 = arith.constant 1.000000e+00 : f32
    %375 = vector.broadcast %cst_87 : f32 to vector<2x128xf32>
    %376 = arith.addf %375, %374 : vector<2x128xf32>
    %377 = arith.divf %375, %376 : vector<2x128xf32>
    %378 = vector.extract_strided_slice %371 {offsets = [0, 128], sizes = [2, 128], strides = [1, 1]} : vector<2x512xf32> to vector<2x128xf32>
    %379 = arith.negf %378 : vector<2x128xf32>
    %380 = math.exp %379 : vector<2x128xf32>
    %cst_88 = arith.constant 1.000000e+00 : f32
    %381 = vector.broadcast %cst_88 : f32 to vector<2x128xf32>
    %382 = arith.addf %381, %380 : vector<2x128xf32>
    %383 = arith.divf %381, %382 : vector<2x128xf32>
    %384 = vector.extract_strided_slice %371 {offsets = [0, 256], sizes = [2, 128], strides = [1, 1]} : vector<2x512xf32> to vector<2x128xf32>
    %385 = math.tanh %384 : vector<2x128xf32>
    %386 = vector.extract_strided_slice %371 {offsets = [0, 384], sizes = [2, 128], strides = [1, 1]} : vector<2x512xf32> to vector<2x128xf32>
    %387 = arith.negf %386 : vector<2x128xf32>
    %388 = math.exp %387 : vector<2x128xf32>
    %cst_89 = arith.constant 1.000000e+00 : f32
    %389 = vector.broadcast %cst_89 : f32 to vector<2x128xf32>
    %390 = arith.addf %389, %388 : vector<2x128xf32>
    %391 = arith.divf %389, %390 : vector<2x128xf32>
    %392 = arith.mulf %383, %331 : vector<2x128xf32>
    %393 = arith.mulf %377, %385 : vector<2x128xf32>
    %394 = arith.addf %392, %393 : vector<2x128xf32>
    %395 = math.tanh %394 : vector<2x128xf32>
    %396 = arith.mulf %391, %395 : vector<2x128xf32>
    %c5 = arith.constant 5 : index
    %c0_90 = arith.constant 0 : index
    %397 = vector.load %arg9[%c5, %c0_90] : memref<8x128xf32, #tpu.memory_space<vmem>>, vector<1x128xf32>
    %398 = vector.shape_cast %397 : vector<1x128xf32> to vector<128xf32>
    %399 = vector.shape_cast %398 : vector<128xf32> to vector<1x128xf32>
    %400 = vector.broadcast %399 : vector<1x128xf32> to vector<2x128xf32>
    %401 = arith.mulf %400, %396 : vector<2x128xf32>
    %402 = arith.addf %339, %401 : vector<2x128xf32>
    %403 = vector.extract_strided_slice %15 {offsets = [12, 0], sizes = [2, 512], strides = [1, 1]} : vector<16x512xf32> to vector<2x512xf32>
    %cst_91 = arith.constant dense<0.000000e+00> : vector<2x512xf32>
    %404 = tpu.matmul %367, %3, %cst_91 {dimension_numbers = #tpu.dot_dimension_numbers<[1], [0], [0], [1], [0, 0, 1, 1], [], []>} : vector<2x128xf32>, vector<128x512xf32>, vector<2x512xf32> -> vector<2x512xf32>
    %405 = arith.addf %403, %404 : vector<2x512xf32>
    %406 = vector.extract_strided_slice %405 {offsets = [0, 0], sizes = [2, 128], strides = [1, 1]} : vector<2x512xf32> to vector<2x128xf32>
    %407 = arith.negf %406 : vector<2x128xf32>
    %408 = math.exp %407 : vector<2x128xf32>
    %cst_92 = arith.constant 1.000000e+00 : f32
    %409 = vector.broadcast %cst_92 : f32 to vector<2x128xf32>
    %410 = arith.addf %409, %408 : vector<2x128xf32>
    %411 = arith.divf %409, %410 : vector<2x128xf32>
    %412 = vector.extract_strided_slice %405 {offsets = [0, 128], sizes = [2, 128], strides = [1, 1]} : vector<2x512xf32> to vector<2x128xf32>
    %413 = arith.negf %412 : vector<2x128xf32>
    %414 = math.exp %413 : vector<2x128xf32>
    %cst_93 = arith.constant 1.000000e+00 : f32
    %415 = vector.broadcast %cst_93 : f32 to vector<2x128xf32>
    %416 = arith.addf %415, %414 : vector<2x128xf32>
    %417 = arith.divf %415, %416 : vector<2x128xf32>
    %418 = vector.extract_strided_slice %405 {offsets = [0, 256], sizes = [2, 128], strides = [1, 1]} : vector<2x512xf32> to vector<2x128xf32>
    %419 = math.tanh %418 : vector<2x128xf32>
    %420 = vector.extract_strided_slice %405 {offsets = [0, 384], sizes = [2, 128], strides = [1, 1]} : vector<2x512xf32> to vector<2x128xf32>
    %421 = arith.negf %420 : vector<2x128xf32>
    %422 = math.exp %421 : vector<2x128xf32>
    %cst_94 = arith.constant 1.000000e+00 : f32
    %423 = vector.broadcast %cst_94 : f32 to vector<2x128xf32>
    %424 = arith.addf %423, %422 : vector<2x128xf32>
    %425 = arith.divf %423, %424 : vector<2x128xf32>
    %426 = arith.mulf %417, %365 : vector<2x128xf32>
    %427 = arith.mulf %411, %419 : vector<2x128xf32>
    %428 = arith.addf %426, %427 : vector<2x128xf32>
    %429 = math.tanh %428 : vector<2x128xf32>
    %430 = arith.mulf %425, %429 : vector<2x128xf32>
    %431 = tpu.concatenate %430, %396 in 1 : vector<2x128xf32>, vector<2x128xf32> -> vector<2x256xf32>
    %cst_95 = arith.constant dense<0.000000e+00> : vector<2x512xf32>
    %432 = tpu.matmul %431, %5, %cst_95 {dimension_numbers = #tpu.dot_dimension_numbers<[1], [0], [0], [1], [0, 0, 1, 1], [], []>} : vector<2x256xf32>, vector<256x512xf32>, vector<2x512xf32> -> vector<2x512xf32>
    %433 = vector.broadcast %7 : vector<1x512xf32> to vector<2x512xf32>
    %434 = arith.addf %432, %433 : vector<2x512xf32>
    %435 = vector.extract_strided_slice %434 {offsets = [0, 0], sizes = [2, 128], strides = [1, 1]} : vector<2x512xf32> to vector<2x128xf32>
    %436 = arith.negf %435 : vector<2x128xf32>
    %437 = math.exp %436 : vector<2x128xf32>
    %cst_96 = arith.constant 1.000000e+00 : f32
    %438 = vector.broadcast %cst_96 : f32 to vector<2x128xf32>
    %439 = arith.addf %438, %437 : vector<2x128xf32>
    %440 = arith.divf %438, %439 : vector<2x128xf32>
    %441 = vector.extract_strided_slice %434 {offsets = [0, 128], sizes = [2, 128], strides = [1, 1]} : vector<2x512xf32> to vector<2x128xf32>
    %442 = arith.negf %441 : vector<2x128xf32>
    %443 = math.exp %442 : vector<2x128xf32>
    %cst_97 = arith.constant 1.000000e+00 : f32
    %444 = vector.broadcast %cst_97 : f32 to vector<2x128xf32>
    %445 = arith.addf %444, %443 : vector<2x128xf32>
    %446 = arith.divf %444, %445 : vector<2x128xf32>
    %447 = vector.extract_strided_slice %434 {offsets = [0, 256], sizes = [2, 128], strides = [1, 1]} : vector<2x512xf32> to vector<2x128xf32>
    %448 = math.tanh %447 : vector<2x128xf32>
    %449 = vector.extract_strided_slice %434 {offsets = [0, 384], sizes = [2, 128], strides = [1, 1]} : vector<2x512xf32> to vector<2x128xf32>
    %450 = arith.negf %449 : vector<2x128xf32>
    %451 = math.exp %450 : vector<2x128xf32>
    %cst_98 = arith.constant 1.000000e+00 : f32
    %452 = vector.broadcast %cst_98 : f32 to vector<2x128xf32>
    %453 = arith.addf %452, %451 : vector<2x128xf32>
    %454 = arith.divf %452, %453 : vector<2x128xf32>
    %455 = arith.mulf %446, %394 : vector<2x128xf32>
    %456 = arith.mulf %440, %448 : vector<2x128xf32>
    %457 = arith.addf %455, %456 : vector<2x128xf32>
    %458 = math.tanh %457 : vector<2x128xf32>
    %459 = arith.mulf %454, %458 : vector<2x128xf32>
    %c6 = arith.constant 6 : index
    %c0_99 = arith.constant 0 : index
    %460 = vector.load %arg9[%c6, %c0_99] : memref<8x128xf32, #tpu.memory_space<vmem>>, vector<1x128xf32>
    %461 = vector.shape_cast %460 : vector<1x128xf32> to vector<128xf32>
    %462 = vector.shape_cast %461 : vector<128xf32> to vector<1x128xf32>
    %463 = vector.broadcast %462 : vector<1x128xf32> to vector<2x128xf32>
    %464 = arith.mulf %463, %459 : vector<2x128xf32>
    %465 = arith.addf %402, %464 : vector<2x128xf32>
    %466 = vector.extract_strided_slice %15 {offsets = [14, 0], sizes = [2, 512], strides = [1, 1]} : vector<16x512xf32> to vector<2x512xf32>
    %cst_100 = arith.constant dense<0.000000e+00> : vector<2x512xf32>
    %467 = tpu.matmul %430, %3, %cst_100 {dimension_numbers = #tpu.dot_dimension_numbers<[1], [0], [0], [1], [0, 0, 1, 1], [], []>} : vector<2x128xf32>, vector<128x512xf32>, vector<2x512xf32> -> vector<2x512xf32>
    %468 = arith.addf %466, %467 : vector<2x512xf32>
    %469 = vector.extract_strided_slice %468 {offsets = [0, 0], sizes = [2, 128], strides = [1, 1]} : vector<2x512xf32> to vector<2x128xf32>
    %470 = arith.negf %469 : vector<2x128xf32>
    %471 = math.exp %470 : vector<2x128xf32>
    %cst_101 = arith.constant 1.000000e+00 : f32
    %472 = vector.broadcast %cst_101 : f32 to vector<2x128xf32>
    %473 = arith.addf %472, %471 : vector<2x128xf32>
    %474 = arith.divf %472, %473 : vector<2x128xf32>
    %475 = vector.extract_strided_slice %468 {offsets = [0, 128], sizes = [2, 128], strides = [1, 1]} : vector<2x512xf32> to vector<2x128xf32>
    %476 = arith.negf %475 : vector<2x128xf32>
    %477 = math.exp %476 : vector<2x128xf32>
    %cst_102 = arith.constant 1.000000e+00 : f32
    %478 = vector.broadcast %cst_102 : f32 to vector<2x128xf32>
    %479 = arith.addf %478, %477 : vector<2x128xf32>
    %480 = arith.divf %478, %479 : vector<2x128xf32>
    %481 = vector.extract_strided_slice %468 {offsets = [0, 256], sizes = [2, 128], strides = [1, 1]} : vector<2x512xf32> to vector<2x128xf32>
    %482 = math.tanh %481 : vector<2x128xf32>
    %483 = vector.extract_strided_slice %468 {offsets = [0, 384], sizes = [2, 128], strides = [1, 1]} : vector<2x512xf32> to vector<2x128xf32>
    %484 = arith.negf %483 : vector<2x128xf32>
    %485 = math.exp %484 : vector<2x128xf32>
    %cst_103 = arith.constant 1.000000e+00 : f32
    %486 = vector.broadcast %cst_103 : f32 to vector<2x128xf32>
    %487 = arith.addf %486, %485 : vector<2x128xf32>
    %488 = arith.divf %486, %487 : vector<2x128xf32>
    %489 = arith.mulf %480, %428 : vector<2x128xf32>
    %490 = arith.mulf %474, %482 : vector<2x128xf32>
    %491 = arith.addf %489, %490 : vector<2x128xf32>
    %492 = math.tanh %491 : vector<2x128xf32>
    %493 = arith.mulf %488, %492 : vector<2x128xf32>
    %494 = tpu.concatenate %493, %459 in 1 : vector<2x128xf32>, vector<2x128xf32> -> vector<2x256xf32>
    %cst_104 = arith.constant dense<0.000000e+00> : vector<2x512xf32>
    %495 = tpu.matmul %494, %5, %cst_104 {dimension_numbers = #tpu.dot_dimension_numbers<[1], [0], [0], [1], [0, 0, 1, 1], [], []>} : vector<2x256xf32>, vector<256x512xf32>, vector<2x512xf32> -> vector<2x512xf32>
    %496 = vector.broadcast %7 : vector<1x512xf32> to vector<2x512xf32>
    %497 = arith.addf %495, %496 : vector<2x512xf32>
    %498 = vector.extract_strided_slice %497 {offsets = [0, 0], sizes = [2, 128], strides = [1, 1]} : vector<2x512xf32> to vector<2x128xf32>
    %499 = arith.negf %498 : vector<2x128xf32>
    %500 = math.exp %499 : vector<2x128xf32>
    %cst_105 = arith.constant 1.000000e+00 : f32
    %501 = vector.broadcast %cst_105 : f32 to vector<2x128xf32>
    %502 = arith.addf %501, %500 : vector<2x128xf32>
    %503 = arith.divf %501, %502 : vector<2x128xf32>
    %504 = vector.extract_strided_slice %497 {offsets = [0, 128], sizes = [2, 128], strides = [1, 1]} : vector<2x512xf32> to vector<2x128xf32>
    %505 = arith.negf %504 : vector<2x128xf32>
    %506 = math.exp %505 : vector<2x128xf32>
    %cst_106 = arith.constant 1.000000e+00 : f32
    %507 = vector.broadcast %cst_106 : f32 to vector<2x128xf32>
    %508 = arith.addf %507, %506 : vector<2x128xf32>
    %509 = arith.divf %507, %508 : vector<2x128xf32>
    %510 = vector.extract_strided_slice %497 {offsets = [0, 256], sizes = [2, 128], strides = [1, 1]} : vector<2x512xf32> to vector<2x128xf32>
    %511 = math.tanh %510 : vector<2x128xf32>
    %512 = vector.extract_strided_slice %497 {offsets = [0, 384], sizes = [2, 128], strides = [1, 1]} : vector<2x512xf32> to vector<2x128xf32>
    %513 = arith.negf %512 : vector<2x128xf32>
    %514 = math.exp %513 : vector<2x128xf32>
    %cst_107 = arith.constant 1.000000e+00 : f32
    %515 = vector.broadcast %cst_107 : f32 to vector<2x128xf32>
    %516 = arith.addf %515, %514 : vector<2x128xf32>
    %517 = arith.divf %515, %516 : vector<2x128xf32>
    %518 = arith.mulf %509, %457 : vector<2x128xf32>
    %519 = arith.mulf %503, %511 : vector<2x128xf32>
    %520 = arith.addf %518, %519 : vector<2x128xf32>
    %521 = math.tanh %520 : vector<2x128xf32>
    %522 = arith.mulf %517, %521 : vector<2x128xf32>
    %c7 = arith.constant 7 : index
    %c0_108 = arith.constant 0 : index
    %523 = vector.load %arg9[%c7, %c0_108] : memref<8x128xf32, #tpu.memory_space<vmem>>, vector<1x128xf32>
    %524 = vector.shape_cast %523 : vector<1x128xf32> to vector<128xf32>
    %525 = vector.shape_cast %524 : vector<128xf32> to vector<1x128xf32>
    %526 = vector.broadcast %525 : vector<1x128xf32> to vector<2x128xf32>
    %527 = arith.mulf %526, %522 : vector<2x128xf32>
    %528 = arith.addf %465, %527 : vector<2x128xf32>
    %cst_109 = arith.constant dense<0.000000e+00> : vector<2x1xf32>
    %529 = tpu.matmul %528, %8, %cst_109 {dimension_numbers = #tpu.dot_dimension_numbers<[1], [0], [0], [1], [0, 0, 1, 1], [], []>} : vector<2x128xf32>, vector<128x1xf32>, vector<2x1xf32> -> vector<2x1xf32>
    %c0_110 = arith.constant 0 : index
    %c0_111 = arith.constant 0 : index
    %530 = vector.load %arg11[%c0_110, %c0_111] : memref<1x1xf32, #tpu.memory_space<vmem>>, vector<1x1xf32>
    %531 = vector.broadcast %530 : vector<1x1xf32> to vector<2x1xf32>
    %532 = arith.addf %529, %531 : vector<2x1xf32>
    %c0_112 = arith.constant 0 : index
    %c0_113 = arith.constant 0 : index
    %c0_114 = arith.constant 0 : index
    %533 = vector.load %arg12[%c0_112, %c0_113, %c0_114] : memref<1x2x1xf32, #tpu.memory_space<vmem>>, vector<1x2x1xf32>
    %534 = vector.shape_cast %533 : vector<1x2x1xf32> to vector<2x1xf32>
    %535 = vector.shape_cast %532 : vector<2x1xf32> to vector<1x2x1xf32>
    tpu.vector_store %arg12[%c0_112, %c0_113, %c0_114], %535 {strides = array<i32>} : memref<1x2x1xf32, #tpu.memory_space<vmem>>, vector<1x2x1xf32>,
    %536 = vector.extract_strided_slice %493 {offsets = [0, 0], sizes = [2, 100], strides = [1, 1]} : vector<2x128xf32> to vector<2x100xf32>
    %c0_115 = arith.constant 0 : index
    %c0_116 = arith.constant 0 : index
    %c0_117 = arith.constant 0 : index
    %c0_118 = arith.constant 0 : index
    %537 = vector.load %arg13[%c0_115, %c0_116, %c0_117, %c0_118] : memref<1x2x2x100xf32, #tpu.memory_space<vmem>>, vector<1x1x2x100xf32>
    %538 = vector.shape_cast %537 : vector<1x1x2x100xf32> to vector<2x100xf32>
    %539 = vector.shape_cast %536 : vector<2x100xf32> to vector<1x1x2x100xf32>
    tpu.vector_store %arg13[%c0_115, %c0_116, %c0_117, %c0_118], %539 {strides = array<i32>} : memref<1x2x2x100xf32, #tpu.memory_space<vmem>>, vector<1x1x2x100xf32>,
    %540 = vector.extract_strided_slice %522 {offsets = [0, 0], sizes = [2, 100], strides = [1, 1]} : vector<2x128xf32> to vector<2x100xf32>
    %c0_119 = arith.constant 0 : index
    %c1_120 = arith.constant 1 : index
    %c0_121 = arith.constant 0 : index
    %c0_122 = arith.constant 0 : index
    %541 = vector.load %arg13[%c0_119, %c1_120, %c0_121, %c0_122] : memref<1x2x2x100xf32, #tpu.memory_space<vmem>>, vector<1x1x2x100xf32>
    %542 = vector.shape_cast %541 : vector<1x1x2x100xf32> to vector<2x100xf32>
    %543 = vector.shape_cast %540 : vector<2x100xf32> to vector<1x1x2x100xf32>
    tpu.vector_store %arg13[%c0_119, %c1_120, %c0_121, %c0_122], %543 {strides = array<i32>} : memref<1x2x2x100xf32, #tpu.memory_space<vmem>>, vector<1x1x2x100xf32>,
    %544 = vector.extract_strided_slice %491 {offsets = [0, 0], sizes = [2, 100], strides = [1, 1]} : vector<2x128xf32> to vector<2x100xf32>
    %c0_123 = arith.constant 0 : index
    %c0_124 = arith.constant 0 : index
    %c0_125 = arith.constant 0 : index
    %c0_126 = arith.constant 0 : index
    %545 = vector.load %arg14[%c0_123, %c0_124, %c0_125, %c0_126] : memref<1x2x2x100xf32, #tpu.memory_space<vmem>>, vector<1x1x2x100xf32>
    %546 = vector.shape_cast %545 : vector<1x1x2x100xf32> to vector<2x100xf32>
    %547 = vector.shape_cast %544 : vector<2x100xf32> to vector<1x1x2x100xf32>
    tpu.vector_store %arg14[%c0_123, %c0_124, %c0_125, %c0_126], %547 {strides = array<i32>} : memref<1x2x2x100xf32, #tpu.memory_space<vmem>>, vector<1x1x2x100xf32>,
    %548 = vector.extract_strided_slice %520 {offsets = [0, 0], sizes = [2, 100], strides = [1, 1]} : vector<2x128xf32> to vector<2x100xf32>
    %c0_127 = arith.constant 0 : index
    %c1_128 = arith.constant 1 : index
    %c0_129 = arith.constant 0 : index
    %c0_130 = arith.constant 0 : index
    %549 = vector.load %arg14[%c0_127, %c1_128, %c0_129, %c0_130] : memref<1x2x2x100xf32, #tpu.memory_space<vmem>>, vector<1x1x2x100xf32>
    %550 = vector.shape_cast %549 : vector<1x1x2x100xf32> to vector<2x100xf32>
    %551 = vector.shape_cast %548 : vector<2x100xf32> to vector<1x1x2x100xf32>
    tpu.vector_store %arg14[%c0_127, %c1_128, %c0_129, %c0_130], %551 {strides = array<i32>} : memref<1x2x2x100xf32, #tpu.memory_space<vmem>>, vector<1x1x2x100xf32>,
    return
  }
  func.func @transform_0(%arg0: i32) -> (i32, i32, i32) {
    %c0_i32 = arith.constant 0 : i32
    %c0_i32_0 = arith.constant 0 : i32
    %c0_i32_1 = arith.constant 0 : i32
    return %arg0, %c0_i32, %c0_i32_0 : i32, i32, i32
  }
  func.func @transform_1(%arg0: i32) -> (i32, i32, i32) {
    %c0_i32 = arith.constant 0 : i32
    %c0_i32_0 = arith.constant 0 : i32
    %c0_i32_1 = arith.constant 0 : i32
    return %arg0, %c0_i32, %c0_i32_0 : i32, i32, i32
  }
  func.func @transform_2(%arg0: i32) -> (i32, i32, i32) {
    %c0_i32 = arith.constant 0 : i32
    %c0_i32_0 = arith.constant 0 : i32
    %c0_i32_1 = arith.constant 0 : i32
    return %arg0, %c0_i32, %c0_i32_0 : i32, i32, i32
  }
  func.func @transform_3(%arg0: i32) -> (i32, i32, i32) {
    %c0_i32 = arith.constant 0 : i32
    %c0_i32_0 = arith.constant 0 : i32
    %c0_i32_1 = arith.constant 0 : i32
    return %arg0, %c0_i32, %c0_i32_0 : i32, i32, i32
  }
  func.func @transform_4(%arg0: i32) -> (i32, i32, i32) {
    %c0_i32 = arith.constant 0 : i32
    %c0_i32_0 = arith.constant 0 : i32
    %c0_i32_1 = arith.constant 0 : i32
    return %arg0, %c0_i32, %c0_i32_0 : i32, i32, i32
  }
  func.func @transform_5(%arg0: i32) -> (i32, i32, i32) {
    %c0_i32 = arith.constant 0 : i32
    %c0_i32_0 = arith.constant 0 : i32
    %c0_i32_1 = arith.constant 0 : i32
    return %arg0, %c0_i32, %c0_i32_0 : i32, i32, i32
  }
  func.func @transform_6(%arg0: i32) -> (i32, i32, i32, i32) {
    %c0_i32 = arith.constant 0 : i32
    %c0_i32_0 = arith.constant 0 : i32
    %c0_i32_1 = arith.constant 0 : i32
    %c0_i32_2 = arith.constant 0 : i32
    return %arg0, %c0_i32, %c0_i32_0, %c0_i32_1 : i32, i32, i32, i32
  }
  func.func @transform_7(%arg0: i32) -> (i32, i32, i32, i32) {
    %c0_i32 = arith.constant 0 : i32
    %c0_i32_0 = arith.constant 0 : i32
    %c0_i32_1 = arith.constant 0 : i32
    %c0_i32_2 = arith.constant 0 : i32
    return %arg0, %c0_i32, %c0_i32_0, %c0_i32_1 : i32, i32, i32, i32
  }
  func.func @transform_8(%arg0: i32) -> (i32, i32) {
    %c0_i32 = arith.constant 0 : i32
    %c0_i32_0 = arith.constant 0 : i32
    %c0_i32_1 = arith.constant 0 : i32
    return %c0_i32, %c0_i32_0 : i32, i32
  }
  func.func @transform_9(%arg0: i32) -> (i32, i32) {
    %c0_i32 = arith.constant 0 : i32
    %c0_i32_0 = arith.constant 0 : i32
    %c0_i32_1 = arith.constant 0 : i32
    return %c0_i32, %c0_i32_0 : i32, i32
  }
  func.func @transform_10(%arg0: i32) -> (i32, i32) {
    %c0_i32 = arith.constant 0 : i32
    %c0_i32_0 = arith.constant 0 : i32
    %c0_i32_1 = arith.constant 0 : i32
    return %c0_i32, %c0_i32_0 : i32, i32
  }
  func.func @transform_11(%arg0: i32) -> (i32, i32, i32) {
    %c0_i32 = arith.constant 0 : i32
    %c0_i32_0 = arith.constant 0 : i32
    %c0_i32_1 = arith.constant 0 : i32
    return %arg0, %c0_i32, %c0_i32_0 : i32, i32, i32
  }
  func.func @transform_12(%arg0: i32) -> (i32, i32, i32, i32) {
    %c0_i32 = arith.constant 0 : i32
    %c0_i32_0 = arith.constant 0 : i32
    %c0_i32_1 = arith.constant 0 : i32
    %c0_i32_2 = arith.constant 0 : i32
    return %arg0, %c0_i32, %c0_i32_0, %c0_i32_1 : i32, i32, i32, i32
  }
  func.func @transform_13(%arg0: i32) -> (i32, i32, i32, i32) {
    %c0_i32 = arith.constant 0 : i32
    %c0_i32_0 = arith.constant 0 : i32
    %c0_i32_1 = arith.constant 0 : i32
    %c0_i32_2 = arith.constant 0 : i32
    return %arg0, %c0_i32, %c0_i32_0, %c0_i32_1 : i32, i32, i32, i32
  }
}

module attributes {stable_mosaic.version = 11 : i64} {
  func.func @_tcn_fused_kernel(%arg0: memref<156x5xf32, #tpu.memory_space<vmem>>, %arg1: memref<1x16xf32, #tpu.memory_space<vmem>>, %arg2: memref<1x16xf32, #tpu.memory_space<vmem>>, %arg3: memref<4x16xf32, #tpu.memory_space<vmem>>, %arg4: memref<1x16xf32, #tpu.memory_space<vmem>>, %arg5: memref<8x32x32xf32, #tpu.memory_space<vmem>>, %arg6: memref<8x1x32xf32, #tpu.memory_space<vmem>>, %arg7: memref<8x16x48xf32, #tpu.memory_space<vmem>>, %arg8: memref<8x1x48xf32, #tpu.memory_space<vmem>>, %arg9: memref<8x1x16xf32, #tpu.memory_space<vmem>>, %arg10: memref<8x1x16xf32, #tpu.memory_space<vmem>>, %arg11: memref<32x16xf32, #tpu.memory_space<vmem>>, %arg12: memref<1x16xf32, #tpu.memory_space<vmem>>, %arg13: memref<16x1xf32, #tpu.memory_space<vmem>>, %arg14: memref<1x1xf32, #tpu.memory_space<vmem>>, %arg15: memref<12x1xf32, #tpu.memory_space<vmem>>, %arg16: memref<156x16xf32, #tpu.memory_space<vmem>>, %arg17: memref<144x32xf32, #tpu.memory_space<vmem>>) attributes {dimension_semantics = [], scalar_prefetch = 0 : i64, scratch_operands = 2 : i64, tpu.core_type = #tpu.core_type<tc>} {
    %c0 = arith.constant 0 : index
    %c0_0 = arith.constant 0 : index
    %0 = vector.load %arg0[%c0, %c0_0] : memref<156x5xf32, #tpu.memory_space<vmem>>, vector<156x5xf32>
    %1 = vector.extract_strided_slice %0 {offsets = [0, 4], sizes = [156, 1], strides = [1, 1]} : vector<156x5xf32> to vector<156x1xf32>
    %2 = vector.extract_strided_slice %0 {offsets = [0, 0], sizes = [156, 4], strides = [1, 1]} : vector<156x5xf32> to vector<156x4xf32>
    %c0_1 = arith.constant 0 : index
    %c0_2 = arith.constant 0 : index
    %3 = vector.load %arg1[%c0_1, %c0_2] : memref<1x16xf32, #tpu.memory_space<vmem>>, vector<1x16xf32>
    %4 = vector.broadcast %1 : vector<156x1xf32> to vector<156x16xf32>
    %5 = vector.broadcast %3 : vector<1x16xf32> to vector<156x16xf32>
    %6 = arith.mulf %4, %5 : vector<156x16xf32>
    %c0_3 = arith.constant 0 : index
    %c0_4 = arith.constant 0 : index
    %7 = vector.load %arg2[%c0_3, %c0_4] : memref<1x16xf32, #tpu.memory_space<vmem>>, vector<1x16xf32>
    %8 = vector.broadcast %7 : vector<1x16xf32> to vector<156x16xf32>
    %9 = arith.addf %6, %8 : vector<156x16xf32>
    %c0_5 = arith.constant 0 : index
    %c0_6 = arith.constant 0 : index
    %10 = vector.load %arg3[%c0_5, %c0_6] : memref<4x16xf32, #tpu.memory_space<vmem>>, vector<4x16xf32>
    %cst = arith.constant dense<0.000000e+00> : vector<156x16xf32>
    %11 = tpu.matmul %2, %10, %cst {dimension_numbers = #tpu.dot_dimension_numbers<[1], [0], [0], [1], [0, 0, 1, 1], [], []>} : vector<156x4xf32>, vector<4x16xf32>, vector<156x16xf32> -> vector<156x16xf32>
    %c0_7 = arith.constant 0 : index
    %c0_8 = arith.constant 0 : index
    %12 = vector.load %arg4[%c0_7, %c0_8] : memref<1x16xf32, #tpu.memory_space<vmem>>, vector<1x16xf32>
    %13 = vector.broadcast %12 : vector<1x16xf32> to vector<156x16xf32>
    %14 = arith.addf %11, %13 : vector<156x16xf32>
    %cst_9 = arith.constant 0.000000e+00 : f32
    %15 = vector.broadcast %cst_9 : f32 to vector<156x16xf32>
    %16 = arith.cmpf ogt, %14, %15 : vector<156x16xf32>
    %cst_10 = arith.constant 0.00999999977 : f32
    %17 = vector.broadcast %cst_10 : f32 to vector<156x16xf32>
    %18 = arith.mulf %17, %14 : vector<156x16xf32>
    %19 = arith.select %16, %14, %18 : vector<156x16xi1>, vector<156x16xf32>
    %20 = arith.addf %9, %19 : vector<156x16xf32>
    %c0_11 = arith.constant 0 : index
    %c0_12 = arith.constant 0 : index
    %21 = vector.load %arg16[%c0_11, %c0_12] : memref<156x16xf32, #tpu.memory_space<vmem>>, vector<156x16xf32>
    tpu.vector_store %arg16[%c0_11, %c0_12], %20 {strides = array<i32>} : memref<156x16xf32, #tpu.memory_space<vmem>>, vector<156x16xf32>,
    %c0_13 = arith.constant 0 : index
    %c0_14 = arith.constant 0 : index
    %22 = vector.load %arg16[%c0_13, %c0_14] : memref<156x16xf32, #tpu.memory_space<vmem>>, vector<144x16xf32>
    %c12 = arith.constant 12 : index
    %c0_15 = arith.constant 0 : index
    %23 = vector.load %arg16[%c12, %c0_15] : memref<156x16xf32, #tpu.memory_space<vmem>>, vector<144x16xf32>
    %24 = tpu.concatenate %22, %23 in 1 : vector<144x16xf32>, vector<144x16xf32> -> vector<144x32xf32>
    %c0_16 = arith.constant 0 : index
    %c0_17 = arith.constant 0 : index
    %c0_18 = arith.constant 0 : index
    %25 = vector.load %arg5[%c0_16, %c0_17, %c0_18] : memref<8x32x32xf32, #tpu.memory_space<vmem>>, vector<1x32x32xf32>
    %26 = vector.shape_cast %25 : vector<1x32x32xf32> to vector<32x32xf32>
    %cst_19 = arith.constant dense<0.000000e+00> : vector<144x32xf32>
    %27 = tpu.matmul %24, %26, %cst_19 {dimension_numbers = #tpu.dot_dimension_numbers<[1], [0], [0], [1], [0, 0, 1, 1], [], []>} : vector<144x32xf32>, vector<32x32xf32>, vector<144x32xf32> -> vector<144x32xf32>
    %c0_20 = arith.constant 0 : index
    %c0_21 = arith.constant 0 : index
    %c0_22 = arith.constant 0 : index
    %28 = vector.load %arg6[%c0_20, %c0_21, %c0_22] : memref<8x1x32xf32, #tpu.memory_space<vmem>>, vector<1x1x32xf32>
    %29 = vector.shape_cast %28 : vector<1x1x32xf32> to vector<1x32xf32>
    %30 = vector.broadcast %29 : vector<1x32xf32> to vector<144x32xf32>
    %31 = arith.addf %27, %30 : vector<144x32xf32>
    %32 = vector.extract_strided_slice %31 {offsets = [0, 0], sizes = [144, 16], strides = [1, 1]} : vector<144x32xf32> to vector<144x16xf32>
    %33 = math.tanh %32 : vector<144x16xf32>
    %34 = vector.extract_strided_slice %31 {offsets = [0, 16], sizes = [144, 16], strides = [1, 1]} : vector<144x32xf32> to vector<144x16xf32>
    %35 = arith.negf %34 : vector<144x16xf32>
    %36 = math.exp %35 : vector<144x16xf32>
    %cst_23 = arith.constant 1.000000e+00 : f32
    %37 = vector.broadcast %cst_23 : f32 to vector<144x16xf32>
    %38 = arith.addf %37, %36 : vector<144x16xf32>
    %39 = arith.divf %37, %38 : vector<144x16xf32>
    %40 = arith.mulf %33, %39 : vector<144x16xf32>
    %c0_24 = arith.constant 0 : index
    %c0_25 = arith.constant 0 : index
    %c0_26 = arith.constant 0 : index
    %41 = vector.load %arg7[%c0_24, %c0_25, %c0_26] : memref<8x16x48xf32, #tpu.memory_space<vmem>>, vector<1x16x48xf32>
    %42 = vector.shape_cast %41 : vector<1x16x48xf32> to vector<16x48xf32>
    %cst_27 = arith.constant dense<0.000000e+00> : vector<144x48xf32>
    %43 = tpu.matmul %40, %42, %cst_27 {dimension_numbers = #tpu.dot_dimension_numbers<[1], [0], [0], [1], [0, 0, 1, 1], [], []>} : vector<144x16xf32>, vector<16x48xf32>, vector<144x48xf32> -> vector<144x48xf32>
    %c0_28 = arith.constant 0 : index
    %c0_29 = arith.constant 0 : index
    %c0_30 = arith.constant 0 : index
    %44 = vector.load %arg8[%c0_28, %c0_29, %c0_30] : memref<8x1x48xf32, #tpu.memory_space<vmem>>, vector<1x1x48xf32>
    %45 = vector.shape_cast %44 : vector<1x1x48xf32> to vector<1x48xf32>
    %46 = vector.broadcast %45 : vector<1x48xf32> to vector<144x48xf32>
    %47 = arith.addf %43, %46 : vector<144x48xf32>
    %48 = vector.extract_strided_slice %47 {offsets = [0, 0], sizes = [144, 32], strides = [1, 1]} : vector<144x48xf32> to vector<144x32xf32>
    %c0_31 = arith.constant 0 : index
    %c0_32 = arith.constant 0 : index
    %49 = vector.load %arg17[%c0_31, %c0_32] : memref<144x32xf32, #tpu.memory_space<vmem>>, vector<144x32xf32>
    tpu.vector_store %arg17[%c0_31, %c0_32], %48 {strides = array<i32>} : memref<144x32xf32, #tpu.memory_space<vmem>>, vector<144x32xf32>,
    %50 = vector.extract_strided_slice %47 {offsets = [0, 32], sizes = [144, 16], strides = [1, 1]} : vector<144x48xf32> to vector<144x16xf32>
    %51 = arith.addf %40, %50 : vector<144x16xf32>
    %52 = arith.addf %51, %23 : vector<144x16xf32>
    %c0_33 = arith.constant 0 : index
    %c0_34 = arith.constant 0 : index
    %c0_35 = arith.constant 0 : index
    %53 = vector.load %arg9[%c0_33, %c0_34, %c0_35] : memref<8x1x16xf32, #tpu.memory_space<vmem>>, vector<1x1x16xf32>
    %54 = vector.shape_cast %53 : vector<1x1x16xf32> to vector<1x16xf32>
    %55 = vector.broadcast %54 : vector<1x16xf32> to vector<144x16xf32>
    %56 = arith.mulf %52, %55 : vector<144x16xf32>
    %c0_36 = arith.constant 0 : index
    %c0_37 = arith.constant 0 : index
    %c0_38 = arith.constant 0 : index
    %57 = vector.load %arg10[%c0_36, %c0_37, %c0_38] : memref<8x1x16xf32, #tpu.memory_space<vmem>>, vector<1x1x16xf32>
    %58 = vector.shape_cast %57 : vector<1x1x16xf32> to vector<1x16xf32>
    %59 = vector.broadcast %58 : vector<1x16xf32> to vector<144x16xf32>
    %60 = arith.addf %56, %59 : vector<144x16xf32>
    %c0_39 = arith.constant 0 : index
    %c0_40 = arith.constant 0 : index
    %61 = vector.load %arg16[%c0_39, %c0_40] : memref<156x16xf32, #tpu.memory_space<vmem>>, vector<144x16xf32>
    tpu.vector_store %arg16[%c0_39, %c0_40], %60 {strides = array<i32>} : memref<156x16xf32, #tpu.memory_space<vmem>>, vector<144x16xf32>,
    %c0_41 = arith.constant 0 : index
    %c0_42 = arith.constant 0 : index
    %62 = vector.load %arg16[%c0_41, %c0_42] : memref<156x16xf32, #tpu.memory_space<vmem>>, vector<120x16xf32>
    %c24 = arith.constant 24 : index
    %c0_43 = arith.constant 0 : index
    %63 = vector.load %arg16[%c24, %c0_43] : memref<156x16xf32, #tpu.memory_space<vmem>>, vector<120x16xf32>
    %64 = tpu.concatenate %62, %63 in 1 : vector<120x16xf32>, vector<120x16xf32> -> vector<120x32xf32>
    %c1 = arith.constant 1 : index
    %c0_44 = arith.constant 0 : index
    %c0_45 = arith.constant 0 : index
    %65 = vector.load %arg5[%c1, %c0_44, %c0_45] : memref<8x32x32xf32, #tpu.memory_space<vmem>>, vector<1x32x32xf32>
    %66 = vector.shape_cast %65 : vector<1x32x32xf32> to vector<32x32xf32>
    %cst_46 = arith.constant dense<0.000000e+00> : vector<120x32xf32>
    %67 = tpu.matmul %64, %66, %cst_46 {dimension_numbers = #tpu.dot_dimension_numbers<[1], [0], [0], [1], [0, 0, 1, 1], [], []>} : vector<120x32xf32>, vector<32x32xf32>, vector<120x32xf32> -> vector<120x32xf32>
    %c1_47 = arith.constant 1 : index
    %c0_48 = arith.constant 0 : index
    %c0_49 = arith.constant 0 : index
    %68 = vector.load %arg6[%c1_47, %c0_48, %c0_49] : memref<8x1x32xf32, #tpu.memory_space<vmem>>, vector<1x1x32xf32>
    %69 = vector.shape_cast %68 : vector<1x1x32xf32> to vector<1x32xf32>
    %70 = vector.broadcast %69 : vector<1x32xf32> to vector<120x32xf32>
    %71 = arith.addf %67, %70 : vector<120x32xf32>
    %72 = vector.extract_strided_slice %71 {offsets = [0, 0], sizes = [120, 16], strides = [1, 1]} : vector<120x32xf32> to vector<120x16xf32>
    %73 = math.tanh %72 : vector<120x16xf32>
    %74 = vector.extract_strided_slice %71 {offsets = [0, 16], sizes = [120, 16], strides = [1, 1]} : vector<120x32xf32> to vector<120x16xf32>
    %75 = arith.negf %74 : vector<120x16xf32>
    %76 = math.exp %75 : vector<120x16xf32>
    %cst_50 = arith.constant 1.000000e+00 : f32
    %77 = vector.broadcast %cst_50 : f32 to vector<120x16xf32>
    %78 = arith.addf %77, %76 : vector<120x16xf32>
    %79 = arith.divf %77, %78 : vector<120x16xf32>
    %80 = arith.mulf %73, %79 : vector<120x16xf32>
    %c1_51 = arith.constant 1 : index
    %c0_52 = arith.constant 0 : index
    %c0_53 = arith.constant 0 : index
    %81 = vector.load %arg7[%c1_51, %c0_52, %c0_53] : memref<8x16x48xf32, #tpu.memory_space<vmem>>, vector<1x16x48xf32>
    %82 = vector.shape_cast %81 : vector<1x16x48xf32> to vector<16x48xf32>
    %cst_54 = arith.constant dense<0.000000e+00> : vector<120x48xf32>
    %83 = tpu.matmul %80, %82, %cst_54 {dimension_numbers = #tpu.dot_dimension_numbers<[1], [0], [0], [1], [0, 0, 1, 1], [], []>} : vector<120x16xf32>, vector<16x48xf32>, vector<120x48xf32> -> vector<120x48xf32>
    %c1_55 = arith.constant 1 : index
    %c0_56 = arith.constant 0 : index
    %c0_57 = arith.constant 0 : index
    %84 = vector.load %arg8[%c1_55, %c0_56, %c0_57] : memref<8x1x48xf32, #tpu.memory_space<vmem>>, vector<1x1x48xf32>
    %85 = vector.shape_cast %84 : vector<1x1x48xf32> to vector<1x48xf32>
    %86 = vector.broadcast %85 : vector<1x48xf32> to vector<120x48xf32>
    %87 = arith.addf %83, %86 : vector<120x48xf32>
    %88 = vector.extract_strided_slice %87 {offsets = [0, 0], sizes = [120, 32], strides = [1, 1]} : vector<120x48xf32> to vector<120x32xf32>
    %c24_58 = arith.constant 24 : index
    %c0_59 = arith.constant 0 : index
    %89 = vector.load %arg17[%c24_58, %c0_59] : memref<144x32xf32, #tpu.memory_space<vmem>>, vector<120x32xf32>
    %90 = arith.addf %88, %89 : vector<120x32xf32>
    %c0_60 = arith.constant 0 : index
    %c0_61 = arith.constant 0 : index
    %91 = vector.load %arg17[%c0_60, %c0_61] : memref<144x32xf32, #tpu.memory_space<vmem>>, vector<120x32xf32>
    tpu.vector_store %arg17[%c0_60, %c0_61], %90 {strides = array<i32>} : memref<144x32xf32, #tpu.memory_space<vmem>>, vector<120x32xf32>,
    %92 = vector.extract_strided_slice %87 {offsets = [0, 32], sizes = [120, 16], strides = [1, 1]} : vector<120x48xf32> to vector<120x16xf32>
    %93 = arith.addf %80, %92 : vector<120x16xf32>
    %94 = arith.addf %93, %63 : vector<120x16xf32>
    %c1_62 = arith.constant 1 : index
    %c0_63 = arith.constant 0 : index
    %c0_64 = arith.constant 0 : index
    %95 = vector.load %arg9[%c1_62, %c0_63, %c0_64] : memref<8x1x16xf32, #tpu.memory_space<vmem>>, vector<1x1x16xf32>
    %96 = vector.shape_cast %95 : vector<1x1x16xf32> to vector<1x16xf32>
    %97 = vector.broadcast %96 : vector<1x16xf32> to vector<120x16xf32>
    %98 = arith.mulf %94, %97 : vector<120x16xf32>
    %c1_65 = arith.constant 1 : index
    %c0_66 = arith.constant 0 : index
    %c0_67 = arith.constant 0 : index
    %99 = vector.load %arg10[%c1_65, %c0_66, %c0_67] : memref<8x1x16xf32, #tpu.memory_space<vmem>>, vector<1x1x16xf32>
    %100 = vector.shape_cast %99 : vector<1x1x16xf32> to vector<1x16xf32>
    %101 = vector.broadcast %100 : vector<1x16xf32> to vector<120x16xf32>
    %102 = arith.addf %98, %101 : vector<120x16xf32>
    %c0_68 = arith.constant 0 : index
    %c0_69 = arith.constant 0 : index
    %103 = vector.load %arg16[%c0_68, %c0_69] : memref<156x16xf32, #tpu.memory_space<vmem>>, vector<120x16xf32>
    tpu.vector_store %arg16[%c0_68, %c0_69], %102 {strides = array<i32>} : memref<156x16xf32, #tpu.memory_space<vmem>>, vector<120x16xf32>,
    %c0_70 = arith.constant 0 : index
    %c0_71 = arith.constant 0 : index
    %104 = vector.load %arg16[%c0_70, %c0_71] : memref<156x16xf32, #tpu.memory_space<vmem>>, vector<108x16xf32>
    %c12_72 = arith.constant 12 : index
    %c0_73 = arith.constant 0 : index
    %105 = vector.load %arg16[%c12_72, %c0_73] : memref<156x16xf32, #tpu.memory_space<vmem>>, vector<108x16xf32>
    %106 = tpu.concatenate %104, %105 in 1 : vector<108x16xf32>, vector<108x16xf32> -> vector<108x32xf32>
    %c2 = arith.constant 2 : index
    %c0_74 = arith.constant 0 : index
    %c0_75 = arith.constant 0 : index
    %107 = vector.load %arg5[%c2, %c0_74, %c0_75] : memref<8x32x32xf32, #tpu.memory_space<vmem>>, vector<1x32x32xf32>
    %108 = vector.shape_cast %107 : vector<1x32x32xf32> to vector<32x32xf32>
    %cst_76 = arith.constant dense<0.000000e+00> : vector<108x32xf32>
    %109 = tpu.matmul %106, %108, %cst_76 {dimension_numbers = #tpu.dot_dimension_numbers<[1], [0], [0], [1], [0, 0, 1, 1], [], []>} : vector<108x32xf32>, vector<32x32xf32>, vector<108x32xf32> -> vector<108x32xf32>
    %c2_77 = arith.constant 2 : index
    %c0_78 = arith.constant 0 : index
    %c0_79 = arith.constant 0 : index
    %110 = vector.load %arg6[%c2_77, %c0_78, %c0_79] : memref<8x1x32xf32, #tpu.memory_space<vmem>>, vector<1x1x32xf32>
    %111 = vector.shape_cast %110 : vector<1x1x32xf32> to vector<1x32xf32>
    %112 = vector.broadcast %111 : vector<1x32xf32> to vector<108x32xf32>
    %113 = arith.addf %109, %112 : vector<108x32xf32>
    %114 = vector.extract_strided_slice %113 {offsets = [0, 0], sizes = [108, 16], strides = [1, 1]} : vector<108x32xf32> to vector<108x16xf32>
    %115 = math.tanh %114 : vector<108x16xf32>
    %116 = vector.extract_strided_slice %113 {offsets = [0, 16], sizes = [108, 16], strides = [1, 1]} : vector<108x32xf32> to vector<108x16xf32>
    %117 = arith.negf %116 : vector<108x16xf32>
    %118 = math.exp %117 : vector<108x16xf32>
    %cst_80 = arith.constant 1.000000e+00 : f32
    %119 = vector.broadcast %cst_80 : f32 to vector<108x16xf32>
    %120 = arith.addf %119, %118 : vector<108x16xf32>
    %121 = arith.divf %119, %120 : vector<108x16xf32>
    %122 = arith.mulf %115, %121 : vector<108x16xf32>
    %c2_81 = arith.constant 2 : index
    %c0_82 = arith.constant 0 : index
    %c0_83 = arith.constant 0 : index
    %123 = vector.load %arg7[%c2_81, %c0_82, %c0_83] : memref<8x16x48xf32, #tpu.memory_space<vmem>>, vector<1x16x48xf32>
    %124 = vector.shape_cast %123 : vector<1x16x48xf32> to vector<16x48xf32>
    %cst_84 = arith.constant dense<0.000000e+00> : vector<108x48xf32>
    %125 = tpu.matmul %122, %124, %cst_84 {dimension_numbers = #tpu.dot_dimension_numbers<[1], [0], [0], [1], [0, 0, 1, 1], [], []>} : vector<108x16xf32>, vector<16x48xf32>, vector<108x48xf32> -> vector<108x48xf32>
    %c2_85 = arith.constant 2 : index
    %c0_86 = arith.constant 0 : index
    %c0_87 = arith.constant 0 : index
    %126 = vector.load %arg8[%c2_85, %c0_86, %c0_87] : memref<8x1x48xf32, #tpu.memory_space<vmem>>, vector<1x1x48xf32>
    %127 = vector.shape_cast %126 : vector<1x1x48xf32> to vector<1x48xf32>
    %128 = vector.broadcast %127 : vector<1x48xf32> to vector<108x48xf32>
    %129 = arith.addf %125, %128 : vector<108x48xf32>
    %130 = vector.extract_strided_slice %129 {offsets = [0, 0], sizes = [108, 32], strides = [1, 1]} : vector<108x48xf32> to vector<108x32xf32>
    %c12_88 = arith.constant 12 : index
    %c0_89 = arith.constant 0 : index
    %131 = vector.load %arg17[%c12_88, %c0_89] : memref<144x32xf32, #tpu.memory_space<vmem>>, vector<108x32xf32>
    %132 = arith.addf %130, %131 : vector<108x32xf32>
    %c0_90 = arith.constant 0 : index
    %c0_91 = arith.constant 0 : index
    %133 = vector.load %arg17[%c0_90, %c0_91] : memref<144x32xf32, #tpu.memory_space<vmem>>, vector<108x32xf32>
    tpu.vector_store %arg17[%c0_90, %c0_91], %132 {strides = array<i32>} : memref<144x32xf32, #tpu.memory_space<vmem>>, vector<108x32xf32>,
    %134 = vector.extract_strided_slice %129 {offsets = [0, 32], sizes = [108, 16], strides = [1, 1]} : vector<108x48xf32> to vector<108x16xf32>
    %135 = arith.addf %122, %134 : vector<108x16xf32>
    %136 = arith.addf %135, %105 : vector<108x16xf32>
    %c2_92 = arith.constant 2 : index
    %c0_93 = arith.constant 0 : index
    %c0_94 = arith.constant 0 : index
    %137 = vector.load %arg9[%c2_92, %c0_93, %c0_94] : memref<8x1x16xf32, #tpu.memory_space<vmem>>, vector<1x1x16xf32>
    %138 = vector.shape_cast %137 : vector<1x1x16xf32> to vector<1x16xf32>
    %139 = vector.broadcast %138 : vector<1x16xf32> to vector<108x16xf32>
    %140 = arith.mulf %136, %139 : vector<108x16xf32>
    %c2_95 = arith.constant 2 : index
    %c0_96 = arith.constant 0 : index
    %c0_97 = arith.constant 0 : index
    %141 = vector.load %arg10[%c2_95, %c0_96, %c0_97] : memref<8x1x16xf32, #tpu.memory_space<vmem>>, vector<1x1x16xf32>
    %142 = vector.shape_cast %141 : vector<1x1x16xf32> to vector<1x16xf32>
    %143 = vector.broadcast %142 : vector<1x16xf32> to vector<108x16xf32>
    %144 = arith.addf %140, %143 : vector<108x16xf32>
    %c0_98 = arith.constant 0 : index
    %c0_99 = arith.constant 0 : index
    %145 = vector.load %arg16[%c0_98, %c0_99] : memref<156x16xf32, #tpu.memory_space<vmem>>, vector<108x16xf32>
    tpu.vector_store %arg16[%c0_98, %c0_99], %144 {strides = array<i32>} : memref<156x16xf32, #tpu.memory_space<vmem>>, vector<108x16xf32>,
    %c0_100 = arith.constant 0 : index
    %c0_101 = arith.constant 0 : index
    %146 = vector.load %arg16[%c0_100, %c0_101] : memref<156x16xf32, #tpu.memory_space<vmem>>, vector<84x16xf32>
    %c24_102 = arith.constant 24 : index
    %c0_103 = arith.constant 0 : index
    %147 = vector.load %arg16[%c24_102, %c0_103] : memref<156x16xf32, #tpu.memory_space<vmem>>, vector<84x16xf32>
    %148 = tpu.concatenate %146, %147 in 1 : vector<84x16xf32>, vector<84x16xf32> -> vector<84x32xf32>
    %c3 = arith.constant 3 : index
    %c0_104 = arith.constant 0 : index
    %c0_105 = arith.constant 0 : index
    %149 = vector.load %arg5[%c3, %c0_104, %c0_105] : memref<8x32x32xf32, #tpu.memory_space<vmem>>, vector<1x32x32xf32>
    %150 = vector.shape_cast %149 : vector<1x32x32xf32> to vector<32x32xf32>
    %cst_106 = arith.constant dense<0.000000e+00> : vector<84x32xf32>
    %151 = tpu.matmul %148, %150, %cst_106 {dimension_numbers = #tpu.dot_dimension_numbers<[1], [0], [0], [1], [0, 0, 1, 1], [], []>} : vector<84x32xf32>, vector<32x32xf32>, vector<84x32xf32> -> vector<84x32xf32>
    %c3_107 = arith.constant 3 : index
    %c0_108 = arith.constant 0 : index
    %c0_109 = arith.constant 0 : index
    %152 = vector.load %arg6[%c3_107, %c0_108, %c0_109] : memref<8x1x32xf32, #tpu.memory_space<vmem>>, vector<1x1x32xf32>
    %153 = vector.shape_cast %152 : vector<1x1x32xf32> to vector<1x32xf32>
    %154 = vector.broadcast %153 : vector<1x32xf32> to vector<84x32xf32>
    %155 = arith.addf %151, %154 : vector<84x32xf32>
    %156 = vector.extract_strided_slice %155 {offsets = [0, 0], sizes = [84, 16], strides = [1, 1]} : vector<84x32xf32> to vector<84x16xf32>
    %157 = math.tanh %156 : vector<84x16xf32>
    %158 = vector.extract_strided_slice %155 {offsets = [0, 16], sizes = [84, 16], strides = [1, 1]} : vector<84x32xf32> to vector<84x16xf32>
    %159 = arith.negf %158 : vector<84x16xf32>
    %160 = math.exp %159 : vector<84x16xf32>
    %cst_110 = arith.constant 1.000000e+00 : f32
    %161 = vector.broadcast %cst_110 : f32 to vector<84x16xf32>
    %162 = arith.addf %161, %160 : vector<84x16xf32>
    %163 = arith.divf %161, %162 : vector<84x16xf32>
    %164 = arith.mulf %157, %163 : vector<84x16xf32>
    %c3_111 = arith.constant 3 : index
    %c0_112 = arith.constant 0 : index
    %c0_113 = arith.constant 0 : index
    %165 = vector.load %arg7[%c3_111, %c0_112, %c0_113] : memref<8x16x48xf32, #tpu.memory_space<vmem>>, vector<1x16x48xf32>
    %166 = vector.shape_cast %165 : vector<1x16x48xf32> to vector<16x48xf32>
    %cst_114 = arith.constant dense<0.000000e+00> : vector<84x48xf32>
    %167 = tpu.matmul %164, %166, %cst_114 {dimension_numbers = #tpu.dot_dimension_numbers<[1], [0], [0], [1], [0, 0, 1, 1], [], []>} : vector<84x16xf32>, vector<16x48xf32>, vector<84x48xf32> -> vector<84x48xf32>
    %c3_115 = arith.constant 3 : index
    %c0_116 = arith.constant 0 : index
    %c0_117 = arith.constant 0 : index
    %168 = vector.load %arg8[%c3_115, %c0_116, %c0_117] : memref<8x1x48xf32, #tpu.memory_space<vmem>>, vector<1x1x48xf32>
    %169 = vector.shape_cast %168 : vector<1x1x48xf32> to vector<1x48xf32>
    %170 = vector.broadcast %169 : vector<1x48xf32> to vector<84x48xf32>
    %171 = arith.addf %167, %170 : vector<84x48xf32>
    %172 = vector.extract_strided_slice %171 {offsets = [0, 0], sizes = [84, 32], strides = [1, 1]} : vector<84x48xf32> to vector<84x32xf32>
    %c24_118 = arith.constant 24 : index
    %c0_119 = arith.constant 0 : index
    %173 = vector.load %arg17[%c24_118, %c0_119] : memref<144x32xf32, #tpu.memory_space<vmem>>, vector<84x32xf32>
    %174 = arith.addf %172, %173 : vector<84x32xf32>
    %c0_120 = arith.constant 0 : index
    %c0_121 = arith.constant 0 : index
    %175 = vector.load %arg17[%c0_120, %c0_121] : memref<144x32xf32, #tpu.memory_space<vmem>>, vector<84x32xf32>
    tpu.vector_store %arg17[%c0_120, %c0_121], %174 {strides = array<i32>} : memref<144x32xf32, #tpu.memory_space<vmem>>, vector<84x32xf32>,
    %176 = vector.extract_strided_slice %171 {offsets = [0, 32], sizes = [84, 16], strides = [1, 1]} : vector<84x48xf32> to vector<84x16xf32>
    %177 = arith.addf %164, %176 : vector<84x16xf32>
    %178 = arith.addf %177, %147 : vector<84x16xf32>
    %c3_122 = arith.constant 3 : index
    %c0_123 = arith.constant 0 : index
    %c0_124 = arith.constant 0 : index
    %179 = vector.load %arg9[%c3_122, %c0_123, %c0_124] : memref<8x1x16xf32, #tpu.memory_space<vmem>>, vector<1x1x16xf32>
    %180 = vector.shape_cast %179 : vector<1x1x16xf32> to vector<1x16xf32>
    %181 = vector.broadcast %180 : vector<1x16xf32> to vector<84x16xf32>
    %182 = arith.mulf %178, %181 : vector<84x16xf32>
    %c3_125 = arith.constant 3 : index
    %c0_126 = arith.constant 0 : index
    %c0_127 = arith.constant 0 : index
    %183 = vector.load %arg10[%c3_125, %c0_126, %c0_127] : memref<8x1x16xf32, #tpu.memory_space<vmem>>, vector<1x1x16xf32>
    %184 = vector.shape_cast %183 : vector<1x1x16xf32> to vector<1x16xf32>
    %185 = vector.broadcast %184 : vector<1x16xf32> to vector<84x16xf32>
    %186 = arith.addf %182, %185 : vector<84x16xf32>
    %c0_128 = arith.constant 0 : index
    %c0_129 = arith.constant 0 : index
    %187 = vector.load %arg16[%c0_128, %c0_129] : memref<156x16xf32, #tpu.memory_space<vmem>>, vector<84x16xf32>
    tpu.vector_store %arg16[%c0_128, %c0_129], %186 {strides = array<i32>} : memref<156x16xf32, #tpu.memory_space<vmem>>, vector<84x16xf32>,
    %c0_130 = arith.constant 0 : index
    %c0_131 = arith.constant 0 : index
    %188 = vector.load %arg16[%c0_130, %c0_131] : memref<156x16xf32, #tpu.memory_space<vmem>>, vector<72x16xf32>
    %c12_132 = arith.constant 12 : index
    %c0_133 = arith.constant 0 : index
    %189 = vector.load %arg16[%c12_132, %c0_133] : memref<156x16xf32, #tpu.memory_space<vmem>>, vector<72x16xf32>
    %190 = tpu.concatenate %188, %189 in 1 : vector<72x16xf32>, vector<72x16xf32> -> vector<72x32xf32>
    %c4 = arith.constant 4 : index
    %c0_134 = arith.constant 0 : index
    %c0_135 = arith.constant 0 : index
    %191 = vector.load %arg5[%c4, %c0_134, %c0_135] : memref<8x32x32xf32, #tpu.memory_space<vmem>>, vector<1x32x32xf32>
    %192 = vector.shape_cast %191 : vector<1x32x32xf32> to vector<32x32xf32>
    %cst_136 = arith.constant dense<0.000000e+00> : vector<72x32xf32>
    %193 = tpu.matmul %190, %192, %cst_136 {dimension_numbers = #tpu.dot_dimension_numbers<[1], [0], [0], [1], [0, 0, 1, 1], [], []>} : vector<72x32xf32>, vector<32x32xf32>, vector<72x32xf32> -> vector<72x32xf32>
    %c4_137 = arith.constant 4 : index
    %c0_138 = arith.constant 0 : index
    %c0_139 = arith.constant 0 : index
    %194 = vector.load %arg6[%c4_137, %c0_138, %c0_139] : memref<8x1x32xf32, #tpu.memory_space<vmem>>, vector<1x1x32xf32>
    %195 = vector.shape_cast %194 : vector<1x1x32xf32> to vector<1x32xf32>
    %196 = vector.broadcast %195 : vector<1x32xf32> to vector<72x32xf32>
    %197 = arith.addf %193, %196 : vector<72x32xf32>
    %198 = vector.extract_strided_slice %197 {offsets = [0, 0], sizes = [72, 16], strides = [1, 1]} : vector<72x32xf32> to vector<72x16xf32>
    %199 = math.tanh %198 : vector<72x16xf32>
    %200 = vector.extract_strided_slice %197 {offsets = [0, 16], sizes = [72, 16], strides = [1, 1]} : vector<72x32xf32> to vector<72x16xf32>
    %201 = arith.negf %200 : vector<72x16xf32>
    %202 = math.exp %201 : vector<72x16xf32>
    %cst_140 = arith.constant 1.000000e+00 : f32
    %203 = vector.broadcast %cst_140 : f32 to vector<72x16xf32>
    %204 = arith.addf %203, %202 : vector<72x16xf32>
    %205 = arith.divf %203, %204 : vector<72x16xf32>
    %206 = arith.mulf %199, %205 : vector<72x16xf32>
    %c4_141 = arith.constant 4 : index
    %c0_142 = arith.constant 0 : index
    %c0_143 = arith.constant 0 : index
    %207 = vector.load %arg7[%c4_141, %c0_142, %c0_143] : memref<8x16x48xf32, #tpu.memory_space<vmem>>, vector<1x16x48xf32>
    %208 = vector.shape_cast %207 : vector<1x16x48xf32> to vector<16x48xf32>
    %cst_144 = arith.constant dense<0.000000e+00> : vector<72x48xf32>
    %209 = tpu.matmul %206, %208, %cst_144 {dimension_numbers = #tpu.dot_dimension_numbers<[1], [0], [0], [1], [0, 0, 1, 1], [], []>} : vector<72x16xf32>, vector<16x48xf32>, vector<72x48xf32> -> vector<72x48xf32>
    %c4_145 = arith.constant 4 : index
    %c0_146 = arith.constant 0 : index
    %c0_147 = arith.constant 0 : index
    %210 = vector.load %arg8[%c4_145, %c0_146, %c0_147] : memref<8x1x48xf32, #tpu.memory_space<vmem>>, vector<1x1x48xf32>
    %211 = vector.shape_cast %210 : vector<1x1x48xf32> to vector<1x48xf32>
    %212 = vector.broadcast %211 : vector<1x48xf32> to vector<72x48xf32>
    %213 = arith.addf %209, %212 : vector<72x48xf32>
    %214 = vector.extract_strided_slice %213 {offsets = [0, 0], sizes = [72, 32], strides = [1, 1]} : vector<72x48xf32> to vector<72x32xf32>
    %c12_148 = arith.constant 12 : index
    %c0_149 = arith.constant 0 : index
    %215 = vector.load %arg17[%c12_148, %c0_149] : memref<144x32xf32, #tpu.memory_space<vmem>>, vector<72x32xf32>
    %216 = arith.addf %214, %215 : vector<72x32xf32>
    %c0_150 = arith.constant 0 : index
    %c0_151 = arith.constant 0 : index
    %217 = vector.load %arg17[%c0_150, %c0_151] : memref<144x32xf32, #tpu.memory_space<vmem>>, vector<72x32xf32>
    tpu.vector_store %arg17[%c0_150, %c0_151], %216 {strides = array<i32>} : memref<144x32xf32, #tpu.memory_space<vmem>>, vector<72x32xf32>,
    %218 = vector.extract_strided_slice %213 {offsets = [0, 32], sizes = [72, 16], strides = [1, 1]} : vector<72x48xf32> to vector<72x16xf32>
    %219 = arith.addf %206, %218 : vector<72x16xf32>
    %220 = arith.addf %219, %189 : vector<72x16xf32>
    %c4_152 = arith.constant 4 : index
    %c0_153 = arith.constant 0 : index
    %c0_154 = arith.constant 0 : index
    %221 = vector.load %arg9[%c4_152, %c0_153, %c0_154] : memref<8x1x16xf32, #tpu.memory_space<vmem>>, vector<1x1x16xf32>
    %222 = vector.shape_cast %221 : vector<1x1x16xf32> to vector<1x16xf32>
    %223 = vector.broadcast %222 : vector<1x16xf32> to vector<72x16xf32>
    %224 = arith.mulf %220, %223 : vector<72x16xf32>
    %c4_155 = arith.constant 4 : index
    %c0_156 = arith.constant 0 : index
    %c0_157 = arith.constant 0 : index
    %225 = vector.load %arg10[%c4_155, %c0_156, %c0_157] : memref<8x1x16xf32, #tpu.memory_space<vmem>>, vector<1x1x16xf32>
    %226 = vector.shape_cast %225 : vector<1x1x16xf32> to vector<1x16xf32>
    %227 = vector.broadcast %226 : vector<1x16xf32> to vector<72x16xf32>
    %228 = arith.addf %224, %227 : vector<72x16xf32>
    %c0_158 = arith.constant 0 : index
    %c0_159 = arith.constant 0 : index
    %229 = vector.load %arg16[%c0_158, %c0_159] : memref<156x16xf32, #tpu.memory_space<vmem>>, vector<72x16xf32>
    tpu.vector_store %arg16[%c0_158, %c0_159], %228 {strides = array<i32>} : memref<156x16xf32, #tpu.memory_space<vmem>>, vector<72x16xf32>,
    %c0_160 = arith.constant 0 : index
    %c0_161 = arith.constant 0 : index
    %230 = vector.load %arg16[%c0_160, %c0_161] : memref<156x16xf32, #tpu.memory_space<vmem>>, vector<48x16xf32>
    %c24_162 = arith.constant 24 : index
    %c0_163 = arith.constant 0 : index
    %231 = vector.load %arg16[%c24_162, %c0_163] : memref<156x16xf32, #tpu.memory_space<vmem>>, vector<48x16xf32>
    %232 = tpu.concatenate %230, %231 in 1 : vector<48x16xf32>, vector<48x16xf32> -> vector<48x32xf32>
    %c5 = arith.constant 5 : index
    %c0_164 = arith.constant 0 : index
    %c0_165 = arith.constant 0 : index
    %233 = vector.load %arg5[%c5, %c0_164, %c0_165] : memref<8x32x32xf32, #tpu.memory_space<vmem>>, vector<1x32x32xf32>
    %234 = vector.shape_cast %233 : vector<1x32x32xf32> to vector<32x32xf32>
    %cst_166 = arith.constant dense<0.000000e+00> : vector<48x32xf32>
    %235 = tpu.matmul %232, %234, %cst_166 {dimension_numbers = #tpu.dot_dimension_numbers<[1], [0], [0], [1], [0, 0, 1, 1], [], []>} : vector<48x32xf32>, vector<32x32xf32>, vector<48x32xf32> -> vector<48x32xf32>
    %c5_167 = arith.constant 5 : index
    %c0_168 = arith.constant 0 : index
    %c0_169 = arith.constant 0 : index
    %236 = vector.load %arg6[%c5_167, %c0_168, %c0_169] : memref<8x1x32xf32, #tpu.memory_space<vmem>>, vector<1x1x32xf32>
    %237 = vector.shape_cast %236 : vector<1x1x32xf32> to vector<1x32xf32>
    %238 = vector.broadcast %237 : vector<1x32xf32> to vector<48x32xf32>
    %239 = arith.addf %235, %238 : vector<48x32xf32>
    %240 = vector.extract_strided_slice %239 {offsets = [0, 0], sizes = [48, 16], strides = [1, 1]} : vector<48x32xf32> to vector<48x16xf32>
    %241 = math.tanh %240 : vector<48x16xf32>
    %242 = vector.extract_strided_slice %239 {offsets = [0, 16], sizes = [48, 16], strides = [1, 1]} : vector<48x32xf32> to vector<48x16xf32>
    %243 = arith.negf %242 : vector<48x16xf32>
    %244 = math.exp %243 : vector<48x16xf32>
    %cst_170 = arith.constant 1.000000e+00 : f32
    %245 = vector.broadcast %cst_170 : f32 to vector<48x16xf32>
    %246 = arith.addf %245, %244 : vector<48x16xf32>
    %247 = arith.divf %245, %246 : vector<48x16xf32>
    %248 = arith.mulf %241, %247 : vector<48x16xf32>
    %c5_171 = arith.constant 5 : index
    %c0_172 = arith.constant 0 : index
    %c0_173 = arith.constant 0 : index
    %249 = vector.load %arg7[%c5_171, %c0_172, %c0_173] : memref<8x16x48xf32, #tpu.memory_space<vmem>>, vector<1x16x48xf32>
    %250 = vector.shape_cast %249 : vector<1x16x48xf32> to vector<16x48xf32>
    %cst_174 = arith.constant dense<0.000000e+00> : vector<48x48xf32>
    %251 = tpu.matmul %248, %250, %cst_174 {dimension_numbers = #tpu.dot_dimension_numbers<[1], [0], [0], [1], [0, 0, 1, 1], [], []>} : vector<48x16xf32>, vector<16x48xf32>, vector<48x48xf32> -> vector<48x48xf32>
    %c5_175 = arith.constant 5 : index
    %c0_176 = arith.constant 0 : index
    %c0_177 = arith.constant 0 : index
    %252 = vector.load %arg8[%c5_175, %c0_176, %c0_177] : memref<8x1x48xf32, #tpu.memory_space<vmem>>, vector<1x1x48xf32>
    %253 = vector.shape_cast %252 : vector<1x1x48xf32> to vector<1x48xf32>
    %254 = vector.broadcast %253 : vector<1x48xf32> to vector<48x48xf32>
    %255 = arith.addf %251, %254 : vector<48x48xf32>
    %256 = vector.extract_strided_slice %255 {offsets = [0, 0], sizes = [48, 32], strides = [1, 1]} : vector<48x48xf32> to vector<48x32xf32>
    %c24_178 = arith.constant 24 : index
    %c0_179 = arith.constant 0 : index
    %257 = vector.load %arg17[%c24_178, %c0_179] : memref<144x32xf32, #tpu.memory_space<vmem>>, vector<48x32xf32>
    %258 = arith.addf %256, %257 : vector<48x32xf32>
    %c0_180 = arith.constant 0 : index
    %c0_181 = arith.constant 0 : index
    %259 = vector.load %arg17[%c0_180, %c0_181] : memref<144x32xf32, #tpu.memory_space<vmem>>, vector<48x32xf32>
    tpu.vector_store %arg17[%c0_180, %c0_181], %258 {strides = array<i32>} : memref<144x32xf32, #tpu.memory_space<vmem>>, vector<48x32xf32>,
    %260 = vector.extract_strided_slice %255 {offsets = [0, 32], sizes = [48, 16], strides = [1, 1]} : vector<48x48xf32> to vector<48x16xf32>
    %261 = arith.addf %248, %260 : vector<48x16xf32>
    %262 = arith.addf %261, %231 : vector<48x16xf32>
    %c5_182 = arith.constant 5 : index
    %c0_183 = arith.constant 0 : index
    %c0_184 = arith.constant 0 : index
    %263 = vector.load %arg9[%c5_182, %c0_183, %c0_184] : memref<8x1x16xf32, #tpu.memory_space<vmem>>, vector<1x1x16xf32>
    %264 = vector.shape_cast %263 : vector<1x1x16xf32> to vector<1x16xf32>
    %265 = vector.broadcast %264 : vector<1x16xf32> to vector<48x16xf32>
    %266 = arith.mulf %262, %265 : vector<48x16xf32>
    %c5_185 = arith.constant 5 : index
    %c0_186 = arith.constant 0 : index
    %c0_187 = arith.constant 0 : index
    %267 = vector.load %arg10[%c5_185, %c0_186, %c0_187] : memref<8x1x16xf32, #tpu.memory_space<vmem>>, vector<1x1x16xf32>
    %268 = vector.shape_cast %267 : vector<1x1x16xf32> to vector<1x16xf32>
    %269 = vector.broadcast %268 : vector<1x16xf32> to vector<48x16xf32>
    %270 = arith.addf %266, %269 : vector<48x16xf32>
    %c0_188 = arith.constant 0 : index
    %c0_189 = arith.constant 0 : index
    %271 = vector.load %arg16[%c0_188, %c0_189] : memref<156x16xf32, #tpu.memory_space<vmem>>, vector<48x16xf32>
    tpu.vector_store %arg16[%c0_188, %c0_189], %270 {strides = array<i32>} : memref<156x16xf32, #tpu.memory_space<vmem>>, vector<48x16xf32>,
    %c0_190 = arith.constant 0 : index
    %c0_191 = arith.constant 0 : index
    %272 = vector.load %arg16[%c0_190, %c0_191] : memref<156x16xf32, #tpu.memory_space<vmem>>, vector<36x16xf32>
    %c12_192 = arith.constant 12 : index
    %c0_193 = arith.constant 0 : index
    %273 = vector.load %arg16[%c12_192, %c0_193] : memref<156x16xf32, #tpu.memory_space<vmem>>, vector<36x16xf32>
    %274 = tpu.concatenate %272, %273 in 1 : vector<36x16xf32>, vector<36x16xf32> -> vector<36x32xf32>
    %c6 = arith.constant 6 : index
    %c0_194 = arith.constant 0 : index
    %c0_195 = arith.constant 0 : index
    %275 = vector.load %arg5[%c6, %c0_194, %c0_195] : memref<8x32x32xf32, #tpu.memory_space<vmem>>, vector<1x32x32xf32>
    %276 = vector.shape_cast %275 : vector<1x32x32xf32> to vector<32x32xf32>
    %cst_196 = arith.constant dense<0.000000e+00> : vector<36x32xf32>
    %277 = tpu.matmul %274, %276, %cst_196 {dimension_numbers = #tpu.dot_dimension_numbers<[1], [0], [0], [1], [0, 0, 1, 1], [], []>} : vector<36x32xf32>, vector<32x32xf32>, vector<36x32xf32> -> vector<36x32xf32>
    %c6_197 = arith.constant 6 : index
    %c0_198 = arith.constant 0 : index
    %c0_199 = arith.constant 0 : index
    %278 = vector.load %arg6[%c6_197, %c0_198, %c0_199] : memref<8x1x32xf32, #tpu.memory_space<vmem>>, vector<1x1x32xf32>
    %279 = vector.shape_cast %278 : vector<1x1x32xf32> to vector<1x32xf32>
    %280 = vector.broadcast %279 : vector<1x32xf32> to vector<36x32xf32>
    %281 = arith.addf %277, %280 : vector<36x32xf32>
    %282 = vector.extract_strided_slice %281 {offsets = [0, 0], sizes = [36, 16], strides = [1, 1]} : vector<36x32xf32> to vector<36x16xf32>
    %283 = math.tanh %282 : vector<36x16xf32>
    %284 = vector.extract_strided_slice %281 {offsets = [0, 16], sizes = [36, 16], strides = [1, 1]} : vector<36x32xf32> to vector<36x16xf32>
    %285 = arith.negf %284 : vector<36x16xf32>
    %286 = math.exp %285 : vector<36x16xf32>
    %cst_200 = arith.constant 1.000000e+00 : f32
    %287 = vector.broadcast %cst_200 : f32 to vector<36x16xf32>
    %288 = arith.addf %287, %286 : vector<36x16xf32>
    %289 = arith.divf %287, %288 : vector<36x16xf32>
    %290 = arith.mulf %283, %289 : vector<36x16xf32>
    %c6_201 = arith.constant 6 : index
    %c0_202 = arith.constant 0 : index
    %c0_203 = arith.constant 0 : index
    %291 = vector.load %arg7[%c6_201, %c0_202, %c0_203] : memref<8x16x48xf32, #tpu.memory_space<vmem>>, vector<1x16x48xf32>
    %292 = vector.shape_cast %291 : vector<1x16x48xf32> to vector<16x48xf32>
    %cst_204 = arith.constant dense<0.000000e+00> : vector<36x48xf32>
    %293 = tpu.matmul %290, %292, %cst_204 {dimension_numbers = #tpu.dot_dimension_numbers<[1], [0], [0], [1], [0, 0, 1, 1], [], []>} : vector<36x16xf32>, vector<16x48xf32>, vector<36x48xf32> -> vector<36x48xf32>
    %c6_205 = arith.constant 6 : index
    %c0_206 = arith.constant 0 : index
    %c0_207 = arith.constant 0 : index
    %294 = vector.load %arg8[%c6_205, %c0_206, %c0_207] : memref<8x1x48xf32, #tpu.memory_space<vmem>>, vector<1x1x48xf32>
    %295 = vector.shape_cast %294 : vector<1x1x48xf32> to vector<1x48xf32>
    %296 = vector.broadcast %295 : vector<1x48xf32> to vector<36x48xf32>
    %297 = arith.addf %293, %296 : vector<36x48xf32>
    %298 = vector.extract_strided_slice %297 {offsets = [0, 0], sizes = [36, 32], strides = [1, 1]} : vector<36x48xf32> to vector<36x32xf32>
    %c12_208 = arith.constant 12 : index
    %c0_209 = arith.constant 0 : index
    %299 = vector.load %arg17[%c12_208, %c0_209] : memref<144x32xf32, #tpu.memory_space<vmem>>, vector<36x32xf32>
    %300 = arith.addf %298, %299 : vector<36x32xf32>
    %c0_210 = arith.constant 0 : index
    %c0_211 = arith.constant 0 : index
    %301 = vector.load %arg17[%c0_210, %c0_211] : memref<144x32xf32, #tpu.memory_space<vmem>>, vector<36x32xf32>
    tpu.vector_store %arg17[%c0_210, %c0_211], %300 {strides = array<i32>} : memref<144x32xf32, #tpu.memory_space<vmem>>, vector<36x32xf32>,
    %302 = vector.extract_strided_slice %297 {offsets = [0, 32], sizes = [36, 16], strides = [1, 1]} : vector<36x48xf32> to vector<36x16xf32>
    %303 = arith.addf %290, %302 : vector<36x16xf32>
    %304 = arith.addf %303, %273 : vector<36x16xf32>
    %c6_212 = arith.constant 6 : index
    %c0_213 = arith.constant 0 : index
    %c0_214 = arith.constant 0 : index
    %305 = vector.load %arg9[%c6_212, %c0_213, %c0_214] : memref<8x1x16xf32, #tpu.memory_space<vmem>>, vector<1x1x16xf32>
    %306 = vector.shape_cast %305 : vector<1x1x16xf32> to vector<1x16xf32>
    %307 = vector.broadcast %306 : vector<1x16xf32> to vector<36x16xf32>
    %308 = arith.mulf %304, %307 : vector<36x16xf32>
    %c6_215 = arith.constant 6 : index
    %c0_216 = arith.constant 0 : index
    %c0_217 = arith.constant 0 : index
    %309 = vector.load %arg10[%c6_215, %c0_216, %c0_217] : memref<8x1x16xf32, #tpu.memory_space<vmem>>, vector<1x1x16xf32>
    %310 = vector.shape_cast %309 : vector<1x1x16xf32> to vector<1x16xf32>
    %311 = vector.broadcast %310 : vector<1x16xf32> to vector<36x16xf32>
    %312 = arith.addf %308, %311 : vector<36x16xf32>
    %c0_218 = arith.constant 0 : index
    %c0_219 = arith.constant 0 : index
    %313 = vector.load %arg16[%c0_218, %c0_219] : memref<156x16xf32, #tpu.memory_space<vmem>>, vector<36x16xf32>
    tpu.vector_store %arg16[%c0_218, %c0_219], %312 {strides = array<i32>} : memref<156x16xf32, #tpu.memory_space<vmem>>, vector<36x16xf32>,
    %c0_220 = arith.constant 0 : index
    %c0_221 = arith.constant 0 : index
    %314 = vector.load %arg16[%c0_220, %c0_221] : memref<156x16xf32, #tpu.memory_space<vmem>>, vector<12x16xf32>
    %c24_222 = arith.constant 24 : index
    %c0_223 = arith.constant 0 : index
    %315 = vector.load %arg16[%c24_222, %c0_223] : memref<156x16xf32, #tpu.memory_space<vmem>>, vector<12x16xf32>
    %316 = tpu.concatenate %314, %315 in 1 : vector<12x16xf32>, vector<12x16xf32> -> vector<12x32xf32>
    %c7 = arith.constant 7 : index
    %c0_224 = arith.constant 0 : index
    %c0_225 = arith.constant 0 : index
    %317 = vector.load %arg5[%c7, %c0_224, %c0_225] : memref<8x32x32xf32, #tpu.memory_space<vmem>>, vector<1x32x32xf32>
    %318 = vector.shape_cast %317 : vector<1x32x32xf32> to vector<32x32xf32>
    %cst_226 = arith.constant dense<0.000000e+00> : vector<12x32xf32>
    %319 = tpu.matmul %316, %318, %cst_226 {dimension_numbers = #tpu.dot_dimension_numbers<[1], [0], [0], [1], [0, 0, 1, 1], [], []>} : vector<12x32xf32>, vector<32x32xf32>, vector<12x32xf32> -> vector<12x32xf32>
    %c7_227 = arith.constant 7 : index
    %c0_228 = arith.constant 0 : index
    %c0_229 = arith.constant 0 : index
    %320 = vector.load %arg6[%c7_227, %c0_228, %c0_229] : memref<8x1x32xf32, #tpu.memory_space<vmem>>, vector<1x1x32xf32>
    %321 = vector.shape_cast %320 : vector<1x1x32xf32> to vector<1x32xf32>
    %322 = vector.broadcast %321 : vector<1x32xf32> to vector<12x32xf32>
    %323 = arith.addf %319, %322 : vector<12x32xf32>
    %324 = vector.extract_strided_slice %323 {offsets = [0, 0], sizes = [12, 16], strides = [1, 1]} : vector<12x32xf32> to vector<12x16xf32>
    %325 = math.tanh %324 : vector<12x16xf32>
    %326 = vector.extract_strided_slice %323 {offsets = [0, 16], sizes = [12, 16], strides = [1, 1]} : vector<12x32xf32> to vector<12x16xf32>
    %327 = arith.negf %326 : vector<12x16xf32>
    %328 = math.exp %327 : vector<12x16xf32>
    %cst_230 = arith.constant 1.000000e+00 : f32
    %329 = vector.broadcast %cst_230 : f32 to vector<12x16xf32>
    %330 = arith.addf %329, %328 : vector<12x16xf32>
    %331 = arith.divf %329, %330 : vector<12x16xf32>
    %332 = arith.mulf %325, %331 : vector<12x16xf32>
    %c7_231 = arith.constant 7 : index
    %c0_232 = arith.constant 0 : index
    %c0_233 = arith.constant 0 : index
    %333 = vector.load %arg7[%c7_231, %c0_232, %c0_233] : memref<8x16x48xf32, #tpu.memory_space<vmem>>, vector<1x16x48xf32>
    %334 = vector.shape_cast %333 : vector<1x16x48xf32> to vector<16x48xf32>
    %cst_234 = arith.constant dense<0.000000e+00> : vector<12x48xf32>
    %335 = tpu.matmul %332, %334, %cst_234 {dimension_numbers = #tpu.dot_dimension_numbers<[1], [0], [0], [1], [0, 0, 1, 1], [], []>} : vector<12x16xf32>, vector<16x48xf32>, vector<12x48xf32> -> vector<12x48xf32>
    %c7_235 = arith.constant 7 : index
    %c0_236 = arith.constant 0 : index
    %c0_237 = arith.constant 0 : index
    %336 = vector.load %arg8[%c7_235, %c0_236, %c0_237] : memref<8x1x48xf32, #tpu.memory_space<vmem>>, vector<1x1x48xf32>
    %337 = vector.shape_cast %336 : vector<1x1x48xf32> to vector<1x48xf32>
    %338 = vector.broadcast %337 : vector<1x48xf32> to vector<12x48xf32>
    %339 = arith.addf %335, %338 : vector<12x48xf32>
    %340 = vector.extract_strided_slice %339 {offsets = [0, 0], sizes = [12, 32], strides = [1, 1]} : vector<12x48xf32> to vector<12x32xf32>
    %c24_238 = arith.constant 24 : index
    %c0_239 = arith.constant 0 : index
    %341 = vector.load %arg17[%c24_238, %c0_239] : memref<144x32xf32, #tpu.memory_space<vmem>>, vector<12x32xf32>
    %342 = arith.addf %340, %341 : vector<12x32xf32>
    %c0_240 = arith.constant 0 : index
    %c0_241 = arith.constant 0 : index
    %343 = vector.load %arg17[%c0_240, %c0_241] : memref<144x32xf32, #tpu.memory_space<vmem>>, vector<12x32xf32>
    tpu.vector_store %arg17[%c0_240, %c0_241], %342 {strides = array<i32>} : memref<144x32xf32, #tpu.memory_space<vmem>>, vector<12x32xf32>,
    %c0_242 = arith.constant 0 : index
    %c0_243 = arith.constant 0 : index
    %344 = vector.load %arg17[%c0_242, %c0_243] : memref<144x32xf32, #tpu.memory_space<vmem>>, vector<12x32xf32>
    %cst_244 = arith.constant 0.000000e+00 : f32
    %345 = vector.broadcast %cst_244 : f32 to vector<12x32xf32>
    %346 = arith.maximumf %344, %345 : vector<12x32xf32>
    %c0_245 = arith.constant 0 : index
    %c0_246 = arith.constant 0 : index
    %347 = vector.load %arg11[%c0_245, %c0_246] : memref<32x16xf32, #tpu.memory_space<vmem>>, vector<32x16xf32>
    %cst_247 = arith.constant dense<0.000000e+00> : vector<12x16xf32>
    %348 = tpu.matmul %346, %347, %cst_247 {dimension_numbers = #tpu.dot_dimension_numbers<[1], [0], [0], [1], [0, 0, 1, 1], [], []>} : vector<12x32xf32>, vector<32x16xf32>, vector<12x16xf32> -> vector<12x16xf32>
    %c0_248 = arith.constant 0 : index
    %c0_249 = arith.constant 0 : index
    %349 = vector.load %arg12[%c0_248, %c0_249] : memref<1x16xf32, #tpu.memory_space<vmem>>, vector<1x16xf32>
    %350 = vector.broadcast %349 : vector<1x16xf32> to vector<12x16xf32>
    %351 = arith.addf %348, %350 : vector<12x16xf32>
    %cst_250 = arith.constant 0.000000e+00 : f32
    %352 = vector.broadcast %cst_250 : f32 to vector<12x16xf32>
    %353 = arith.maximumf %351, %352 : vector<12x16xf32>
    %c0_251 = arith.constant 0 : index
    %c0_252 = arith.constant 0 : index
    %354 = vector.load %arg13[%c0_251, %c0_252] : memref<16x1xf32, #tpu.memory_space<vmem>>, vector<16x1xf32>
    %cst_253 = arith.constant dense<0.000000e+00> : vector<12x1xf32>
    %355 = tpu.matmul %353, %354, %cst_253 {dimension_numbers = #tpu.dot_dimension_numbers<[1], [0], [0], [1], [0, 0, 1, 1], [], []>} : vector<12x16xf32>, vector<16x1xf32>, vector<12x1xf32> -> vector<12x1xf32>
    %c0_254 = arith.constant 0 : index
    %c0_255 = arith.constant 0 : index
    %356 = vector.load %arg14[%c0_254, %c0_255] : memref<1x1xf32, #tpu.memory_space<vmem>>, vector<1x1xf32>
    %357 = vector.broadcast %356 : vector<1x1xf32> to vector<12x1xf32>
    %358 = arith.addf %355, %357 : vector<12x1xf32>
    %c0_256 = arith.constant 0 : index
    %c0_257 = arith.constant 0 : index
    %359 = vector.load %arg15[%c0_256, %c0_257] : memref<12x1xf32, #tpu.memory_space<vmem>>, vector<12x1xf32>
    tpu.vector_store %arg15[%c0_256, %c0_257], %358 {strides = array<i32>} : memref<12x1xf32, #tpu.memory_space<vmem>>, vector<12x1xf32>,
    return
  }
}

</mosaic_0001>

<bundles_post_ra>
// kernel: airspace_forward.2
= control target key start
LH: loop header
LB: loop body
LE: loop exit
PB: predicated region body
PF: predicated region fallthrough
CT: control target
= control target key end

     0   :  { %s8649_s0 = inlined_call_operand.vmem [shape: f32[6,16,5], index: 0, kind: input, shape index: {}]   ;;  %s8650_s1 = inlined_call_operand.vmem [shape: f32[6,5,512], index: 1, kind: input, shape index: {}]   ;;  %s8651_s2 = inlined_call_operand.hbm [shape: f32[6,128,512], index: 2, kind: input, shape index: {}]   ;;  %s8652_s3 = inlined_call_operand.hbm [shape: f32[6,1,512], index: 3, kind: input, shape index: {}]   ;;  %s8653_s4 = inlined_call_operand.hbm [shape: f32[6,256,512], index: 4, kind: input, shape index: {}]   ;;  %s8654_s5 = inlined_call_operand.hbm [shape: f32[6,1,512], index: 5, kind: input, shape index: {}]   ;;  %s8655_s6 = inlined_call_operand.vmem [shape: f32[6,2,2,128], index: 6, kind: input, shape index: {}]   ;;  %s8656_s7 = inlined_call_operand.vmem [shape: f32[6,2,2,128], index: 7, kind: input, shape index: {}]   ;;  %s8657_s8 = inlined_call_operand.hbm [shape: f32[8,128], index: 8, kind: input, shape index: {}]   ;;  %s8658_s9 = inlined_call_operand.vmem [shape: f32[128,1], index: 9, kind: input, shape index: {}]   ;;  %s8659_s10 = inlined_call_operand.<no memory space> [shape: f32[1,1], index: 10, kind: input, shape index: {}]   ;;  %s8660_s11 = inlined_call_operand.vmem [shape: f32[6,2,1], index: 11, kind: output, shape index: {0}]   ;;  %s8661_s12 = inlined_call_operand.hbm [shape: f32[6,2,2,100], index: 12, kind: output, shape index: {1}]   ;;  %s8662_s13 = inlined_call_operand.hbm [shape: f32[6,2,2,100], index: 13, kind: output, shape index: {2}]  }
   0x1   :  { %8828 = sst [smem:[#allocation96_spill]] %s8651_s2  ;;  %v19_v0 = vstv %s8659_s10 }
   0x2   :  { %8829 = sst [smem:[#allocation97_spill]] %s8652_s3  ;;  %20 = vst [vmem:[#allocation2] sm:$0x1] %v19_v0 }
   0x3   :  { %8830 = sst [smem:[#allocation98_spill]] %s8657_s8 }
   0x4   :  { %8831 = sst [smem:[#allocation99_spill]] %s8660_s11 }
   0x5   :  { %8832 = sst [smem:[#allocation100_spill]] %s8661_s12 }
   0x6   :  { %8833 = sst [smem:[#allocation101_spill]] %s8662_s13 }
   0x7   :  { %21 = vsyncpa [#allocation4], 0 }
   0x8   :  { %23 = vsyncpa [#allocation4 + $0x1], 0 }
   0x9   :  { %24 = vsyncpa [#allocation7], 0 }
   0xa   :  { %26 = vsyncpa [#allocation7 + $0x1], 0 }
   0xb   :  { %27 = vsyncpa [#allocation10], 0 }
   0xc   :  { %29 = vsyncpa [#allocation10 + $0x1], 0 }
   0xd   :  { %30 = vsyncpa [#allocation5], 0 }
   0xe   :  { %32 = vsyncpa [#allocation5 + $0x1], 0 }
   0xf   :  { %33 = vsyncpa [#allocation14], 0 }
  0x10   :  { %35 = vsyncpa [#allocation14 + $0x1], 0  ;;  %s6804_s27 = smov 0   ;;  %s6806_s28 = smov 0  }
  0x11   :  { %s6808_s29 = smov 0   ;;  %s6810_s30 = smov 0  }
  0x12 LB: > { %8834 = sst [smem:[#allocation21_spill]] %s6703_s27  ;;  %s6825_s10 = sadd.s32 4294967295, %s6715_s30   ;;  %s6715_s30 = sphi %s6810_s30, %s9377_s30   ;;  %s6711_s29 = sphi %s6808_s29, %s9379_s29   ;;  %s6707_s28 = sphi %s6806_s28, %s9381_s28   ;;  %s6703_s27 = sphi %s6804_s27, %s9380_s27  }
  0x13   : > { %8835 = sst [smem:[#allocation22_spill]] %s6711_s29  ;;  %s4385_s14 = sadd.s32 4294967294, %s6715_s30  }
  0x14   : > { %s6829_s15 = sadd.s32 1, %s6715_s30   ;;  %s100_s16 = sadd.s32 1, %s6711_s29 }
  0x15   : > { %8836 = sst [smem:[#allocation23_spill]] %s6829_s15  ;;  %s97_s17 = ssub.s32 %s6715_s30, %s6829_s15 }
  0x16   : > { %p107_p0 = scmp.ne.s32.totalorder %s6711_s29, %s6707_s28  ;;  %p98_p1 = scmp.eq.s32.totalorder %s97_s17, 0 }
  0x17   : > { %p108_p2 = scmp.eq.s32.totalorder %s6715_s30, 0  ;;  %p113_p3 = scmp.ne.s32.totalorder %s6707_s28, %s6703_s27 }
  0x18   : > { %p8668_p4 = scmp.eq.s32.totalorder %s6825_s10, 0  ;;  %p356_p7 = scmp.eq.s32.totalorder %s6825_s10, 5 }
  0x19   : > { %s6841_s18 = scalar_select %p98_p1, %s6711_s29, %s100_s16  }
  0x1a   : > { %p6843_p5 = por %p108_p2, %p107_p0  ;;  %p6849_p6 = por %p8668_p4, %p113_p3 }
  0x1b   : > { %8837 = sst [smem:[#allocation24_spill]] %s6841_s18  ;;  %p362_p8 = scmp.eq.s32.totalorder %s4385_s14, 5 }
  0x1c   : > { %s8839_s20 = scalar_select %p6849_p6, 1, 0 }
  0x1d   : > { %p4386_p9 = scmp.ge.s32.totalorder %s6715_s30, 1  ;;  %p395_p10 = scmp.lt.s32.totalorder %s6715_s30, 7 }
  0x1e   : > { %p6856_p11 = por %p356_p7, %p107_p0  ;;  %p6860_p12 = por %p362_p8, %p113_p3 }
  0x1f   : > { %p6864_p13 = pnand %p4386_p9, %p395_p10  ;;  %s6717_s24 = smov [#allocation11]  }
  0x20   : > { %s8840_s21 = scalar_select %p6856_p11, 1, 0 }
  0x21   : > { %s8842_s22 = scalar_select %p6860_p12, 1, 0 }
  0x22   : > { %8841 = sst [smem:[#allocation25_spill]] %s8840_s21  ;;  %p6133_p1 = pneg %p6864_p13 }
  0x23   : > { %8843 = sst [smem:[#allocation26_spill]] %s8842_s22  ;;  %s408_s25 = sshll.u32 %s6717_s24, 4  ;;  %s409_s25 = int_to_ptr.vmem [resolvable:$true] %s408_s25 }
  0x24   : > { %s8844_s23 = scalar_select %p6864_p13, 1, 0 }
  0x25   : > { %p6158_p2 = scmp.lt.s32.totalorder %s6715_s30, 6  ;;  %p6873_p0 = pnand %p6133_p1, %p8668_p4 }
  0x26   : > { %s6878_s14 = sand.u32 1, %s6711_s29   ;;  %s8675_s17 = sand.u32 1, %s6715_s30  }
  0x27   : > { %p6882_p3 = pnand %p6158_p2, %p6843_p5  ;;  %s8847_s8 = sld [smem:[#allocation98_spill]] }
  0x28   : > { %p6459_p8 = pneg %p6873_p0 }
  0x29   : > { %s8846_s16 = scalar_select %p6882_p3, 1, 0 }
  0x2d   : > { %s6457_s24 = scalar_lea.hbm %s8847_s8, 128 }
  0x2e   : > { %p6458_p7 = scmp.ne.s32.totalorder %s8847_s8, %s6457_s24  ;;  %p6464_p5 = scmp.lt.u32.totalorder %s6457_s24, %s8847_s8 }
  0x30   : > { %p6460_p9 = pnand %p6459_p8, %p6458_p7 }
  0x32   : > { %p6461_p10 = pneg %p6460_p9 }
  0x34   : > { %p6466_p1 = pnand %p6464_p5, %p6461_p10 }
  0x36   : > { %6469 = shalt.err (!%p6466_p1)
}
  0x37   : > { %s6470_s19 = scalar_lea.vmem %s409_s25, 128  ;;  %p6478_p11 = scmp.lt.s32.totalorder %s409_s25, %s409_s25 }
  0x38   : > { %p6471_p2 = scmp.ne.s32.totalorder %s409_s25, %s6470_s19  ;;  %p6479_p6 = scmp.lt.s32.totalorder %s6470_s19, %s6470_s19 }
  0x3a   : > { %p6473_p4 = pnand %p6471_p2, %p6459_p8  ;;  %p6480_p13 = por %p6479_p6, %p6478_p11 }
  0x3c   : > { %p6474_p12 = pneg %p6473_p4 }
  0x3e   : > { %p6481_p3 = pnand %p6480_p13, %p6474_p12 }
  0x40   : > { %6484 = shalt.err (!%p6481_p3)
}
  0x41   : > { %6136 = dma.hbm_to_vmem [thread:$0]  (!%p6873_p0), %s8847_s8, 128, %s409_s25, [#allocation10]  }
  0x42   : > { %s8673_s11 = sshll.u32 %s6878_s14, 2  ;;  %s8674_s29 = sshll.u32 %s6715_s30, 6 }
  0x43   : > { %s8848_s3 = sld [smem:[#allocation97_spill]]  ;;  %s466_s26 = scalar_lea.vmem [#allocation6], %s8673_s11 }
  0x44   : > { %s474_s19 = sshll.u32 %s466_s26, 4  ;;  %s6918_s27 = scalar_lea.sflag [#allocation7], %s8675_s17  ;;  %s6914_s19 = int_to_ptr.vmem [resolvable:$true] %s474_s19 }
  0x45   : > { %p8849_p6 = scmp.ne.s32.totalorder %s8846_s16, 0 }
  0x47   : > { %p6924_p11 = pneg %p8849_p6 }
  0x49   : > { %s6910_s24 = scalar_lea.hbm %s8848_s3, %s8674_s29  ;;  %s6490_s26 = scalar_lea.hbm %s8848_s3, 384 }
  0x4a   : > { %s6485_s25 = scalar_lea.hbm %s6910_s24, 64  ;;  %p6491_p0 = scmp.lt.u32.totalorder %s6910_s24, %s8848_s3 }
  0x4b   : > { %p6486_p4 = scmp.ne.s32.totalorder %s6910_s24, %s6485_s25  ;;  %p6492_p3 = scmp.lt.u32.totalorder %s6490_s26, %s6485_s25 }
  0x4c   : > { %p6494_p8 = scmp.lt.u32.totalorder %s6485_s25, %s6910_s24 }
  0x4d   : > { %p6488_p12 = pnand %p6924_p11, %p6486_p4  ;;  %p6493_p7 = por %p6492_p3, %p6491_p0 }
  0x4f   : > { %p6489_p13 = pneg %p6488_p12  ;;  %p6495_p9 = por %p6494_p8, %p6493_p7 }
  0x51   : > { %p6496_p10 = pnand %p6495_p9, %p6489_p13 }
  0x53   : > { %6499 = shalt.err (!%p6496_p10)
}
  0x54   : > { %s6500_s17 = scalar_lea.vmem %s6914_s19, 64  ;;  %s6718_s18 = smov [#allocation6]  }
  0x55   : > { %p6501_p5 = scmp.ne.s32.totalorder %s6914_s19, %s6500_s17  ;;  %s6505_s22 = sshll.u32 %s6718_s18, 4  ;;  %s6506_s22 = int_to_ptr.vmem [resolvable:$false] %s6505_s22 }
  0x56   : > { %s6507_s11 = scalar_lea.vmem %s6506_s22, 128  ;;  %p6508_p4 = scmp.lt.s32.totalorder %s6914_s19, %s6506_s22 }
  0x57   : > { %p6503_p1 = pnand %p6501_p5, %p6924_p11  ;;  %p6509_p12 = scmp.lt.s32.totalorder %s6507_s11, %s6500_s17 }
  0x59   : > { %p6504_p2 = pneg %p6503_p1  ;;  %p6510_p0 = por %p6509_p12, %p6508_p4 }
  0x5b   : > { %p6511_p3 = pnand %p6510_p0, %p6504_p2 }
  0x5d   : > { %6514 = shalt.err (!%p6511_p3)
}
  0x5e   : > { %6143 = dma.hbm_to_vmem [thread:$0]  (!%p8849_p6), %s6910_s24, 64, %s6914_s19, %s6918_s27  }
  0x5f   : > { %s8851_s29 = sshll.u32 %s6715_s30, 6  ;;  %s4389_s18 = sshll.u32 %s6878_s14, 9 }
  0x60   : > { %s6953_s17 = scalar_lea.hbm %s8654_s5, %s8851_s29  ;;  %s4495_s22 = sshll.u32 %s6715_s30, 13 }
  0x61   : > { %s8852_s2 = sld [smem:[#allocation96_spill]]  ;;  %s445_s13 = scalar_lea.vmem [#allocation3], %s4389_s18 }
  0x62   : > { %s452_s12 = sshll.u32 %s445_s13, 4  ;;  %s4395_s24 = sshll.u32 %s6878_s14, 10  ;;  %s6962_s12 = int_to_ptr.vmem [resolvable:$true] %s452_s12 }
  0x63   : > { %s442_s19 = scalar_lea.sflag [#allocation4], %s6878_s14 }
  0x67   : > { %s6960_s8 = scalar_lea.hbm %s8852_s2, %s4495_s22  ;;  %s6520_s3 = scalar_lea.hbm %s8852_s2, 49152 }
  0x68   : > { %s6515_s25 = scalar_lea.hbm %s6960_s8, 8192  ;;  %p6521_p9 = scmp.lt.u32.totalorder %s6960_s8, %s8852_s2 }
  0x69   : > { %p6516_p13 = scmp.ne.s32.totalorder %s6960_s8, %s6515_s25  ;;  %p6522_p10 = scmp.lt.u32.totalorder %s6520_s3, %s6515_s25 }
  0x6a   : > { %p6524_p1 = scmp.lt.u32.totalorder %s6515_s25, %s6960_s8 }
  0x6b   : > { %p6518_p7 = pnand %p6516_p13, %p6924_p11  ;;  %p6523_p5 = por %p6522_p10, %p6521_p9 }
  0x6d   : > { %p6519_p8 = pneg %p6518_p7  ;;  %p6525_p2 = por %p6524_p1, %p6523_p5 }
  0x6f   : > { %p6526_p4 = pnand %p6525_p2, %p6519_p8 }
  0x71   : > { %6529 = shalt.err (!%p6526_p4)
}
  0x72   : > { %s6530_s13 = scalar_lea.vmem %s6962_s12, 8192  ;;  %s6719_s18 = smov [#allocation3]  }
  0x73   : > { %p6531_p12 = scmp.ne.s32.totalorder %s6962_s12, %s6530_s13  ;;  %s6535_s29 = sshll.u32 %s6719_s18, 4  ;;  %s6536_s29 = int_to_ptr.vmem [resolvable:$false] %s6535_s29 }
  0x74   : > { %s6537_s26 = scalar_lea.vmem %s6536_s29, 16384  ;;  %p6538_p13 = scmp.lt.s32.totalorder %s6962_s12, %s6536_s29 }
  0x75   : > { %p6533_p0 = pnand %p6531_p12, %p6924_p11  ;;  %p6539_p7 = scmp.lt.s32.totalorder %s6537_s26, %s6530_s13 }
  0x77   : > { %p6534_p3 = pneg %p6533_p0  ;;  %p6540_p9 = por %p6539_p7, %p6538_p13 }
  0x79   : > { %p6541_p10 = pnand %p6540_p9, %p6534_p3 }
  0x7b   : > { %6544 = shalt.err (!%p6541_p10)
}
  0x7c   : > { %s8680_s25 = smov 512   ;;  %s6721_s3 = smov 32  }
  0x7d   : > { %6140 = dma.hbm_to_vmem [thread:$0]  (!%p8849_p6), %s6960_s8, 8192, %s6962_s12, %s442_s19, %s8680_s25, %s8680_s25, %s6721_s3  }
  0x7e   : > { %s4497_s22 = sshll.u32 %s6715_s30, 14  ;;  %s485_s29 = scalar_lea.vmem [#allocation8], %s4395_s24 }
  0x7f   : > { %s6996_s18 = scalar_lea.hbm %s8653_s4, %s4497_s22  ;;  %s492_s26 = sshll.u32 %s485_s29, 4  ;;  %s7000_s26 = int_to_ptr.vmem [resolvable:$true] %s492_s26 }
  0x80   : > { %s8853_s2 = sshll.u32 %s6878_s14, 2  ;;  %s6545_s12 = scalar_lea.hbm %s6996_s18, 16384 }
  0x81   : > { %s7004_s21 = scalar_lea.vmem [#allocation9], %s8853_s2  ;;  %p6546_p8 = scmp.ne.s32.totalorder %s6996_s18, %s6545_s12 }
  0x82   : > { %s514_s8 = sshll.u32 %s7004_s21, 4  ;;  %s6550_s11 = scalar_lea.hbm %s8653_s4, 98304  ;;  %s515_s8 = int_to_ptr.vmem [resolvable:$true] %s514_s8 }
  0x83   : > { %p6548_p5 = pnand %p6546_p8, %p6924_p11  ;;  %p6551_p2 = scmp.lt.u32.totalorder %s6996_s18, %s8653_s4 }
  0x84   : > { %p6552_p4 = scmp.lt.u32.totalorder %s6550_s11, %s6545_s12  ;;  %p6554_p0 = scmp.lt.u32.totalorder %s6545_s12, %s6996_s18 }
  0x85   : > { %p6549_p1 = pneg %p6548_p5 }
  0x86   : > { %p6553_p12 = por %p6552_p4, %p6551_p2 }
  0x88   : > { %p6555_p3 = por %p6554_p0, %p6553_p12 }
  0x8a   : > { %p6556_p13 = pnand %p6555_p3, %p6549_p1 }
  0x8c   : > { %6559 = shalt.err (!%p6556_p13)
}
  0x8d   : > { %s6560_s2 = scalar_lea.vmem %s7000_s26, 16384  ;;  %s6722_s14 = smov [#allocation8]  }
  0x8e   : > { %p6561_p7 = scmp.ne.s32.totalorder %s7000_s26, %s6560_s2  ;;  %s6565_s24 = sshll.u32 %s6722_s14, 4  ;;  %s6566_s24 = int_to_ptr.vmem [resolvable:$false] %s6565_s24 }
  0x8f   : > { %s6567_s25 = scalar_lea.vmem %s6566_s24, 32768  ;;  %p6568_p8 = scmp.lt.s32.totalorder %s7000_s26, %s6566_s24 }
  0x90   : > { %p6563_p9 = pnand %p6561_p7, %p6924_p11  ;;  %p6569_p5 = scmp.lt.s32.totalorder %s6567_s25, %s6560_s2 }
  0x92   : > { %p6564_p10 = pneg %p6563_p9  ;;  %p6570_p2 = por %p6569_p5, %p6568_p8 }
  0x94   : > { %p6571_p4 = pnand %p6570_p2, %p6564_p10 }
  0x96   : > { %6574 = shalt.err (!%p6571_p4)
}
  0x97   : > { %s8854_s29 = smov 512   ;;  %s8855_s12 = sand.u32 1, %s6715_s30  }
  0x98   : > { %6146 = dma.hbm_to_vmem [thread:$0]  (!%p8849_p6), %s6996_s18, 16384, %s7000_s26, %s6918_s27, %s8854_s29, %s8854_s29, %s6721_s3  }
  0x99   : > { %s503_s19 = scalar_lea.sflag [#allocation10], %s8855_s12  ;;  %s6575_s22 = scalar_lea.hbm %s6953_s17, 64 }
  0x9a   : > { %p6576_p1 = scmp.ne.s32.totalorder %s6953_s17, %s6575_s22  ;;  %s6580_s2 = scalar_lea.hbm %s8654_s5, 384 }
  0x9b   : > { %p6581_p3 = scmp.lt.u32.totalorder %s6953_s17, %s8654_s5  ;;  %p6582_p13 = scmp.lt.u32.totalorder %s6580_s2, %s6575_s22 }
  0x9c   : > { %p6578_p12 = pnand %p6576_p1, %p6924_p11  ;;  %p6584_p9 = scmp.lt.u32.totalorder %s6575_s22, %s6953_s17 }
  0x9d   : > { %p6583_p7 = por %p6582_p13, %p6581_p3 }
  0x9e   : > { %p6579_p0 = pneg %p6578_p12 }
  0x9f   : > { %p6585_p10 = por %p6584_p9, %p6583_p7 }
  0xa1   : > { %p6586_p8 = pnand %p6585_p10, %p6579_p0 }
  0xa3   : > { %6589 = shalt.err (!%p6586_p8)
}
  0xa4   : > { %s6590_s21 = scalar_lea.vmem %s515_s8, 64  ;;  %s6723_s27 = smov [#allocation9]  }
  0xa5   : > { %p6591_p5 = scmp.ne.s32.totalorder %s515_s8, %s6590_s21  ;;  %s6595_s3 = sshll.u32 %s6723_s27, 4  ;;  %s6596_s3 = int_to_ptr.vmem [resolvable:$false] %s6595_s3 }
  0xa6   : > { %s6597_s18 = scalar_lea.vmem %s6596_s3, 128  ;;  %p6598_p1 = scmp.lt.s32.totalorder %s515_s8, %s6596_s3 }
  0xa7   : > { %p6593_p2 = pnand %p6591_p5, %p6924_p11  ;;  %p6599_p12 = scmp.lt.s32.totalorder %s6597_s18, %s6590_s21 }
  0xa9   : > { %p6594_p4 = pneg %p6593_p2  ;;  %p6600_p6 = por %p6599_p12, %p6598_p1 }
  0xab   : > { %p6601_p3 = pnand %p6600_p6, %p6594_p4 }
  0xad   : > { %6604 = shalt.err (!%p6601_p3)
}
  0xae   : > { %p8856_p13 = scmp.ne.s32.totalorder %s8846_s16, 0  ;;  %p8857_p0 = scmp.ne.s32.totalorder %s8844_s23, 0 }
  0xb0   : > { %6149 = dma.hbm_to_vmem [thread:$0]  (!%p8856_p13), %s6953_s17, 64, %s515_s8, %s503_s19  }
  0xb1   : > { %539 = sbr.rel (%p8857_p0) target bundleno = 3025 (0xbd1), region = 64 }
  0xb8   : > { %s7056_s15 = sand.u32 1, %s6707_s28   ;;  %p8858_p11 = scmp.ne.s32.totalorder %s8839_s20, 0 }
  0xb9   : > { %s4402_s26 = sshll.u32 %s7056_s15, 9  ;;  %s542_s25 = scalar_lea.sflag [#allocation4], %s7056_s15 }
  0xba   : > { %s7060_s29 = scalar_lea.vmem [#allocation3], %s4402_s26 }
  0xbb   : > { %6678 = dma.done.wait (%p8858_p11), %s542_s25, 8192  }
  0xbc   : > { %6680 = vsyncadd (%p8858_p11), %s542_s25, 4294959104  ;;  %s550_s23 = sand.u32 1, %s6825_s10   ;;  %s7068_s16 = sshll.u32 %s7056_s15, 2 }
  0xbd   : > { %s551_s17 = scalar_lea.sflag [#allocation7], %s550_s23  ;;  %s554_s8 = scalar_lea.vmem [#allocation6], %s7068_s16 }
  0xbe   : > { %6682 = dma.done.wait (%p8858_p11), %s551_s17, 16448  }
  0xbf   : > { %6684 = vsyncadd (%p8858_p11), %s551_s17, 4294950848  ;;  %s4404_s12 = sshll.u32 %s7056_s15, 10  ;;  %s569_s22 = scalar_lea.sflag [#allocation10], %s550_s23 }
  0xc0   : > { %s7076_s19 = scalar_lea.vmem [#allocation8], %s4404_s12  ;;  %s572_s11 = scalar_lea.vmem [#allocation9], %s7068_s16 }
  0xc1   : > { %6686 = dma.done.wait (%p8858_p11), %s569_s22, 64  }
  0xc2   : > { %6688 = vsyncadd (%p8858_p11), %s569_s22, 4294967232  ;;  %p8859_p6 = scmp.eq.s32.totalorder %s6825_s10, 0 }
  0xc4   : > { %6690 = dma.done.wait (%p8859_p6), [#allocation10], 128   ;;  %p8860_p7 = pmov %p8859_p6 }
  0xc5   : > { %p663_p9 = scmp.lt.s32.totalorder %s6825_s10, 5  ;;  %v8682_v1 = vmov 0.0   ;;  %vm931_vm0 = vcmask 1044480   ;;  %vm924_vm1 = vcmask 39936   ;;  %v692_v5 = vld [vmem:[%s7060_s29 + $0x8] sm:$0xff]  ;;  %v691_v7 = vld [vmem:[%s7060_s29] sm:$0xff] }
  0xc6   : > { %6692 = vsyncadd (%p8860_p7), [#allocation10], 4294967168  ;;  %1008 = vmatprep.mubr.f32.mxu1 %v8682_v1  ;;  %1168 = vmatprep.mubr.f32.mxu0 %v8682_v1  ;;  %v696_v6 = vld [vmem:[%s7060_s29 + $0x28] sm:$0xff]  ;;  %v695_v9 = vld [vmem:[%s7060_s29 + $0x20] sm:$0xff]  ;;  %vm4083_vm2 = vcmask 818182   ;;  %s8493_s22 = scalar_lea.vmem [#allocation12], %s7068_s16 }
  0xc7   : > { %s7091_s13 = scalar_select %p663_p9, %s6825_s10, 5  ;;  %v7106_v8 = vpack.c.bf16 %v696_v6, %v692_v5  ;;  %v700_v11 = vld [vmem:[%s7060_s29 + $0x48] sm:$0xff]  ;;  %v7113_v12 = vpack.c.bf16 %v695_v9, %v691_v7  ;;  %v699_v15 = vld [vmem:[%s7060_s29 + $0x40] sm:$0xff]  ;;  %v694_v19 = vld [vmem:[%s7060_s29 + $0x18] sm:$0xff]  ;;  %vm6726_vm3 = vmmov 0   ;;  %vm4086_vm4 = vcmask 812032  }
  0xc8   : > { %v704_v13 = vld [vmem:[%s7060_s29 + $0x68] sm:$0xff]  ;;  %v703_v17 = vld [vmem:[%s7060_s29 + $0x60] sm:$0xff]  ;;  %v698_v21 = vld [vmem:[%s7060_s29 + $0x38] sm:$0xff]  ;;  %s9370_s14 = sld [smem:[#allocation100_spill]]  ;;  %s6727_s27 = smov [#allocation12]  }
  0xc9   : > { %s4500_s20 = sshll.u32 %s7091_s13, 5  ;;  %s4499_s2 = sshll.u32 %s7091_s13, 4  ;;  %8861 = vst [vmem:[#allocation27_spill] sm:$0xff] %v7106_v8  ;;  %4558 = vmatprep.subr.bf16.mxu0 %v7106_v8  ;;  %v7119_v16 = vpack.c.bf16 %v704_v13, %v700_v11  ;;  %v7125_v20 = vpack.c.bf16 %v703_v17, %v699_v15  ;;  %v708_v22 = vld [vmem:[%s7060_s29 + $0x88] sm:$0xff]  ;;  %v7132_v24 = vpack.c.bf16 %v698_v21, %v694_v19  ;;  %v693_v26 = vld [vmem:[%s7060_s29 + $0x10] sm:$0xff]  ;;  %v707_v28 = vld [vmem:[%s7060_s29 + $0x80] sm:$0xff] }
  0xca   : > { %s672_s21 = scalar_lea.vmem %s8650_s1, %s4500_s20  ;;  %s667_s18 = scalar_lea.vmem %s8649_s0, %s4499_s2  ;;  %4560 = vmatpush1.bf16.msra.mxu0 %v7113_v12  ;;  %v712_v23 = vld [vmem:[%s7060_s29 + $0xa8] sm:$0xff]  ;;  %v697_v27 = vld [vmem:[%s7060_s29 + $0x30] sm:$0xff]  ;;  %v711_v29 = vld [vmem:[%s7060_s29 + $0xa0] sm:$0xff] }
  0xcb   : > { %v688_v2 = vld [vmem:[%s672_s21 + $0x8] sm:$0x1f]  ;;  %v687_v3 = vld [vmem:[%s672_s21] sm:$0x1f]  ;;  %v690_v14 = vld [vmem:[%s672_s21 + $0x18] sm:$0x1f]  ;;  %4562 = vmatprep.subr.bf16.mxu0 %v7119_v16  ;;  %v7134_v25 = vpack.c.bf16 %v712_v23, %v708_v22  ;;  %v7146_v32 = vpack.c.bf16 %v697_v27, %v693_v26  ;;  %v7151_v35 = vpack.c.bf16 %v711_v29, %v707_v28 }
  0xcc   : > { %v900_v4 = vld [vmem:[%s667_s18] sm:$0xff]  ;;  %4418 = vmatprep.subr.msk.mxu1 %vm931_vm0, %v688_v2  ;;  %v7109_v10 = vld [vmem:[%s667_s18 + $0x8] sm:$0xff]  ;;  %v689_v18 = vld [vmem:[%s672_s21 + $0x10] sm:$0x1f]  ;;  %8862 = vst [vmem:[#allocation28_spill] sm:$0xff] %v7132_v24  ;;  %s4501_s26 = sshll.u32 %s7091_s13, 2 }
  0xcd   : > { %4419 = vmatpush1.msk.msra.mxu1 %vm931_vm0, %v687_v3  ;;  %v702_v30 = vld [vmem:[%s7060_s29 + $0x58] sm:$0xff]  ;;  %v716_v33 = vld [vmem:[%s7060_s29 + $0xc8] sm:$0xff]  ;;  %v701_v37 = vld [vmem:[%s7060_s29 + $0x50] sm:$0xff]  ;;  %s7267_s17 = scalar_lea.vmem %s8655_s6, %s4501_s26  ;;  %s7650_s12 = scalar_lea.vmem %s8656_s7, %s4501_s26 }
  0xce   : > { %4420 = vmatmul.mubr.msk.f32.vlgmr.msra.gmra.mrb[0].mxu1 %vm924_vm1, %v900_v4  ;;  %4422 = vmatprep.subr.msk.mxu1 %vm931_vm0, %v690_v14  ;;  %v706_v31 = vld [vmem:[%s7060_s29 + $0x78] sm:$0xff]  ;;  %v720_v34 = vld [vmem:[%s7060_s29 + $0xe8] sm:$0xff]  ;;  %v705_v38 = vld [vmem:[%s7060_s29 + $0x70] sm:$0xff]  ;;  %s6609_s3 = sshll.u32 %s6727_s27, 4  ;;  %s6610_s3 = int_to_ptr.vmem [resolvable:$false] %s6609_s3 }
  0xcf   : > { %1014 = vmatprep.mubr.f32.mxu1 %v8682_v1  ;;  %4423 = vmatpush1.msk.msra.mxu1 %vm931_vm0, %v689_v18  ;;  %v7153_v36 = vpack.c.bf16 %v706_v31, %v702_v30  ;;  %v715_v39 = vld [vmem:[%s7060_s29 + $0xc0] sm:$0xff]  ;;  %v7159_v40 = vpack.c.bf16 %v720_v34, %v716_v33  ;;  %v710_v42 = vld [vmem:[%s7060_s29 + $0x98] sm:$0xff]  ;;  %v724_v44 = vld [vmem:[%s7060_s29 + $0x108] sm:$0xff]  ;;  %v7168_v46 = vpack.c.bf16 %v705_v38, %v701_v37 }
  0xd0   : > { %4590 = vmatprep.subr.bf16.mxu1 %v7132_v24  ;;  %4564 = vmatpush1.bf16.msra.mxu0 %v7125_v20  ;;  %v719_v41 = vld [vmem:[%s7060_s29 + $0xe0] sm:$0xff]  ;;  %v714_v43 = vld [vmem:[%s7060_s29 + $0xb8] sm:$0xff]  ;;  %v728_v45 = vld [vmem:[%s7060_s29 + $0x128] sm:$0xff] }
  0xd1   : > { %4566 = vmatprep.subr.bf16.mxu0 %v7134_v25  ;;  %v7173_v47 = vpack.c.bf16 %v719_v41, %v715_v39  ;;  %v7175_v48 = vpack.c.bf16 %v714_v43, %v710_v42  ;;  %v709_v49 = vld [vmem:[%s7060_s29 + $0x90] sm:$0xff]  ;;  %v723_v51 = vld [vmem:[%s7060_s29 + $0x100] sm:$0xff]  ;;  %v7181_v52 = vpack.c.bf16 %v728_v45, %v724_v44  ;;  %v718_v54 = vld [vmem:[%s7060_s29 + $0xd8] sm:$0xff] }
  0xd2   : > { %4421 = vmatmul.mubr.msk.f32.gmra.mrb[2].mxu1 %vm924_vm1, %v7109_v10  ;;  %v713_v50 = vld [vmem:[%s7060_s29 + $0xb0] sm:$0xff]  ;;  %v727_v53 = vld [vmem:[%s7060_s29 + $0x120] sm:$0xff]  ;;  %v722_v55 = vld [vmem:[%s7060_s29 + $0xf8] sm:$0xff] }
  0xd3   : > { %1085 = vmatprep.mubr.f32.mxu1 %v8682_v1  ;;  %v732_v56 = vld [vmem:[%s7060_s29 + $0x148] sm:$0xff]  ;;  %v7191_v58 = vpack.c.bf16 %v713_v50, %v709_v49  ;;  %v7196_v59 = vpack.c.bf16 %v727_v53, %v723_v51  ;;  %v7198_v60 = vpack.c.bf16 %v722_v55, %v718_v54  ;;  %v717_v61 = vld [vmem:[%s7060_s29 + $0xd0] sm:$0xff]  ;;  %v731_v63 = vld [vmem:[%s7060_s29 + $0x140] sm:$0xff] }
  0xd4   : > { %4568 = vmatpush1.bf16.msra.mxu0 %v7151_v35  ;;  %v736_v57 = vld [vmem:[%s7060_s29 + $0x168] sm:$0xff]  ;;  %v721_v62 = vld [vmem:[%s7060_s29 + $0xf0] sm:$0xff]  ;;  %v735_v2 = vld [vmem:[%s7060_s29 + $0x160] sm:$0xff] }
  0xd5   : > { %4570 = vmatprep.subr.bf16.mxu0 %v7159_v40  ;;  %v7204_v0 = vpack.c.bf16 %v736_v57, %v732_v56  ;;  %v726_v3 = vld [vmem:[%s7060_s29 + $0x118] sm:$0xff]  ;;  %v740_v5 = vld [vmem:[%s7060_s29 + $0x188] sm:$0xff]  ;;  %v7212_v7 = vpack.c.bf16 %v721_v62, %v717_v61  ;;  %v7216_v9 = vpack.c.bf16 %v735_v2, %v731_v63  ;;  %v725_v11 = vld [vmem:[%s7060_s29 + $0x110] sm:$0xff] }
  0xd6   : > { %4424 = vmatmul.mubr.msk.f32.vlgmr.msra.gmra.mrb[4].mxu1 %vm924_vm1, %v900_v4  ;;  %v730_v4 = vld [vmem:[%s7060_s29 + $0x138] sm:$0xff]  ;;  %v744_v6 = vld [vmem:[%s7060_s29 + $0x1a8] sm:$0xff]  ;;  %v729_v13 = vld [vmem:[%s7060_s29 + $0x130] sm:$0xff] }
  0xd7   : > { %4592 = vmatpush1.bf16.msra.mxu1 %v7146_v32  ;;  %1091 = vmatprep.mubr.f32.mxu1 %v8682_v1  ;;  %v739_v14 = vld [vmem:[%s7060_s29 + $0x180] sm:$0xff]  ;;  %v7224_v15 = vpack.c.bf16 %v744_v6, %v740_v5  ;;  %v734_v18 = vld [vmem:[%s7060_s29 + $0x158] sm:$0xff]  ;;  %v748_v21 = vld [vmem:[%s7060_s29 + $0x1c8] sm:$0xff]  ;;  %v7232_v23 = vpack.c.bf16 %v729_v13, %v725_v11 }
  0xd8   : > { %4594 = vmatprep.subr.bf16.mxu1 %v7153_v36  ;;  %4572 = vmatpush1.bf16.msra.mxu0 %v7173_v47  ;;  %v743_v17 = vld [vmem:[%s7060_s29 + $0x1a0] sm:$0xff]  ;;  %v738_v19 = vld [vmem:[%s7060_s29 + $0x178] sm:$0xff]  ;;  %v752_v22 = vld [vmem:[%s7060_s29 + $0x1e8] sm:$0xff] }
  0xd9   : > { %4574 = vmatprep.subr.bf16.mxu0 %v7181_v52  ;;  %v7236_v26 = vpack.c.bf16 %v743_v17, %v739_v14  ;;  %v7238_v27 = vpack.c.bf16 %v738_v19, %v734_v18  ;;  %v733_v28 = vld [vmem:[%s7060_s29 + $0x150] sm:$0xff]  ;;  %v747_v30 = vld [vmem:[%s7060_s29 + $0x1c0] sm:$0xff]  ;;  %v7244_v31 = vpack.c.bf16 %v752_v22, %v748_v21  ;;  %v742_v34 = vld [vmem:[%s7060_s29 + $0x198] sm:$0xff] }
  0xda   : > { %4425 = vmatmul.mubr.msk.f32.gmra.mrb[6].mxu1 %vm924_vm1, %v7109_v10  ;;  %v7218_v10 = vpack.c.bf16 %v730_v4, %v726_v3  ;;  %v737_v29 = vld [vmem:[%s7060_s29 + $0x170] sm:$0xff]  ;;  %v751_v33 = vld [vmem:[%s7060_s29 + $0x1e0] sm:$0xff]  ;;  %v746_v37 = vld [vmem:[%s7060_s29 + $0x1b8] sm:$0xff] }
  0xdb   : > { %4596 = vmatpush1.bf16.msra.mxu1 %v7168_v46  ;;  %1239 = vmatprep.mubr.f32.mxu1 %v8682_v1  ;;  %v7251_v38 = vpack.c.bf16 %v737_v29, %v733_v28  ;;  %v7255_v39 = vpack.c.bf16 %v751_v33, %v747_v30  ;;  %v7257_v41 = vpack.c.bf16 %v746_v37, %v742_v34  ;;  %v741_v42 = vld [vmem:[%s7060_s29 + $0x190] sm:$0xff]  ;;  %v750_v44 = vld [vmem:[%s7060_s29 + $0x1d8] sm:$0xff]  ;;  %v758_v61 = vld [vmem:[%s7076_s19 + $0x18] sm:$0xff] }
  0xdc   : > { %4598 = vmatprep.subr.bf16.mxu1 %v7175_v48  ;;  %4576 = vmatpush1.bf16.msra.mxu0 %v7196_v59  ;;  %v745_v43 = vld [vmem:[%s7060_s29 + $0x1b0] sm:$0xff]  ;;  %v754_v45 = vld [vmem:[%s7060_s29 + $0x1f8] sm:$0xff]  ;;  %v762_v63 = vld [vmem:[%s7076_s19 + $0x38] sm:$0xff] }
  0xdd   : > { %4578 = vmatprep.subr.bf16.mxu0 %v7204_v0  ;;  %v7272_v49 = vpack.c.bf16 %v745_v43, %v741_v42  ;;  %v1098_v50 = vld [vmem:[%s7267_s17] sm:$0x3]  ;;  %v7277_v51 = vpack.c.bf16 %v754_v45, %v750_v44  ;;  %v749_v53 = vld [vmem:[%s7060_s29 + $0x1d0] sm:$0xff]  ;;  %v7292_v2 = vpack.c.bf16 %v762_v63, %v758_v61  ;;  %v755_v3 = vld [vmem:[%s7076_s19] sm:$0xff] }
  0xde   : > { %v753_v54 = vld [vmem:[%s7060_s29 + $0x1f0] sm:$0xff]  ;;  %v759_v4 = vld [vmem:[%s7076_s19 + $0x20] sm:$0xff]  ;;  %v757_v5 = vld [vmem:[%s7076_s19 + $0x10] sm:$0xff] }
  0xdf   : > { %4600 = vmatpush1.bf16.msra.mxu1 %v7191_v58  ;;  %v7282_v55 = vpack.c.bf16 %v753_v54, %v749_v53  ;;  %v756_v56 = vld [vmem:[%s7076_s19 + $0x8] sm:$0xff]  ;;  %v7299_v6 = vpack.c.bf16 %v759_v4, %v755_v3  ;;  %v761_v11 = vld [vmem:[%s7076_s19 + $0x30] sm:$0xff]  ;;  %v766_v19 = vld [vmem:[%s7076_s19 + $0x58] sm:$0xff] }
  0xe0   : > { %4602 = vmatprep.subr.bf16.mxu1 %v7198_v60  ;;  %4580 = vmatpush1.bf16.msra.mxu0 %v7216_v9  ;;  %v760_v57 = vld [vmem:[%s7076_s19 + $0x28] sm:$0xff]  ;;  %v7304_v17 = vpack.c.bf16 %v761_v11, %v757_v5  ;;  %v770_v21 = vld [vmem:[%s7076_s19 + $0x78] sm:$0xff]  ;;  %v763_v22 = vld [vmem:[%s7076_s19 + $0x40] sm:$0xff] }
  0xe1   : > { %4582 = vmatprep.subr.bf16.mxu0 %v7224_v15  ;;  %v7289_v62 = vpack.c.bf16 %v760_v57, %v756_v56  ;;  %v764_v13 = vld [vmem:[%s7076_s19 + $0x48] sm:$0xff]  ;;  %v7312_v28 = vpack.c.bf16 %v770_v21, %v766_v19  ;;  %v767_v29 = vld [vmem:[%s7076_s19 + $0x60] sm:$0xff]  ;;  %v765_v30 = vld [vmem:[%s7076_s19 + $0x50] sm:$0xff] }
  0xe2   : > { %v768_v14 = vld [vmem:[%s7076_s19 + $0x68] sm:$0xff]  ;;  %v769_v33 = vld [vmem:[%s7076_s19 + $0x70] sm:$0xff]  ;;  %v7319_v34 = vpack.c.bf16 %v767_v29, %v763_v22  ;;  %v774_v44 = vld [vmem:[%s7076_s19 + $0x98] sm:$0xff] }
  0xe3   : > { %4604 = vmatpush1.bf16.msra.mxu1 %v7212_v7  ;;  %v7306_v18 = vpack.c.bf16 %v768_v14, %v764_v13  ;;  %v7321_v37 = vpack.c.bf16 %v769_v33, %v765_v30  ;;  %v772_v42 = vld [vmem:[%s7076_s19 + $0x88] sm:$0xff]  ;;  %v771_v53 = vld [vmem:[%s7076_s19 + $0x80] sm:$0xff]  ;;  %v773_v57 = vld [vmem:[%s7076_s19 + $0x90] sm:$0xff] }
  0xe4   : > { %4606 = vmatprep.subr.bf16.mxu1 %v7218_v10  ;;  %4584 = vmatpush1.bf16.msra.mxu0 %v7236_v26  ;;  %v776_v43 = vld [vmem:[%s7076_s19 + $0xa8] sm:$0xff]  ;;  %v775_v54 = vld [vmem:[%s7076_s19 + $0xa0] sm:$0xff]  ;;  %v777_v61 = vld [vmem:[%s7076_s19 + $0xb0] sm:$0xff] }
  0xe5   : > { %4586 = vmatprep.subr.bf16.mxu0 %v7244_v31  ;;  %8863 = vst [vmem:[#allocation29_spill] sm:$0xff] %v7321_v37  ;;  %v7327_v45 = vpack.c.bf16 %v776_v43, %v772_v42  ;;  %v780_v63 = vld [vmem:[%s7076_s19 + $0xc8] sm:$0xff]  ;;  %v7338_v3 = vpack.c.bf16 %v775_v54, %v771_v53  ;;  %v782_v5 = vld [vmem:[%s7076_s19 + $0xd8] sm:$0xff]  ;;  %v7345_v13 = vpack.c.bf16 %v777_v61, %v773_v57  ;;  %v779_v19 = vld [vmem:[%s7076_s19 + $0xc0] sm:$0xff] }
  0xe6   : > { %v784_v4 = vld [vmem:[%s7076_s19 + $0xe8] sm:$0xff]  ;;  %v786_v11 = vld [vmem:[%s7076_s19 + $0xf8] sm:$0xff]  ;;  %v783_v21 = vld [vmem:[%s7076_s19 + $0xe0] sm:$0xff] }
  0xe7   : > { %4608 = vmatpush1.bf16.msra.mxu1 %v7232_v23  ;;  %8864 = vst [vmem:[#allocation30_spill] sm:$0xff] %v7327_v45  ;;  %8866 = vst [vmem:[#allocation32_spill] sm:$0xff] %v7338_v3  ;;  %v7347_v14 = vpack.c.bf16 %v784_v4, %v780_v63  ;;  %v781_v22 = vld [vmem:[%s7076_s19 + $0xd0] sm:$0xff]  ;;  %v7353_v29 = vpack.c.bf16 %v786_v11, %v782_v5  ;;  %v788_v33 = vld [vmem:[%s7076_s19 + $0x108] sm:$0xff] }
  0xe8   : > { %4610 = vmatprep.subr.bf16.mxu1 %v7238_v27  ;;  %4588 = vmatpush1.bf16.msra.mxu0 %v7255_v39  ;;  %8867 = vst [vmem:[#allocation33_spill] sm:$0xff] %v7345_v13  ;;  %v785_v30 = vld [vmem:[%s7076_s19 + $0xf0] sm:$0xff]  ;;  %v792_v42 = vld [vmem:[%s7076_s19 + $0x128] sm:$0xff]  ;;  %v790_v43 = vld [vmem:[%s7076_s19 + $0x118] sm:$0xff] }
  0xe9   : > { %4622 = vmatprep.subr.bf16.mxu0 %v7289_v62  ;;  %8868 = vst [vmem:[#allocation34_spill] sm:$0xff] %v7347_v14  ;;  %8869 = vst [vmem:[#allocation35_spill] sm:$0xff] %v7353_v29  ;;  %v7365_v53 = vpack.c.bf16 %v785_v30, %v781_v22  ;;  %v7367_v54 = vpack.c.bf16 %v792_v42, %v788_v33  ;;  %v787_v57 = vld [vmem:[%s7076_s19 + $0x100] sm:$0xff]  ;;  %v789_v4 = vld [vmem:[%s7076_s19 + $0x110] sm:$0xff] }
  0xea   : > { %v791_v61 = vld [vmem:[%s7076_s19 + $0x120] sm:$0xff]  ;;  %v793_v5 = vld [vmem:[%s7076_s19 + $0x130] sm:$0xff]  ;;  %v800_v22 = vld [vmem:[%s7076_s19 + $0x168] sm:$0xff] }
  0xeb   : > { %4612 = vmatpush1.bf16.msra.mxu1 %v7251_v38  ;;  %1169 = vmatmul.mubr.f32.vlgmr.msra.gmra.mrb[0].mxu0 %v1098_v50  ;;  %8871 = vst [vmem:[#allocation37_spill] sm:$0xff] %v7365_v53  ;;  %8872 = vst [vmem:[#allocation38_spill] sm:$0xff] %v7367_v54  ;;  %v7377_v11 = vpack.c.bf16 %v791_v61, %v787_v57  ;;  %v798_v30 = vld [vmem:[%s7076_s19 + $0x158] sm:$0xff] }
  0xec   : > { %4614 = vmatprep.subr.bf16.mxu1 %v7257_v41  ;;  %4624 = vmatpush1.bf16.msra.mxu0 %v7299_v6  ;;  %v802_v42 = vld [vmem:[%s7076_s19 + $0x178] sm:$0xff] }
  0xed   : > { %4626 = vmatprep.subr.bf16.mxu0 %v7306_v18  ;;  %8874 = vst [vmem:[#allocation40_spill] sm:$0xff] %v7377_v11  ;;  %v7394_v57 = vpack.c.bf16 %v802_v42, %v798_v30  ;;  %v806_v30 = vld [vmem:[%s7076_s19 + $0x198] sm:$0xff] }
  0xef   : > { %4616 = vmatpush1.bf16.msra.mxu1 %v7272_v49  ;;  %8877 = vst [vmem:[#allocation43_spill] sm:$0xff] %v7394_v57 }
  0xf0   : > { %4618 = vmatprep.subr.bf16.mxu1 %v7277_v51  ;;  %4628 = vmatpush1.bf16.msra.mxu0 %v7319_v34 }
  0xf1   : > { %4630 = vmatprep.subr.bf16.mxu0 %v7327_v45 }
  0xf3   : > { %4620 = vmatpush1.bf16.msra.mxu1 %v7282_v55 }
  0xf4   : > { %4686 = vmatprep.subr.bf16.mxu1 %v7292_v2  ;;  %4632 = vmatpush1.bf16.msra.mxu0 %v7338_v3 }
  0xf5   : > { %4634 = vmatprep.subr.bf16.mxu0 %v7347_v14 }
  0xf6   : > { %1240 = vmatmul.mubr.f32.vlgmr.msra.gmra.mrb[8].mxu1 %v1098_v50  ;;  %v778_v50 = vld [vmem:[%s7076_s19 + $0xb8] sm:$0xff] }
  0xf7   : > { %4688 = vmatpush1.bf16.msra.mxu1 %v7304_v17  ;;  %v7332_v56 = vpack.c.bf16 %v778_v50, %v774_v44  ;;  %v794_v44 = vld [vmem:[%s7076_s19 + $0x138] sm:$0xff]  ;;  %v7361_v50 = vpack.c.bf16 %v783_v21, %v779_v19  ;;  %v7381_v19 = vpack.c.bf16 %v793_v5, %v789_v4  ;;  %v796_v21 = vld [vmem:[%s7076_s19 + $0x148] sm:$0xff]  ;;  %v797_v4 = vld [vmem:[%s7076_s19 + $0x150] sm:$0xff] }
  0xf8   : > { %4690 = vmatprep.subr.bf16.mxu1 %v7312_v28  ;;  %v7372_v63 = vpack.c.bf16 %v794_v44, %v790_v43  ;;  %v7389_v33 = vpack.c.bf16 %v800_v22, %v796_v21  ;;  %v795_v43 = vld [vmem:[%s7076_s19 + $0x140] sm:$0xff]  ;;  %v801_v5 = vld [vmem:[%s7076_s19 + $0x170] sm:$0xff]  ;;  %v804_v21 = vld [vmem:[%s7076_s19 + $0x188] sm:$0xff] }
  0xf9   : > { %8865 = vst [vmem:[#allocation31_spill] sm:$0xff] %v7332_v56  ;;  %8870 = vst [vmem:[#allocation36_spill] sm:$0xff] %v7361_v50  ;;  %4636 = vmatpush1.bf16.msra.mxu0 %v7361_v50  ;;  %v799_v44 = vld [vmem:[%s7076_s19 + $0x160] sm:$0xff]  ;;  %v7401_v1 = vpack.c.bf16 %v801_v5, %v797_v4  ;;  %v808_v22 = vld [vmem:[%s7076_s19 + $0x1a8] sm:$0xff] }
  0xfa   : > { %8873 = vst [vmem:[#allocation39_spill] sm:$0xff] %v7372_v63  ;;  %4638 = vmatprep.subr.bf16.mxu0 %v7367_v54  ;;  %8875 = vst [vmem:[#allocation41_spill] sm:$0xff] %v7381_v19  ;;  %v7396_v61 = vpack.c.bf16 %v799_v44, %v795_v43  ;;  %v7409_v42 = vpack.c.bf16 %v808_v22, %v804_v21  ;;  %v810_v43 = vld [vmem:[%s7076_s19 + $0x1b8] sm:$0xff]  ;;  %v803_v44 = vld [vmem:[%s7076_s19 + $0x180] sm:$0xff] }
  0xfb   : > { %4692 = vmatpush1.bf16.msra.mxu1 %v7321_v37  ;;  %8876 = vst [vmem:[#allocation42_spill] sm:$0xff] %v7389_v33  ;;  %8879 = vst [vmem:[#allocation45_spill] sm:$0xff] %v7401_v1  ;;  %v807_v4 = vld [vmem:[%s7076_s19 + $0x1a0] sm:$0xff]  ;;  %v7414_v5 = vpack.c.bf16 %v810_v43, %v806_v30  ;;  %v812_v21 = vld [vmem:[%s7076_s19 + $0x1c8] sm:$0xff] }
  0xfc   : > { %4694 = vmatprep.subr.bf16.mxu1 %v7332_v56  ;;  %8878 = vst [vmem:[#allocation44_spill] sm:$0xff] %v7396_v61  ;;  %8880 = vst [vmem:[#allocation46_spill] sm:$0xff] %v7409_v42  ;;  %v816_v22 = vld [vmem:[%s7076_s19 + $0x1e8] sm:$0xff]  ;;  %v814_v30 = vld [vmem:[%s7076_s19 + $0x1d8] sm:$0xff] }
  0xfd   : > { %4640 = vmatpush1.bf16.msra.mxu0 %v7377_v11  ;;  %8881 = vst [vmem:[#allocation47_spill] sm:$0xff] %v7414_v5  ;;  %v7429_v43 = vpack.c.bf16 %v816_v22, %v812_v21  ;;  %v820_v21 = vld [vmem:[%s7076_s19 + $0x208] sm:$0xff] }
  0xfe   : > { %4642 = vmatprep.subr.bf16.mxu0 %v7389_v33  ;;  %v809_v33 = vld [vmem:[%s7076_s19 + $0x1b0] sm:$0xff]  ;;  %v824_v22 = vld [vmem:[%s7076_s19 + $0x228] sm:$0xff] }
  0xff   : > { %4696 = vmatpush1.bf16.msra.mxu1 %v7345_v13  ;;  %8884 = vst [vmem:[#allocation50_spill] sm:$0xff] %v7429_v43  ;;  %v876_v11 = vld [vmem:[%s7076_s19 + $0x3c8] sm:$0xff] }
 0x100   : > { %4698 = vmatprep.subr.bf16.mxu1 %v7353_v29 }
 0x101   : > { %4644 = vmatpush1.bf16.msra.mxu0 %v7396_v61  ;;  %v805_v61 = vld [vmem:[%s7076_s19 + $0x190] sm:$0xff] }
 0x102   : > { %4646 = vmatprep.subr.bf16.mxu0 %v7409_v42  ;;  %v817_v42 = vld [vmem:[%s7076_s19 + $0x1f0] sm:$0xff] }
 0x103   : > { %4700 = vmatpush1.bf16.msra.mxu1 %v7365_v53 }
 0x104   : > { %4702 = vmatprep.subr.bf16.mxu1 %v7372_v63  ;;  %v882_v63 = vld [vmem:[%s7076_s19 + $0x3f8] sm:$0xff] }
 0x107   : > { %4704 = vmatpush1.bf16.msra.mxu1 %v7381_v19  ;;  %v7421_v19 = vpack.c.bf16 %v809_v33, %v805_v61  ;;  %v815_v33 = vld [vmem:[%s7076_s19 + $0x1e0] sm:$0xff] }
 0x108   : > { %4706 = vmatprep.subr.bf16.mxu1 %v7394_v57  ;;  %v7416_v57 = vpack.c.bf16 %v807_v4, %v803_v44  ;;  %v818_v44 = vld [vmem:[%s7076_s19 + $0x1f8] sm:$0xff]  ;;  %v811_v4 = vld [vmem:[%s7076_s19 + $0x1c0] sm:$0xff] }
 0x109   : > { %8883 = vst [vmem:[#allocation49_spill] sm:$0xff] %v7421_v19  ;;  %v7434_v61 = vpack.c.bf16 %v818_v44, %v814_v30  ;;  %v822_v30 = vld [vmem:[%s7076_s19 + $0x218] sm:$0xff]  ;;  %v7449_v44 = vpack.c.bf16 %v824_v22, %v820_v21  ;;  %v828_v21 = vld [vmem:[%s7076_s19 + $0x248] sm:$0xff] }
 0x10a   : > { %8882 = vst [vmem:[#allocation48_spill] sm:$0xff] %v7416_v57  ;;  %4648 = vmatpush1.bf16.msra.mxu0 %v7416_v57  ;;  %v813_v57 = vld [vmem:[%s7076_s19 + $0x1d0] sm:$0xff]  ;;  %v832_v22 = vld [vmem:[%s7076_s19 + $0x268] sm:$0xff] }
 0x10b   : > { %4708 = vmatpush1.bf16.msra.mxu1 %v7401_v1  ;;  %8885 = vst [vmem:[#allocation51_spill] sm:$0xff] %v7434_v61  ;;  %4650 = vmatprep.subr.bf16.mxu0 %v7429_v43  ;;  %v7441_v1 = vpack.c.bf16 %v817_v42, %v813_v57  ;;  %8888 = vst [vmem:[#allocation54_spill] sm:$0xff] %v7449_v44  ;;  %v823_v57 = vld [vmem:[%s7076_s19 + $0x220] sm:$0xff]  ;;  %v825_v43 = vld [vmem:[%s7076_s19 + $0x230] sm:$0xff] }
 0x10c   : > { %4710 = vmatprep.subr.bf16.mxu1 %v7414_v5  ;;  %v7436_v5 = vpack.c.bf16 %v815_v33, %v811_v4  ;;  %v826_v4 = vld [vmem:[%s7076_s19 + $0x238] sm:$0xff]  ;;  %v819_v33 = vld [vmem:[%s7076_s19 + $0x200] sm:$0xff] }
 0x10d   : > { %8887 = vst [vmem:[#allocation53_spill] sm:$0xff] %v7441_v1  ;;  %v7454_v42 = vpack.c.bf16 %v826_v4, %v822_v30  ;;  %v830_v30 = vld [vmem:[%s7076_s19 + $0x258] sm:$0xff]  ;;  %v7469_v4 = vpack.c.bf16 %v832_v22, %v828_v21  ;;  %v836_v21 = vld [vmem:[%s7076_s19 + $0x288] sm:$0xff] }
 0x10e   : > { %8886 = vst [vmem:[#allocation52_spill] sm:$0xff] %v7436_v5  ;;  %4652 = vmatpush1.bf16.msra.mxu0 %v7436_v5  ;;  %v821_v5 = vld [vmem:[%s7076_s19 + $0x210] sm:$0xff]  ;;  %v840_v22 = vld [vmem:[%s7076_s19 + $0x2a8] sm:$0xff] }
 0x10f   : > { %4712 = vmatpush1.bf16.msra.mxu1 %v7421_v19  ;;  %8889 = vst [vmem:[#allocation55_spill] sm:$0xff] %v7454_v42  ;;  %4654 = vmatprep.subr.bf16.mxu0 %v7449_v44  ;;  %v7461_v19 = vpack.c.bf16 %v825_v43, %v821_v5  ;;  %8892 = vst [vmem:[#allocation58_spill] sm:$0xff] %v7469_v4  ;;  %v831_v5 = vld [vmem:[%s7076_s19 + $0x260] sm:$0xff]  ;;  %v833_v44 = vld [vmem:[%s7076_s19 + $0x270] sm:$0xff] }
 0x110   : > { %4714 = vmatprep.subr.bf16.mxu1 %v7434_v61  ;;  %v7456_v61 = vpack.c.bf16 %v823_v57, %v819_v33  ;;  %v834_v33 = vld [vmem:[%s7076_s19 + $0x278] sm:$0xff]  ;;  %v827_v57 = vld [vmem:[%s7076_s19 + $0x240] sm:$0xff] }
 0x111   : > { %8891 = vst [vmem:[#allocation57_spill] sm:$0xff] %v7461_v19  ;;  %v7474_v43 = vpack.c.bf16 %v834_v33, %v830_v30  ;;  %v838_v30 = vld [vmem:[%s7076_s19 + $0x298] sm:$0xff]  ;;  %v7489_v33 = vpack.c.bf16 %v840_v22, %v836_v21  ;;  %v844_v21 = vld [vmem:[%s7076_s19 + $0x2c8] sm:$0xff] }
 0x112   : > { %8890 = vst [vmem:[#allocation56_spill] sm:$0xff] %v7456_v61  ;;  %4656 = vmatpush1.bf16.msra.mxu0 %v7456_v61  ;;  %v829_v61 = vld [vmem:[%s7076_s19 + $0x250] sm:$0xff]  ;;  %v848_v22 = vld [vmem:[%s7076_s19 + $0x2e8] sm:$0xff] }
 0x113   : > { %4716 = vmatpush1.bf16.msra.mxu1 %v7441_v1  ;;  %8893 = vst [vmem:[#allocation59_spill] sm:$0xff] %v7474_v43  ;;  %4658 = vmatprep.subr.bf16.mxu0 %v7469_v4  ;;  %v7481_v1 = vpack.c.bf16 %v833_v44, %v829_v61  ;;  %8896 = vst [vmem:[#allocation62_spill] sm:$0xff] %v7489_v33  ;;  %v839_v61 = vld [vmem:[%s7076_s19 + $0x2a0] sm:$0xff]  ;;  %v841_v4 = vld [vmem:[%s7076_s19 + $0x2b0] sm:$0xff] }
 0x114   : > { %4718 = vmatprep.subr.bf16.mxu1 %v7454_v42  ;;  %v7476_v42 = vpack.c.bf16 %v831_v5, %v827_v57  ;;  %v842_v57 = vld [vmem:[%s7076_s19 + $0x2b8] sm:$0xff]  ;;  %v835_v5 = vld [vmem:[%s7076_s19 + $0x280] sm:$0xff] }
 0x115   : > { %8895 = vst [vmem:[#allocation61_spill] sm:$0xff] %v7481_v1  ;;  %v7494_v44 = vpack.c.bf16 %v842_v57, %v838_v30  ;;  %v846_v30 = vld [vmem:[%s7076_s19 + $0x2d8] sm:$0xff]  ;;  %v7509_v57 = vpack.c.bf16 %v848_v22, %v844_v21  ;;  %v852_v21 = vld [vmem:[%s7076_s19 + $0x308] sm:$0xff] }
 0x116   : > { %8894 = vst [vmem:[#allocation60_spill] sm:$0xff] %v7476_v42  ;;  %4660 = vmatpush1.bf16.msra.mxu0 %v7476_v42  ;;  %v837_v42 = vld [vmem:[%s7076_s19 + $0x290] sm:$0xff]  ;;  %v856_v22 = vld [vmem:[%s7076_s19 + $0x328] sm:$0xff] }
 0x117   : > { %4720 = vmatpush1.bf16.msra.mxu1 %v7461_v19  ;;  %8897 = vst [vmem:[#allocation63_spill] sm:$0xff] %v7494_v44  ;;  %4662 = vmatprep.subr.bf16.mxu0 %v7489_v33  ;;  %v7501_v19 = vpack.c.bf16 %v841_v4, %v837_v42  ;;  %8900 = vst [vmem:[#allocation66_spill] sm:$0xff] %v7509_v57  ;;  %v847_v42 = vld [vmem:[%s7076_s19 + $0x2e0] sm:$0xff]  ;;  %v849_v33 = vld [vmem:[%s7076_s19 + $0x2f0] sm:$0xff] }
 0x118   : > { %4722 = vmatprep.subr.bf16.mxu1 %v7474_v43  ;;  %v7496_v43 = vpack.c.bf16 %v839_v61, %v835_v5  ;;  %v850_v5 = vld [vmem:[%s7076_s19 + $0x2f8] sm:$0xff]  ;;  %v843_v61 = vld [vmem:[%s7076_s19 + $0x2c0] sm:$0xff] }
 0x119   : > { %8899 = vst [vmem:[#allocation65_spill] sm:$0xff] %v7501_v19  ;;  %v7514_v4 = vpack.c.bf16 %v850_v5, %v846_v30  ;;  %v854_v30 = vld [vmem:[%s7076_s19 + $0x318] sm:$0xff]  ;;  %v7529_v5 = vpack.c.bf16 %v856_v22, %v852_v21  ;;  %v860_v21 = vld [vmem:[%s7076_s19 + $0x348] sm:$0xff] }
 0x11a   : > { %8898 = vst [vmem:[#allocation64_spill] sm:$0xff] %v7496_v43  ;;  %4664 = vmatpush1.bf16.msra.mxu0 %v7496_v43  ;;  %v845_v43 = vld [vmem:[%s7076_s19 + $0x2d0] sm:$0xff]  ;;  %v864_v22 = vld [vmem:[%s7076_s19 + $0x368] sm:$0xff] }
 0x11b   : > { %4724 = vmatpush1.bf16.msra.mxu1 %v7481_v1  ;;  %8901 = vst [vmem:[#allocation67_spill] sm:$0xff] %v7514_v4  ;;  %4666 = vmatprep.subr.bf16.mxu0 %v7509_v57  ;;  %v7521_v1 = vpack.c.bf16 %v849_v33, %v845_v43  ;;  %8904 = vst [vmem:[#allocation70_spill] sm:$0xff] %v7529_v5  ;;  %v855_v43 = vld [vmem:[%s7076_s19 + $0x320] sm:$0xff]  ;;  %v857_v57 = vld [vmem:[%s7076_s19 + $0x330] sm:$0xff] }
 0x11c   : > { %4726 = vmatprep.subr.bf16.mxu1 %v7494_v44  ;;  %v7516_v44 = vpack.c.bf16 %v847_v42, %v843_v61  ;;  %v858_v61 = vld [vmem:[%s7076_s19 + $0x338] sm:$0xff]  ;;  %v851_v42 = vld [vmem:[%s7076_s19 + $0x300] sm:$0xff] }
 0x11d   : > { %8903 = vst [vmem:[#allocation69_spill] sm:$0xff] %v7521_v1  ;;  %v7534_v33 = vpack.c.bf16 %v858_v61, %v854_v30  ;;  %v862_v30 = vld [vmem:[%s7076_s19 + $0x358] sm:$0xff]  ;;  %v7549_v61 = vpack.c.bf16 %v864_v22, %v860_v21  ;;  %v868_v21 = vld [vmem:[%s7076_s19 + $0x388] sm:$0xff] }
 0x11e   : > { %8902 = vst [vmem:[#allocation68_spill] sm:$0xff] %v7516_v44  ;;  %4668 = vmatpush1.bf16.msra.mxu0 %v7516_v44  ;;  %v853_v44 = vld [vmem:[%s7076_s19 + $0x310] sm:$0xff]  ;;  %v872_v22 = vld [vmem:[%s7076_s19 + $0x3a8] sm:$0xff] }
 0x11f   : > { %4728 = vmatpush1.bf16.msra.mxu1 %v7501_v19  ;;  %8905 = vst [vmem:[#allocation71_spill] sm:$0xff] %v7534_v33  ;;  %4670 = vmatprep.subr.bf16.mxu0 %v7529_v5  ;;  %v7541_v19 = vpack.c.bf16 %v857_v57, %v853_v44  ;;  %8908 = vst [vmem:[#allocation74_spill] sm:$0xff] %v7549_v61  ;;  %v863_v44 = vld [vmem:[%s7076_s19 + $0x360] sm:$0xff]  ;;  %v865_v5 = vld [vmem:[%s7076_s19 + $0x370] sm:$0xff] }
 0x120   : > { %4730 = vmatprep.subr.bf16.mxu1 %v7514_v4  ;;  %v7536_v4 = vpack.c.bf16 %v855_v43, %v851_v42  ;;  %v866_v42 = vld [vmem:[%s7076_s19 + $0x378] sm:$0xff]  ;;  %v859_v43 = vld [vmem:[%s7076_s19 + $0x340] sm:$0xff] }
 0x121   : > { %8907 = vst [vmem:[#allocation73_spill] sm:$0xff] %v7541_v19  ;;  %v7554_v57 = vpack.c.bf16 %v866_v42, %v862_v30  ;;  %v7568_v30 = vpack.c.bf16 %v872_v22, %v868_v21  ;;  %v874_v42 = vld [vmem:[%s7076_s19 + $0x3b8] sm:$0xff]  ;;  %v880_v22 = vld [vmem:[%s7076_s19 + $0x3e8] sm:$0xff] }
 0x122   : > { %8906 = vst [vmem:[#allocation72_spill] sm:$0xff] %v7536_v4  ;;  %4672 = vmatpush1.bf16.msra.mxu0 %v7536_v4  ;;  %v861_v4 = vld [vmem:[%s7076_s19 + $0x350] sm:$0xff] }
 0x123   : > { %4732 = vmatpush1.bf16.msra.mxu1 %v7521_v1  ;;  %8909 = vst [vmem:[#allocation75_spill] sm:$0xff] %v7554_v57  ;;  %4674 = vmatprep.subr.bf16.mxu0 %v7549_v61  ;;  %v870_v1 = vld [vmem:[%s7076_s19 + $0x398] sm:$0xff]  ;;  %8912 = vst [vmem:[#allocation78_spill] sm:$0xff] %v7568_v30  ;;  %v869_v61 = vld [vmem:[%s7076_s19 + $0x390] sm:$0xff] }
 0x124   : > { %4734 = vmatprep.subr.bf16.mxu1 %v7534_v33  ;;  %v7556_v33 = vpack.c.bf16 %v863_v44, %v859_v43  ;;  %v867_v43 = vld [vmem:[%s7076_s19 + $0x380] sm:$0xff] }
 0x125   : > { %v871_v44 = vld [vmem:[%s7076_s19 + $0x3a0] sm:$0xff] }
 0x126   : > { %8910 = vst [vmem:[#allocation76_spill] sm:$0xff] %v7556_v33  ;;  %4676 = vmatpush1.bf16.msra.mxu0 %v7556_v33  ;;  %v878_v33 = vld [vmem:[%s7076_s19 + $0x3d8] sm:$0xff] }
 0x127   : > { %4736 = vmatpush1.bf16.msra.mxu1 %v7541_v19  ;;  %v7561_v19 = vpack.c.bf16 %v865_v5, %v861_v4  ;;  %v7574_v4 = vpack.c.bf16 %v874_v42, %v870_v1  ;;  %v7576_v5 = vpack.c.bf16 %v871_v44, %v867_v43  ;;  %4678 = vmatprep.subr.bf16.mxu0 %v7568_v30  ;;  %v875_v42 = vld [vmem:[%s7076_s19 + $0x3c0] sm:$0xff]  ;;  %v877_v44 = vld [vmem:[%s7076_s19 + $0x3d0] sm:$0xff] }
 0x128   : > { %4738 = vmatprep.subr.bf16.mxu1 %v7554_v57  ;;  %v873_v57 = vld [vmem:[%s7076_s19 + $0x3b0] sm:$0xff]  ;;  %v7590_v1 = vpack.c.bf16 %v882_v63, %v878_v33  ;;  %v879_v43 = vld [vmem:[%s7076_s19 + $0x3e0] sm:$0xff]  ;;  %v904_v63 = vlaneseq }
 0x129   : > { %8911 = vst [vmem:[#allocation77_spill] sm:$0xff] %v7561_v19  ;;  %8913 = vst [vmem:[#allocation79_spill] sm:$0xff] %v7574_v4  ;;  %v7582_v21 = vpack.c.bf16 %v873_v57, %v869_v61  ;;  %v7596_v54 = vpack.c.bf16 %v879_v43, %v875_v42  ;;  %v881_v30 = vld [vmem:[%s7076_s19 + $0x3f0] sm:$0xff]  ;;  %v4426_v61 = vld [vmem:[%s7267_s17 + $0x2] sm:$0x3]  ;;  %s8489_s19 = scalar_lea.vmem [#allocation13], %s7068_s16 }
 0x12a   : > { %8914 = vst [vmem:[#allocation80_spill] sm:$0xff] %v7576_v5  ;;  %8917 = vst [vmem:[#allocation83_spill] sm:$0xff] %v7590_v1  ;;  %4680 = vmatpush1.bf16.msra.mxu0 %v7576_v5  ;;  %v7602_v57 = vpack.c.bf16 %v881_v30, %v877_v44  ;;  %1359 = vmatprep.mubr.f32.mxu0 %v4426_v61  ;;  %v902_v30 = vld [vmem:[%s554_s8] sm:$0xf]  ;;  %s9369_s8 = sld [smem:[#allocation25_spill]]  ;;  %s4096_s16 = scalar_lea.sflag [#allocation5], %s7056_s15 }
 0x12b   : > { %4740 = vmatpush1.bf16.msra.mxu1 %v7561_v19  ;;  %8915 = vst [vmem:[#allocation81_spill] sm:$0xff] %v7582_v21  ;;  %v7588_v19 = vpack.c.bf16 %v880_v22, %v876_v11  ;;  %8918 = vst [vmem:[#allocation84_spill] sm:$0xff] %v7596_v54  ;;  %1430 = vmatprep.mubr.f32.mxu1 %v4426_v61  ;;  %v7609_v11 = vshrl.u32 %v904_v63, 7 }
 0x12c   : > { %4742 = vmatprep.subr.bf16.mxu1 %v7574_v4  ;;  %8919 = vst [vmem:[#allocation85_spill] sm:$0xff] %v7602_v57 }
 0x12d   : > { %8916 = vst [vmem:[#allocation82_spill] sm:$0xff] %v7588_v19  ;;  %4682 = vmatprep.subr.bf16.mxu0 %v7588_v19  ;;  %v8782_v33 = vsub.s32 0, %v7609_v11  ;;  %v8785_v42 = vsub.s32 1, %v7609_v11  ;;  %v8799_v19 = vsub.s32 3, %v7609_v11 }
 0x12e   : > { %4684 = vmatpush1.bf16.msra.mxu0 %v7596_v54  ;;  %v8796_v54 = vsub.s32 2, %v7609_v11 }
 0x12f   : > { %4744 = vmatpush1.bf16.msra.mxu1 %v7582_v21  ;;  %4750 = vmatprep.subr.bf16.mxu0 %v7106_v8  ;;  %v907_v44 = vrot.slane %v902_v30, %v8782_v33  ;;  %v911_v61 = vrot.slane %v902_v30, %v8785_v42  ;;  %v919_v33 = vrot.slane %v902_v30, %v8799_v19 }
 0x130   : > { %4746 = vmatprep.subr.bf16.mxu1 %v7590_v1  ;;  %v915_v5 = vrot.slane %v902_v30, %v8796_v54  ;;  %p9371_p8 = scmp.ne.s32.totalorder %s9369_s8, 0 }
 0x133   : > { %4748 = vmatpush1.bf16.msra.mxu1 %v7602_v57 }
 0x134   : > { %4782 = vmatprep.subr.bf16.mxu1 %v7132_v24 }
 0x1a1   : > { %v1010_v22 = vpop.f32.mrb[0].mxu1 }
 0x1a2   : > { %v1012_v43 = vpop.f32.mrb[1].mxu1 }
 0x1a5   : > { %v1016_v8 = vpop.f32.mrb[2].mxu1 }
 0x1a6   : > { %v7619_v57 = vadd.f32 %v1016_v8, %v907_v44  ;;  %v1018_v24 = vpop.f32.mrb[3].mxu1 }
 0x1a7   : > { %v7621_v63 = vadd.f32 %v1018_v24, %v911_v61  ;;  %v7633_v24 = vadd.f32 %v1010_v22, %v907_v44 }
 0x1a8   : > { %8920 = vst [vmem:[#allocation86_spill] sm:$0xff] %v7619_v57 }
 0x1a9   : > { %8921 = vst [vmem:[#allocation87_spill] sm:$0xff] %v7621_v63  ;;  %v1087_v1 = vpop.f32.mrb[4].mxu1  ;;  %8924 = vst [vmem:[#allocation90_spill] sm:$0xff] %v7633_v24  ;;  %v7635_v63 = vadd.f32 %v1012_v43, %v911_v61 }
 0x1aa   : > { %v1089_v21 = vpop.f32.mrb[5].mxu1  ;;  %v7642_v44 = vadd.f32 %v1087_v1, %v915_v5 }
 0x1ad   : > { %v1093_v4 = vpop.f32.mrb[6].mxu1 }
 0x1ae   : > { %v7629_v42 = vadd.f32 %v1093_v4, %v915_v5  ;;  %v1095_v8 = vpop.f32.mrb[7].mxu1  ;;  %v7639_v4 = vadd.f32 %v1089_v21, %v919_v33 }
 0x1af   : > { %v7631_v57 = vadd.f32 %v1095_v8, %v919_v33 }
 0x1b0   : > { %8922 = vst [vmem:[#allocation88_spill] sm:$0xff] %v7629_v42 }
 0x1b1   : > { %8923 = vst [vmem:[#allocation89_spill] sm:$0xff] %v7631_v57  ;;  %v8941_v57 = vld [vmem:[#allocation48_spill] sm:$0xff] }
 0x1be   : > { %v1170_v53 = vpop.f32.mrb[0].mxu0 }
 0x1bf   : > { %v1246_v50 = vadd.f32 %v1170_v53, %v7633_v24  ;;  %v1172_v29 = vpop.f32.mrb[1].mxu0 }
 0x1c0   : > { %v1247_v14 = vadd.f32 %v1172_v29, %v7635_v63 }
 0x1c1   : > { %v4428_v54 = vmul.f32 -1.442695, %v1246_v50  ;;  %v1099_v50 = vld [vmem:[%s7650_s12] sm:$0x3] }
 0x1c2   : > { %v4429_v13 = vmul.f32 -1.442695, %v1247_v14 }
 0x1c3   : > { %6201 = vpow2.f32 %v4428_v54 }
 0x1c4   : > { %6203 = vpow2.f32 %v4429_v13 }
 0x1c9   : > { %v1241_v30 = vpop.f32.mrb[8].mxu1 }
 0x1ca   : > { %v1243_v8 = vpop.f32.mrb[9].mxu1  ;;  %v1248_v61 = vadd.f32 %v1241_v30, %v7642_v44 }
 0x1cb   : > { %v1249_v22 = vadd.f32 %v1243_v8, %v7639_v4 }
 0x1cd   : > { %v4430_v43 = vmul.f32 -1.442695, %v1249_v22  ;;  %v6202_v53 = vpop.eup %6201  ;;  %v8925_v22 = vmov 0.0  }
 0x1ce   : > { %v6204_v19 = vpop.eup %6203  ;;  %v1253_v42 = vadd.f32 1.0, %v6202_v53  ;;  %v8928_v53 = vld [vmem:[#allocation35_spill] sm:$0xff] }
 0x1cf   : > { %6205 = vpow2.f32 %v4430_v43  ;;  %v1259_v29 = vadd.f32 1.0, %v6204_v19  ;;  %v8926_v43 = vld [vmem:[#allocation33_spill] sm:$0xff] }
 0x1d0   : > { %6207 = vtanh.f32 %v1248_v61  ;;  %v8927_v61 = vld [vmem:[#allocation34_spill] sm:$0xff] }
 0x1d1   : > { %6209 = vrcp.f32 %v1253_v42 }
 0x1d2   : > { %6211 = vrcp.f32 %v1259_v29  ;;  %v8929_v29 = vld [vmem:[#allocation36_spill] sm:$0xff] }
 0x1d9   : > { %v6206_v13 = vpop.eup %6205 }
 0x1da   : > { %v6208_v14 = vpop.eup %6207  ;;  %v1266_v1 = vadd.f32 1.0, %v6206_v13  ;;  %v8930_v13 = vld [vmem:[#allocation37_spill] sm:$0xff] }
 0x1db   : > { %v6210_v54 = vpop.eup %6209 }
 0x1dc   : > { %v6212_v5 = vpop.eup %6211  ;;  %v1270_v21 = vmul.f32 %v6210_v54, %v6208_v14  ;;  %6213 = vrcp.f32 %v1266_v1  ;;  %v8931_v14 = vld [vmem:[#allocation38_spill] sm:$0xff]  ;;  %v8933_v54 = vld [vmem:[#allocation40_spill] sm:$0xff]  ;;  %v8936_v1 = vld [vmem:[#allocation43_spill] sm:$0xff] }
 0x1dd   : > { %v1269_v33 = vmul.f32 %v6212_v5, %v1099_v50  ;;  %v8932_v50 = vld [vmem:[#allocation39_spill] sm:$0xff]  ;;  %v8934_v5 = vld [vmem:[#allocation41_spill] sm:$0xff] }
 0x1df   : > { %v7653_v30 = vadd.f32 %v1270_v21, %v1269_v33  ;;  %v8935_v21 = vld [vmem:[#allocation42_spill] sm:$0xff]  ;;  %v8937_v33 = vld [vmem:[#allocation44_spill] sm:$0xff] }
 0x1e1   : > { %6215 = vtanh.f32 %v7653_v30 }
 0x1e6   : > { %v6214_v19 = vpop.eup %6213 }
 0x1eb   : > { %v6216_v42 = vpop.eup %6215 }
 0x1ec   : > { %v1273_v8 = vmul.f32 %v6216_v42, %v6214_v19  ;;  %v8938_v19 = vld [vmem:[#allocation45_spill] sm:$0xff]  ;;  %v8939_v42 = vld [vmem:[#allocation46_spill] sm:$0xff] }
 0x1ee   : > { %1360 = vmatmul.mubr.f32.vlgmr.msra.gmra.mrb[2].mxu0 %v1273_v8  ;;  %1431 = vmatmul.mubr.f32.vlgmr.msra.gmra.mrb[10].mxu1 %v1273_v8 }
 0x1ef   : > { %4752 = vmatpush1.bf16.msra.mxu0 %v7113_v12  ;;  %4784 = vmatpush1.bf16.msra.mxu1 %v7146_v32 }
 0x1f0   : > { %4754 = vmatprep.subr.bf16.mxu0 %v7119_v16  ;;  %4786 = vmatprep.subr.bf16.mxu1 %v7153_v36 }
 0x1f1   : > { %1532 = vmatprep.mubr.f32.mxu0 %v8925_v22  ;;  %1603 = vmatprep.mubr.f32.mxu1 %v8925_v22 }
 0x1f3   : > { %4756 = vmatpush1.bf16.msra.mxu0 %v7125_v20  ;;  %4788 = vmatpush1.bf16.msra.mxu1 %v7168_v46 }
 0x1f4   : > { %4758 = vmatprep.subr.bf16.mxu0 %v7134_v25  ;;  %4790 = vmatprep.subr.bf16.mxu1 %v7175_v48 }
 0x1f7   : > { %4760 = vmatpush1.bf16.msra.mxu0 %v7151_v35  ;;  %4792 = vmatpush1.bf16.msra.mxu1 %v7191_v58 }
 0x1f8   : > { %4762 = vmatprep.subr.bf16.mxu0 %v7159_v40  ;;  %4794 = vmatprep.subr.bf16.mxu1 %v7198_v60 }
 0x1fb   : > { %4764 = vmatpush1.bf16.msra.mxu0 %v7173_v47  ;;  %4796 = vmatpush1.bf16.msra.mxu1 %v7212_v7 }
 0x1fc   : > { %4766 = vmatprep.subr.bf16.mxu0 %v7181_v52  ;;  %4798 = vmatprep.subr.bf16.mxu1 %v7218_v10 }
 0x1ff   : > { %4768 = vmatpush1.bf16.msra.mxu0 %v7196_v59  ;;  %4800 = vmatpush1.bf16.msra.mxu1 %v7232_v23 }
 0x200   : > { %4770 = vmatprep.subr.bf16.mxu0 %v7204_v0  ;;  %4802 = vmatprep.subr.bf16.mxu1 %v7238_v27 }
 0x203   : > { %4772 = vmatpush1.bf16.msra.mxu0 %v7216_v9  ;;  %4804 = vmatpush1.bf16.msra.mxu1 %v7251_v38 }
 0x204   : > { %4774 = vmatprep.subr.bf16.mxu0 %v7224_v15  ;;  %4806 = vmatprep.subr.bf16.mxu1 %v7257_v41 }
 0x207   : > { %4776 = vmatpush1.bf16.msra.mxu0 %v7236_v26  ;;  %4808 = vmatpush1.bf16.msra.mxu1 %v7272_v49 }
 0x208   : > { %4778 = vmatprep.subr.bf16.mxu0 %v7244_v31  ;;  %4810 = vmatprep.subr.bf16.mxu1 %v7277_v51 }
 0x20b   : > { %4780 = vmatpush1.bf16.msra.mxu0 %v7255_v39  ;;  %4812 = vmatpush1.bf16.msra.mxu1 %v7282_v55 }
 0x20c   : > { %4814 = vmatprep.subr.bf16.mxu0 %v7289_v62  ;;  %4878 = vmatprep.subr.bf16.mxu1 %v7292_v2 }
 0x20e   : > { %1533 = vmatmul.mubr.f32.vlgmr.msra.gmra.mrb[4].mxu0 %v1273_v8  ;;  %1604 = vmatmul.mubr.f32.vlgmr.msra.gmra.mrb[12].mxu1 %v1273_v8  ;;  %v8940_v8 = vld [vmem:[#allocation47_spill] sm:$0xff] }
 0x20f   : > { %4816 = vmatpush1.bf16.msra.mxu0 %v7299_v6  ;;  %4880 = vmatpush1.bf16.msra.mxu1 %v7304_v17 }
 0x210   : > { %4818 = vmatprep.subr.bf16.mxu0 %v7306_v18  ;;  %4882 = vmatprep.subr.bf16.mxu1 %v7312_v28 }
 0x213   : > { %4820 = vmatpush1.bf16.msra.mxu0 %v7319_v34  ;;  %4884 = vmatpush1.bf16.msra.mxu1 %v7321_v37 }
 0x214   : > { %4822 = vmatprep.subr.bf16.mxu0 %v7327_v45  ;;  %4886 = vmatprep.subr.bf16.mxu1 %v7332_v56 }
 0x217   : > { %4824 = vmatpush1.bf16.msra.mxu0 %v7338_v3  ;;  %4888 = vmatpush1.bf16.msra.mxu1 %v8926_v43 }
 0x218   : > { %4826 = vmatprep.subr.bf16.mxu0 %v8927_v61  ;;  %4890 = vmatprep.subr.bf16.mxu1 %v8928_v53 }
 0x21b   : > { %4828 = vmatpush1.bf16.msra.mxu0 %v8929_v29  ;;  %4892 = vmatpush1.bf16.msra.mxu1 %v8930_v13 }
 0x21c   : > { %4830 = vmatprep.subr.bf16.mxu0 %v8931_v14  ;;  %4894 = vmatprep.subr.bf16.mxu1 %v8932_v50  ;;  %v8942_v14 = vld [vmem:[#allocation49_spill] sm:$0xff]  ;;  %v8943_v50 = vld [vmem:[#allocation50_spill] sm:$0xff] }
 0x21f   : > { %4832 = vmatpush1.bf16.msra.mxu0 %v8933_v54  ;;  %4896 = vmatpush1.bf16.msra.mxu1 %v8934_v5  ;;  %v8944_v54 = vld [vmem:[#allocation51_spill] sm:$0xff]  ;;  %v8945_v5 = vld [vmem:[#allocation52_spill] sm:$0xff] }
 0x220   : > { %4834 = vmatprep.subr.bf16.mxu0 %v8935_v21  ;;  %4898 = vmatprep.subr.bf16.mxu1 %v8936_v1  ;;  %v8946_v21 = vld [vmem:[#allocation53_spill] sm:$0xff]  ;;  %v8947_v1 = vld [vmem:[#allocation54_spill] sm:$0xff] }
 0x223   : > { %4836 = vmatpush1.bf16.msra.mxu0 %v8937_v33  ;;  %4900 = vmatpush1.bf16.msra.mxu1 %v8938_v19  ;;  %v8948_v33 = vld [vmem:[#allocation55_spill] sm:$0xff]  ;;  %v8949_v19 = vld [vmem:[#allocation56_spill] sm:$0xff] }
 0x224   : > { %4838 = vmatprep.subr.bf16.mxu0 %v8939_v42  ;;  %4902 = vmatprep.subr.bf16.mxu1 %v8940_v8  ;;  %v8950_v42 = vld [vmem:[#allocation57_spill] sm:$0xff]  ;;  %v8951_v8 = vld [vmem:[#allocation58_spill] sm:$0xff] }
 0x227   : > { %4840 = vmatpush1.bf16.msra.mxu0 %v8941_v57  ;;  %4904 = vmatpush1.bf16.msra.mxu1 %v8942_v14  ;;  %v8952_v57 = vld [vmem:[#allocation59_spill] sm:$0xff]  ;;  %v8953_v14 = vld [vmem:[#allocation60_spill] sm:$0xff] }
 0x228   : > { %4842 = vmatprep.subr.bf16.mxu0 %v8943_v50  ;;  %4906 = vmatprep.subr.bf16.mxu1 %v8944_v54  ;;  %v8954_v50 = vld [vmem:[#allocation61_spill] sm:$0xff]  ;;  %v8955_v54 = vld [vmem:[#allocation62_spill] sm:$0xff] }
 0x22b   : > { %4844 = vmatpush1.bf16.msra.mxu0 %v8945_v5  ;;  %4908 = vmatpush1.bf16.msra.mxu1 %v8946_v21  ;;  %v8956_v5 = vld [vmem:[#allocation63_spill] sm:$0xff]  ;;  %v8957_v21 = vld [vmem:[#allocation64_spill] sm:$0xff] }
 0x22c   : > { %4846 = vmatprep.subr.bf16.mxu0 %v8947_v1  ;;  %4910 = vmatprep.subr.bf16.mxu1 %v8948_v33  ;;  %v8958_v1 = vld [vmem:[#allocation65_spill] sm:$0xff]  ;;  %v8959_v33 = vld [vmem:[#allocation66_spill] sm:$0xff] }
 0x22f   : > { %4848 = vmatpush1.bf16.msra.mxu0 %v8949_v19  ;;  %4912 = vmatpush1.bf16.msra.mxu1 %v8950_v42  ;;  %v8960_v19 = vld [vmem:[#allocation67_spill] sm:$0xff]  ;;  %v8961_v42 = vld [vmem:[#allocation68_spill] sm:$0xff] }
 0x230   : > { %4850 = vmatprep.subr.bf16.mxu0 %v8951_v8  ;;  %4914 = vmatprep.subr.bf16.mxu1 %v8952_v57  ;;  %v8962_v8 = vld [vmem:[#allocation69_spill] sm:$0xff]  ;;  %v8963_v57 = vld [vmem:[#allocation70_spill] sm:$0xff] }
 0x233   : > { %4852 = vmatpush1.bf16.msra.mxu0 %v8953_v14  ;;  %4916 = vmatpush1.bf16.msra.mxu1 %v8954_v50  ;;  %v8964_v14 = vld [vmem:[#allocation71_spill] sm:$0xff]  ;;  %v8965_v50 = vld [vmem:[#allocation72_spill] sm:$0xff] }
 0x234   : > { %4854 = vmatprep.subr.bf16.mxu0 %v8955_v54  ;;  %4918 = vmatprep.subr.bf16.mxu1 %v8956_v5  ;;  %v8966_v54 = vld [vmem:[#allocation73_spill] sm:$0xff]  ;;  %v8976_v5 = vld [vmem:[#allocation83_spill] sm:$0xff] }
 0x237   : > { %4856 = vmatpush1.bf16.msra.mxu0 %v8957_v21  ;;  %4920 = vmatpush1.bf16.msra.mxu1 %v8958_v1  ;;  %v8967_v21 = vld [vmem:[#allocation74_spill] sm:$0xff]  ;;  %v8968_v1 = vld [vmem:[#allocation75_spill] sm:$0xff] }
 0x238   : > { %4858 = vmatprep.subr.bf16.mxu0 %v8959_v33  ;;  %4922 = vmatprep.subr.bf16.mxu1 %v8960_v19  ;;  %v8969_v33 = vld [vmem:[#allocation76_spill] sm:$0xff]  ;;  %v8970_v19 = vld [vmem:[#allocation77_spill] sm:$0xff] }
 0x23b   : > { %4860 = vmatpush1.bf16.msra.mxu0 %v8961_v42  ;;  %4924 = vmatpush1.bf16.msra.mxu1 %v8962_v8  ;;  %v8971_v42 = vld [vmem:[#allocation78_spill] sm:$0xff]  ;;  %v8972_v8 = vld [vmem:[#allocation79_spill] sm:$0xff] }
 0x23c   : > { %4862 = vmatprep.subr.bf16.mxu0 %v8963_v57  ;;  %4926 = vmatprep.subr.bf16.mxu1 %v8964_v14  ;;  %v8973_v57 = vld [vmem:[#allocation80_spill] sm:$0xff]  ;;  %v8974_v14 = vld [vmem:[#allocation81_spill] sm:$0xff] }
 0x23f   : > { %4864 = vmatpush1.bf16.msra.mxu0 %v8965_v50  ;;  %4928 = vmatpush1.bf16.msra.mxu1 %v8966_v54  ;;  %v8975_v50 = vld [vmem:[#allocation82_spill] sm:$0xff]  ;;  %v8977_v54 = vld [vmem:[#allocation84_spill] sm:$0xff] }
 0x240   : > { %4866 = vmatprep.subr.bf16.mxu0 %v8967_v21  ;;  %4930 = vmatprep.subr.bf16.mxu1 %v8968_v1  ;;  %v8978_v21 = vld [vmem:[#allocation85_spill] sm:$0xff]  ;;  %v8979_v1 = vld [vmem:[#allocation27_spill] sm:$0xff] }
 0x243   : > { %4868 = vmatpush1.bf16.msra.mxu0 %v8969_v33  ;;  %4932 = vmatpush1.bf16.msra.mxu1 %v8970_v19  ;;  %v8980_v33 = vld [vmem:[#allocation28_spill] sm:$0xff] }
 0x244   : > { %4870 = vmatprep.subr.bf16.mxu0 %v8971_v42  ;;  %4934 = vmatprep.subr.bf16.mxu1 %v8972_v8  ;;  %v883_v42 = vld [vmem:[%s572_s11] sm:$0xf]  ;;  %v8981_v8 = vsub.s32 0, %v7609_v11  ;;  %s4117_s11 = sshll.u32 %s8493_s22, 4  ;;  %s8562_s11 = int_to_ptr.vmem [resolvable:$true] %s4117_s11 }
 0x245   : > { %s6605_s21 = scalar_lea.vmem %s8562_s11, 64  ;;  %p6612_p4 = scmp.lt.s32.totalorder %s8562_s11, %s6610_s3 }
 0x246   : > { %v7758_v19 = vrot.slane %v883_v42, %v8981_v8  ;;  %v8987_v8 = vsub.s32 2, %v7609_v11  ;;  %p6606_p10 = scmp.ne.s32.totalorder %s8562_s11, %s6605_s21 }
 0x247   : > { %4872 = vmatpush1.bf16.msra.mxu0 %v8973_v57  ;;  %4936 = vmatpush1.bf16.msra.mxu1 %v8974_v14  ;;  %v8983_v14 = vsub.s32 1, %v7609_v11 }
 0x248   : > { %4874 = vmatprep.subr.bf16.mxu0 %v8975_v50  ;;  %4938 = vmatprep.subr.bf16.mxu1 %v8976_v5  ;;  %8982 = vst [vmem:[#allocation91_spill] sm:$0xff] %v7758_v19  ;;  %v7773_v43 = vrot.slane %v883_v42, %v8987_v8  ;;  %p6607_p5 = pnand %p6606_p10, %p9371_p8 }
 0x249   : > { %v7762_v57 = vrot.slane %v883_v42, %v8983_v14 }
 0x24a   : > { %8988 = vst [vmem:[#allocation94_spill] sm:$0xff] %v7773_v43  ;;  %p6608_p2 = pneg %p6607_p5 }
 0x24b   : > { %4876 = vmatpush1.bf16.msra.mxu0 %v8977_v54  ;;  %4940 = vmatpush1.bf16.msra.mxu1 %v8978_v21  ;;  %8984 = vst [vmem:[#allocation92_spill] sm:$0xff] %v7762_v57 }
 0x24c   : > { %4942 = vmatprep.subr.bf16.mxu0 %v8979_v1  ;;  %4974 = vmatprep.subr.bf16.mxu1 %v8980_v33  ;;  %v8985_v33 = vsub.s32 3, %v7609_v11 }
 0x24e   : > { %v7768_v53 = vrot.slane %v883_v42, %v8985_v33 }
 0x250   : > { %8986 = vst [vmem:[#allocation93_spill] sm:$0xff] %v7768_v53 }
 0x2c1   : > { %v1361_v50 = vpop.f32.mrb[2].mxu0  ;;  %v1432_v5 = vpop.f32.mrb[10].mxu1 }
 0x2c2   : > { %v1362_v54 = vadd.f32 %v1361_v50, %v7758_v19  ;;  %v1363_v13 = vpop.f32.mrb[3].mxu0  ;;  %v1434_v21 = vpop.f32.mrb[11].mxu1  ;;  %v1433_v19 = vadd.f32 %v1432_v5, %v7773_v43 }
 0x2c3   : > { %v1364_v1 = vadd.f32 %v1363_v13, %v7762_v57  ;;  %v1435_v14 = vadd.f32 %v1434_v21, %v7768_v53 }
 0x2c4   : > { %v4431_v29 = vmul.f32 -1.442695, %v1362_v54 }
 0x2c5   : > { %v4432_v61 = vmul.f32 -1.442695, %v1364_v1  ;;  %v4433_v50 = vmul.f32 -1.442695, %v1435_v14 }
 0x2c6   : > { %6217 = vpow2.f32 %v4431_v29 }
 0x2c7   : > { %6219 = vpow2.f32 %v4432_v61  ;;  %v4427_v61 = vld [vmem:[%s7650_s12 + $0x2] sm:$0x3]  ;;  %s4503_s12 = sshll.u32 %s6825_s10, 6 }
 0x2c8   : > { %6221 = vpow2.f32 %v4433_v50  ;;  %s8560_s24 = scalar_lea.hbm %s9370_s14, %s4503_s12 }
 0x2c9   : > { %6223 = vtanh.f32 %v1433_v19 }
 0x2d0   : > { %v6218_v3 = vpop.eup %6217 }
 0x2d1   : > { %v6220_v13 = vpop.eup %6219  ;;  %v1440_v54 = vadd.f32 1.0, %v6218_v3 }
 0x2d2   : > { %v1446_v33 = vadd.f32 1.0, %v6220_v13  ;;  %v6222_v29 = vpop.eup %6221 }
 0x2d3   : > { %6225 = vrcp.f32 %v1440_v54  ;;  %v6224_v1 = vpop.eup %6223  ;;  %v1453_v11 = vadd.f32 1.0, %v6222_v29 }
 0x2d4   : > { %6227 = vrcp.f32 %v1446_v33 }
 0x2d5   : > { %6229 = vrcp.f32 %v1453_v11 }
 0x2dd   : > { %v6226_v57 = vpop.eup %6225 }
 0x2de   : > { %v6228_v21 = vpop.eup %6227  ;;  %v1457_v53 = vmul.f32 %v6226_v57, %v6224_v1 }
 0x2df   : > { %v1456_v42 = vmul.f32 %v6228_v21, %v4427_v61  ;;  %v6230_v29 = vpop.eup %6229 }
 0x2e1   : > { %v7777_v8 = vadd.f32 %v1457_v53, %v1456_v42  ;;  %v1534_v14 = vpop.f32.mrb[4].mxu0  ;;  %v1605_v5 = vpop.f32.mrb[12].mxu1 }
 0x2e2   : > { %v1614_v43 = vrot.slane %v1534_v14, 6  ;;  %v1536_v3 = vpop.f32.mrb[5].mxu0  ;;  %v1607_v50 = vpop.f32.mrb[13].mxu1  ;;  %v1616_v1 = vrot.slane %v1605_v5, 6 }
 0x2e3   : > { %v1615_v19 = vrot.slane %v1536_v3, 6  ;;  %6231 = vtanh.f32 %v7777_v8  ;;  %v1617_v57 = vrot.slane %v1607_v50, 6 }
 0x2e4   : > { %v1622_v13 = vadd.f32 %v1614_v43, %v7633_v24  ;;  %v1624_v42 = vadd.f32 %v1616_v1, %v7642_v44 }
 0x2e5   : > { %v1623_v54 = vadd.f32 %v1615_v19, %v7635_v63  ;;  %v1625_v53 = vadd.f32 %v1617_v57, %v7639_v4 }
 0x2e6   : > { %v4435_v33 = vmul.f32 -1.442695, %v1622_v13 }
 0x2e7   : > { %v4436_v56 = vmul.f32 -1.442695, %v1623_v54  ;;  %v4437_v11 = vmul.f32 -1.442695, %v1625_v53 }
 0x2e8   : > { %6233 = vpow2.f32 %v4435_v33  ;;  %v1646_v33 = vrot.slane %v7653_v30, 6  ;;  %v8989_v30 = vld [vmem:[#allocation31_spill] sm:$0xff] }
 0x2e9   : > { %6235 = vpow2.f32 %v4436_v56 }
 0x2ea   : > { %6237 = vpow2.f32 %v4437_v11 }
 0x2eb   : > { %6239 = vtanh.f32 %v1624_v42 }
 0x2ed   : > { %v6232_v61 = vpop.eup %6231 }
 0x2ee   : > { %v7783_v21 = vmul.f32 %v6232_v61, %v6230_v29 }
 0x2f0   : > { %v1654_v14 = vrot.slane %v7783_v21, 6 }
 0x2f2   : > { %v6234_v43 = vpop.eup %6233  ;;  %v1657_v3 = vrot.slane %v1654_v14, 2 }
 0x2f3   : > { %v6236_v19 = vpop.eup %6235  ;;  %v1629_v13 = vadd.f32 1.0, %v6234_v43 }
 0x2f4   : > { %v1635_v50 = vadd.f32 1.0, %v6236_v19  ;;  %1724 = vmatprep.mubr.f32.mxu0 %v1657_v3  ;;  %1795 = vmatprep.mubr.f32.mxu1 %v1657_v3  ;;  %v6238_v56 = vpop.eup %6237  ;;  %v8990_v3 = vld [vmem:[#allocation32_spill] sm:$0xff]  ;;  %v8991_v19 = vld [vmem:[#allocation33_spill] sm:$0xff] }
 0x2f5   : > { %6241 = vrcp.f32 %v1629_v13  ;;  %v6240_v5 = vpop.eup %6239  ;;  %v1642_v29 = vadd.f32 1.0, %v6238_v56  ;;  %v8992_v13 = vld [vmem:[#allocation34_spill] sm:$0xff]  ;;  %v8994_v56 = vld [vmem:[#allocation36_spill] sm:$0xff] }
 0x2f6   : > { %6243 = vrcp.f32 %v1635_v50  ;;  %v8993_v50 = vld [vmem:[#allocation35_spill] sm:$0xff] }
 0x2f7   : > { %6245 = vrcp.f32 %v1642_v29  ;;  %v9000_v29 = vld [vmem:[#allocation42_spill] sm:$0xff] }
 0x2ff   : > { %v6242_v54 = vpop.eup %6241 }
 0x300   : > { %v6244_v57 = vpop.eup %6243  ;;  %v1649_v53 = vmul.f32 %v6242_v54, %v6240_v5  ;;  %v8995_v5 = vld [vmem:[#allocation37_spill] sm:$0xff]  ;;  %v8996_v54 = vld [vmem:[#allocation38_spill] sm:$0xff] }
 0x301   : > { %v1648_v1 = vmul.f32 %v6244_v57, %v1646_v33  ;;  %v6246_v11 = vpop.eup %6245  ;;  %v8997_v33 = vld [vmem:[#allocation39_spill] sm:$0xff]  ;;  %v8998_v57 = vld [vmem:[#allocation40_spill] sm:$0xff] }
 0x303   : > { %v7788_v61 = vadd.f32 %v1649_v53, %v1648_v1  ;;  %v8999_v53 = vld [vmem:[#allocation41_spill] sm:$0xff]  ;;  %v9001_v1 = vld [vmem:[#allocation43_spill] sm:$0xff] }
 0x305   : > { %6247 = vtanh.f32 %v7788_v61 }
 0x30f   : > { %v6248_v42 = vpop.eup %6247 }
 0x310   : > { %v1652_v14 = vmul.f32 %v6248_v42, %v6246_v11  ;;  %v9002_v11 = vld [vmem:[#allocation44_spill] sm:$0xff]  ;;  %v9003_v42 = vld [vmem:[#allocation45_spill] sm:$0xff] }
 0x312   : > { %v1656_v43 = vrot.slane %v1652_v14, 2  ;;  %v9004_v14 = vld [vmem:[#allocation46_spill] sm:$0xff] }
 0x314   : > { %1725 = vmatmul.mubr.f32.vlgmr.msra.gmra.mrb[6].mxu0 %v1656_v43  ;;  %1796 = vmatmul.mubr.f32.vlgmr.msra.gmra.mrb[14].mxu1 %v1656_v43 }
 0x315   : > { %4944 = vmatpush1.bf16.msra.mxu0 %v7113_v12  ;;  %4976 = vmatpush1.bf16.msra.mxu1 %v7146_v32 }
 0x316   : > { %4946 = vmatprep.subr.bf16.mxu0 %v7119_v16  ;;  %4978 = vmatprep.subr.bf16.mxu1 %v7153_v36 }
 0x317   : > { %1897 = vmatprep.mubr.f32.mxu0 %v8925_v22  ;;  %1968 = vmatprep.mubr.f32.mxu1 %v8925_v22 }
 0x319   : > { %4948 = vmatpush1.bf16.msra.mxu0 %v7125_v20  ;;  %4980 = vmatpush1.bf16.msra.mxu1 %v7168_v46 }
 0x31a   : > { %4950 = vmatprep.subr.bf16.mxu0 %v7134_v25  ;;  %4982 = vmatprep.subr.bf16.mxu1 %v7175_v48 }
 0x31d   : > { %4952 = vmatpush1.bf16.msra.mxu0 %v7151_v35  ;;  %4984 = vmatpush1.bf16.msra.mxu1 %v7191_v58 }
 0x31e   : > { %4954 = vmatprep.subr.bf16.mxu0 %v7159_v40  ;;  %4986 = vmatprep.subr.bf16.mxu1 %v7198_v60 }
 0x321   : > { %4956 = vmatpush1.bf16.msra.mxu0 %v7173_v47  ;;  %4988 = vmatpush1.bf16.msra.mxu1 %v7212_v7 }
 0x322   : > { %4958 = vmatprep.subr.bf16.mxu0 %v7181_v52  ;;  %4990 = vmatprep.subr.bf16.mxu1 %v7218_v10 }
 0x325   : > { %4960 = vmatpush1.bf16.msra.mxu0 %v7196_v59  ;;  %4992 = vmatpush1.bf16.msra.mxu1 %v7232_v23 }
 0x326   : > { %4962 = vmatprep.subr.bf16.mxu0 %v7204_v0  ;;  %4994 = vmatprep.subr.bf16.mxu1 %v7238_v27 }
 0x329   : > { %4964 = vmatpush1.bf16.msra.mxu0 %v7216_v9  ;;  %4996 = vmatpush1.bf16.msra.mxu1 %v7251_v38 }
 0x32a   : > { %4966 = vmatprep.subr.bf16.mxu0 %v7224_v15  ;;  %4998 = vmatprep.subr.bf16.mxu1 %v7257_v41 }
 0x32d   : > { %4968 = vmatpush1.bf16.msra.mxu0 %v7236_v26  ;;  %5000 = vmatpush1.bf16.msra.mxu1 %v7272_v49 }
 0x32e   : > { %4970 = vmatprep.subr.bf16.mxu0 %v7244_v31  ;;  %5002 = vmatprep.subr.bf16.mxu1 %v7277_v51 }
 0x331   : > { %4972 = vmatpush1.bf16.msra.mxu0 %v7255_v39  ;;  %5004 = vmatpush1.bf16.msra.mxu1 %v7282_v55 }
 0x332   : > { %5006 = vmatprep.subr.bf16.mxu0 %v7289_v62  ;;  %5070 = vmatprep.subr.bf16.mxu1 %v7292_v2 }
 0x334   : > { %1898 = vmatmul.mubr.f32.vlgmr.msra.gmra.mrb[8].mxu0 %v1656_v43  ;;  %1969 = vmatmul.mubr.f32.vlgmr.msra.gmra.mrb[16].mxu1 %v1656_v43  ;;  %v9005_v43 = vld [vmem:[#allocation47_spill] sm:$0xff] }
 0x335   : > { %5008 = vmatpush1.bf16.msra.mxu0 %v7299_v6  ;;  %5072 = vmatpush1.bf16.msra.mxu1 %v7304_v17 }
 0x336   : > { %5010 = vmatprep.subr.bf16.mxu0 %v7306_v18  ;;  %5074 = vmatprep.subr.bf16.mxu1 %v7312_v28 }
 0x339   : > { %5012 = vmatpush1.bf16.msra.mxu0 %v7319_v34  ;;  %5076 = vmatpush1.bf16.msra.mxu1 %v7321_v37 }
 0x33a   : > { %5014 = vmatprep.subr.bf16.mxu0 %v7327_v45  ;;  %5078 = vmatprep.subr.bf16.mxu1 %v8989_v30 }
 0x33d   : > { %5016 = vmatpush1.bf16.msra.mxu0 %v8990_v3  ;;  %5080 = vmatpush1.bf16.msra.mxu1 %v8991_v19 }
 0x33e   : > { %5018 = vmatprep.subr.bf16.mxu0 %v8992_v13  ;;  %5082 = vmatprep.subr.bf16.mxu1 %v8993_v50  ;;  %v9047_v13 = vld [vmem:[#allocation92_spill] sm:$0xff] }
 0x341   : > { %5020 = vmatpush1.bf16.msra.mxu0 %v8994_v56  ;;  %5084 = vmatpush1.bf16.msra.mxu1 %v8995_v5  ;;  %v9006_v5 = vld [vmem:[#allocation48_spill] sm:$0xff]  ;;  %v9046_v56 = vld [vmem:[#allocation91_spill] sm:$0xff] }
 0x342   : > { %5022 = vmatprep.subr.bf16.mxu0 %v8996_v54  ;;  %5086 = vmatprep.subr.bf16.mxu1 %v8997_v33  ;;  %v9007_v54 = vld [vmem:[#allocation49_spill] sm:$0xff]  ;;  %v9008_v33 = vld [vmem:[#allocation50_spill] sm:$0xff] }
 0x345   : > { %5024 = vmatpush1.bf16.msra.mxu0 %v8998_v57  ;;  %5088 = vmatpush1.bf16.msra.mxu1 %v8999_v53  ;;  %v9009_v57 = vld [vmem:[#allocation51_spill] sm:$0xff]  ;;  %v9010_v53 = vld [vmem:[#allocation52_spill] sm:$0xff] }
 0x346   : > { %5026 = vmatprep.subr.bf16.mxu0 %v9000_v29  ;;  %5090 = vmatprep.subr.bf16.mxu1 %v9001_v1  ;;  %v9011_v29 = vld [vmem:[#allocation53_spill] sm:$0xff]  ;;  %v9012_v1 = vld [vmem:[#allocation54_spill] sm:$0xff] }
 0x349   : > { %5028 = vmatpush1.bf16.msra.mxu0 %v9002_v11  ;;  %5092 = vmatpush1.bf16.msra.mxu1 %v9003_v42  ;;  %v9013_v11 = vld [vmem:[#allocation55_spill] sm:$0xff]  ;;  %v9014_v42 = vld [vmem:[#allocation56_spill] sm:$0xff] }
 0x34a   : > { %5030 = vmatprep.subr.bf16.mxu0 %v9004_v14  ;;  %5094 = vmatprep.subr.bf16.mxu1 %v9005_v43  ;;  %v9015_v14 = vld [vmem:[#allocation57_spill] sm:$0xff]  ;;  %v9016_v43 = vld [vmem:[#allocation58_spill] sm:$0xff] }
 0x34d   : > { %5032 = vmatpush1.bf16.msra.mxu0 %v9006_v5  ;;  %5096 = vmatpush1.bf16.msra.mxu1 %v9007_v54  ;;  %v9017_v5 = vld [vmem:[#allocation59_spill] sm:$0xff]  ;;  %v9018_v54 = vld [vmem:[#allocation60_spill] sm:$0xff] }
 0x34e   : > { %5034 = vmatprep.subr.bf16.mxu0 %v9008_v33  ;;  %5098 = vmatprep.subr.bf16.mxu1 %v9009_v57  ;;  %v9019_v33 = vld [vmem:[#allocation61_spill] sm:$0xff]  ;;  %v9020_v57 = vld [vmem:[#allocation62_spill] sm:$0xff] }
 0x351   : > { %5036 = vmatpush1.bf16.msra.mxu0 %v9010_v53  ;;  %5100 = vmatpush1.bf16.msra.mxu1 %v9011_v29  ;;  %v9021_v53 = vld [vmem:[#allocation63_spill] sm:$0xff]  ;;  %v9022_v29 = vld [vmem:[#allocation64_spill] sm:$0xff] }
 0x352   : > { %5038 = vmatprep.subr.bf16.mxu0 %v9012_v1  ;;  %5102 = vmatprep.subr.bf16.mxu1 %v9013_v11  ;;  %v9023_v1 = vld [vmem:[#allocation65_spill] sm:$0xff]  ;;  %v9024_v11 = vld [vmem:[#allocation66_spill] sm:$0xff] }
 0x355   : > { %5040 = vmatpush1.bf16.msra.mxu0 %v9014_v42  ;;  %5104 = vmatpush1.bf16.msra.mxu1 %v9015_v14  ;;  %v9025_v42 = vld [vmem:[#allocation67_spill] sm:$0xff]  ;;  %v9026_v14 = vld [vmem:[#allocation68_spill] sm:$0xff] }
 0x356   : > { %5042 = vmatprep.subr.bf16.mxu0 %v9016_v43  ;;  %5106 = vmatprep.subr.bf16.mxu1 %v9017_v5  ;;  %v9027_v43 = vld [vmem:[#allocation69_spill] sm:$0xff]  ;;  %v9028_v5 = vld [vmem:[#allocation70_spill] sm:$0xff] }
 0x359   : > { %5044 = vmatpush1.bf16.msra.mxu0 %v9018_v54  ;;  %5108 = vmatpush1.bf16.msra.mxu1 %v9019_v33  ;;  %v9029_v54 = vld [vmem:[#allocation71_spill] sm:$0xff]  ;;  %v9030_v33 = vld [vmem:[#allocation72_spill] sm:$0xff] }
 0x35a   : > { %5046 = vmatprep.subr.bf16.mxu0 %v9020_v57  ;;  %5110 = vmatprep.subr.bf16.mxu1 %v9021_v53  ;;  %v9031_v57 = vld [vmem:[#allocation73_spill] sm:$0xff]  ;;  %v9032_v53 = vld [vmem:[#allocation74_spill] sm:$0xff] }
 0x35d   : > { %5048 = vmatpush1.bf16.msra.mxu0 %v9022_v29  ;;  %5112 = vmatpush1.bf16.msra.mxu1 %v9023_v1  ;;  %v9033_v29 = vld [vmem:[#allocation75_spill] sm:$0xff]  ;;  %v9034_v1 = vld [vmem:[#allocation76_spill] sm:$0xff] }
 0x35e   : > { %5050 = vmatprep.subr.bf16.mxu0 %v9024_v11  ;;  %5114 = vmatprep.subr.bf16.mxu1 %v9025_v42  ;;  %v9035_v11 = vld [vmem:[#allocation77_spill] sm:$0xff]  ;;  %v9036_v42 = vld [vmem:[#allocation78_spill] sm:$0xff] }
 0x361   : > { %5052 = vmatpush1.bf16.msra.mxu0 %v9026_v14  ;;  %5116 = vmatpush1.bf16.msra.mxu1 %v9027_v43  ;;  %v9037_v14 = vld [vmem:[#allocation79_spill] sm:$0xff]  ;;  %v9038_v43 = vld [vmem:[#allocation80_spill] sm:$0xff] }
 0x362   : > { %5054 = vmatprep.subr.bf16.mxu0 %v9028_v5  ;;  %5118 = vmatprep.subr.bf16.mxu1 %v9029_v54  ;;  %v9039_v5 = vld [vmem:[#allocation81_spill] sm:$0xff]  ;;  %v9040_v54 = vld [vmem:[#allocation82_spill] sm:$0xff] }
 0x365   : > { %5056 = vmatpush1.bf16.msra.mxu0 %v9030_v33  ;;  %5120 = vmatpush1.bf16.msra.mxu1 %v9031_v57  ;;  %v9041_v33 = vld [vmem:[#allocation83_spill] sm:$0xff]  ;;  %v9042_v57 = vld [vmem:[#allocation84_spill] sm:$0xff] }
 0x366   : > { %5058 = vmatprep.subr.bf16.mxu0 %v9032_v53  ;;  %5122 = vmatprep.subr.bf16.mxu1 %v9033_v29  ;;  %v9043_v53 = vld [vmem:[#allocation85_spill] sm:$0xff]  ;;  %v9044_v29 = vld [vmem:[#allocation27_spill] sm:$0xff] }
 0x369   : > { %5060 = vmatpush1.bf16.msra.mxu0 %v9034_v1  ;;  %5124 = vmatpush1.bf16.msra.mxu1 %v9035_v11  ;;  %v9045_v1 = vld [vmem:[#allocation28_spill] sm:$0xff] }
 0x36a   : > { %5062 = vmatprep.subr.bf16.mxu0 %v9036_v42  ;;  %5126 = vmatprep.subr.bf16.mxu1 %v9037_v14 }
 0x36d   : > { %5064 = vmatpush1.bf16.msra.mxu0 %v9038_v43  ;;  %5128 = vmatpush1.bf16.msra.mxu1 %v9039_v5 }
 0x36e   : > { %5066 = vmatprep.subr.bf16.mxu0 %v9040_v54  ;;  %5130 = vmatprep.subr.bf16.mxu1 %v9041_v33  ;;  %v9048_v33 = vld [vmem:[#allocation93_spill] sm:$0xff] }
 0x371   : > { %5068 = vmatpush1.bf16.msra.mxu0 %v9042_v57  ;;  %5132 = vmatpush1.bf16.msra.mxu1 %v9043_v53  ;;  %v9049_v53 = vld [vmem:[#allocation94_spill] sm:$0xff] }
 0x372   : > { %5134 = vmatprep.subr.bf16.mxu0 %v9044_v29  ;;  %5166 = vmatprep.subr.bf16.mxu1 %v9045_v1 }
 0x3e7   : > { %v1726_v11 = vpop.f32.mrb[6].mxu0  ;;  %v1797_v42 = vpop.f32.mrb[14].mxu1 }
 0x3e8   : > { %v1727_v14 = vadd.f32 %v1726_v11, %v9046_v56  ;;  %v1728_v50 = vpop.f32.mrb[7].mxu0  ;;  %v1799_v43 = vpop.f32.mrb[15].mxu1  ;;  %v1798_v30 = vadd.f32 %v1797_v42, %v9049_v53 }
 0x3e9   : > { %v1729_v5 = vadd.f32 %v1728_v50, %v9047_v13  ;;  %v1800_v57 = vadd.f32 %v1799_v43, %v9048_v33 }
 0x3ea   : > { %v4438_v19 = vmul.f32 -1.442695, %v1727_v14 }
 0x3eb   : > { %v4439_v54 = vmul.f32 -1.442695, %v1729_v5  ;;  %v4440_v3 = vmul.f32 -1.442695, %v1800_v57 }
 0x3ec   : > { %6249 = vpow2.f32 %v4438_v19 }
 0x3ed   : > { %6251 = vpow2.f32 %v4439_v54 }
 0x3ee   : > { %6253 = vpow2.f32 %v4440_v3 }
 0x3ef   : > { %6255 = vtanh.f32 %v1798_v30 }
 0x3f6   : > { %v6250_v29 = vpop.eup %6249 }
 0x3f7   : > { %v6252_v45 = vpop.eup %6251  ;;  %v1805_v1 = vadd.f32 1.0, %v6250_v29 }
 0x3f8   : > { %v1811_v37 = vadd.f32 1.0, %v6252_v45  ;;  %v6254_v11 = vpop.eup %6253 }
 0x3f9   : > { %6257 = vrcp.f32 %v1805_v1  ;;  %v6256_v56 = vpop.eup %6255  ;;  %v1818_v19 = vadd.f32 1.0, %v6254_v11 }
 0x3fa   : > { %6259 = vrcp.f32 %v1811_v37 }
 0x3fb   : > { %6261 = vrcp.f32 %v1818_v19  ;;  %v4434_v19 = vld [vmem:[#allocation11] ss:$0 sm:$0xff] }
 0x403   : > { %v6258_v50 = vpop.eup %6257 }
 0x404   : > { %v6260_v14 = vpop.eup %6259  ;;  %v1822_v5 = vmul.f32 %v6258_v50, %v6256_v56 }
 0x405   : > { %v1821_v54 = vmul.f32 %v6260_v14, %v7777_v8  ;;  %v6262_v50 = vpop.eup %6261 }
 0x407   : > { %v7894_v43 = vadd.f32 %v1822_v5, %v1821_v54  ;;  %v1899_v57 = vpop.f32.mrb[8].mxu0  ;;  %v1970_v42 = vpop.f32.mrb[16].mxu1  ;;  %v4441_v54 = vld [vmem:[#allocation11 + $0x1] ss:$0 sm:$0xff] }
 0x408   : > { %v1979_v53 = vrot.slane %v1899_v57, 4  ;;  %v1901_v29 = vpop.f32.mrb[9].mxu0  ;;  %v1972_v3 = vpop.f32.mrb[17].mxu1  ;;  %v1981_v14 = vrot.slane %v1970_v42, 4 }
 0x409   : > { %9050 = vst [vmem:[#allocation95_spill] sm:$0xff] %v7894_v43  ;;  %v1980_v30 = vrot.slane %v1901_v29, 4  ;;  %6263 = vtanh.f32 %v7894_v43  ;;  %v1982_v11 = vrot.slane %v1972_v3, 4  ;;  %v1466_v43 = vmul.f32 %v4434_v19, %v7783_v21 }
 0x40a   : > { %v1987_v37 = vadd.f32 %v1979_v53, %v7633_v24  ;;  %v1989_v53 = vadd.f32 %v1981_v14, %v7642_v44 }
 0x40b   : > { %v1988_v45 = vadd.f32 %v1980_v30, %v7635_v63  ;;  %v1990_v8 = vadd.f32 %v1982_v11, %v7639_v4 }
 0x40c   : > { %v4442_v1 = vmul.f32 -1.442695, %v1987_v37 }
 0x40d   : > { %v4443_v56 = vmul.f32 -1.442695, %v1988_v45  ;;  %v4444_v29 = vmul.f32 -1.442695, %v1990_v8 }
 0x40e   : > { %6265 = vpow2.f32 %v4442_v1 }
 0x40f   : > { %6267 = vpow2.f32 %v4443_v56 }
 0x410   : > { %6269 = vpow2.f32 %v4444_v29 }
 0x411   : > { %6271 = vtanh.f32 %v1989_v53 }
 0x413   : > { %v6264_v5 = vpop.eup %6263 }
 0x414   : > { %v1825_v57 = vmul.f32 %v6264_v5, %v6262_v50  ;;  %v2011_v50 = vrot.slane %v7788_v61, 6  ;;  %v9051_v61 = vld [vmem:[#allocation29_spill] sm:$0xff] }
 0x416   : > { %v1831_v24 = vmul.f32 %v4441_v54, %v1825_v57  ;;  %v2019_v30 = vrot.slane %v1825_v57, 4 }
 0x418   : > { %v6266_v37 = vpop.eup %6265  ;;  %v7902_v45 = vadd.f32 %v1831_v24, %v1466_v43  ;;  %v2022_v3 = vrot.slane %v2019_v30, 4  ;;  %v9052_v30 = vld [vmem:[#allocation30_spill] sm:$0xff] }
 0x419   : > { %v6268_v1 = vpop.eup %6267  ;;  %v1994_v56 = vadd.f32 1.0, %v6266_v37  ;;  %v9053_v37 = vld [vmem:[#allocation31_spill] sm:$0xff] }
 0x41a   : > { %v2000_v42 = vadd.f32 1.0, %v6268_v1  ;;  %2089 = vmatprep.mubr.f32.mxu0 %v2022_v3  ;;  %2160 = vmatprep.mubr.f32.mxu1 %v2022_v3  ;;  %v6270_v11 = vpop.eup %6269  ;;  %v9054_v3 = vld [vmem:[#allocation32_spill] sm:$0xff]  ;;  %v9055_v1 = vld [vmem:[#allocation33_spill] sm:$0xff] }
 0x41b   : > { %6273 = vrcp.f32 %v1994_v56  ;;  %v6272_v8 = vpop.eup %6271  ;;  %v2007_v19 = vadd.f32 1.0, %v6270_v11  ;;  %v9056_v56 = vld [vmem:[#allocation34_spill] sm:$0xff]  ;;  %v9058_v11 = vld [vmem:[#allocation36_spill] sm:$0xff] }
 0x41c   : > { %6275 = vrcp.f32 %v2000_v42  ;;  %v9057_v42 = vld [vmem:[#allocation35_spill] sm:$0xff] }
 0x41d   : > { %6277 = vrcp.f32 %v2007_v19  ;;  %v9064_v19 = vld [vmem:[#allocation42_spill] sm:$0xff] }
 0x425   : > { %v6274_v21 = vpop.eup %6273 }
 0x426   : > { %v6276_v14 = vpop.eup %6275  ;;  %v2014_v5 = vmul.f32 %v6274_v21, %v6272_v8  ;;  %v9059_v8 = vld [vmem:[#allocation37_spill] sm:$0xff]  ;;  %v9060_v21 = vld [vmem:[#allocation38_spill] sm:$0xff] }
 0x427   : > { %v2013_v24 = vmul.f32 %v6276_v14, %v2011_v50  ;;  %v6278_v54 = vpop.eup %6277  ;;  %v9061_v50 = vld [vmem:[#allocation39_spill] sm:$0xff]  ;;  %v9062_v14 = vld [vmem:[#allocation40_spill] sm:$0xff] }
 0x429   : > { %v7905_v43 = vadd.f32 %v2014_v5, %v2013_v24  ;;  %v9063_v5 = vld [vmem:[#allocation41_spill] sm:$0xff]  ;;  %v9065_v24 = vld [vmem:[#allocation43_spill] sm:$0xff] }
 0x42b   : > { %6279 = vtanh.f32 %v7905_v43 }
 0x435   : > { %v6280_v57 = vpop.eup %6279 }
 0x436   : > { %v2017_v29 = vmul.f32 %v6280_v57, %v6278_v54  ;;  %v9066_v54 = vld [vmem:[#allocation44_spill] sm:$0xff]  ;;  %v9067_v57 = vld [vmem:[#allocation45_spill] sm:$0xff] }
 0x438   : > { %v2021_v53 = vrot.slane %v2017_v29, 4  ;;  %v9068_v29 = vld [vmem:[#allocation46_spill] sm:$0xff] }
 0x43a   : > { %2090 = vmatmul.mubr.f32.vlgmr.msra.gmra.mrb[10].mxu0 %v2021_v53  ;;  %2161 = vmatmul.mubr.f32.vlgmr.msra.gmra.mrb[18].mxu1 %v2021_v53 }
 0x43b   : > { %5136 = vmatpush1.bf16.msra.mxu0 %v7113_v12  ;;  %5168 = vmatpush1.bf16.msra.mxu1 %v7146_v32 }
 0x43c   : > { %5138 = vmatprep.subr.bf16.mxu0 %v7119_v16  ;;  %5170 = vmatprep.subr.bf16.mxu1 %v7153_v36 }
 0x43d   : > { %2262 = vmatprep.mubr.f32.mxu0 %v8925_v22  ;;  %2333 = vmatprep.mubr.f32.mxu1 %v8925_v22 }
 0x43f   : > { %5140 = vmatpush1.bf16.msra.mxu0 %v7125_v20  ;;  %5172 = vmatpush1.bf16.msra.mxu1 %v7168_v46 }
 0x440   : > { %5142 = vmatprep.subr.bf16.mxu0 %v7134_v25  ;;  %5174 = vmatprep.subr.bf16.mxu1 %v7175_v48 }
 0x443   : > { %5144 = vmatpush1.bf16.msra.mxu0 %v7151_v35  ;;  %5176 = vmatpush1.bf16.msra.mxu1 %v7191_v58 }
 0x444   : > { %5146 = vmatprep.subr.bf16.mxu0 %v7159_v40  ;;  %5178 = vmatprep.subr.bf16.mxu1 %v7198_v60 }
 0x447   : > { %5148 = vmatpush1.bf16.msra.mxu0 %v7173_v47  ;;  %5180 = vmatpush1.bf16.msra.mxu1 %v7212_v7 }
 0x448   : > { %5150 = vmatprep.subr.bf16.mxu0 %v7181_v52  ;;  %5182 = vmatprep.subr.bf16.mxu1 %v7218_v10 }
 0x44b   : > { %5152 = vmatpush1.bf16.msra.mxu0 %v7196_v59  ;;  %5184 = vmatpush1.bf16.msra.mxu1 %v7232_v23 }
 0x44c   : > { %5154 = vmatprep.subr.bf16.mxu0 %v7204_v0  ;;  %5186 = vmatprep.subr.bf16.mxu1 %v7238_v27 }
 0x44f   : > { %5156 = vmatpush1.bf16.msra.mxu0 %v7216_v9  ;;  %5188 = vmatpush1.bf16.msra.mxu1 %v7251_v38 }
 0x450   : > { %5158 = vmatprep.subr.bf16.mxu0 %v7224_v15  ;;  %5190 = vmatprep.subr.bf16.mxu1 %v7257_v41 }
 0x453   : > { %5160 = vmatpush1.bf16.msra.mxu0 %v7236_v26  ;;  %5192 = vmatpush1.bf16.msra.mxu1 %v7272_v49 }
 0x454   : > { %5162 = vmatprep.subr.bf16.mxu0 %v7244_v31  ;;  %5194 = vmatprep.subr.bf16.mxu1 %v7277_v51 }
 0x457   : > { %5164 = vmatpush1.bf16.msra.mxu0 %v7255_v39  ;;  %5196 = vmatpush1.bf16.msra.mxu1 %v7282_v55 }
 0x458   : > { %5198 = vmatprep.subr.bf16.mxu0 %v7289_v62  ;;  %5262 = vmatprep.subr.bf16.mxu1 %v7292_v2 }
 0x45a   : > { %2263 = vmatmul.mubr.f32.vlgmr.msra.gmra.mrb[12].mxu0 %v2021_v53  ;;  %2334 = vmatmul.mubr.f32.vlgmr.msra.gmra.mrb[20].mxu1 %v2021_v53  ;;  %v9069_v53 = vld [vmem:[#allocation47_spill] sm:$0xff] }
 0x45b   : > { %5200 = vmatpush1.bf16.msra.mxu0 %v7299_v6  ;;  %5264 = vmatpush1.bf16.msra.mxu1 %v7304_v17 }
 0x45c   : > { %5202 = vmatprep.subr.bf16.mxu0 %v7306_v18  ;;  %5266 = vmatprep.subr.bf16.mxu1 %v7312_v28 }
 0x45f   : > { %5204 = vmatpush1.bf16.msra.mxu0 %v7319_v34  ;;  %5268 = vmatpush1.bf16.msra.mxu1 %v9051_v61 }
 0x460   : > { %5206 = vmatprep.subr.bf16.mxu0 %v9052_v30  ;;  %5270 = vmatprep.subr.bf16.mxu1 %v9053_v37 }
 0x463   : > { %5208 = vmatpush1.bf16.msra.mxu0 %v9054_v3  ;;  %5272 = vmatpush1.bf16.msra.mxu1 %v9055_v1 }
 0x464   : > { %5210 = vmatprep.subr.bf16.mxu0 %v9056_v56  ;;  %5274 = vmatprep.subr.bf16.mxu1 %v9057_v42 }
 0x467   : > { %5212 = vmatpush1.bf16.msra.mxu0 %v9058_v11  ;;  %5276 = vmatpush1.bf16.msra.mxu1 %v9059_v8  ;;  %v9070_v8 = vld [vmem:[#allocation48_spill] sm:$0xff]  ;;  %v9110_v11 = vld [vmem:[#allocation91_spill] sm:$0xff] }
 0x468   : > { %5214 = vmatprep.subr.bf16.mxu0 %v9060_v21  ;;  %5278 = vmatprep.subr.bf16.mxu1 %v9061_v50  ;;  %v9071_v21 = vld [vmem:[#allocation49_spill] sm:$0xff]  ;;  %v9072_v50 = vld [vmem:[#allocation50_spill] sm:$0xff] }
 0x46b   : > { %5216 = vmatpush1.bf16.msra.mxu0 %v9062_v14  ;;  %5280 = vmatpush1.bf16.msra.mxu1 %v9063_v5  ;;  %v9073_v14 = vld [vmem:[#allocation51_spill] sm:$0xff]  ;;  %v9074_v5 = vld [vmem:[#allocation52_spill] sm:$0xff] }
 0x46c   : > { %5218 = vmatprep.subr.bf16.mxu0 %v9064_v19  ;;  %5282 = vmatprep.subr.bf16.mxu1 %v9065_v24  ;;  %v9075_v19 = vld [vmem:[#allocation53_spill] sm:$0xff]  ;;  %v9076_v24 = vld [vmem:[#allocation54_spill] sm:$0xff] }
 0x46f   : > { %5220 = vmatpush1.bf16.msra.mxu0 %v9066_v54  ;;  %5284 = vmatpush1.bf16.msra.mxu1 %v9067_v57  ;;  %v9077_v54 = vld [vmem:[#allocation55_spill] sm:$0xff]  ;;  %v9078_v57 = vld [vmem:[#allocation56_spill] sm:$0xff] }
 0x470   : > { %5222 = vmatprep.subr.bf16.mxu0 %v9068_v29  ;;  %5286 = vmatprep.subr.bf16.mxu1 %v9069_v53  ;;  %v9079_v29 = vld [vmem:[#allocation57_spill] sm:$0xff]  ;;  %v9080_v53 = vld [vmem:[#allocation58_spill] sm:$0xff] }
 0x473   : > { %5224 = vmatpush1.bf16.msra.mxu0 %v9070_v8  ;;  %5288 = vmatpush1.bf16.msra.mxu1 %v9071_v21  ;;  %v9081_v8 = vld [vmem:[#allocation59_spill] sm:$0xff]  ;;  %v9082_v21 = vld [vmem:[#allocation60_spill] sm:$0xff] }
 0x474   : > { %5226 = vmatprep.subr.bf16.mxu0 %v9072_v50  ;;  %5290 = vmatprep.subr.bf16.mxu1 %v9073_v14  ;;  %v9083_v50 = vld [vmem:[#allocation61_spill] sm:$0xff]  ;;  %v9084_v14 = vld [vmem:[#allocation62_spill] sm:$0xff] }
 0x477   : > { %5228 = vmatpush1.bf16.msra.mxu0 %v9074_v5  ;;  %5292 = vmatpush1.bf16.msra.mxu1 %v9075_v19  ;;  %v9085_v5 = vld [vmem:[#allocation63_spill] sm:$0xff]  ;;  %v9086_v19 = vld [vmem:[#allocation64_spill] sm:$0xff] }
 0x478   : > { %5230 = vmatprep.subr.bf16.mxu0 %v9076_v24  ;;  %5294 = vmatprep.subr.bf16.mxu1 %v9077_v54  ;;  %v9087_v24 = vld [vmem:[#allocation65_spill] sm:$0xff]  ;;  %v9088_v54 = vld [vmem:[#allocation66_spill] sm:$0xff] }
 0x47b   : > { %5232 = vmatpush1.bf16.msra.mxu0 %v9078_v57  ;;  %5296 = vmatpush1.bf16.msra.mxu1 %v9079_v29  ;;  %v9089_v57 = vld [vmem:[#allocation67_spill] sm:$0xff]  ;;  %v9090_v29 = vld [vmem:[#allocation68_spill] sm:$0xff] }
 0x47c   : > { %5234 = vmatprep.subr.bf16.mxu0 %v9080_v53  ;;  %5298 = vmatprep.subr.bf16.mxu1 %v9081_v8  ;;  %v9091_v53 = vld [vmem:[#allocation69_spill] sm:$0xff]  ;;  %v9092_v8 = vld [vmem:[#allocation70_spill] sm:$0xff] }
 0x47f   : > { %5236 = vmatpush1.bf16.msra.mxu0 %v9082_v21  ;;  %5300 = vmatpush1.bf16.msra.mxu1 %v9083_v50  ;;  %v9093_v21 = vld [vmem:[#allocation71_spill] sm:$0xff]  ;;  %v9094_v50 = vld [vmem:[#allocation72_spill] sm:$0xff] }
 0x480   : > { %5238 = vmatprep.subr.bf16.mxu0 %v9084_v14  ;;  %5302 = vmatprep.subr.bf16.mxu1 %v9085_v5  ;;  %v9095_v14 = vld [vmem:[#allocation73_spill] sm:$0xff]  ;;  %v9096_v5 = vld [vmem:[#allocation74_spill] sm:$0xff] }
 0x483   : > { %5240 = vmatpush1.bf16.msra.mxu0 %v9086_v19  ;;  %5304 = vmatpush1.bf16.msra.mxu1 %v9087_v24  ;;  %v9097_v19 = vld [vmem:[#allocation75_spill] sm:$0xff]  ;;  %v9098_v24 = vld [vmem:[#allocation76_spill] sm:$0xff] }
 0x484   : > { %5242 = vmatprep.subr.bf16.mxu0 %v9088_v54  ;;  %5306 = vmatprep.subr.bf16.mxu1 %v9089_v57  ;;  %v9099_v54 = vld [vmem:[#allocation77_spill] sm:$0xff]  ;;  %v9100_v57 = vld [vmem:[#allocation78_spill] sm:$0xff] }
 0x487   : > { %5244 = vmatpush1.bf16.msra.mxu0 %v9090_v29  ;;  %5308 = vmatpush1.bf16.msra.mxu1 %v9091_v53  ;;  %v9101_v29 = vld [vmem:[#allocation79_spill] sm:$0xff]  ;;  %v9102_v53 = vld [vmem:[#allocation80_spill] sm:$0xff] }
 0x488   : > { %5246 = vmatprep.subr.bf16.mxu0 %v9092_v8  ;;  %5310 = vmatprep.subr.bf16.mxu1 %v9093_v21  ;;  %v9103_v8 = vld [vmem:[#allocation81_spill] sm:$0xff]  ;;  %v9104_v21 = vld [vmem:[#allocation82_spill] sm:$0xff] }
 0x48b   : > { %5248 = vmatpush1.bf16.msra.mxu0 %v9094_v50  ;;  %5312 = vmatpush1.bf16.msra.mxu1 %v9095_v14  ;;  %v9105_v50 = vld [vmem:[#allocation83_spill] sm:$0xff]  ;;  %v9106_v14 = vld [vmem:[#allocation84_spill] sm:$0xff] }
 0x48c   : > { %5250 = vmatprep.subr.bf16.mxu0 %v9096_v5  ;;  %5314 = vmatprep.subr.bf16.mxu1 %v9097_v19  ;;  %v9107_v5 = vld [vmem:[#allocation85_spill] sm:$0xff]  ;;  %v9108_v19 = vld [vmem:[#allocation27_spill] sm:$0xff] }
 0x48f   : > { %5252 = vmatpush1.bf16.msra.mxu0 %v9098_v24  ;;  %5316 = vmatpush1.bf16.msra.mxu1 %v9099_v54  ;;  %v9109_v24 = vld [vmem:[#allocation28_spill] sm:$0xff] }
 0x490   : > { %5254 = vmatprep.subr.bf16.mxu0 %v9100_v57  ;;  %5318 = vmatprep.subr.bf16.mxu1 %v9101_v29 }
 0x493   : > { %5256 = vmatpush1.bf16.msra.mxu0 %v9102_v53  ;;  %5320 = vmatpush1.bf16.msra.mxu1 %v9103_v8 }
 0x494   : > { %5258 = vmatprep.subr.bf16.mxu0 %v9104_v21  ;;  %5322 = vmatprep.subr.bf16.mxu1 %v9105_v50 }
 0x497   : > { %5260 = vmatpush1.bf16.msra.mxu0 %v9106_v14  ;;  %5324 = vmatpush1.bf16.msra.mxu1 %v9107_v5  ;;  %v9111_v5 = vld [vmem:[#allocation94_spill] sm:$0xff] }
 0x498   : > { %5326 = vmatprep.subr.bf16.mxu0 %v9108_v19  ;;  %5358 = vmatprep.subr.bf16.mxu1 %v9109_v24 }
 0x50d   : > { %v2091_v54 = vpop.f32.mrb[10].mxu0  ;;  %v2162_v57 = vpop.f32.mrb[18].mxu1 }
 0x50e   : > { %v2092_v29 = vadd.f32 %v2091_v54, %v9110_v11  ;;  %v2093_v42 = vpop.f32.mrb[11].mxu0  ;;  %v2164_v53 = vpop.f32.mrb[19].mxu1  ;;  %v2163_v1 = vadd.f32 %v2162_v57, %v9111_v5 }
 0x50f   : > { %v2094_v8 = vadd.f32 %v2093_v42, %v9047_v13  ;;  %v2165_v14 = vadd.f32 %v2164_v53, %v9048_v33 }
 0x510   : > { %v4445_v56 = vmul.f32 -1.442695, %v2092_v29 }
 0x511   : > { %v4446_v21 = vmul.f32 -1.442695, %v2094_v8  ;;  %v4447_v50 = vmul.f32 -1.442695, %v2165_v14 }
 0x512   : > { %6281 = vpow2.f32 %v4445_v56 }
 0x513   : > { %6283 = vpow2.f32 %v4446_v21  ;;  %v9112_v21 = vld [vmem:[#allocation95_spill] sm:$0xff] }
 0x514   : > { %6285 = vpow2.f32 %v4447_v50 }
 0x515   : > { %6287 = vtanh.f32 %v2163_v1 }
 0x51c   : > { %v6282_v19 = vpop.eup %6281 }
 0x51d   : > { %v6284_v3 = vpop.eup %6283  ;;  %v2170_v24 = vadd.f32 1.0, %v6282_v19 }
 0x51e   : > { %v2176_v37 = vadd.f32 1.0, %v6284_v3  ;;  %v6286_v54 = vpop.eup %6285 }
 0x51f   : > { %6289 = vrcp.f32 %v2170_v24  ;;  %v6288_v11 = vpop.eup %6287  ;;  %v2183_v56 = vadd.f32 1.0, %v6286_v54 }
 0x520   : > { %6291 = vrcp.f32 %v2176_v37  ;;  %v9114_v37 = vld [vmem:[#allocation90_spill] sm:$0xff] }
 0x521   : > { %6293 = vrcp.f32 %v2183_v56  ;;  %v4448_v56 = vld [vmem:[#allocation11 + $0x2] ss:$0 sm:$0xff] }
 0x529   : > { %v6290_v42 = vpop.eup %6289 }
 0x52a   : > { %v6292_v29 = vpop.eup %6291  ;;  %v2187_v8 = vmul.f32 %v6290_v42, %v6288_v11 }
 0x52b   : > { %v2186_v13 = vmul.f32 %v6292_v29, %v9112_v21  ;;  %v6294_v42 = vpop.eup %6293 }
 0x52d   : > { %v8011_v53 = vadd.f32 %v2187_v8, %v2186_v13  ;;  %v2264_v14 = vpop.f32.mrb[12].mxu0  ;;  %v2335_v57 = vpop.f32.mrb[20].mxu1 }
 0x52e   : > { %v2344_v5 = vrot.slane %v2264_v14, 2  ;;  %v2266_v19 = vpop.f32.mrb[13].mxu0  ;;  %v2337_v50 = vpop.f32.mrb[21].mxu1  ;;  %v2346_v29 = vrot.slane %v2335_v57, 2 }
 0x52f   : > { %9113 = vst [vmem:[#allocation29_spill] sm:$0xff] %v8011_v53  ;;  %v2345_v1 = vrot.slane %v2266_v19, 2  ;;  %6295 = vtanh.f32 %v8011_v53  ;;  %v2347_v54 = vrot.slane %v2337_v50, 2 }
 0x530   : > { %v2352_v3 = vadd.f32 %v2344_v5, %v9114_v37  ;;  %v2354_v19 = vadd.f32 %v2346_v29, %v7642_v44  ;;  %v2376_v44 = vrot.slane %v7905_v43, 6  ;;  %v9115_v43 = vld [vmem:[#allocation30_spill] sm:$0xff] }
 0x531   : > { %v2353_v24 = vadd.f32 %v2345_v1, %v7635_v63  ;;  %v2355_v13 = vadd.f32 %v2347_v54, %v7639_v4 }
 0x532   : > { %v4449_v33 = vmul.f32 -1.442695, %v2352_v3 }
 0x533   : > { %v4450_v11 = vmul.f32 -1.442695, %v2353_v24  ;;  %v4451_v14 = vmul.f32 -1.442695, %v2355_v13 }
 0x534   : > { %6297 = vpow2.f32 %v4449_v33 }
 0x535   : > { %6299 = vpow2.f32 %v4450_v11 }
 0x536   : > { %6301 = vpow2.f32 %v4451_v14  ;;  %v9119_v14 = vld [vmem:[#allocation34_spill] sm:$0xff] }
 0x537   : > { %6303 = vtanh.f32 %v2354_v19  ;;  %v9120_v19 = vld [vmem:[#allocation35_spill] sm:$0xff] }
 0x539   : > { %v6296_v8 = vpop.eup %6295 }
 0x53a   : > { %v2190_v21 = vmul.f32 %v6296_v8, %v6294_v42  ;;  %v9116_v8 = vld [vmem:[#allocation31_spill] sm:$0xff] }
 0x53c   : > { %v2196_v53 = vmul.f32 %v4448_v56, %v2190_v21  ;;  %v2384_v30 = vrot.slane %v2190_v21, 2  ;;  %v9117_v56 = vld [vmem:[#allocation32_spill] sm:$0xff]  ;;  %v9118_v21 = vld [vmem:[#allocation33_spill] sm:$0xff] }
 0x53e   : > { %v6298_v5 = vpop.eup %6297  ;;  %v8019_v63 = vadd.f32 %v2196_v53, %v7902_v45  ;;  %v2387_v1 = vrot.slane %v2384_v30, 6 }
 0x53f   : > { %v6300_v50 = vpop.eup %6299  ;;  %v2359_v33 = vadd.f32 1.0, %v6298_v5  ;;  %v9121_v5 = vld [vmem:[#allocation36_spill] sm:$0xff] }
 0x540   : > { %v2365_v4 = vadd.f32 1.0, %v6300_v50  ;;  %2454 = vmatprep.mubr.f32.mxu0 %v2387_v1  ;;  %2525 = vmatprep.mubr.f32.mxu1 %v2387_v1  ;;  %v6302_v57 = vpop.eup %6301  ;;  %v9122_v1 = vld [vmem:[#allocation37_spill] sm:$0xff]  ;;  %v9123_v50 = vld [vmem:[#allocation38_spill] sm:$0xff] }
 0x541   : > { %6305 = vrcp.f32 %v2359_v33  ;;  %v6304_v37 = vpop.eup %6303  ;;  %v2372_v54 = vadd.f32 1.0, %v6302_v57  ;;  %v9124_v33 = vld [vmem:[#allocation39_spill] sm:$0xff]  ;;  %v9126_v57 = vld [vmem:[#allocation41_spill] sm:$0xff] }
 0x542   : > { %6307 = vrcp.f32 %v2365_v4  ;;  %v9125_v4 = vld [vmem:[#allocation40_spill] sm:$0xff] }
 0x543   : > { %6309 = vrcp.f32 %v2372_v54  ;;  %v9132_v54 = vld [vmem:[#allocation47_spill] sm:$0xff] }
 0x54b   : > { %v6306_v3 = vpop.eup %6305 }
 0x54c   : > { %v6308_v24 = vpop.eup %6307  ;;  %v2379_v11 = vmul.f32 %v6306_v3, %v6304_v37  ;;  %v9127_v37 = vld [vmem:[#allocation42_spill] sm:$0xff]  ;;  %v9128_v3 = vld [vmem:[#allocation43_spill] sm:$0xff] }
 0x54d   : > { %v2378_v45 = vmul.f32 %v6308_v24, %v2376_v44  ;;  %v6310_v30 = vpop.eup %6309  ;;  %v9129_v44 = vld [vmem:[#allocation44_spill] sm:$0xff]  ;;  %v9130_v24 = vld [vmem:[#allocation45_spill] sm:$0xff] }
 0x54f   : > { %v8022_v53 = vadd.f32 %v2379_v11, %v2378_v45  ;;  %v9131_v11 = vld [vmem:[#allocation46_spill] sm:$0xff]  ;;  %v9133_v45 = vld [vmem:[#allocation48_spill] sm:$0xff] }
 0x551   : > { %6311 = vtanh.f32 %v8022_v53 }
 0x55b   : > { %v6312_v13 = vpop.eup %6311 }
 0x55c   : > { %v2382_v42 = vmul.f32 %v6312_v13, %v6310_v30  ;;  %v9134_v30 = vld [vmem:[#allocation49_spill] sm:$0xff]  ;;  %v9135_v13 = vld [vmem:[#allocation50_spill] sm:$0xff] }
 0x55e   : > { %v2386_v29 = vrot.slane %v2382_v42, 6  ;;  %v9136_v42 = vld [vmem:[#allocation51_spill] sm:$0xff] }
 0x560   : > { %2455 = vmatmul.mubr.f32.vlgmr.msra.gmra.mrb[14].mxu0 %v2386_v29  ;;  %2526 = vmatmul.mubr.f32.vlgmr.msra.gmra.mrb[22].mxu1 %v2386_v29 }
 0x561   : > { %5328 = vmatpush1.bf16.msra.mxu0 %v7113_v12  ;;  %5360 = vmatpush1.bf16.msra.mxu1 %v7146_v32 }
 0x562   : > { %5330 = vmatprep.subr.bf16.mxu0 %v7119_v16  ;;  %5362 = vmatprep.subr.bf16.mxu1 %v7153_v36 }
 0x563   : > { %2627 = vmatprep.mubr.f32.mxu0 %v8925_v22  ;;  %2698 = vmatprep.mubr.f32.mxu1 %v8925_v22 }
 0x565   : > { %5332 = vmatpush1.bf16.msra.mxu0 %v7125_v20  ;;  %5364 = vmatpush1.bf16.msra.mxu1 %v7168_v46 }
 0x566   : > { %5334 = vmatprep.subr.bf16.mxu0 %v7134_v25  ;;  %5366 = vmatprep.subr.bf16.mxu1 %v7175_v48 }
 0x569   : > { %5336 = vmatpush1.bf16.msra.mxu0 %v7151_v35  ;;  %5368 = vmatpush1.bf16.msra.mxu1 %v7191_v58 }
 0x56a   : > { %5338 = vmatprep.subr.bf16.mxu0 %v7159_v40  ;;  %5370 = vmatprep.subr.bf16.mxu1 %v7198_v60 }
 0x56d   : > { %5340 = vmatpush1.bf16.msra.mxu0 %v7173_v47  ;;  %5372 = vmatpush1.bf16.msra.mxu1 %v7212_v7 }
 0x56e   : > { %5342 = vmatprep.subr.bf16.mxu0 %v7181_v52  ;;  %5374 = vmatprep.subr.bf16.mxu1 %v7218_v10 }
 0x571   : > { %5344 = vmatpush1.bf16.msra.mxu0 %v7196_v59  ;;  %5376 = vmatpush1.bf16.msra.mxu1 %v7232_v23 }
 0x572   : > { %5346 = vmatprep.subr.bf16.mxu0 %v7204_v0  ;;  %5378 = vmatprep.subr.bf16.mxu1 %v7238_v27 }
 0x575   : > { %5348 = vmatpush1.bf16.msra.mxu0 %v7216_v9  ;;  %5380 = vmatpush1.bf16.msra.mxu1 %v7251_v38 }
 0x576   : > { %5350 = vmatprep.subr.bf16.mxu0 %v7224_v15  ;;  %5382 = vmatprep.subr.bf16.mxu1 %v7257_v41 }
 0x579   : > { %5352 = vmatpush1.bf16.msra.mxu0 %v7236_v26  ;;  %5384 = vmatpush1.bf16.msra.mxu1 %v7272_v49 }
 0x57a   : > { %5354 = vmatprep.subr.bf16.mxu0 %v7244_v31  ;;  %5386 = vmatprep.subr.bf16.mxu1 %v7277_v51 }
 0x57d   : > { %5356 = vmatpush1.bf16.msra.mxu0 %v7255_v39  ;;  %5388 = vmatpush1.bf16.msra.mxu1 %v7282_v55 }
 0x57e   : > { %5390 = vmatprep.subr.bf16.mxu0 %v7289_v62  ;;  %5454 = vmatprep.subr.bf16.mxu1 %v7292_v2 }
 0x580   : > { %2628 = vmatmul.mubr.f32.vlgmr.msra.gmra.mrb[16].mxu0 %v2386_v29  ;;  %2699 = vmatmul.mubr.f32.vlgmr.msra.gmra.mrb[24].mxu1 %v2386_v29  ;;  %v9137_v29 = vld [vmem:[#allocation52_spill] sm:$0xff] }
 0x581   : > { %5392 = vmatpush1.bf16.msra.mxu0 %v7299_v6  ;;  %5456 = vmatpush1.bf16.msra.mxu1 %v7304_v17 }
 0x582   : > { %5394 = vmatprep.subr.bf16.mxu0 %v7306_v18  ;;  %5458 = vmatprep.subr.bf16.mxu1 %v7312_v28 }
 0x585   : > { %5396 = vmatpush1.bf16.msra.mxu0 %v7319_v34  ;;  %5460 = vmatpush1.bf16.msra.mxu1 %v9051_v61 }
 0x586   : > { %5398 = vmatprep.subr.bf16.mxu0 %v9115_v43  ;;  %5462 = vmatprep.subr.bf16.mxu1 %v9116_v8 }
 0x589   : > { %5400 = vmatpush1.bf16.msra.mxu0 %v9117_v56  ;;  %5464 = vmatpush1.bf16.msra.mxu1 %v9118_v21 }
 0x58a   : > { %5402 = vmatprep.subr.bf16.mxu0 %v9119_v14  ;;  %5466 = vmatprep.subr.bf16.mxu1 %v9120_v19 }
 0x58d   : > { %5404 = vmatpush1.bf16.msra.mxu0 %v9121_v5  ;;  %5468 = vmatpush1.bf16.msra.mxu1 %v9122_v1 }
 0x58e   : > { %5406 = vmatprep.subr.bf16.mxu0 %v9123_v50  ;;  %5470 = vmatprep.subr.bf16.mxu1 %v9124_v33  ;;  %v9174_v33 = vld [vmem:[#allocation92_spill] sm:$0xff] }
 0x591   : > { %5408 = vmatpush1.bf16.msra.mxu0 %v9125_v4  ;;  %5472 = vmatpush1.bf16.msra.mxu1 %v9126_v57  ;;  %v9173_v57 = vld [vmem:[#allocation91_spill] sm:$0xff] }
 0x592   : > { %5410 = vmatprep.subr.bf16.mxu0 %v9127_v37  ;;  %5474 = vmatprep.subr.bf16.mxu1 %v9128_v3  ;;  %v9138_v37 = vld [vmem:[#allocation53_spill] sm:$0xff]  ;;  %v9139_v3 = vld [vmem:[#allocation54_spill] sm:$0xff] }
 0x595   : > { %5412 = vmatpush1.bf16.msra.mxu0 %v9129_v44  ;;  %5476 = vmatpush1.bf16.msra.mxu1 %v9130_v24  ;;  %v9140_v44 = vld [vmem:[#allocation55_spill] sm:$0xff]  ;;  %v9141_v24 = vld [vmem:[#allocation56_spill] sm:$0xff] }
 0x596   : > { %5414 = vmatprep.subr.bf16.mxu0 %v9131_v11  ;;  %5478 = vmatprep.subr.bf16.mxu1 %v9132_v54  ;;  %v9142_v11 = vld [vmem:[#allocation57_spill] sm:$0xff]  ;;  %v9143_v54 = vld [vmem:[#allocation58_spill] sm:$0xff] }
 0x599   : > { %5416 = vmatpush1.bf16.msra.mxu0 %v9133_v45  ;;  %5480 = vmatpush1.bf16.msra.mxu1 %v9134_v30  ;;  %v9144_v45 = vld [vmem:[#allocation59_spill] sm:$0xff]  ;;  %v9145_v30 = vld [vmem:[#allocation60_spill] sm:$0xff] }
 0x59a   : > { %5418 = vmatprep.subr.bf16.mxu0 %v9135_v13  ;;  %5482 = vmatprep.subr.bf16.mxu1 %v9136_v42  ;;  %v9146_v13 = vld [vmem:[#allocation61_spill] sm:$0xff]  ;;  %v9147_v42 = vld [vmem:[#allocation62_spill] sm:$0xff] }
 0x59d   : > { %5420 = vmatpush1.bf16.msra.mxu0 %v9137_v29  ;;  %5484 = vmatpush1.bf16.msra.mxu1 %v9138_v37  ;;  %v9148_v29 = vld [vmem:[#allocation63_spill] sm:$0xff]  ;;  %v9149_v37 = vld [vmem:[#allocation64_spill] sm:$0xff] }
 0x59e   : > { %5422 = vmatprep.subr.bf16.mxu0 %v9139_v3  ;;  %5486 = vmatprep.subr.bf16.mxu1 %v9140_v44  ;;  %v9150_v3 = vld [vmem:[#allocation65_spill] sm:$0xff]  ;;  %v9151_v44 = vld [vmem:[#allocation66_spill] sm:$0xff] }
 0x5a1   : > { %5424 = vmatpush1.bf16.msra.mxu0 %v9141_v24  ;;  %5488 = vmatpush1.bf16.msra.mxu1 %v9142_v11  ;;  %v9152_v24 = vld [vmem:[#allocation67_spill] sm:$0xff]  ;;  %v9153_v11 = vld [vmem:[#allocation68_spill] sm:$0xff] }
 0x5a2   : > { %5426 = vmatprep.subr.bf16.mxu0 %v9143_v54  ;;  %5490 = vmatprep.subr.bf16.mxu1 %v9144_v45  ;;  %v9154_v54 = vld [vmem:[#allocation69_spill] sm:$0xff]  ;;  %v9155_v45 = vld [vmem:[#allocation70_spill] sm:$0xff] }
 0x5a5   : > { %5428 = vmatpush1.bf16.msra.mxu0 %v9145_v30  ;;  %5492 = vmatpush1.bf16.msra.mxu1 %v9146_v13  ;;  %v9156_v30 = vld [vmem:[#allocation71_spill] sm:$0xff]  ;;  %v9157_v13 = vld [vmem:[#allocation72_spill] sm:$0xff] }
 0x5a6   : > { %5430 = vmatprep.subr.bf16.mxu0 %v9147_v42  ;;  %5494 = vmatprep.subr.bf16.mxu1 %v9148_v29  ;;  %v9158_v42 = vld [vmem:[#allocation73_spill] sm:$0xff]  ;;  %v9159_v29 = vld [vmem:[#allocation74_spill] sm:$0xff] }
 0x5a9   : > { %5432 = vmatpush1.bf16.msra.mxu0 %v9149_v37  ;;  %5496 = vmatpush1.bf16.msra.mxu1 %v9150_v3  ;;  %v9160_v37 = vld [vmem:[#allocation75_spill] sm:$0xff]  ;;  %v9161_v3 = vld [vmem:[#allocation76_spill] sm:$0xff] }
 0x5aa   : > { %5434 = vmatprep.subr.bf16.mxu0 %v9151_v44  ;;  %5498 = vmatprep.subr.bf16.mxu1 %v9152_v24  ;;  %v9162_v44 = vld [vmem:[#allocation77_spill] sm:$0xff]  ;;  %v9163_v24 = vld [vmem:[#allocation78_spill] sm:$0xff] }
 0x5ad   : > { %5436 = vmatpush1.bf16.msra.mxu0 %v9153_v11  ;;  %5500 = vmatpush1.bf16.msra.mxu1 %v9154_v54  ;;  %v9164_v11 = vld [vmem:[#allocation79_spill] sm:$0xff]  ;;  %v9165_v54 = vld [vmem:[#allocation80_spill] sm:$0xff] }
 0x5ae   : > { %5438 = vmatprep.subr.bf16.mxu0 %v9155_v45  ;;  %5502 = vmatprep.subr.bf16.mxu1 %v9156_v30  ;;  %v9166_v45 = vld [vmem:[#allocation81_spill] sm:$0xff]  ;;  %v9167_v30 = vld [vmem:[#allocation82_spill] sm:$0xff] }
 0x5b1   : > { %5440 = vmatpush1.bf16.msra.mxu0 %v9157_v13  ;;  %5504 = vmatpush1.bf16.msra.mxu1 %v9158_v42  ;;  %v9168_v13 = vld [vmem:[#allocation83_spill] sm:$0xff]  ;;  %v9169_v42 = vld [vmem:[#allocation84_spill] sm:$0xff] }
 0x5b2   : > { %5442 = vmatprep.subr.bf16.mxu0 %v9159_v29  ;;  %5506 = vmatprep.subr.bf16.mxu1 %v9160_v37  ;;  %v9170_v29 = vld [vmem:[#allocation85_spill] sm:$0xff]  ;;  %v9171_v37 = vld [vmem:[#allocation27_spill] sm:$0xff] }
 0x5b5   : > { %5444 = vmatpush1.bf16.msra.mxu0 %v9161_v3  ;;  %5508 = vmatpush1.bf16.msra.mxu1 %v9162_v44  ;;  %v9172_v3 = vld [vmem:[#allocation28_spill] sm:$0xff] }
 0x5b6   : > { %5446 = vmatprep.subr.bf16.mxu0 %v9163_v24  ;;  %5510 = vmatprep.subr.bf16.mxu1 %v9164_v11 }
 0x5b9   : > { %5448 = vmatpush1.bf16.msra.mxu0 %v9165_v54  ;;  %5512 = vmatpush1.bf16.msra.mxu1 %v9166_v45 }
 0x5ba   : > { %5450 = vmatprep.subr.bf16.mxu0 %v9167_v30  ;;  %5514 = vmatprep.subr.bf16.mxu1 %v9168_v13  ;;  %v9175_v13 = vld [vmem:[#allocation93_spill] sm:$0xff] }
 0x5bd   : > { %5452 = vmatpush1.bf16.msra.mxu0 %v9169_v42  ;;  %5516 = vmatpush1.bf16.msra.mxu1 %v9170_v29  ;;  %v9176_v29 = vld [vmem:[#allocation94_spill] sm:$0xff] }
 0x5be   : > { %5518 = vmatprep.subr.bf16.mxu0 %v9171_v37  ;;  %5550 = vmatprep.subr.bf16.mxu1 %v9172_v3 }
 0x633   : > { %v2456_v44 = vpop.f32.mrb[14].mxu0  ;;  %v2527_v24 = vpop.f32.mrb[22].mxu1 }
 0x634   : > { %v2457_v11 = vadd.f32 %v2456_v44, %v9173_v57  ;;  %v2458_v4 = vpop.f32.mrb[15].mxu0  ;;  %v2529_v54 = vpop.f32.mrb[23].mxu1  ;;  %v2528_v5 = vadd.f32 %v2527_v24, %v9176_v29  ;;  %v9178_v24 = vld [vmem:[#allocation86_spill] sm:$0xff] }
 0x635   : > { %v2459_v45 = vadd.f32 %v2458_v4, %v9174_v33  ;;  %v2530_v42 = vadd.f32 %v2529_v54, %v9175_v13 }
 0x636   : > { %v4452_v50 = vmul.f32 -1.442695, %v2457_v11 }
 0x637   : > { %v4453_v30 = vmul.f32 -1.442695, %v2459_v45  ;;  %v4454_v1 = vmul.f32 -1.442695, %v2530_v42 }
 0x638   : > { %6313 = vpow2.f32 %v4452_v50 }
 0x639   : > { %6315 = vpow2.f32 %v4453_v30  ;;  %v9177_v30 = vld [vmem:[#allocation29_spill] sm:$0xff] }
 0x63a   : > { %6317 = vpow2.f32 %v4454_v1 }
 0x63b   : > { %6319 = vtanh.f32 %v2528_v5 }
 0x642   : > { %v6314_v37 = vpop.eup %6313 }
 0x643   : > { %v6316_v19 = vpop.eup %6315  ;;  %v2535_v3 = vadd.f32 1.0, %v6314_v37 }
 0x644   : > { %v2541_v14 = vadd.f32 1.0, %v6316_v19  ;;  %v6318_v44 = vpop.eup %6317  ;;  %v9179_v19 = vld [vmem:[#allocation87_spill] sm:$0xff] }
 0x645   : > { %6321 = vrcp.f32 %v2535_v3  ;;  %v6320_v57 = vpop.eup %6319  ;;  %v2548_v50 = vadd.f32 1.0, %v6318_v44 }
 0x646   : > { %6323 = vrcp.f32 %v2541_v14 }
 0x647   : > { %6325 = vrcp.f32 %v2548_v50 }
 0x64f   : > { %v6322_v4 = vpop.eup %6321 }
 0x650   : > { %v6324_v11 = vpop.eup %6323  ;;  %v2552_v45 = vmul.f32 %v6322_v4, %v6320_v57  ;;  %v9180_v57 = vld [vmem:[#allocation89_spill] sm:$0xff] }
 0x651   : > { %v2551_v33 = vmul.f32 %v6324_v11, %v9177_v30  ;;  %v6326_v4 = vpop.eup %6325 }
 0x653   : > { %v2629_v54 = vpop.f32.mrb[16].mxu0  ;;  %v2700_v42 = vpop.f32.mrb[24].mxu1  ;;  %v8128_v13 = vadd.f32 %v2552_v45, %v2551_v33  ;;  %v4455_v33 = vld [vmem:[#allocation11 + $0x3] ss:$0 sm:$0xff] }
 0x654   : > { %v2705_v37 = vadd.f32 %v2629_v54, %v9178_v24  ;;  %v2631_v1 = vpop.f32.mrb[17].mxu0  ;;  %v2702_v5 = vpop.f32.mrb[25].mxu1  ;;  %v9181_v45 = vld [vmem:[#allocation88_spill] sm:$0xff] }
 0x655   : > { %v2706_v3 = vadd.f32 %v2631_v1, %v9179_v19  ;;  %6327 = vtanh.f32 %v8128_v13  ;;  %v2708_v44 = vadd.f32 %v2702_v5, %v9180_v57  ;;  %v2707_v50 = vadd.f32 %v2700_v42, %v9181_v45 }
 0x656   : > { %v4456_v14 = vmul.f32 -1.442695, %v2705_v37  ;;  %v2729_v42 = vrot.slane %v8022_v53, 6  ;;  %v9182_v53 = vld [vmem:[#allocation33_spill] sm:$0xff] }
 0x657   : > { %v4457_v29 = vmul.f32 -1.442695, %v2706_v3  ;;  %v4458_v30 = vmul.f32 -1.442695, %v2708_v44 }
 0x658   : > { %6329 = vpow2.f32 %v4456_v14 }
 0x659   : > { %6331 = vpow2.f32 %v4457_v29 }
 0x65a   : > { %6333 = vpow2.f32 %v4458_v30 }
 0x65b   : > { %6335 = vtanh.f32 %v2707_v50 }
 0x65f   : > { %v6328_v11 = vpop.eup %6327 }
 0x660   : > { %v2555_v21 = vmul.f32 %v6328_v11, %v6326_v4 }
 0x662   : > { %v6330_v54 = vpop.eup %6329  ;;  %v2561_v24 = vmul.f32 %v4455_v33, %v2555_v21  ;;  %2800 = vmatprep.mubr.f32.mxu0 %v2555_v21  ;;  %2871 = vmatprep.mubr.f32.mxu1 %v2555_v21 }
 0x663   : > { %v6332_v1 = vpop.eup %6331  ;;  %v2712_v19 = vadd.f32 1.0, %v6330_v54  ;;  %v9185_v54 = vld [vmem:[#allocation36_spill] sm:$0xff] }
 0x664   : > { %v2718_v37 = vadd.f32 1.0, %v6332_v1  ;;  %v8136_v29 = vadd.f32 %v2561_v24, %v8019_v63  ;;  %v6334_v5 = vpop.eup %6333  ;;  %v9183_v24 = vld [vmem:[#allocation34_spill] sm:$0xff]  ;;  %v9186_v1 = vld [vmem:[#allocation37_spill] sm:$0xff] }
 0x665   : > { %6337 = vrcp.f32 %v2712_v19  ;;  %v6336_v3 = vpop.eup %6335  ;;  %v2725_v11 = vadd.f32 1.0, %v6334_v5  ;;  %v9184_v19 = vld [vmem:[#allocation35_spill] sm:$0xff] }
 0x666   : > { %6339 = vrcp.f32 %v2718_v37  ;;  %v9187_v37 = vld [vmem:[#allocation38_spill] sm:$0xff]  ;;  %v9188_v5 = vld [vmem:[#allocation39_spill] sm:$0xff] }
 0x667   : > { %6341 = vrcp.f32 %v2725_v11  ;;  %v9194_v11 = vld [vmem:[#allocation45_spill] sm:$0xff] }
 0x66f   : > { %v6338_v14 = vpop.eup %6337 }
 0x670   : > { %v6340_v44 = vpop.eup %6339  ;;  %v2732_v4 = vmul.f32 %v6338_v14, %v6336_v3  ;;  %v9189_v3 = vld [vmem:[#allocation40_spill] sm:$0xff]  ;;  %v9190_v14 = vld [vmem:[#allocation41_spill] sm:$0xff] }
 0x671   : > { %v2731_v33 = vmul.f32 %v6340_v44, %v2729_v42  ;;  %v6342_v30 = vpop.eup %6341  ;;  %v9191_v42 = vld [vmem:[#allocation42_spill] sm:$0xff]  ;;  %v9192_v44 = vld [vmem:[#allocation43_spill] sm:$0xff] }
 0x673   : > { %v8139_v21 = vadd.f32 %v2732_v4, %v2731_v33  ;;  %v9193_v4 = vld [vmem:[#allocation44_spill] sm:$0xff]  ;;  %v9195_v33 = vld [vmem:[#allocation46_spill] sm:$0xff] }
 0x675   : > { %6343 = vtanh.f32 %v8139_v21 }
 0x67f   : > { %v6344_v50 = vpop.eup %6343 }
 0x680   : > { %v2735_v63 = vmul.f32 %v6344_v50, %v6342_v30  ;;  %v9196_v30 = vld [vmem:[#allocation47_spill] sm:$0xff]  ;;  %v9197_v50 = vld [vmem:[#allocation48_spill] sm:$0xff] }
 0x682   : > { %2801 = vmatmul.mubr.f32.vlgmr.msra.gmra.mrb[18].mxu0 %v2735_v63  ;;  %2872 = vmatmul.mubr.f32.vlgmr.msra.gmra.mrb[26].mxu1 %v2735_v63 }
 0x683   : > { %5520 = vmatpush1.bf16.msra.mxu0 %v7113_v12  ;;  %5552 = vmatpush1.bf16.msra.mxu1 %v7146_v32 }
 0x684   : > { %5522 = vmatprep.subr.bf16.mxu0 %v7119_v16  ;;  %5554 = vmatprep.subr.bf16.mxu1 %v7153_v36 }
 0x685   : > { %2973 = vmatprep.mubr.f32.mxu0 %v8925_v22  ;;  %3044 = vmatprep.mubr.f32.mxu1 %v8925_v22 }
 0x687   : > { %5524 = vmatpush1.bf16.msra.mxu0 %v7125_v20  ;;  %5556 = vmatpush1.bf16.msra.mxu1 %v7168_v46 }
 0x688   : > { %5526 = vmatprep.subr.bf16.mxu0 %v7134_v25  ;;  %5558 = vmatprep.subr.bf16.mxu1 %v7175_v48 }
 0x68b   : > { %5528 = vmatpush1.bf16.msra.mxu0 %v7151_v35  ;;  %5560 = vmatpush1.bf16.msra.mxu1 %v7191_v58 }
 0x68c   : > { %5530 = vmatprep.subr.bf16.mxu0 %v7159_v40  ;;  %5562 = vmatprep.subr.bf16.mxu1 %v7198_v60 }
 0x68f   : > { %5532 = vmatpush1.bf16.msra.mxu0 %v7173_v47  ;;  %5564 = vmatpush1.bf16.msra.mxu1 %v7212_v7 }
 0x690   : > { %5534 = vmatprep.subr.bf16.mxu0 %v7181_v52  ;;  %5566 = vmatprep.subr.bf16.mxu1 %v7218_v10 }
 0x693   : > { %5536 = vmatpush1.bf16.msra.mxu0 %v7196_v59  ;;  %5568 = vmatpush1.bf16.msra.mxu1 %v7232_v23 }
 0x694   : > { %5538 = vmatprep.subr.bf16.mxu0 %v7204_v0  ;;  %5570 = vmatprep.subr.bf16.mxu1 %v7238_v27 }
 0x697   : > { %5540 = vmatpush1.bf16.msra.mxu0 %v7216_v9  ;;  %5572 = vmatpush1.bf16.msra.mxu1 %v7251_v38 }
 0x698   : > { %5542 = vmatprep.subr.bf16.mxu0 %v7224_v15  ;;  %5574 = vmatprep.subr.bf16.mxu1 %v7257_v41 }
 0x69b   : > { %5544 = vmatpush1.bf16.msra.mxu0 %v7236_v26  ;;  %5576 = vmatpush1.bf16.msra.mxu1 %v7272_v49 }
 0x69c   : > { %5546 = vmatprep.subr.bf16.mxu0 %v7244_v31  ;;  %5578 = vmatprep.subr.bf16.mxu1 %v7277_v51 }
 0x69f   : > { %5548 = vmatpush1.bf16.msra.mxu0 %v7255_v39  ;;  %5580 = vmatpush1.bf16.msra.mxu1 %v7282_v55 }
 0x6a0   : > { %5582 = vmatprep.subr.bf16.mxu0 %v7289_v62  ;;  %5646 = vmatprep.subr.bf16.mxu1 %v7292_v2 }
 0x6a2   : > { %2974 = vmatmul.mubr.f32.vlgmr.msra.gmra.mrb[20].mxu0 %v2735_v63  ;;  %3045 = vmatmul.mubr.f32.vlgmr.msra.gmra.mrb[28].mxu1 %v2735_v63  ;;  %v9198_v63 = vld [vmem:[#allocation49_spill] sm:$0xff] }
 0x6a3   : > { %5584 = vmatpush1.bf16.msra.mxu0 %v7299_v6  ;;  %5648 = vmatpush1.bf16.msra.mxu1 %v7304_v17 }
 0x6a4   : > { %5586 = vmatprep.subr.bf16.mxu0 %v7306_v18  ;;  %5650 = vmatprep.subr.bf16.mxu1 %v7312_v28 }
 0x6a7   : > { %5588 = vmatpush1.bf16.msra.mxu0 %v7319_v34  ;;  %5652 = vmatpush1.bf16.msra.mxu1 %v9051_v61 }
 0x6a8   : > { %5590 = vmatprep.subr.bf16.mxu0 %v9115_v43  ;;  %5654 = vmatprep.subr.bf16.mxu1 %v9116_v8 }
 0x6ab   : > { %5592 = vmatpush1.bf16.msra.mxu0 %v9117_v56  ;;  %5656 = vmatpush1.bf16.msra.mxu1 %v9182_v53 }
 0x6ac   : > { %5594 = vmatprep.subr.bf16.mxu0 %v9183_v24  ;;  %5658 = vmatprep.subr.bf16.mxu1 %v9184_v19 }
 0x6af   : > { %5596 = vmatpush1.bf16.msra.mxu0 %v9185_v54  ;;  %5660 = vmatpush1.bf16.msra.mxu1 %v9186_v1  ;;  %v9238_v54 = vld [vmem:[#allocation92_spill] sm:$0xff] }
 0x6b0   : > { %5598 = vmatprep.subr.bf16.mxu0 %v9187_v37  ;;  %5662 = vmatprep.subr.bf16.mxu1 %v9188_v5  ;;  %v9199_v5 = vld [vmem:[#allocation50_spill] sm:$0xff]  ;;  %v9237_v37 = vld [vmem:[#allocation91_spill] sm:$0xff] }
 0x6b3   : > { %5600 = vmatpush1.bf16.msra.mxu0 %v9189_v3  ;;  %5664 = vmatpush1.bf16.msra.mxu1 %v9190_v14  ;;  %v9200_v3 = vld [vmem:[#allocation51_spill] sm:$0xff]  ;;  %v9201_v14 = vld [vmem:[#allocation52_spill] sm:$0xff] }
 0x6b4   : > { %5602 = vmatprep.subr.bf16.mxu0 %v9191_v42  ;;  %5666 = vmatprep.subr.bf16.mxu1 %v9192_v44  ;;  %v9202_v42 = vld [vmem:[#allocation53_spill] sm:$0xff]  ;;  %v9203_v44 = vld [vmem:[#allocation54_spill] sm:$0xff] }
 0x6b7   : > { %5604 = vmatpush1.bf16.msra.mxu0 %v9193_v4  ;;  %5668 = vmatpush1.bf16.msra.mxu1 %v9194_v11  ;;  %v9204_v4 = vld [vmem:[#allocation55_spill] sm:$0xff]  ;;  %v9205_v11 = vld [vmem:[#allocation56_spill] sm:$0xff] }
 0x6b8   : > { %5606 = vmatprep.subr.bf16.mxu0 %v9195_v33  ;;  %5670 = vmatprep.subr.bf16.mxu1 %v9196_v30  ;;  %v9206_v33 = vld [vmem:[#allocation57_spill] sm:$0xff]  ;;  %v9207_v30 = vld [vmem:[#allocation58_spill] sm:$0xff] }
 0x6bb   : > { %5608 = vmatpush1.bf16.msra.mxu0 %v9197_v50  ;;  %5672 = vmatpush1.bf16.msra.mxu1 %v9198_v63  ;;  %v9208_v50 = vld [vmem:[#allocation59_spill] sm:$0xff]  ;;  %v9209_v63 = vld [vmem:[#allocation60_spill] sm:$0xff] }
 0x6bc   : > { %5610 = vmatprep.subr.bf16.mxu0 %v9199_v5  ;;  %5674 = vmatprep.subr.bf16.mxu1 %v9200_v3  ;;  %v9210_v5 = vld [vmem:[#allocation61_spill] sm:$0xff]  ;;  %v9211_v3 = vld [vmem:[#allocation62_spill] sm:$0xff] }
 0x6bf   : > { %5612 = vmatpush1.bf16.msra.mxu0 %v9201_v14  ;;  %5676 = vmatpush1.bf16.msra.mxu1 %v9202_v42  ;;  %v9212_v14 = vld [vmem:[#allocation63_spill] sm:$0xff]  ;;  %v9213_v42 = vld [vmem:[#allocation64_spill] sm:$0xff] }
 0x6c0   : > { %5614 = vmatprep.subr.bf16.mxu0 %v9203_v44  ;;  %5678 = vmatprep.subr.bf16.mxu1 %v9204_v4  ;;  %v9214_v44 = vld [vmem:[#allocation65_spill] sm:$0xff]  ;;  %v9215_v4 = vld [vmem:[#allocation66_spill] sm:$0xff] }
 0x6c3   : > { %5616 = vmatpush1.bf16.msra.mxu0 %v9205_v11  ;;  %5680 = vmatpush1.bf16.msra.mxu1 %v9206_v33  ;;  %v9216_v11 = vld [vmem:[#allocation67_spill] sm:$0xff]  ;;  %v9217_v33 = vld [vmem:[#allocation68_spill] sm:$0xff] }
 0x6c4   : > { %5618 = vmatprep.subr.bf16.mxu0 %v9207_v30  ;;  %5682 = vmatprep.subr.bf16.mxu1 %v9208_v50  ;;  %v9218_v30 = vld [vmem:[#allocation69_spill] sm:$0xff]  ;;  %v9219_v50 = vld [vmem:[#allocation70_spill] sm:$0xff] }
 0x6c7   : > { %5620 = vmatpush1.bf16.msra.mxu0 %v9209_v63  ;;  %5684 = vmatpush1.bf16.msra.mxu1 %v9210_v5  ;;  %v9220_v63 = vld [vmem:[#allocation71_spill] sm:$0xff]  ;;  %v9221_v5 = vld [vmem:[#allocation72_spill] sm:$0xff] }
 0x6c8   : > { %5622 = vmatprep.subr.bf16.mxu0 %v9211_v3  ;;  %5686 = vmatprep.subr.bf16.mxu1 %v9212_v14  ;;  %v9222_v3 = vld [vmem:[#allocation73_spill] sm:$0xff]  ;;  %v9223_v14 = vld [vmem:[#allocation74_spill] sm:$0xff] }
 0x6cb   : > { %5624 = vmatpush1.bf16.msra.mxu0 %v9213_v42  ;;  %5688 = vmatpush1.bf16.msra.mxu1 %v9214_v44  ;;  %v9224_v42 = vld [vmem:[#allocation75_spill] sm:$0xff]  ;;  %v9225_v44 = vld [vmem:[#allocation76_spill] sm:$0xff] }
 0x6cc   : > { %5626 = vmatprep.subr.bf16.mxu0 %v9215_v4  ;;  %5690 = vmatprep.subr.bf16.mxu1 %v9216_v11  ;;  %v9226_v4 = vld [vmem:[#allocation77_spill] sm:$0xff]  ;;  %v9227_v11 = vld [vmem:[#allocation78_spill] sm:$0xff] }
 0x6cf   : > { %5628 = vmatpush1.bf16.msra.mxu0 %v9217_v33  ;;  %5692 = vmatpush1.bf16.msra.mxu1 %v9218_v30  ;;  %v9228_v33 = vld [vmem:[#allocation79_spill] sm:$0xff]  ;;  %v9229_v30 = vld [vmem:[#allocation80_spill] sm:$0xff] }
 0x6d0   : > { %5630 = vmatprep.subr.bf16.mxu0 %v9219_v50  ;;  %5694 = vmatprep.subr.bf16.mxu1 %v9220_v63  ;;  %v9230_v50 = vld [vmem:[#allocation81_spill] sm:$0xff]  ;;  %v9231_v63 = vld [vmem:[#allocation82_spill] sm:$0xff] }
 0x6d3   : > { %5632 = vmatpush1.bf16.msra.mxu0 %v9221_v5  ;;  %5696 = vmatpush1.bf16.msra.mxu1 %v9222_v3  ;;  %v9232_v5 = vld [vmem:[#allocation83_spill] sm:$0xff]  ;;  %v9233_v3 = vld [vmem:[#allocation84_spill] sm:$0xff] }
 0x6d4   : > { %5634 = vmatprep.subr.bf16.mxu0 %v9223_v14  ;;  %5698 = vmatprep.subr.bf16.mxu1 %v9224_v42  ;;  %v9234_v14 = vld [vmem:[#allocation85_spill] sm:$0xff]  ;;  %v9235_v42 = vld [vmem:[#allocation27_spill] sm:$0xff] }
 0x6d7   : > { %5636 = vmatpush1.bf16.msra.mxu0 %v9225_v44  ;;  %5700 = vmatpush1.bf16.msra.mxu1 %v9226_v4  ;;  %v9236_v44 = vld [vmem:[#allocation28_spill] sm:$0xff] }
 0x6d8   : > { %5638 = vmatprep.subr.bf16.mxu0 %v9227_v11  ;;  %5702 = vmatprep.subr.bf16.mxu1 %v9228_v33 }
 0x6db   : > { %5640 = vmatpush1.bf16.msra.mxu0 %v9229_v30  ;;  %5704 = vmatpush1.bf16.msra.mxu1 %v9230_v50 }
 0x6dc   : > { %5642 = vmatprep.subr.bf16.mxu0 %v9231_v63  ;;  %5706 = vmatprep.subr.bf16.mxu1 %v9232_v5  ;;  %v9239_v5 = vld [vmem:[#allocation93_spill] sm:$0xff] }
 0x6df   : > { %5644 = vmatpush1.bf16.msra.mxu0 %v9233_v3  ;;  %5708 = vmatpush1.bf16.msra.mxu1 %v9234_v14  ;;  %v9240_v14 = vld [vmem:[#allocation94_spill] sm:$0xff] }
 0x6e0   : > { %5710 = vmatprep.subr.bf16.mxu0 %v9235_v42  ;;  %5742 = vmatprep.subr.bf16.mxu1 %v9236_v44 }
 0x755   : > { %v2802_v4 = vpop.f32.mrb[18].mxu0  ;;  %v2873_v11 = vpop.f32.mrb[26].mxu1 }
 0x756   : > { %v2803_v33 = vadd.f32 %v2802_v4, %v9237_v37  ;;  %v2804_v1 = vpop.f32.mrb[19].mxu0  ;;  %v2875_v30 = vpop.f32.mrb[27].mxu1  ;;  %v2874_v53 = vadd.f32 %v2873_v11, %v9240_v14 }
 0x757   : > { %v2805_v50 = vadd.f32 %v2804_v1, %v9238_v54  ;;  %v2876_v3 = vadd.f32 %v2875_v30, %v9239_v5 }
 0x758   : > { %v4459_v19 = vmul.f32 -1.442695, %v2803_v33 }
 0x759   : > { %v4460_v63 = vmul.f32 -1.442695, %v2805_v50  ;;  %v4461_v24 = vmul.f32 -1.442695, %v2876_v3 }
 0x75a   : > { %6345 = vpow2.f32 %v4459_v19 }
 0x75b   : > { %6347 = vpow2.f32 %v4460_v63 }
 0x75c   : > { %6349 = vpow2.f32 %v4461_v24 }
 0x75d   : > { %6351 = vtanh.f32 %v2874_v53 }
 0x764   : > { %v6346_v42 = vpop.eup %6345 }
 0x765   : > { %v6348_v56 = vpop.eup %6347  ;;  %v2881_v44 = vadd.f32 1.0, %v6346_v42 }
 0x766   : > { %v2887_v8 = vadd.f32 1.0, %v6348_v56  ;;  %v6350_v4 = vpop.eup %6349 }
 0x767   : > { %6353 = vrcp.f32 %v2881_v44  ;;  %v6352_v37 = vpop.eup %6351  ;;  %v2894_v19 = vadd.f32 1.0, %v6350_v4  ;;  %v9243_v44 = vld [vmem:[#allocation87_spill] sm:$0xff] }
 0x768   : > { %6355 = vrcp.f32 %v2887_v8  ;;  %v9242_v8 = vld [vmem:[#allocation86_spill] sm:$0xff] }
 0x769   : > { %6357 = vrcp.f32 %v2894_v19  ;;  %v4462_v19 = vld [vmem:[#allocation11 + $0x4] ss:$0 sm:$0xff] }
 0x771   : > { %v6354_v1 = vpop.eup %6353 }
 0x772   : > { %v6356_v33 = vpop.eup %6355  ;;  %v2898_v50 = vmul.f32 %v6354_v1, %v6352_v37 }
 0x773   : > { %v2897_v63 = vmul.f32 %v6356_v33, %v8128_v13  ;;  %v6358_v1 = vpop.eup %6357 }
 0x775   : > { %v8245_v30 = vadd.f32 %v2898_v50, %v2897_v63  ;;  %v2975_v3 = vpop.f32.mrb[20].mxu0  ;;  %v3046_v11 = vpop.f32.mrb[28].mxu1 }
 0x776   : > { %v3055_v14 = vrot.slane %v2975_v3, 6  ;;  %v2977_v42 = vpop.f32.mrb[21].mxu0  ;;  %v3048_v24 = vpop.f32.mrb[29].mxu1  ;;  %v3057_v33 = vrot.slane %v3046_v11, 6 }
 0x777   : > { %9241 = vst [vmem:[#allocation95_spill] sm:$0xff] %v8245_v30  ;;  %v3056_v53 = vrot.slane %v2977_v42, 6  ;;  %6359 = vtanh.f32 %v8245_v30  ;;  %v3058_v4 = vrot.slane %v3048_v24, 6 }
 0x778   : > { %v3063_v56 = vadd.f32 %v3055_v14, %v9242_v8  ;;  %v3065_v42 = vadd.f32 %v3057_v33, %v9181_v45 }
 0x779   : > { %v3064_v5 = vadd.f32 %v3056_v53, %v9243_v44  ;;  %v3066_v13 = vadd.f32 %v3058_v4, %v9180_v57 }
 0x77a   : > { %v4463_v54 = vmul.f32 -1.442695, %v3063_v56 }
 0x77b   : > { %v4464_v37 = vmul.f32 -1.442695, %v3064_v5  ;;  %v4465_v3 = vmul.f32 -1.442695, %v3066_v13  ;;  %v3087_v13 = vrot.slane %v8139_v21, 6  ;;  %v9244_v21 = vld [vmem:[#allocation30_spill] sm:$0xff] }
 0x77c   : > { %6361 = vpow2.f32 %v4463_v54 }
 0x77d   : > { %6363 = vpow2.f32 %v4464_v37 }
 0x77e   : > { %6365 = vpow2.f32 %v4465_v3 }
 0x77f   : > { %6367 = vtanh.f32 %v3065_v42  ;;  %v9245_v42 = vld [vmem:[#allocation31_spill] sm:$0xff] }
 0x781   : > { %v6360_v50 = vpop.eup %6359 }
 0x782   : > { %v2901_v63 = vmul.f32 %v6360_v50, %v6358_v1 }
 0x784   : > { %v2907_v30 = vmul.f32 %v4462_v19, %v2901_v63  ;;  %v3095_v43 = vrot.slane %v2901_v63, 6 }
 0x786   : > { %v6362_v14 = vpop.eup %6361  ;;  %v8253_v53 = vadd.f32 %v2907_v30, %v8136_v29  ;;  %v3098_v5 = vrot.slane %v3095_v43, 2 }
 0x787   : > { %v6364_v24 = vpop.eup %6363  ;;  %v3070_v54 = vadd.f32 1.0, %v6362_v14  ;;  %v9246_v14 = vld [vmem:[#allocation32_spill] sm:$0xff] }
 0x788   : > { %v3076_v56 = vadd.f32 1.0, %v6364_v24  ;;  %3165 = vmatprep.mubr.f32.mxu0 %v3098_v5  ;;  %3236 = vmatprep.mubr.f32.mxu1 %v3098_v5  ;;  %v6366_v11 = vpop.eup %6365  ;;  %v9247_v5 = vld [vmem:[#allocation33_spill] sm:$0xff]  ;;  %v9248_v24 = vld [vmem:[#allocation34_spill] sm:$0xff] }
 0x789   : > { %6369 = vrcp.f32 %v3070_v54  ;;  %v6368_v37 = vpop.eup %6367  ;;  %v3083_v50 = vadd.f32 1.0, %v6366_v11  ;;  %v9249_v54 = vld [vmem:[#allocation35_spill] sm:$0xff]  ;;  %v9251_v11 = vld [vmem:[#allocation37_spill] sm:$0xff] }
 0x78a   : > { %6371 = vrcp.f32 %v3076_v56  ;;  %v9250_v56 = vld [vmem:[#allocation36_spill] sm:$0xff] }
 0x78b   : > { %6373 = vrcp.f32 %v3083_v50  ;;  %v9257_v50 = vld [vmem:[#allocation43_spill] sm:$0xff] }
 0x793   : > { %v6370_v4 = vpop.eup %6369 }
 0x794   : > { %v6372_v1 = vpop.eup %6371  ;;  %v3090_v33 = vmul.f32 %v6370_v4, %v6368_v37  ;;  %v9252_v37 = vld [vmem:[#allocation38_spill] sm:$0xff]  ;;  %v9253_v4 = vld [vmem:[#allocation39_spill] sm:$0xff] }
 0x795   : > { %v3089_v29 = vmul.f32 %v6372_v1, %v3087_v13  ;;  %v6374_v43 = vpop.eup %6373  ;;  %v9254_v13 = vld [vmem:[#allocation40_spill] sm:$0xff]  ;;  %v9255_v1 = vld [vmem:[#allocation41_spill] sm:$0xff] }
 0x797   : > { %v8256_v30 = vadd.f32 %v3090_v33, %v3089_v29  ;;  %v9256_v33 = vld [vmem:[#allocation42_spill] sm:$0xff]  ;;  %v9258_v29 = vld [vmem:[#allocation44_spill] sm:$0xff] }
 0x799   : > { %6375 = vtanh.f32 %v8256_v30 }
 0x7a3   : > { %v6376_v19 = vpop.eup %6375 }
 0x7a4   : > { %v3093_v63 = vmul.f32 %v6376_v19, %v6374_v43  ;;  %v9259_v43 = vld [vmem:[#allocation45_spill] sm:$0xff]  ;;  %v9260_v19 = vld [vmem:[#allocation46_spill] sm:$0xff] }
 0x7a6   : > { %v3097_v3 = vrot.slane %v3093_v63, 2  ;;  %v9261_v63 = vld [vmem:[#allocation47_spill] sm:$0xff] }
 0x7a8   : > { %3166 = vmatmul.mubr.f32.vlgmr.msra.gmra.mrb[22].mxu0 %v3097_v3  ;;  %3237 = vmatmul.mubr.f32.vlgmr.msra.gmra.mrb[30].mxu1 %v3097_v3 }
 0x7a9   : > { %5712 = vmatpush1.bf16.msra.mxu0 %v7113_v12  ;;  %5744 = vmatpush1.bf16.msra.mxu1 %v7146_v32 }
 0x7aa   : > { %5714 = vmatprep.subr.bf16.mxu0 %v7119_v16  ;;  %5746 = vmatprep.subr.bf16.mxu1 %v7153_v36 }
 0x7ab   : > { %3338 = vmatprep.mubr.f32.mxu0 %v8925_v22  ;;  %3409 = vmatprep.mubr.f32.mxu1 %v8925_v22 }
 0x7ad   : > { %5716 = vmatpush1.bf16.msra.mxu0 %v7125_v20  ;;  %5748 = vmatpush1.bf16.msra.mxu1 %v7168_v46 }
 0x7ae   : > { %5718 = vmatprep.subr.bf16.mxu0 %v7134_v25  ;;  %5750 = vmatprep.subr.bf16.mxu1 %v7175_v48 }
 0x7b1   : > { %5720 = vmatpush1.bf16.msra.mxu0 %v7151_v35  ;;  %5752 = vmatpush1.bf16.msra.mxu1 %v7191_v58 }
 0x7b2   : > { %5722 = vmatprep.subr.bf16.mxu0 %v7159_v40  ;;  %5754 = vmatprep.subr.bf16.mxu1 %v7198_v60 }
 0x7b5   : > { %5724 = vmatpush1.bf16.msra.mxu0 %v7173_v47  ;;  %5756 = vmatpush1.bf16.msra.mxu1 %v7212_v7 }
 0x7b6   : > { %5726 = vmatprep.subr.bf16.mxu0 %v7181_v52  ;;  %5758 = vmatprep.subr.bf16.mxu1 %v7218_v10 }
 0x7b9   : > { %5728 = vmatpush1.bf16.msra.mxu0 %v7196_v59  ;;  %5760 = vmatpush1.bf16.msra.mxu1 %v7232_v23 }
 0x7ba   : > { %5730 = vmatprep.subr.bf16.mxu0 %v7204_v0  ;;  %5762 = vmatprep.subr.bf16.mxu1 %v7238_v27 }
 0x7bd   : > { %5732 = vmatpush1.bf16.msra.mxu0 %v7216_v9  ;;  %5764 = vmatpush1.bf16.msra.mxu1 %v7251_v38 }
 0x7be   : > { %5734 = vmatprep.subr.bf16.mxu0 %v7224_v15  ;;  %5766 = vmatprep.subr.bf16.mxu1 %v7257_v41 }
 0x7c1   : > { %5736 = vmatpush1.bf16.msra.mxu0 %v7236_v26  ;;  %5768 = vmatpush1.bf16.msra.mxu1 %v7272_v49 }
 0x7c2   : > { %5738 = vmatprep.subr.bf16.mxu0 %v7244_v31  ;;  %5770 = vmatprep.subr.bf16.mxu1 %v7277_v51 }
 0x7c5   : > { %5740 = vmatpush1.bf16.msra.mxu0 %v7255_v39  ;;  %5772 = vmatpush1.bf16.msra.mxu1 %v7282_v55 }
 0x7c6   : > { %5774 = vmatprep.subr.bf16.mxu0 %v7289_v62  ;;  %5838 = vmatprep.subr.bf16.mxu1 %v7292_v2 }
 0x7c8   : > { %3339 = vmatmul.mubr.f32.vlgmr.msra.gmra.mrb[24].mxu0 %v3097_v3  ;;  %3410 = vmatmul.mubr.f32.vlgmr.msra.gmra.mrb[32].mxu1 %v3097_v3  ;;  %v9262_v3 = vld [vmem:[#allocation48_spill] sm:$0xff] }
 0x7c9   : > { %5776 = vmatpush1.bf16.msra.mxu0 %v7299_v6  ;;  %5840 = vmatpush1.bf16.msra.mxu1 %v7304_v17 }
 0x7ca   : > { %5778 = vmatprep.subr.bf16.mxu0 %v7306_v18  ;;  %5842 = vmatprep.subr.bf16.mxu1 %v7312_v28 }
 0x7cd   : > { %5780 = vmatpush1.bf16.msra.mxu0 %v7319_v34  ;;  %5844 = vmatpush1.bf16.msra.mxu1 %v9051_v61 }
 0x7ce   : > { %5782 = vmatprep.subr.bf16.mxu0 %v9244_v21  ;;  %5846 = vmatprep.subr.bf16.mxu1 %v9245_v42 }
 0x7d1   : > { %5784 = vmatpush1.bf16.msra.mxu0 %v9246_v14  ;;  %5848 = vmatpush1.bf16.msra.mxu1 %v9247_v5 }
 0x7d2   : > { %5786 = vmatprep.subr.bf16.mxu0 %v9248_v24  ;;  %5850 = vmatprep.subr.bf16.mxu1 %v9249_v54  ;;  %v9303_v54 = vld [vmem:[#allocation92_spill] sm:$0xff] }
 0x7d5   : > { %5788 = vmatpush1.bf16.msra.mxu0 %v9250_v56  ;;  %5852 = vmatpush1.bf16.msra.mxu1 %v9251_v11  ;;  %v9302_v11 = vld [vmem:[#allocation91_spill] sm:$0xff] }
 0x7d6   : > { %5790 = vmatprep.subr.bf16.mxu0 %v9252_v37  ;;  %5854 = vmatprep.subr.bf16.mxu1 %v9253_v4  ;;  %v9263_v37 = vld [vmem:[#allocation49_spill] sm:$0xff]  ;;  %v9264_v4 = vld [vmem:[#allocation50_spill] sm:$0xff] }
 0x7d9   : > { %5792 = vmatpush1.bf16.msra.mxu0 %v9254_v13  ;;  %5856 = vmatpush1.bf16.msra.mxu1 %v9255_v1  ;;  %v9265_v13 = vld [vmem:[#allocation51_spill] sm:$0xff]  ;;  %v9266_v1 = vld [vmem:[#allocation52_spill] sm:$0xff] }
 0x7da   : > { %5794 = vmatprep.subr.bf16.mxu0 %v9256_v33  ;;  %5858 = vmatprep.subr.bf16.mxu1 %v9257_v50  ;;  %v9267_v33 = vld [vmem:[#allocation53_spill] sm:$0xff]  ;;  %v9268_v50 = vld [vmem:[#allocation54_spill] sm:$0xff] }
 0x7dd   : > { %5796 = vmatpush1.bf16.msra.mxu0 %v9258_v29  ;;  %5860 = vmatpush1.bf16.msra.mxu1 %v9259_v43  ;;  %v9269_v29 = vld [vmem:[#allocation55_spill] sm:$0xff]  ;;  %v9270_v43 = vld [vmem:[#allocation56_spill] sm:$0xff] }
 0x7de   : > { %5798 = vmatprep.subr.bf16.mxu0 %v9260_v19  ;;  %5862 = vmatprep.subr.bf16.mxu1 %v9261_v63  ;;  %v9271_v19 = vld [vmem:[#allocation57_spill] sm:$0xff]  ;;  %v9272_v63 = vld [vmem:[#allocation58_spill] sm:$0xff] }
 0x7e1   : > { %5800 = vmatpush1.bf16.msra.mxu0 %v9262_v3  ;;  %5864 = vmatpush1.bf16.msra.mxu1 %v9263_v37  ;;  %v9273_v3 = vld [vmem:[#allocation59_spill] sm:$0xff]  ;;  %v9274_v37 = vld [vmem:[#allocation60_spill] sm:$0xff] }
 0x7e2   : > { %5802 = vmatprep.subr.bf16.mxu0 %v9264_v4  ;;  %5866 = vmatprep.subr.bf16.mxu1 %v9265_v13  ;;  %v9275_v4 = vld [vmem:[#allocation61_spill] sm:$0xff]  ;;  %v9276_v13 = vld [vmem:[#allocation62_spill] sm:$0xff] }
 0x7e5   : > { %5804 = vmatpush1.bf16.msra.mxu0 %v9266_v1  ;;  %5868 = vmatpush1.bf16.msra.mxu1 %v9267_v33  ;;  %v9277_v1 = vld [vmem:[#allocation63_spill] sm:$0xff]  ;;  %v9278_v33 = vld [vmem:[#allocation64_spill] sm:$0xff] }
 0x7e6   : > { %5806 = vmatprep.subr.bf16.mxu0 %v9268_v50  ;;  %5870 = vmatprep.subr.bf16.mxu1 %v9269_v29  ;;  %v9279_v50 = vld [vmem:[#allocation65_spill] sm:$0xff]  ;;  %v9280_v29 = vld [vmem:[#allocation66_spill] sm:$0xff] }
 0x7e9   : > { %5808 = vmatpush1.bf16.msra.mxu0 %v9270_v43  ;;  %5872 = vmatpush1.bf16.msra.mxu1 %v9271_v19  ;;  %v9281_v43 = vld [vmem:[#allocation67_spill] sm:$0xff]  ;;  %v9282_v19 = vld [vmem:[#allocation68_spill] sm:$0xff] }
 0x7ea   : > { %5810 = vmatprep.subr.bf16.mxu0 %v9272_v63  ;;  %5874 = vmatprep.subr.bf16.mxu1 %v9273_v3  ;;  %v9283_v63 = vld [vmem:[#allocation69_spill] sm:$0xff]  ;;  %v9284_v3 = vld [vmem:[#allocation70_spill] sm:$0xff] }
 0x7ed   : > { %5812 = vmatpush1.bf16.msra.mxu0 %v9274_v37  ;;  %5876 = vmatpush1.bf16.msra.mxu1 %v9275_v4  ;;  %v9285_v37 = vld [vmem:[#allocation71_spill] sm:$0xff]  ;;  %v9286_v4 = vld [vmem:[#allocation72_spill] sm:$0xff] }
 0x7ee   : > { %5814 = vmatprep.subr.bf16.mxu0 %v9276_v13  ;;  %5878 = vmatprep.subr.bf16.mxu1 %v9277_v1  ;;  %v9287_v13 = vld [vmem:[#allocation73_spill] sm:$0xff]  ;;  %v9288_v1 = vld [vmem:[#allocation74_spill] sm:$0xff] }
 0x7f1   : > { %5816 = vmatpush1.bf16.msra.mxu0 %v9278_v33  ;;  %5880 = vmatpush1.bf16.msra.mxu1 %v9279_v50  ;;  %v9289_v33 = vld [vmem:[#allocation75_spill] sm:$0xff]  ;;  %v9290_v50 = vld [vmem:[#allocation76_spill] sm:$0xff] }
 0x7f2   : > { %5818 = vmatprep.subr.bf16.mxu0 %v9280_v29  ;;  %5882 = vmatprep.subr.bf16.mxu1 %v9281_v43  ;;  %v9291_v29 = vld [vmem:[#allocation77_spill] sm:$0xff]  ;;  %v9292_v43 = vld [vmem:[#allocation78_spill] sm:$0xff] }
 0x7f5   : > { %5820 = vmatpush1.bf16.msra.mxu0 %v9282_v19  ;;  %5884 = vmatpush1.bf16.msra.mxu1 %v9283_v63  ;;  %v9293_v19 = vld [vmem:[#allocation79_spill] sm:$0xff]  ;;  %v9294_v63 = vld [vmem:[#allocation80_spill] sm:$0xff] }
 0x7f6   : > { %5822 = vmatprep.subr.bf16.mxu0 %v9284_v3  ;;  %5886 = vmatprep.subr.bf16.mxu1 %v9285_v37  ;;  %v9295_v3 = vld [vmem:[#allocation81_spill] sm:$0xff]  ;;  %v9296_v37 = vld [vmem:[#allocation82_spill] sm:$0xff] }
 0x7f9   : > { %5824 = vmatpush1.bf16.msra.mxu0 %v9286_v4  ;;  %5888 = vmatpush1.bf16.msra.mxu1 %v9287_v13  ;;  %v9297_v4 = vld [vmem:[#allocation83_spill] sm:$0xff]  ;;  %v9298_v13 = vld [vmem:[#allocation84_spill] sm:$0xff] }
 0x7fa   : > { %5826 = vmatprep.subr.bf16.mxu0 %v9288_v1  ;;  %5890 = vmatprep.subr.bf16.mxu1 %v9289_v33  ;;  %v9299_v1 = vld [vmem:[#allocation85_spill] sm:$0xff]  ;;  %v9300_v33 = vld [vmem:[#allocation27_spill] sm:$0xff] }
 0x7fd   : > { %5828 = vmatpush1.bf16.msra.mxu0 %v9290_v50  ;;  %5892 = vmatpush1.bf16.msra.mxu1 %v9291_v29  ;;  %v9301_v50 = vld [vmem:[#allocation28_spill] sm:$0xff] }
 0x7fe   : > { %5830 = vmatprep.subr.bf16.mxu0 %v9292_v43  ;;  %5894 = vmatprep.subr.bf16.mxu1 %v9293_v19 }
 0x801   : > { %5832 = vmatpush1.bf16.msra.mxu0 %v9294_v63  ;;  %5896 = vmatpush1.bf16.msra.mxu1 %v9295_v3 }
 0x802   : > { %5834 = vmatprep.subr.bf16.mxu0 %v9296_v37  ;;  %5898 = vmatprep.subr.bf16.mxu1 %v9297_v4  ;;  %v9304_v4 = vld [vmem:[#allocation93_spill] sm:$0xff] }
 0x805   : > { %5836 = vmatpush1.bf16.msra.mxu0 %v9298_v13  ;;  %5900 = vmatpush1.bf16.msra.mxu1 %v9299_v1  ;;  %v9305_v1 = vld [vmem:[#allocation94_spill] sm:$0xff] }
 0x806   : > { %5902 = vmatprep.subr.bf16.mxu0 %v9300_v33  ;;  %5934 = vmatprep.subr.bf16.mxu1 %v9301_v50 }
 0x87b   : > { %v3167_v29 = vpop.f32.mrb[22].mxu0  ;;  %v3238_v43 = vpop.f32.mrb[30].mxu1 }
 0x87c   : > { %v3168_v19 = vadd.f32 %v3167_v29, %v9302_v11  ;;  %v3169_v56 = vpop.f32.mrb[23].mxu0  ;;  %v3240_v63 = vpop.f32.mrb[31].mxu1  ;;  %v3239_v14 = vadd.f32 %v3238_v43, %v9305_v1 }
 0x87d   : > { %v3170_v3 = vadd.f32 %v3169_v56, %v9303_v54  ;;  %v3241_v13 = vadd.f32 %v3240_v63, %v9304_v4 }
 0x87e   : > { %v4466_v24 = vmul.f32 -1.442695, %v3168_v19 }
 0x87f   : > { %v4467_v37 = vmul.f32 -1.442695, %v3170_v3  ;;  %v4468_v5 = vmul.f32 -1.442695, %v3241_v13 }
 0x880   : > { %6377 = vpow2.f32 %v4466_v24 }
 0x881   : > { %6379 = vpow2.f32 %v4467_v37  ;;  %v9306_v37 = vld [vmem:[#allocation95_spill] sm:$0xff] }
 0x882   : > { %6381 = vpow2.f32 %v4468_v5 }
 0x883   : > { %6383 = vtanh.f32 %v3239_v14 }
 0x88a   : > { %v6378_v33 = vpop.eup %6377 }
 0x88b   : > { %v6380_v42 = vpop.eup %6379  ;;  %v3246_v50 = vadd.f32 1.0, %v6378_v33 }
 0x88c   : > { %v3252_v21 = vadd.f32 1.0, %v6380_v42  ;;  %v6382_v29 = vpop.eup %6381 }
 0x88d   : > { %6385 = vrcp.f32 %v3246_v50  ;;  %v6384_v11 = vpop.eup %6383  ;;  %v3259_v24 = vadd.f32 1.0, %v6382_v29 }
 0x88e   : > { %6387 = vrcp.f32 %v3252_v21 }
 0x88f   : > { %6389 = vrcp.f32 %v3259_v24  ;;  %v4469_v24 = vld [vmem:[#allocation11 + $0x5] ss:$0 sm:$0xff] }
 0x897   : > { %v6386_v56 = vpop.eup %6385 }
 0x898   : > { %v6388_v19 = vpop.eup %6387  ;;  %v3263_v3 = vmul.f32 %v6386_v56, %v6384_v11 }
 0x899   : > { %v3262_v54 = vmul.f32 %v6388_v19, %v9306_v37  ;;  %v6390_v56 = vpop.eup %6389 }
 0x89b   : > { %v8362_v63 = vadd.f32 %v3263_v3, %v3262_v54  ;;  %v3340_v13 = vpop.f32.mrb[24].mxu0  ;;  %v3411_v43 = vpop.f32.mrb[32].mxu1 }
 0x89c   : > { %v3420_v1 = vrot.slane %v3340_v13, 4  ;;  %v3342_v33 = vpop.f32.mrb[25].mxu0  ;;  %v3413_v5 = vpop.f32.mrb[33].mxu1  ;;  %v3422_v19 = vrot.slane %v3411_v43, 4 }
 0x89d   : > { %9307 = vst [vmem:[#allocation90_spill] sm:$0xff] %v8362_v63  ;;  %v3421_v14 = vrot.slane %v3342_v33, 4  ;;  %6391 = vtanh.f32 %v8362_v63  ;;  %v3423_v29 = vrot.slane %v3413_v5, 4 }
 0x89e   : > { %v3428_v21 = vadd.f32 %v3420_v1, %v9242_v8  ;;  %v3430_v33 = vadd.f32 %v3422_v19, %v9181_v45 }
 0x89f   : > { %v3429_v42 = vadd.f32 %v3421_v14, %v9243_v44  ;;  %v3431_v54 = vadd.f32 %v3423_v29, %v9180_v57 }
 0x8a0   : > { %v4470_v50 = vmul.f32 -1.442695, %v3428_v21 }
 0x8a1   : > { %v4471_v11 = vmul.f32 -1.442695, %v3429_v42  ;;  %v4472_v13 = vmul.f32 -1.442695, %v3431_v54  ;;  %v3452_v54 = vrot.slane %v8256_v30, 6  ;;  %v9346_v30 = vld [vmem:[#allocation68_spill] sm:$0xff] }
 0x8a2   : > { %6393 = vpow2.f32 %v4470_v50 }
 0x8a3   : > { %6395 = vpow2.f32 %v4471_v11 }
 0x8a4   : > { %6397 = vpow2.f32 %v4472_v13 }
 0x8a5   : > { %6399 = vtanh.f32 %v3430_v33  ;;  %v9347_v33 = vld [vmem:[#allocation69_spill] sm:$0xff] }
 0x8a7   : > { %v6392_v3 = vpop.eup %6391 }
 0x8a8   : > { %v3266_v37 = vmul.f32 %v6392_v3, %v6390_v56 }
 0x8aa   : > { %v3272_v63 = vmul.f32 %v4469_v24, %v3266_v37  ;;  %v3460_v4 = vrot.slane %v3266_v37, 4 }
 0x8ac   : > { %v6394_v1 = vpop.eup %6393  ;;  %v8370_v14 = vadd.f32 %v3272_v63, %v8253_v53  ;;  %v3463_v21 = vrot.slane %v3460_v4, 4 }
 0x8ad   : > { %v6396_v5 = vpop.eup %6395  ;;  %v3435_v42 = vadd.f32 1.0, %v6394_v1  ;;  %v9348_v1 = vld [vmem:[#allocation70_spill] sm:$0xff] }
 0x8ae   : > { %v3441_v50 = vadd.f32 1.0, %v6396_v5  ;;  %3530 = vmatprep.mubr.f32.mxu0 %v3463_v21  ;;  %3601 = vmatprep.mubr.f32.mxu1 %v3463_v21  ;;  %v6398_v43 = vpop.eup %6397  ;;  %v9349_v21 = vld [vmem:[#allocation71_spill] sm:$0xff]  ;;  %v9350_v5 = vld [vmem:[#allocation72_spill] sm:$0xff] }
 0x8af   : > { %6401 = vrcp.f32 %v3435_v42  ;;  %v6400_v11 = vpop.eup %6399  ;;  %v3448_v3 = vadd.f32 1.0, %v6398_v43  ;;  %v9351_v42 = vld [vmem:[#allocation73_spill] sm:$0xff]  ;;  %v9353_v43 = vld [vmem:[#allocation75_spill] sm:$0xff] }
 0x8b0   : > { %6403 = vrcp.f32 %v3441_v50  ;;  %v9352_v50 = vld [vmem:[#allocation74_spill] sm:$0xff] }
 0x8b1   : > { %6405 = vrcp.f32 %v3448_v3  ;;  %v9359_v3 = vld [vmem:[#allocation81_spill] sm:$0xff] }
 0x8b9   : > { %v6402_v29 = vpop.eup %6401 }
 0x8ba   : > { %v6404_v56 = vpop.eup %6403  ;;  %v3455_v19 = vmul.f32 %v6402_v29, %v6400_v11  ;;  %v9354_v11 = vld [vmem:[#allocation76_spill] sm:$0xff]  ;;  %v9355_v29 = vld [vmem:[#allocation77_spill] sm:$0xff] }
 0x8bb   : > { %v3454_v53 = vmul.f32 %v6404_v56, %v3452_v54  ;;  %v6406_v4 = vpop.eup %6405  ;;  %v9356_v54 = vld [vmem:[#allocation78_spill] sm:$0xff]  ;;  %v9357_v56 = vld [vmem:[#allocation79_spill] sm:$0xff] }
 0x8bd   : > { %v8373_v63 = vadd.f32 %v3455_v19, %v3454_v53  ;;  %v9358_v19 = vld [vmem:[#allocation80_spill] sm:$0xff]  ;;  %v9360_v53 = vld [vmem:[#allocation82_spill] sm:$0xff] }
 0x8bf   : > { %6407 = vtanh.f32 %v8373_v63 }
 0x8c9   : > { %v6408_v24 = vpop.eup %6407 }
 0x8ca   : > { %v3458_v37 = vmul.f32 %v6408_v24, %v6406_v4  ;;  %v9361_v4 = vld [vmem:[#allocation83_spill] sm:$0xff]  ;;  %v9362_v24 = vld [vmem:[#allocation84_spill] sm:$0xff] }
 0x8cc   : > { %v3462_v13 = vrot.slane %v3458_v37, 4  ;;  %v9363_v37 = vld [vmem:[#allocation85_spill] sm:$0xff] }
 0x8ce   : > { %3531 = vmatmul.mubr.f32.vlgmr.msra.gmra.mrb[26].mxu0 %v3462_v13  ;;  %3602 = vmatmul.mubr.f32.vlgmr.msra.gmra.mrb[34].mxu1 %v3462_v13 }
 0x8cf   : > { %5904 = vmatpush1.bf16.msra.mxu0 %v7113_v12  ;;  %5936 = vmatpush1.bf16.msra.mxu1 %v7146_v32  ;;  %v9308_v12 = vld [vmem:[#allocation30_spill] sm:$0xff] }
 0x8d0   : > { %5906 = vmatprep.subr.bf16.mxu0 %v7119_v16  ;;  %5938 = vmatprep.subr.bf16.mxu1 %v7153_v36  ;;  %v9309_v16 = vld [vmem:[#allocation31_spill] sm:$0xff]  ;;  %v9312_v32 = vld [vmem:[#allocation34_spill] sm:$0xff]  ;;  %v9314_v36 = vld [vmem:[#allocation36_spill] sm:$0xff] }
 0x8d1   : > { %3703 = vmatprep.mubr.f32.mxu0 %v8925_v22  ;;  %3774 = vmatprep.mubr.f32.mxu1 %v8925_v22 }
 0x8d3   : > { %5908 = vmatpush1.bf16.msra.mxu0 %v7125_v20  ;;  %5940 = vmatpush1.bf16.msra.mxu1 %v7168_v46  ;;  %v9310_v20 = vld [vmem:[#allocation32_spill] sm:$0xff]  ;;  %v9316_v46 = vld [vmem:[#allocation38_spill] sm:$0xff] }
 0x8d4   : > { %5910 = vmatprep.subr.bf16.mxu0 %v7134_v25  ;;  %5942 = vmatprep.subr.bf16.mxu1 %v7175_v48  ;;  %v9311_v25 = vld [vmem:[#allocation33_spill] sm:$0xff]  ;;  %v9318_v48 = vld [vmem:[#allocation40_spill] sm:$0xff] }
 0x8d7   : > { %5912 = vmatpush1.bf16.msra.mxu0 %v7151_v35  ;;  %5944 = vmatpush1.bf16.msra.mxu1 %v7191_v58  ;;  %v9313_v35 = vld [vmem:[#allocation35_spill] sm:$0xff]  ;;  %v9320_v58 = vld [vmem:[#allocation42_spill] sm:$0xff] }
 0x8d8   : > { %5914 = vmatprep.subr.bf16.mxu0 %v7159_v40  ;;  %5946 = vmatprep.subr.bf16.mxu1 %v7198_v60  ;;  %v9315_v40 = vld [vmem:[#allocation37_spill] sm:$0xff]  ;;  %v9322_v60 = vld [vmem:[#allocation44_spill] sm:$0xff] }
 0x8db   : > { %5916 = vmatpush1.bf16.msra.mxu0 %v7173_v47  ;;  %5948 = vmatpush1.bf16.msra.mxu1 %v7212_v7  ;;  %v9317_v47 = vld [vmem:[#allocation39_spill] sm:$0xff]  ;;  %v9324_v7 = vld [vmem:[#allocation46_spill] sm:$0xff] }
 0x8dc   : > { %5918 = vmatprep.subr.bf16.mxu0 %v7181_v52  ;;  %5950 = vmatprep.subr.bf16.mxu1 %v7218_v10  ;;  %v9319_v52 = vld [vmem:[#allocation41_spill] sm:$0xff]  ;;  %v9326_v10 = vld [vmem:[#allocation48_spill] sm:$0xff] }
 0x8df   : > { %5920 = vmatpush1.bf16.msra.mxu0 %v7196_v59  ;;  %5952 = vmatpush1.bf16.msra.mxu1 %v7232_v23  ;;  %v9321_v59 = vld [vmem:[#allocation43_spill] sm:$0xff]  ;;  %v9328_v23 = vld [vmem:[#allocation50_spill] sm:$0xff] }
 0x8e0   : > { %5922 = vmatprep.subr.bf16.mxu0 %v7204_v0  ;;  %5954 = vmatprep.subr.bf16.mxu1 %v7238_v27  ;;  %v9323_v0 = vld [vmem:[#allocation45_spill] sm:$0xff]  ;;  %v9330_v27 = vld [vmem:[#allocation52_spill] sm:$0xff] }
 0x8e3   : > { %5924 = vmatpush1.bf16.msra.mxu0 %v7216_v9  ;;  %5956 = vmatpush1.bf16.msra.mxu1 %v7251_v38  ;;  %v9325_v9 = vld [vmem:[#allocation47_spill] sm:$0xff]  ;;  %v9332_v38 = vld [vmem:[#allocation54_spill] sm:$0xff] }
 0x8e4   : > { %5926 = vmatprep.subr.bf16.mxu0 %v7224_v15  ;;  %5958 = vmatprep.subr.bf16.mxu1 %v7257_v41  ;;  %v9327_v15 = vld [vmem:[#allocation49_spill] sm:$0xff]  ;;  %v9334_v41 = vld [vmem:[#allocation56_spill] sm:$0xff] }
 0x8e7   : > { %5928 = vmatpush1.bf16.msra.mxu0 %v7236_v26  ;;  %5960 = vmatpush1.bf16.msra.mxu1 %v7272_v49  ;;  %v9329_v26 = vld [vmem:[#allocation51_spill] sm:$0xff]  ;;  %v9335_v49 = vld [vmem:[#allocation57_spill] sm:$0xff] }
 0x8e8   : > { %5930 = vmatprep.subr.bf16.mxu0 %v7244_v31  ;;  %5962 = vmatprep.subr.bf16.mxu1 %v7277_v51  ;;  %v9331_v31 = vld [vmem:[#allocation53_spill] sm:$0xff]  ;;  %v9336_v51 = vld [vmem:[#allocation58_spill] sm:$0xff] }
 0x8eb   : > { %5932 = vmatpush1.bf16.msra.mxu0 %v7255_v39  ;;  %5964 = vmatpush1.bf16.msra.mxu1 %v7282_v55  ;;  %v9333_v39 = vld [vmem:[#allocation55_spill] sm:$0xff] }
 0x8ec   : > { %5966 = vmatprep.subr.bf16.mxu0 %v7289_v62  ;;  %6030 = vmatprep.subr.bf16.mxu1 %v7292_v2  ;;  %v9337_v55 = vld [vmem:[#allocation59_spill] sm:$0xff]  ;;  %v9338_v62 = vld [vmem:[#allocation60_spill] sm:$0xff]  ;;  %v9339_v2 = vld [vmem:[#allocation61_spill] sm:$0xff] }
 0x8ee   : > { %3704 = vmatmul.mubr.f32.vlgmr.msra.gmra.mrb[28].mxu0 %v3462_v13  ;;  %3775 = vmatmul.mubr.f32.vlgmr.msra.gmra.mrb[36].mxu1 %v3462_v13 }
 0x8ef   : > { %5968 = vmatpush1.bf16.msra.mxu0 %v7299_v6  ;;  %6032 = vmatpush1.bf16.msra.mxu1 %v7304_v17  ;;  %v9340_v6 = vld [vmem:[#allocation62_spill] sm:$0xff]  ;;  %v9341_v17 = vld [vmem:[#allocation63_spill] sm:$0xff] }
 0x8f0   : > { %5970 = vmatprep.subr.bf16.mxu0 %v7306_v18  ;;  %6034 = vmatprep.subr.bf16.mxu1 %v7312_v28  ;;  %v9342_v18 = vld [vmem:[#allocation64_spill] sm:$0xff]  ;;  %v9343_v28 = vld [vmem:[#allocation65_spill] sm:$0xff] }
 0x8f3   : > { %5972 = vmatpush1.bf16.msra.mxu0 %v7319_v34  ;;  %6036 = vmatpush1.bf16.msra.mxu1 %v9051_v61  ;;  %v9344_v34 = vld [vmem:[#allocation66_spill] sm:$0xff]  ;;  %v9345_v61 = vld [vmem:[#allocation67_spill] sm:$0xff] }
 0x8f4   : > { %5974 = vmatprep.subr.bf16.mxu0 %v9308_v12  ;;  %6038 = vmatprep.subr.bf16.mxu1 %v9309_v16  ;;  %v9364_v16 = vld [vmem:[#allocation91_spill] sm:$0xff] }
 0x8f7   : > { %5976 = vmatpush1.bf16.msra.mxu0 %v9310_v20  ;;  %6040 = vmatpush1.bf16.msra.mxu1 %v9311_v25 }
 0x8f8   : > { %5978 = vmatprep.subr.bf16.mxu0 %v9312_v32  ;;  %6042 = vmatprep.subr.bf16.mxu1 %v9313_v35  ;;  %v9365_v35 = vld [vmem:[#allocation92_spill] sm:$0xff] }
 0x8fb   : > { %5980 = vmatpush1.bf16.msra.mxu0 %v9314_v36  ;;  %6044 = vmatpush1.bf16.msra.mxu1 %v9315_v40 }
 0x8fc   : > { %5982 = vmatprep.subr.bf16.mxu0 %v9316_v46  ;;  %6046 = vmatprep.subr.bf16.mxu1 %v9317_v47  ;;  %v9366_v47 = vld [vmem:[#allocation93_spill] sm:$0xff] }
 0x8ff   : > { %5984 = vmatpush1.bf16.msra.mxu0 %v9318_v48  ;;  %6048 = vmatpush1.bf16.msra.mxu1 %v9319_v52 }
 0x900   : > { %5986 = vmatprep.subr.bf16.mxu0 %v9320_v58  ;;  %6050 = vmatprep.subr.bf16.mxu1 %v9321_v59  ;;  %v9367_v58 = vld [vmem:[#allocation94_spill] sm:$0xff] }
 0x903   : > { %5988 = vmatpush1.bf16.msra.mxu0 %v9322_v60  ;;  %6052 = vmatpush1.bf16.msra.mxu1 %v9323_v0 }
 0x904   : > { %5990 = vmatprep.subr.bf16.mxu0 %v9324_v7  ;;  %6054 = vmatprep.subr.bf16.mxu1 %v9325_v9 }
 0x907   : > { %5992 = vmatpush1.bf16.msra.mxu0 %v9326_v10  ;;  %6056 = vmatpush1.bf16.msra.mxu1 %v9327_v15 }
 0x908   : > { %5994 = vmatprep.subr.bf16.mxu0 %v9328_v23  ;;  %6058 = vmatprep.subr.bf16.mxu1 %v9329_v26 }
 0x90b   : > { %5996 = vmatpush1.bf16.msra.mxu0 %v9330_v27  ;;  %6060 = vmatpush1.bf16.msra.mxu1 %v9331_v31 }
 0x90c   : > { %5998 = vmatprep.subr.bf16.mxu0 %v9332_v38  ;;  %6062 = vmatprep.subr.bf16.mxu1 %v9333_v39  ;;  %v9368_v38 = vld [vmem:[#allocation90_spill] sm:$0xff] }
 0x90f   : > { %6000 = vmatpush1.bf16.msra.mxu0 %v9334_v41  ;;  %6064 = vmatpush1.bf16.msra.mxu1 %v9335_v49 }
 0x910   : > { %6002 = vmatprep.subr.bf16.mxu0 %v9336_v51  ;;  %6066 = vmatprep.subr.bf16.mxu1 %v9337_v55 }
 0x913   : > { %6004 = vmatpush1.bf16.msra.mxu0 %v9338_v62  ;;  %6068 = vmatpush1.bf16.msra.mxu1 %v9339_v2 }
 0x914   : > { %6006 = vmatprep.subr.bf16.mxu0 %v9340_v6  ;;  %6070 = vmatprep.subr.bf16.mxu1 %v9341_v17 }
 0x917   : > { %6008 = vmatpush1.bf16.msra.mxu0 %v9342_v18  ;;  %6072 = vmatpush1.bf16.msra.mxu1 %v9343_v28 }
 0x918   : > { %6010 = vmatprep.subr.bf16.mxu0 %v9344_v34  ;;  %6074 = vmatprep.subr.bf16.mxu1 %v9345_v61 }
 0x91b   : > { %6012 = vmatpush1.bf16.msra.mxu0 %v9346_v30  ;;  %6076 = vmatpush1.bf16.msra.mxu1 %v9347_v33 }
 0x91c   : > { %6014 = vmatprep.subr.bf16.mxu0 %v9348_v1  ;;  %6078 = vmatprep.subr.bf16.mxu1 %v9349_v21 }
 0x91f   : > { %6016 = vmatpush1.bf16.msra.mxu0 %v9350_v5  ;;  %6080 = vmatpush1.bf16.msra.mxu1 %v9351_v42  ;;  %v4476_v5 = vld [vmem:[#allocation11 + $0x6] ss:$0 sm:$0xff] }
 0x920   : > { %6018 = vmatprep.subr.bf16.mxu0 %v9352_v50  ;;  %6082 = vmatprep.subr.bf16.mxu1 %v9353_v43 }
 0x923   : > { %6020 = vmatpush1.bf16.msra.mxu0 %v9354_v11  ;;  %6084 = vmatpush1.bf16.msra.mxu1 %v9355_v29 }
 0x924   : > { %6022 = vmatprep.subr.bf16.mxu0 %v9356_v54  ;;  %6086 = vmatprep.subr.bf16.mxu1 %v9357_v56 }
 0x927   : > { %6024 = vmatpush1.bf16.msra.mxu0 %v9358_v19  ;;  %6088 = vmatpush1.bf16.msra.mxu1 %v9359_v3 }
 0x928   : > { %6026 = vmatprep.subr.bf16.mxu0 %v9360_v53  ;;  %6090 = vmatprep.subr.bf16.mxu1 %v9361_v4  ;;  %v3817_v4 = vrot.slane %v8373_v63, 6  ;;  %v884_v63 = vld [vmem:[%s8658_s9] sm:$0xff] }
 0x92b   : > { %6028 = vmatpush1.bf16.msra.mxu0 %v9362_v24  ;;  %6092 = vmatpush1.bf16.msra.mxu1 %v9363_v37 }
 0x9a1   : > { %v3532_v13 = vpop.f32.mrb[26].mxu0  ;;  %v3603_v12 = vpop.f32.mrb[34].mxu1 }
 0x9a2   : > { %v3533_v20 = vadd.f32 %v3532_v13, %v9364_v16  ;;  %v3534_v25 = vpop.f32.mrb[27].mxu0  ;;  %v3605_v32 = vpop.f32.mrb[35].mxu1  ;;  %v3604_v59 = vadd.f32 %v3603_v12, %v9367_v58 }
 0x9a3   : > { %v3535_v36 = vadd.f32 %v3534_v25, %v9365_v35  ;;  %v3606_v48 = vadd.f32 %v3605_v32, %v9366_v47 }
 0x9a4   : > { %v4473_v40 = vmul.f32 -1.442695, %v3533_v20 }
 0x9a5   : > { %v4474_v46 = vmul.f32 -1.442695, %v3535_v36  ;;  %v4475_v52 = vmul.f32 -1.442695, %v3606_v48  ;;  %v6725_v48 = vmov 0.0|0.0  }
 0x9a6   : > { %6409 = vpow2.f32 %v4473_v40  ;;  %v885_v40 = vld [vmem:[%s8658_s9 + $0x8] sm:$0xff]  ;;  %6093 = vmatprep.subr.bf16.mxu0 %v6725_v48 }
 0x9a7   : > { %6411 = vpow2.f32 %v4474_v46  ;;  %v6094_v46 = vpack.c.bf16 %v885_v40, %v884_v63 }
 0x9a8   : > { %6413 = vpow2.f32 %v4475_v52  ;;  %v886_v52 = vld [vmem:[%s8658_s9 + $0x10] sm:$0xff] }
 0x9a9   : > { %6415 = vtanh.f32 %v3604_v59  ;;  %v887_v59 = vld [vmem:[%s8658_s9 + $0x18] sm:$0xff] }
 0x9b0   : > { %v6410_v60 = vpop.eup %6409 }
 0x9b1   : > { %v6412_v0 = vpop.eup %6411  ;;  %v3611_v7 = vadd.f32 1.0, %v6410_v60  ;;  %v6097_v60 = vpack.c.bf16 %v887_v59, %v886_v52 }
 0x9b2   : > { %v3617_v9 = vadd.f32 1.0, %v6412_v0  ;;  %v6414_v10 = vpop.eup %6413  ;;  %v888_v0 = vld [vmem:[%s8658_s9 + $0x20] sm:$0xff] }
 0x9b3   : > { %6417 = vrcp.f32 %v3611_v7  ;;  %v6416_v15 = vpop.eup %6415  ;;  %v3624_v31 = vadd.f32 1.0, %v6414_v10  ;;  %v889_v7 = vld [vmem:[%s8658_s9 + $0x28] sm:$0xff]  ;;  %v890_v10 = vld [vmem:[%s8658_s9 + $0x30] sm:$0xff] }
 0x9b4   : > { %6419 = vrcp.f32 %v3617_v9  ;;  %v6100_v9 = vpack.c.bf16 %v889_v7, %v888_v0 }
 0x9b5   : > { %6421 = vrcp.f32 %v3624_v31  ;;  %v894_v31 = vld [vmem:[%s8658_s9 + $0x50] sm:$0xff] }
 0x9bd   : > { %v6418_v23 = vpop.eup %6417 }
 0x9be   : > { %v6420_v26 = vpop.eup %6419  ;;  %v3628_v27 = vmul.f32 %v6418_v23, %v6416_v15  ;;  %v891_v15 = vld [vmem:[%s8658_s9 + $0x38] sm:$0xff] }
 0x9bf   : > { %v3627_v39 = vmul.f32 %v6420_v26, %v9368_v38  ;;  %v6422_v33 = vpop.eup %6421  ;;  %v6103_v23 = vpack.c.bf16 %v891_v15, %v890_v10  ;;  %v892_v26 = vld [vmem:[%s8658_s9 + $0x40] sm:$0xff] }
 0x9c1   : > { %v8477_v41 = vadd.f32 %v3628_v27, %v3627_v39  ;;  %v3705_v49 = vpop.f32.mrb[28].mxu0  ;;  %v3776_v51 = vpop.f32.mrb[36].mxu1  ;;  %v893_v27 = vld [vmem:[%s8658_s9 + $0x48] sm:$0xff]  ;;  %v895_v39 = vld [vmem:[%s8658_s9 + $0x58] sm:$0xff] }
 0x9c2   : > { %v3785_v55 = vrot.slane %v3705_v49, 2  ;;  %v3707_v62 = vpop.f32.mrb[29].mxu0  ;;  %v3778_v2 = vpop.f32.mrb[37].mxu1  ;;  %v3787_v1 = vrot.slane %v3776_v51, 2  ;;  %v6106_v38 = vpack.c.bf16 %v893_v27, %v892_v26  ;;  %v6109_v49 = vpack.c.bf16 %v895_v39, %v894_v31  ;;  %v896_v51 = vld [vmem:[%s8658_s9 + $0x60] sm:$0xff] }
 0x9c3   : > { %v3786_v6 = vrot.slane %v3707_v62, 2  ;;  %6423 = vtanh.f32 %v8477_v41  ;;  %v3788_v61 = vrot.slane %v3778_v2, 2  ;;  %v898_v2 = vld [vmem:[%s8658_s9 + $0x70] sm:$0xff] }
 0x9c4   : > { %v3793_v17 = vadd.f32 %v3785_v55, %v9242_v8  ;;  %v3795_v43 = vadd.f32 %v3787_v1, %v9181_v45  ;;  %v897_v55 = vld [vmem:[%s8658_s9 + $0x68] sm:$0xff] }
 0x9c5   : > { %v3794_v18 = vadd.f32 %v3786_v6, %v9243_v44  ;;  %v3796_v30 = vadd.f32 %v3788_v61, %v9180_v57  ;;  %v6112_v62 = vpack.c.bf16 %v897_v55, %v896_v51 }
 0x9c6   : > { %v4477_v28 = vmul.f32 -1.442695, %v3793_v17 }
 0x9c7   : > { %v4478_v34 = vmul.f32 -1.442695, %v3794_v18  ;;  %v4479_v50 = vmul.f32 -1.442695, %v3796_v30 }
 0x9c8   : > { %6425 = vpow2.f32 %v4477_v28 }
 0x9c9   : > { %6427 = vpow2.f32 %v4478_v34 }
 0x9ca   : > { %6429 = vpow2.f32 %v4479_v50 }
 0x9cb   : > { %6431 = vtanh.f32 %v3795_v43 }
 0x9cd   : > { %v6424_v21 = vpop.eup %6423 }
 0x9ce   : > { %v3631_v42 = vmul.f32 %v6424_v21, %v6422_v33 }
 0x9d0   : > { %v3637_v11 = vmul.f32 %v4476_v5, %v3631_v42  ;;  %v3825_v29 = vrot.slane %v3631_v42, 2 }
 0x9d2   : > { %v6426_v8 = vpop.eup %6425  ;;  %v3828_v54 = vrot.slane %v3825_v29, 6  ;;  %v8485_v44 = vadd.f32 %v3637_v11, %v8370_v14 }
 0x9d3   : > { %v6428_v56 = vpop.eup %6427  ;;  %v3800_v19 = vadd.f32 1.0, %v6426_v8 }
 0x9d4   : > { %v3806_v57 = vadd.f32 1.0, %v6428_v56  ;;  %3895 = vmatprep.mubr.f32.mxu0 %v3828_v54  ;;  %3966 = vmatprep.mubr.f32.mxu1 %v3828_v54  ;;  %v6430_v3 = vpop.eup %6429 }
 0x9d5   : > { %6433 = vrcp.f32 %v3800_v19  ;;  %v6432_v53 = vpop.eup %6431  ;;  %v3813_v14 = vadd.f32 1.0, %v6430_v3 }
 0x9d6   : > { %6435 = vrcp.f32 %v3806_v57 }
 0x9d7   : > { %6437 = vrcp.f32 %v3813_v14 }
 0x9df   : > { %v6434_v45 = vpop.eup %6433 }
 0x9e0   : > { %v6436_v24 = vpop.eup %6435  ;;  %v3820_v37 = vmul.f32 %v6434_v45, %v6432_v53  ;;  %v4483_v53 = vld [vmem:[#allocation11 + $0x7] ss:$0 sm:$0xff] }
 0x9e1   : > { %v3819_v13 = vmul.f32 %v6436_v24, %v3817_v4  ;;  %v6438_v20 = vpop.eup %6437 }
 0x9e3   : > { %v3821_v12 = vadd.f32 %v3820_v37, %v3819_v13 }
 0x9e5   : > { %6439 = vtanh.f32 %v3821_v12  ;;  %4088 = vst.msk [vmem:[%s8489_s19 - $0x6] sm:$0xc0] %vm4083_vm2, %v3821_v12 }
 0x9ef   : > { %v6440_v25 = vpop.eup %6439 }
 0x9f0   : > { %v3823_v32 = vmul.f32 %v6440_v25, %v6438_v20 }
 0x9f2   : > { %v3827_v36 = vrot.slane %v3823_v32, 6  ;;  %4084 = vst.msk [vmem:[%s8493_s22 - $0x6] sm:$0xc0] %vm4083_vm2, %v3823_v32 }
 0x9f4   : > { %3896 = vmatmul.mubr.f32.vlgmr.msra.gmra.mrb[30].mxu0 %v3827_v36  ;;  %3967 = vmatmul.mubr.f32.vlgmr.msra.gmra.mrb[38].mxu1 %v3827_v36 }
 0x9f5   : > { %6095 = vmatpush3.bf16.msra.mxu0 %v6094_v46  ;;  %4554 = vmatprep.mubr.msk.f32.mxu0 %vm6726_vm3, %v8925_v22  ;;  %v899_v22 = vld [vmem:[%s8658_s9 + $0x78] sm:$0xff] }
 0x9f6   : > { %6096 = vmatprep.subr.bf16.mxu0 %v6725_v48  ;;  %v6115_v6 = vpack.c.bf16 %v899_v22, %v898_v2 }
 0x9f9   : > { %6098 = vmatpush3.bf16.msra.mxu0 %v6097_v60 }
 0x9fa   : > { %6099 = vmatprep.subr.bf16.mxu0 %v6725_v48 }
 0x9fd   : > { %6101 = vmatpush3.bf16.msra.mxu0 %v6100_v9 }
 0x9fe   : > { %6102 = vmatprep.subr.bf16.mxu0 %v6725_v48 }
 0xa01   : > { %6104 = vmatpush3.bf16.msra.mxu0 %v6103_v23 }
 0xa02   : > { %6105 = vmatprep.subr.bf16.mxu0 %v6725_v48 }
 0xa05   : > { %6107 = vmatpush3.bf16.msra.mxu0 %v6106_v38 }
 0xa06   : > { %6108 = vmatprep.subr.bf16.mxu0 %v6725_v48 }
 0xa09   : > { %6110 = vmatpush3.bf16.msra.mxu0 %v6109_v49 }
 0xa0a   : > { %6111 = vmatprep.subr.bf16.mxu0 %v6725_v48 }
 0xa0d   : > { %6113 = vmatpush3.bf16.msra.mxu0 %v6112_v62 }
 0xa0e   : > { %6114 = vmatprep.subr.bf16.mxu0 %v6725_v48 }
 0xa11   : > { %6116 = vmatpush3.bf16.msra.mxu0 %v6115_v6 }
 0xac7   : > { %v3897_v17 = vpop.f32.mrb[30].mxu0  ;;  %v3968_v18 = vpop.f32.mrb[38].mxu1 }
 0xac8   : > { %v3898_v28 = vadd.f32 %v3897_v17, %v9364_v16  ;;  %v3899_v34 = vpop.f32.mrb[31].mxu0  ;;  %v3970_v61 = vpop.f32.mrb[39].mxu1  ;;  %v3969_v42 = vadd.f32 %v3968_v18, %v9367_v58 }
 0xac9   : > { %v3900_v30 = vadd.f32 %v3899_v34, %v9365_v35  ;;  %v3971_v21 = vadd.f32 %v3970_v61, %v9366_v47 }
 0xaca   : > { %v4480_v33 = vmul.f32 -1.442695, %v3898_v28 }
 0xacb   : > { %v4481_v1 = vmul.f32 -1.442695, %v3900_v30  ;;  %v4482_v5 = vmul.f32 -1.442695, %v3971_v21 }
 0xacc   : > { %6441 = vpow2.f32 %v4480_v33 }
 0xacd   : > { %6443 = vpow2.f32 %v4481_v1 }
 0xace   : > { %6445 = vpow2.f32 %v4482_v5 }
 0xacf   : > { %6447 = vtanh.f32 %v3969_v42 }
 0xad6   : > { %v6442_v50 = vpop.eup %6441 }
 0xad7   : > { %v6444_v43 = vpop.eup %6443  ;;  %v3976_v11 = vadd.f32 1.0, %v6442_v50 }
 0xad8   : > { %v3982_v16 = vadd.f32 1.0, %v6444_v43  ;;  %v6446_v29 = vpop.eup %6445 }
 0xad9   : > { %6449 = vrcp.f32 %v3976_v11  ;;  %v6448_v35 = vpop.eup %6447  ;;  %v3989_v47 = vadd.f32 1.0, %v6446_v29 }
 0xada   : > { %6451 = vrcp.f32 %v3982_v16 }
 0xadb   : > { %6453 = vrcp.f32 %v3989_v47 }
 0xae3   : > { %v6450_v8 = vpop.eup %6449 }
 0xae4   : > { %v6452_v54 = vpop.eup %6451  ;;  %v3993_v56 = vmul.f32 %v6450_v8, %v6448_v35 }
 0xae5   : > { %v3992_v58 = vmul.f32 %v6452_v54, %v8477_v41  ;;  %v6454_v57 = vpop.eup %6453 }
 0xae7   : > { %v3994_v19 = vadd.f32 %v3993_v56, %v3992_v58 }
 0xae9   : > { %6455 = vtanh.f32 %v3994_v19  ;;  %4486 = vst.msk [vmem:[%s8489_s19 + $0x2] sm:$0x3] %vm4086_vm4, %v3994_v19 }
 0xaf3   : > { %v6456_v3 = vpop.eup %6455 }
 0xaf4   : > { %v3996_v45 = vmul.f32 %v6456_v3, %v6454_v57 }
 0xaf6   : > { %v4002_v4 = vmul.f32 %v4483_v53, %v3996_v45  ;;  %4485 = vst.msk [vmem:[%s8493_s22 + $0x2] sm:$0x3] %vm4086_vm4, %v3996_v45  ;;  %s6611_s22 = scalar_lea.vmem %s6610_s3, 128 }
 0xaf7   : > { %p6613_p1 = scmp.lt.s32.totalorder %s6611_s22, %s6605_s21 }
 0xaf8   : > { %v4003_v24 = vadd.f32 %v4002_v4, %v8485_v44 }
 0xaf9   : > { %p6614_p12 = por %p6613_p1, %p6612_p4 }
 0xafa   : > { %4555 = vmatmul.mubr.f32.vlgmr.msra.gmra.mrb[32].mxu0 %v4003_v24 }
 0xafb   : > { %p6615_p3 = pnand %p6614_p12, %p6608_p2 }
 0xafd   : > { %6618 = shalt.err (!%p6615_p3)
}
 0xafe   : > { %s6619_s18 = scalar_lea.hbm %s8560_s24, 64  ;;  %s6623_s23 = scalar_lea.hbm %s9370_s14, 384 }
 0xaff   : > { %p6620_p13 = scmp.ne.s32.totalorder %s8560_s24, %s6619_s18  ;;  %p6624_p6 = scmp.lt.u32.totalorder %s8560_s24, %s9370_s14 }
 0xb00   : > { %p6625_p7 = scmp.lt.u32.totalorder %s6623_s23, %s6619_s18  ;;  %p6627_p10 = scmp.lt.u32.totalorder %s6619_s18, %s8560_s24 }
 0xb01   : > { %p6621_p0 = pnand %p6620_p13, %p9371_p8 }
 0xb02   : > { %p6626_p9 = por %p6625_p7, %p6624_p6 }
 0xb03   : > { %p6622_p11 = pneg %p6621_p0 }
 0xb04   : > { %p6628_p5 = por %p6627_p10, %p6626_p9 }
 0xb06   : > { %p6629_p2 = pnand %p6628_p5, %p6622_p11 }
 0xb08   : > { %6632 = shalt.err (!%p6629_p2)
}
 0xb09   : > { %s6728_s20 = smov 32   ;;  %s6729_s2 = smov 2  }
 0xb0a   : > { %6129 = dma.vmem_to_hbm [thread:$0]  (%p9371_p8), %s8562_s11, 64, %s8560_s24, %s4096_s16, %s6728_s20, %s6728_s20, %s6729_s2  }
 0xb0b   : > { %s9372_s3 = sld [smem:[#allocation101_spill]]  ;;  %s4133_s18 = sshll.u32 %s8489_s19, 4  ;;  %s8599_s18 = int_to_ptr.vmem [resolvable:$true] %s4133_s18 }
 0xb0c   : > { %s4101_s26 = scalar_lea.sflag [#allocation14], %s7056_s15  ;;  %s6633_s25 = scalar_lea.vmem %s8599_s18, 64 }
 0xb0d   : > { %p6634_p4 = scmp.ne.s32.totalorder %s8599_s18, %s6633_s25  ;;  %s6730_s23 = smov [#allocation13]  }
 0xb0e   : > { %s6637_s11 = sshll.u32 %s6730_s23, 4  ;;  %s6638_s11 = int_to_ptr.vmem [resolvable:$false] %s6637_s11 }
 0xb0f   : > { %p6635_p1 = pnand %p6634_p4, %p9371_p8  ;;  %s6639_s10 = scalar_lea.vmem %s6638_s11, 128 }
 0xb10   : > { %p6640_p3 = scmp.lt.s32.totalorder %s8599_s18, %s6638_s11  ;;  %p6641_p13 = scmp.lt.s32.totalorder %s6639_s10, %s6633_s25 }
 0xb11   : > { %s8596_s22 = scalar_lea.hbm %s9372_s3, %s4503_s12  ;;  %p6636_p12 = pneg %p6635_p1 }
 0xb12   : > { %p6642_p0 = por %p6641_p13, %p6640_p3 }
 0xb14   : > { %p6643_p11 = pnand %p6642_p0, %p6636_p12 }
 0xb16   : > { %6646 = shalt.err (!%p6643_p11)
}
 0xb17   : > { %s6647_s19 = scalar_lea.hbm %s8596_s22, 64  ;;  %s6651_s16 = scalar_lea.hbm %s9372_s3, 384 }
 0xb18   : > { %p6648_p6 = scmp.ne.s32.totalorder %s8596_s22, %s6647_s19  ;;  %p6652_p10 = scmp.lt.u32.totalorder %s8596_s22, %s9372_s3 }
 0xb19   : > { %p6653_p5 = scmp.lt.u32.totalorder %s6651_s16, %s6647_s19  ;;  %p6655_p4 = scmp.lt.u32.totalorder %s6647_s19, %s8596_s22 }
 0xb1a   : > { %p6649_p7 = pnand %p6648_p6, %p9371_p8 }
 0xb1b   : > { %p6654_p2 = por %p6653_p5, %p6652_p10 }
 0xb1c   : > { %p6650_p9 = pneg %p6649_p7 }
 0xb1d   : > { %p6656_p1 = por %p6655_p4, %p6654_p2 }
 0xb1f   : > { %p6657_p12 = pnand %p6656_p1, %p6650_p9 }
 0xb21   : > { %6660 = shalt.err (!%p6657_p12)
}
 0xb22   : > { %6130 = dma.vmem_to_hbm [thread:$0]  (%p9371_p8), %s8599_s18, 64, %s8596_s22, %s4101_s26, %s6728_s20, %s6728_s20, %s6729_s2   ;;  %v4484_v41 = vld [vmem:[#allocation2] ss:$0 sm:$0xff]  ;;  %vm4081_vm5 = vcmask 1024  }
 0xb23   : > { %s4417_s21 = sshll.u32 %s7091_s13, 1  ;;  %s9373_s23 = sld [smem:[#allocation99_spill]] }
 0xb29   : > { %s686_s11 = scalar_lea.vmem %s9373_s23, %s4417_s21 }
 0xbcd   : > { %v4077_v44 = vpop.f32.mrb[32].mxu0 }
 0xbce   : > { %v4078_v37 = vadd.f32 %v4484_v41, %v4077_v44  ;;  %v4556_v14 = vpop.f32.mrb[33].mxu0 }
 0xbd0   : > { %4082 = vst.msk [vmem:[%s686_s11] sm:$0x3] %vm4081_vm5, %v4078_v37 }
 0xbd1 PF: > { %s9374_s8 = sld [smem:[#allocation21_spill]]  ;;  %s9375_s10 = sld [smem:[#allocation26_spill]] }
 0xbd2   : > { %p6160_p3 = scmp.ge.s32.totalorder %s6715_s30, 2 }
 0xbd7   : > { %s4155_s15 = sand.u32 1, %s9374_s8   ;;  %p9376_p13 = scmp.ne.s32.totalorder %s9375_s10, 0 }
 0xbd8   : > { %s4156_s20 = scalar_lea.sflag [#allocation5], %s4155_s15 }
 0xbd9   : > { %p6151_p0 = pnand %p6160_p3, %p9376_p13 }
 0xbdb   : > { %6694 = dma.done.wait (!%p6151_p0), %s4156_s20, 64  }
 0xbdc   : > { %6696 = vsyncadd (!%p6151_p0), %s4156_s20, 4294967232  ;;  %s4165_s13 = scalar_lea.sflag [#allocation14], %s4155_s15 }
 0xbdd   : > { %6698 = dma.done.wait (!%p6151_p0), %s4165_s13, 64  }
 0xbde   : > { %6700 = vsyncadd (!%p6151_p0), %s4165_s13, 4294967232  ;;  %s9377_s30 = sld [smem:[#allocation23_spill]]  ;;  %s9378_s2 = sld [smem:[#allocation22_spill]] }
 0xbdf   : > { %s9379_s29 = sld [smem:[#allocation24_spill]]  ;;  %s9380_s27 = smov %s6707_s28 }
 0xbe4   : > { %p38_p8 = scmp.ge.s32.totalorder %s9377_s30, 8   ;;  %s9381_s28 = smov %s9378_s2 }
 0xbe6   :  { %40 = sbr.rel (!%p38_p8) target bundleno = 18 (0x12), region = 195 }
 0xbed   :  { %4170 = vsyncpa [#allocation4], 1 }
 0xbee   :  { %4172 = vsyncpa [#allocation4 + $0x1], 1 }
 0xbef   :  { %4173 = vsyncpa [#allocation7], 1 }
 0xbf0   :  { %4175 = vsyncpa [#allocation7 + $0x1], 1 }
 0xbf1   :  { %4176 = vsyncpa [#allocation10], 1 }
 0xbf2   :  { %4178 = vsyncpa [#allocation10 + $0x1], 1 }
 0xbf3   :  { %4179 = vsyncpa [#allocation5], 1 }
 0xbf4   :  { %4181 = vsyncpa [#allocation5 + $0x1], 1 }
 0xbf5   :  { %4182 = vsyncpa [#allocation14], 1 }
 0xbf6   :  { %4184 = vsyncpa [#allocation14 + $0x1], 1 }

// kernel: airspace_forward.3
= control target key start
LH: loop header
LB: loop body
LE: loop exit
PB: predicated region body
PF: predicated region fallthrough
CT: control target
= control target key end

     0   :  { %vm275_vm0 = vcmask 1043456   ;;  %vm234_vm1 = vcmask 31744   ;;  %v7488_v3 = vmov 4   ;;  %vm524_vm4 = vcmask 130048   ;;  %s7490_s28 = smov 112   ;;  %s7491_s16 = smov 96   ;;  %s9997_s3 = inlined_call_operand.vmem [shape: f32[4,16], index: 3, kind: input, shape index: {}]   ;;  %s9998_s0 = inlined_call_operand.vmem [shape: f32[156,5], index: 0, kind: input, shape index: {}]   ;;  %s9999_s5 = inlined_call_operand.vmem [shape: f32[8,32,32], index: 5, kind: input, shape index: {}]   ;;  %s10000_s1 = inlined_call_operand.vmem [shape: f32[1,16], index: 1, kind: input, shape index: {}]   ;;  %s10001_s4 = inlined_call_operand.vmem [shape: f32[1,16], index: 4, kind: input, shape index: {}]   ;;  %s10002_s2 = inlined_call_operand.vmem [shape: f32[1,16], index: 2, kind: input, shape index: {}]   ;;  %s10003_s7 = inlined_call_operand.vmem [shape: f32[8,16,48], index: 7, kind: input, shape index: {}]   ;;  %s10004_s6 = inlined_call_operand.vmem [shape: f32[8,1,32], index: 6, kind: input, shape index: {}]   ;;  %s10005_s8 = inlined_call_operand.vmem [shape: f32[8,1,48], index: 8, kind: input, shape index: {}]   ;;  %s10006_s9 = inlined_call_operand.vmem [shape: f32[8,1,16], index: 9, kind: input, shape index: {}]   ;;  %s10007_s10 = inlined_call_operand.vmem [shape: f32[8,1,16], index: 10, kind: input, shape index: {}]   ;;  %s10008_s11 = inlined_call_operand.vmem [shape: f32[32,16], index: 11, kind: input, shape index: {}]   ;;  %s10009_s13 = inlined_call_operand.vmem [shape: f32[16,1], index: 13, kind: input, shape index: {}]   ;;  %s10010_s14 = inlined_call_operand.<no memory space> [shape: f32[1,1], index: 14, kind: input, shape index: {}]   ;;  %s10011_s12 = inlined_call_operand.vmem [shape: f32[1,16], index: 12, kind: input, shape index: {}]   ;;  %s10012_s15 = inlined_call_operand.vmem [shape: f32[12,1], index: 15, kind: output, shape index: {}]  }
   0x1   :  { %v226_v0 = vld [vmem:[%s9997_s3] sm:$0xf]  ;;  %v53_v2 = vld [vmem:[%s9998_s0 + $0x8] sm:$0xff]  ;;  %6983 = vset.pattern.permute.xlu1 %v7488_v3  ;;  %6982 = vset.pattern.permute.xlu0 %v7488_v3  ;;  %v54_v4 = vld [vmem:[%s9998_s0 + $0x10] sm:$0xff] }
   0x2   :  { %v52_v1 = vld [vmem:[%s9998_s0] sm:$0xff]  ;;  %6373 = vmatprep.subr.msk.mxu0 %vm275_vm0, %v226_v0  ;;  %v55_v5 = vld [vmem:[%s9998_s0 + $0x18] sm:$0xff]  ;;  %80 = vperm.xlu0 %6982, %v53_v2   ;;  %v57_v7 = vld [vmem:[%s9998_s0 + $0x28] sm:$0xff] }
   0x3   :  { %6375 = vmatprep.mubr.msk.f32.mxu0 %vm234_vm1, %v52_v1  ;;  %6374 = vmatpush3.msk.msra.mxu0 %vm275_vm0, %v226_v0  ;;  %v56_v6 = vld [vmem:[%s9998_s0 + $0x20] sm:$0xff]  ;;  %v58_v8 = vld [vmem:[%s9998_s0 + $0x30] sm:$0xff]  ;;  %v59_v9 = vld [vmem:[%s9998_s0 + $0x38] sm:$0xff] }
   0x4   :  { %90 = vperm.xlu1 %6983, %v55_v5   ;;  %6376 = vmatmul.mubr.msk.f32.vlgmr.msra.gmra.mrb[0].mxu0 %vm234_vm1, %v53_v2  ;;  %v60_v10 = vld [vmem:[%s9998_s0 + $0x40] sm:$0xff]  ;;  %v61_v11 = vld [vmem:[%s9998_s0 + $0x48] sm:$0xff]  ;;  %v62_v12 = vld [vmem:[%s9998_s0 + $0x50] sm:$0xff] }
   0x5   :  { %6378 = vmatprep.mubr.msk.f32.mxu0 %vm234_vm1, %v54_v4  ;;  %v63_v13 = vld [vmem:[%s9998_s0 + $0x58] sm:$0xff]  ;;  %v64_v14 = vld [vmem:[%s9998_s0 + $0x60] sm:$0xff]  ;;  %v65_v15 = vld [vmem:[%s9998_s0 + $0x68] sm:$0xff] }
   0x6   :  { %85 = vperm.xlu0 %6982, %v54_v4   ;;  %v66_v16 = vld [vmem:[%s9998_s0 + $0x70] sm:$0xff]  ;;  %v67_v17 = vld [vmem:[%s9998_s0 + $0x78] sm:$0xff]  ;;  %v68_v18 = vld [vmem:[%s9998_s0 + $0x80] sm:$0xff] }
   0x7   :  { %v69_v19 = vld [vmem:[%s9998_s0 + $0x88] sm:$0xff]  ;;  %v70_v20 = vld [vmem:[%s9998_s0 + $0x90] sm:$0xff]  ;;  %v71_v21 = vld [vmem:[%s9998_s0 + $0x98] sm:$0xf] }
   0x8   :  { %95 = vperm.xlu1 %6983, %v56_v6   ;;  %6379 = vmatmul.mubr.msk.f32.gmra.mrb[2].mxu0 %vm234_vm1, %v55_v5  ;;  %v672_v22 = vld [vmem:[%s9999_s5] sm:$0xff]  ;;  %v673_v23 = vld [vmem:[%s9999_s5 + $0x8] sm:$0xff]  ;;  %v674_v24 = vld [vmem:[%s9999_s5 + $0x10] sm:$0xff] }
   0x9   :  { %6381 = vmatprep.mubr.msk.f32.mxu0 %vm234_vm1, %v56_v6  ;;  %v6879_v25 = vpack.c.bf16 %v673_v23, %v672_v22  ;;  %v675_v26 = vld [vmem:[%s9999_s5 + $0x18] sm:$0xff]  ;;  %v7687_v40 = vld [vmem:[%s10000_s1] ss:$0 sm:$0xff]  ;;  %s7489_s1 = smov 16  }
   0xa   :  { %100 = vperm.xlu0 %6982, %v57_v7   ;;  %v6883_v27 = vpack.c.bf16 %v675_v26, %v674_v24  ;;  %v7693_v44 = vld [vmem:[%s10001_s4] ss:$0 sm:$0xff] }
   0xb   :  { %6880 = vmatprep.subr.bf16.mxu1 %v6879_v25  ;;  %v7698_v45 = vld [vmem:[%s10002_s2] ss:$0 sm:$0xff] }
   0xc   :  { %105 = vperm.xlu1 %6983, %v58_v8   ;;  %6382 = vmatmul.mubr.msk.f32.gmra.mrb[4].mxu0 %vm234_vm1, %v57_v7 }
   0xd   :  { %6384 = vmatprep.mubr.msk.f32.mxu0 %vm234_vm1, %v58_v8  ;;  %6882 = vmatpush3.bf16.msra.mxu1 %v6879_v25 }
   0xe   :  { %110 = vperm.xlu0 %6982, %v59_v9   ;;  %6884 = vmatprep.subr.bf16.mxu1 %v6883_v27 }
  0x10   :  { %115 = vperm.xlu1 %6983, %v60_v10   ;;  %6385 = vmatmul.mubr.msk.f32.gmra.mrb[6].mxu0 %vm234_vm1, %v59_v9 }
  0x11   :  { %6387 = vmatprep.mubr.msk.f32.mxu0 %vm234_vm1, %v60_v10  ;;  %6886 = vmatpush3.bf16.msra.mxu1 %v6883_v27 }
  0x12   :  { %120 = vperm.xlu0 %6982, %v61_v11  }
  0x14   :  { %125 = vperm.xlu1 %6983, %v62_v12   ;;  %6388 = vmatmul.mubr.msk.f32.gmra.mrb[8].mxu0 %vm234_vm1, %v61_v11 }
  0x15   :  { %6390 = vmatprep.mubr.msk.f32.mxu0 %vm234_vm1, %v62_v12 }
  0x16   :  { %130 = vperm.xlu0 %6982, %v63_v13  }
  0x18   :  { %135 = vperm.xlu1 %6983, %v64_v14   ;;  %6391 = vmatmul.mubr.msk.f32.gmra.mrb[10].mxu0 %vm234_vm1, %v63_v13 }
  0x19   :  { %6393 = vmatprep.mubr.msk.f32.mxu0 %vm234_vm1, %v64_v14 }
  0x1a   :  { %140 = vperm.xlu0 %6982, %v65_v15  }
  0x1c   :  { %145 = vperm.xlu1 %6983, %v66_v16   ;;  %6394 = vmatmul.mubr.msk.f32.gmra.mrb[12].mxu0 %vm234_vm1, %v65_v15 }
  0x1d   :  { %6396 = vmatprep.mubr.msk.f32.mxu0 %vm234_vm1, %v66_v16 }
  0x1e   :  { %150 = vperm.xlu0 %6982, %v67_v17  }
  0x20   :  { %155 = vperm.xlu1 %6983, %v68_v18   ;;  %6397 = vmatmul.mubr.msk.f32.gmra.mrb[14].mxu0 %vm234_vm1, %v67_v17 }
  0x21   :  { %6399 = vmatprep.mubr.msk.f32.mxu0 %vm234_vm1, %v68_v18 }
  0x22   :  { %160 = vperm.xlu0 %6982, %v69_v19  }
  0x24   :  { %165 = vperm.xlu1 %6983, %v70_v20   ;;  %6400 = vmatmul.mubr.msk.f32.gmra.mrb[16].mxu0 %vm234_vm1, %v69_v19 }
  0x25   :  { %6402 = vmatprep.mubr.msk.f32.mxu0 %vm234_vm1, %v70_v20 }
  0x26   :  { %170 = vperm.xlu0 %6982, %v71_v21  }
  0x28   :  { %75 = vperm.xlu1 %6983, %v52_v1   ;;  %6403 = vmatmul.mubr.msk.f32.gmra.mrb[18].mxu0 %vm234_vm1, %v71_v21 }
  0x81   :  { %v81_v35 = vpop.permute.xlu0 %80 }
  0x82   :  { %v180_v43 = vmul.f32 %v7687_v40, %v81_v35 }
  0x83   :  { %v91_v28 = vpop.permute.xlu1 %90 }
  0x84   :  { %v182_v50 = vmul.f32 %v7687_v40, %v91_v28  ;;  %v207_v51 = vadd.f32 %v7698_v45, %v180_v43 }
  0x85   :  { %v86_v37 = vpop.permute.xlu0 %85 }
  0x86   :  { %v181_v58 = vmul.f32 %v7687_v40, %v86_v37  ;;  %v209_v62 = vadd.f32 %v7698_v45, %v182_v50 }
  0x87   :  { %v96_v29 = vpop.permute.xlu1 %95 }
  0x88   :  { %v183_v7 = vmul.f32 %v7687_v40, %v96_v29  ;;  %v208_v8 = vadd.f32 %v7698_v45, %v181_v58 }
  0x89   :  { %v101_v39 = vpop.permute.xlu0 %100 }
  0x8a   :  { %v184_v4 = vmul.f32 %v7687_v40, %v101_v39  ;;  %v210_v22 = vadd.f32 %v7698_v45, %v183_v7 }
  0x8b   :  { %v7670_v30 = vpop.permute.xlu1 %105 }
  0x8c   :  { %v211_v18 = vadd.f32 %v7698_v45, %v184_v4  ;;  %v185_v23 = vmul.f32 %v7687_v40, %v7670_v30 }
  0x8d   :  { %v111_v42 = vpop.permute.xlu0 %110 }
  0x8e   :  { %v186_v19 = vmul.f32 %v7687_v40, %v111_v42 }
  0x8f   :  { %v7672_v31 = vpop.permute.xlu1 %115 }
  0x90   :  { %v187_v35 = vmul.f32 %v7687_v40, %v7672_v31  ;;  %v213_v42 = vadd.f32 %v7698_v45, %v186_v19 }
  0x91   :  { %v121_v53 = vpop.permute.xlu0 %120 }
  0x92   :  { %v188_v30 = vmul.f32 %v7687_v40, %v121_v53 }
  0x93   :  { %v7674_v32 = vpop.permute.xlu1 %125 }
  0x95   :  { %v131_v9 = vpop.permute.xlu0 %130 }
  0x97   :  { %v7676_v33 = vpop.permute.xlu1 %135 }
  0x99   :  { %v141_v37 = vpop.permute.xlu0 %140 }
  0x9b   :  { %v7678_v34 = vpop.permute.xlu1 %145 }
  0x9f   :  { %v7680_v36 = vpop.permute.xlu1 %155 }
  0xa3   :  { %v7682_v38 = vpop.permute.xlu1 %165 }
  0xa7   :  { %v76_v41 = vpop.permute.xlu1 %75 }
  0xa8   :  { %v179_v46 = vmul.f32 %v7687_v40, %v76_v41 }
  0xaa   :  { %v206_v55 = vadd.f32 %v7698_v45, %v179_v46 }
  0xd7   :  { %v6377_v47 = vpop.f32.mrb[0].mxu0 }
  0xd8   :  { %v351_v48 = vadd.f32 %v6377_v47, %v7693_v44  ;;  %v345_v49 = vpop.f32.mrb[1].mxu0  ;;  %v212_v47 = vadd.f32 %v7698_v45, %v185_v23 }
  0xd9   :  { %v346_v52 = vadd.f32 %v7693_v44, %v345_v49 }
  0xda   :  { %vm445_vm2 = vcmp.gt.f32.partialorder %v351_v48, 0.0  ;;  %v465_v54 = vmul.f32 0.01, %v351_v48 }
  0xdb   :  { %vm444_vm3 = vcmp.gt.f32.partialorder %v346_v52, 0.0  ;;  %v464_v56 = vmul.f32 0.01, %v346_v52  ;;  %v6380_v57 = vpop.f32.mrb[2].mxu0 }
  0xdc   :  { %v485_v59 = vsel %vm445_vm2, %v351_v48, %v465_v54  ;;  %v361_v60 = vadd.f32 %v6380_v57, %v7693_v44  ;;  %v355_v61 = vpop.f32.mrb[3].mxu0  ;;  %v214_v54 = vadd.f32 %v7698_v45, %v187_v35  ;;  %v190_v57 = vmul.f32 %v7687_v40, %v131_v9 }
  0xdd   :  { %v505_v63 = vadd.f32 %v485_v59, %v207_v51  ;;  %v484_v0 = vsel %vm444_vm3, %v346_v52, %v464_v56  ;;  %v356_v1 = vadd.f32 %v7693_v44, %v355_v61  ;;  %v215_v56 = vadd.f32 %v7698_v45, %v188_v30 }
  0xde   :  { %v504_v2 = vadd.f32 %v484_v0, %v206_v55  ;;  %vm447_vm5 = vcmp.gt.f32.partialorder %v361_v60, 0.0  ;;  %v467_v3 = vmul.f32 0.01, %v361_v60  ;;  %v192_v9 = vmul.f32 %v7687_v40, %v141_v37 }
  0xdf   :  { %526 = vst.msk [vmem:[#allocation2 + $0x8] sm:$0xff] %vm524_vm4, %v505_v63  ;;  %vm446_vm6 = vcmp.gt.f32.partialorder %v356_v1, 0.0  ;;  %v466_v5 = vmul.f32 0.01, %v356_v1  ;;  %v6383_v6 = vpop.f32.mrb[4].mxu0  ;;  %v151_v63 = vpop.permute.xlu0 %150  ;;  %v193_v35 = vmul.f32 %v7687_v40, %v7678_v34 }
  0xe0   :  { %525 = vst.msk [vmem:[#allocation2] sm:$0xff] %vm524_vm4, %v504_v2  ;;  %v487_v10 = vsel %vm447_vm5, %v361_v60, %v467_v3  ;;  %v371_v11 = vadd.f32 %v6383_v6, %v7693_v44  ;;  %v365_v12 = vpop.f32.mrb[5].mxu0 }
  0xe1   :  { %v507_v13 = vadd.f32 %v487_v10, %v209_v62  ;;  %v486_v14 = vsel %vm446_vm6, %v356_v1, %v466_v5  ;;  %v366_v15 = vadd.f32 %v7693_v44, %v365_v12  ;;  %v189_v62 = vmul.f32 %v7687_v40, %v7674_v32 }
  0xe2   :  { %v506_v16 = vadd.f32 %v486_v14, %v208_v8  ;;  %vm449_vm7 = vcmp.gt.f32.partialorder %v371_v11, 0.0  ;;  %v469_v17 = vmul.f32 0.01, %v371_v11  ;;  %v191_v32 = vmul.f32 %v7687_v40, %v7676_v33 }
  0xe3   :  { %528 = vst.msk [vmem:[#allocation2 + $0x18] sm:$0xff] %vm524_vm4, %v507_v13  ;;  %vm448_vm8 = vcmp.gt.f32.partialorder %v366_v15, 0.0  ;;  %v468_v20 = vmul.f32 0.01, %v366_v15  ;;  %v6386_v21 = vpop.f32.mrb[6].mxu0  ;;  %v217_v8 = vadd.f32 %v7698_v45, %v190_v57  ;;  %v216_v14 = vadd.f32 %v7698_v45, %v189_v62 }
  0xe4   :  { %527 = vst.msk [vmem:[#allocation2 + $0x10] sm:$0xff] %vm524_vm4, %v506_v16  ;;  %v489_v24 = vsel %vm449_vm7, %v371_v11, %v469_v17  ;;  %v381_v25 = vadd.f32 %v6386_v21, %v7693_v44  ;;  %v375_v26 = vpop.f32.mrb[7].mxu0  ;;  %v161_v21 = vpop.permute.xlu0 %160 }
  0xe5   :  { %v509_v27 = vadd.f32 %v489_v24, %v211_v18  ;;  %v488_v28 = vsel %vm448_vm8, %v366_v15, %v468_v20  ;;  %v376_v29 = vadd.f32 %v7693_v44, %v375_v26  ;;  %v218_v20 = vadd.f32 %v7698_v45, %v191_v32 }
  0xe6   :  { %v508_v39 = vadd.f32 %v488_v28, %v210_v22  ;;  %vm451_vm9 = vcmp.gt.f32.partialorder %v381_v25, 0.0  ;;  %v471_v41 = vmul.f32 0.01, %v381_v25  ;;  %v219_v24 = vadd.f32 %v7698_v45, %v192_v9 }
  0xe7   :  { %530 = vst.msk [vmem:[#allocation2 + $0x28] sm:$0xff] %vm524_vm4, %v509_v27  ;;  %vm450_vm10 = vcmp.gt.f32.partialorder %v376_v29, 0.0  ;;  %v470_v43 = vmul.f32 0.01, %v376_v29  ;;  %v6389_v46 = vpop.f32.mrb[8].mxu0  ;;  %v197_v32 = vmul.f32 %v7687_v40, %v7682_v38  ;;  %vm544_vm8 = vcmask 125952  }
  0xe8   :  { %529 = vst.msk [vmem:[#allocation2 + $0x20] sm:$0xff] %vm524_vm4, %v508_v39  ;;  %v491_v48 = vsel %vm451_vm9, %v381_v25, %v471_v41  ;;  %v391_v31 = vadd.f32 %v6389_v46, %v7693_v44  ;;  %v385_v49 = vpop.f32.mrb[9].mxu0  ;;  %v194_v25 = vmul.f32 %v7687_v40, %v151_v63  ;;  %v195_v46 = vmul.f32 %v7687_v40, %v7680_v36 }
  0xe9   :  { %v511_v50 = vadd.f32 %v491_v48, %v213_v42  ;;  %v490_v51 = vsel %vm450_vm10, %v376_v29, %v470_v43  ;;  %v386_v52 = vadd.f32 %v7693_v44, %v385_v49  ;;  %vm683_vm9 = vcmask 261120  }
  0xea   :  { %v510_v53 = vadd.f32 %v490_v51, %v212_v47  ;;  %vm453_vm11 = vcmp.gt.f32.partialorder %v391_v31, 0.0  ;;  %v473_v55 = vmul.f32 0.01, %v391_v31  ;;  %v221_v48 = vadd.f32 %v7698_v45, %v194_v25  ;;  %v547_v25 = vld [vmem:[#allocation2 + $0x8] sm:$0xff] }
  0xeb   :  { %v564_v58 = vld [vmem:[#allocation2 + $0xc] sm:$0xff]  ;;  %v7738_v59 = vld [vmem:[#allocation2 + $0x14] sm:$0xff]  ;;  %532 = vst.msk [vmem:[#allocation2 + $0x38] sm:$0xff] %vm524_vm4, %v511_v50  ;;  %vm452_vm12 = vcmp.gt.f32.partialorder %v386_v52, 0.0  ;;  %v472_v60 = vmul.f32 0.01, %v386_v52 }
  0xec   :  { %v6392_v61 = vpop.f32.mrb[10].mxu0  ;;  %531 = vst.msk [vmem:[#allocation2 + $0x30] sm:$0xff] %vm524_vm4, %v510_v53  ;;  %v493_v0 = vsel %vm453_vm11, %v391_v31, %v473_v55  ;;  %602 = vrot.lane.b32.xlu1 %v7738_v59, %s7489_s1  ;;  %600 = vrot.lane.b32.xlu0 %v564_v58, %s7489_s1  ;;  %v196_v31 = vmul.f32 %v7687_v40, %v161_v21  ;;  %v171_v53 = vpop.permute.xlu0 %170  ;;  %vm7493_vm10 = vmmov 0   ;;  %vm3069_vm11 = vcmask 257024  }
  0xed   :  { %v401_v1 = vadd.f32 %v6392_v61, %v7693_v44  ;;  %v395_v2 = vpop.f32.mrb[11].mxu0  ;;  %v513_v3 = vadd.f32 %v493_v0, %v215_v56  ;;  %v492_v4 = vsel %vm452_vm12, %v386_v52, %v472_v60  ;;  %v222_v61 = vadd.f32 %v7698_v45, %v195_v46 }
  0xee   :  { %v396_v5 = vadd.f32 %v7693_v44, %v395_v2  ;;  %v512_v6 = vadd.f32 %v492_v4, %v214_v54  ;;  %v220_v54 = vadd.f32 %v7698_v45, %v193_v35  ;;  %v223_v0 = vadd.f32 %v7698_v45, %v196_v31  ;;  %v551_v46 = vld [vmem:[#allocation2 + $0x28] sm:$0xff] }
  0xef   :  { %vm455_vm13 = vcmp.gt.f32.partialorder %v401_v1, 0.0  ;;  %v475_v7 = vmul.f32 0.01, %v401_v1  ;;  %v7753_v10 = vld [vmem:[#allocation2 + $0x1c] sm:$0xff]  ;;  %v567_v11 = vld [vmem:[#allocation2 + $0x24] sm:$0xff]  ;;  %534 = vst.msk [vmem:[#allocation2 + $0x48] sm:$0xff] %vm524_vm4, %v513_v3 }
  0xf0   :  { %vm454_vm14 = vcmp.gt.f32.partialorder %v396_v5, 0.0  ;;  %v474_v12 = vmul.f32 0.01, %v396_v5  ;;  %v6395_v13 = vpop.f32.mrb[12].mxu0  ;;  %533 = vst.msk [vmem:[#allocation2 + $0x40] sm:$0xff] %vm524_vm4, %v512_v6  ;;  %606 = vrot.lane.b32.xlu1 %v567_v11, %s7489_s1  ;;  %604 = vrot.lane.b32.xlu0 %v7753_v10, %s7489_s1  ;;  %vm5760_vm12 = vcmask 3072  }
  0xf1   :  { %v495_v33 = vsel %vm455_vm13, %v401_v1, %v475_v7  ;;  %v411_v15 = vadd.f32 %v6395_v13, %v7693_v44  ;;  %v405_v16 = vpop.f32.mrb[13].mxu0  ;;  %v198_v1 = vmul.f32 %v7687_v40, %v171_v53  ;;  %vm5758_vm13 = vcmask 7168  }
  0xf2   :  { %v515_v17 = vadd.f32 %v495_v33, %v217_v8  ;;  %v494_v18 = vsel %vm454_vm14, %v396_v5, %v474_v12  ;;  %v406_v19 = vadd.f32 %v7693_v44, %v405_v16  ;;  %v224_v16 = vadd.f32 %v7698_v45, %v197_v32 }
  0xf3   :  { %v514_v22 = vadd.f32 %v494_v18, %v216_v14  ;;  %vm457_vm15 = vcmp.gt.f32.partialorder %v411_v15, 0.0  ;;  %v477_v23 = vmul.f32 0.01, %v411_v15  ;;  %v568_v26 = vld [vmem:[#allocation2 + $0x2c] sm:$0xff]  ;;  %v6398_v28 = vpop.f32.mrb[14].mxu0  ;;  %v569_v29 = vld [vmem:[#allocation2 + $0x34] sm:$0xff]  ;;  %v225_v38 = vadd.f32 %v7698_v45, %v198_v1 }
  0xf4   :  { %536 = vst.msk [vmem:[#allocation2 + $0x58] sm:$0xff] %vm524_vm4, %v515_v17  ;;  %vm456_vm0 = vcmp.gt.f32.partialorder %v406_v19, 0.0  ;;  %v476_v27 = vmul.f32 0.01, %v406_v19  ;;  %v421_v39 = vadd.f32 %v6398_v28, %v7693_v44  ;;  %v415_v41 = vpop.f32.mrb[15].mxu0  ;;  %610 = vrot.lane.b32.xlu1 %v569_v29, %s7489_s1  ;;  %608 = vrot.lane.b32.xlu0 %v568_v26, %s7489_s1  ;;  %v546_v28 = vld [vmem:[#allocation2] sm:$0xff] }
  0xf5   :  { %535 = vst.msk [vmem:[#allocation2 + $0x50] sm:$0xff] %vm524_vm4, %v514_v22  ;;  %v497_v37 = vsel %vm457_vm15, %v411_v15, %v477_v23  ;;  %v416_v43 = vadd.f32 %v7693_v44, %v415_v41 }
  0xf6   :  { %v517_v42 = vadd.f32 %v497_v37, %v219_v24  ;;  %v496_v30 = vsel %vm456_vm0, %v406_v19, %v476_v27  ;;  %vm459_vm1 = vcmp.gt.f32.partialorder %v421_v39, 0.0  ;;  %v479_v34 = vmul.f32 0.01, %v421_v39  ;;  %v549_v37 = vld [vmem:[#allocation2 + $0x18] sm:$0xff] }
  0xf7   :  { %v516_v47 = vadd.f32 %v496_v30, %v218_v20  ;;  %vm458_vm2 = vcmp.gt.f32.partialorder %v416_v43, 0.0  ;;  %v478_v49 = vmul.f32 0.01, %v416_v43  ;;  %v6401_v50 = vpop.f32.mrb[16].mxu0  ;;  %v571_v51 = vld [vmem:[#allocation2 + $0x44] sm:$0xff]  ;;  %v570_v52 = vld [vmem:[#allocation2 + $0x3c] sm:$0xff] }
  0xf8   :  { %538 = vst.msk [vmem:[#allocation2 + $0x68] sm:$0xff] %vm524_vm4, %v517_v42  ;;  %v499_v36 = vsel %vm459_vm1, %v421_v39, %v479_v34  ;;  %v431_v55 = vadd.f32 %v6401_v50, %v7693_v44  ;;  %v425_v56 = vpop.f32.mrb[17].mxu0  ;;  %614 = vrot.lane.b32.xlu1 %v571_v51, %s7489_s1  ;;  %612 = vrot.lane.b32.xlu0 %v570_v52, %s7489_s1  ;;  %v548_v42 = vld [vmem:[#allocation2 + $0x10] sm:$0xff]  ;;  %v550_v34 = vld [vmem:[#allocation2 + $0x20] sm:$0xff]  ;;  %v553_v50 = vld [vmem:[#allocation2 + $0x38] sm:$0xff] }
  0xf9   :  { %537 = vst.msk [vmem:[#allocation2 + $0x60] sm:$0xff] %vm524_vm4, %v516_v47  ;;  %v519_v57 = vadd.f32 %v499_v36, %v221_v48  ;;  %v498_v58 = vsel %vm458_vm2, %v416_v43, %v478_v49  ;;  %v426_v60 = vadd.f32 %v7693_v44, %v425_v56  ;;  %v552_v52 = vld [vmem:[#allocation2 + $0x30] sm:$0xff] }
  0xfa   :  { %v518_v62 = vadd.f32 %v498_v58, %v220_v54  ;;  %vm461_vm3 = vcmp.gt.f32.partialorder %v431_v55, 0.0  ;;  %v481_v63 = vmul.f32 0.01, %v431_v55 }
  0xfb   :  { %540 = vst.msk [vmem:[#allocation2 + $0x78] sm:$0xff] %vm524_vm4, %v519_v57  ;;  %vm460_vm5 = vcmp.gt.f32.partialorder %v426_v60, 0.0  ;;  %v480_v2 = vmul.f32 0.01, %v426_v60  ;;  %v6404_v3 = vpop.f32.mrb[18].mxu0  ;;  %v554_v57 = vld [vmem:[#allocation2 + $0x40] sm:$0xff] }
  0xfc   :  { %v7789_v4 = vld [vmem:[#allocation2 + $0x54] sm:$0xff]  ;;  %v572_v5 = vld [vmem:[#allocation2 + $0x4c] sm:$0xff]  ;;  %539 = vst.msk [vmem:[#allocation2 + $0x70] sm:$0xff] %vm524_vm4, %v518_v62  ;;  %v501_v6 = vsel %vm461_vm3, %v431_v55, %v481_v63  ;;  %v441_v7 = vadd.f32 %v6404_v3, %v7693_v44  ;;  %v435_v8 = vpop.f32.mrb[19].mxu0 }
  0xfd   :  { %618 = vrot.lane.b32.xlu1 %v7789_v4, %s7489_s1  ;;  %616 = vrot.lane.b32.xlu0 %v572_v5, %s7489_s1  ;;  %v521_v9 = vadd.f32 %v501_v6, %v223_v0  ;;  %v500_v11 = vsel %vm460_vm5, %v426_v60, %v480_v2  ;;  %v436_v12 = vadd.f32 %v7693_v44, %v435_v8  ;;  %v555_v55 = vld [vmem:[#allocation2 + $0x48] sm:$0xff]  ;;  %v557_v62 = vld [vmem:[#allocation2 + $0x58] sm:$0xff]  ;;  %v556_v0 = vld [vmem:[#allocation2 + $0x50] sm:$0xff] }
  0xfe   :  { %v520_v13 = vadd.f32 %v500_v11, %v222_v61  ;;  %vm463_vm6 = vcmp.gt.f32.partialorder %v441_v7, 0.0  ;;  %v483_v14 = vmul.f32 0.01, %v441_v7 }
  0xff   :  { %542 = vst.msk [vmem:[#allocation2 + $0x88] sm:$0xff] %vm524_vm4, %v521_v9  ;;  %vm462_vm7 = vcmp.gt.f32.partialorder %v436_v12, 0.0  ;;  %v482_v40 = vmul.f32 0.01, %v436_v12  ;;  %v559_v5 = vld [vmem:[#allocation2 + $0x68] sm:$0xff] }
 0x100   :  { %v7801_v33 = vld [vmem:[#allocation2 + $0x64] sm:$0xff]  ;;  %v7803_v15 = vld [vmem:[#allocation2 + $0x5c] sm:$0xff]  ;;  %541 = vst.msk [vmem:[#allocation2 + $0x80] sm:$0xff] %vm524_vm4, %v520_v13  ;;  %v503_v17 = vsel %vm463_vm6, %v441_v7, %v483_v14 }
 0x101   :  { %622 = vrot.lane.b32.xlu1 %v7801_v33, %s7489_s1  ;;  %620 = vrot.lane.b32.xlu0 %v7803_v15, %s7489_s1  ;;  %v523_v44 = vadd.f32 %v503_v17, %v225_v38  ;;  %v502_v18 = vsel %vm462_vm7, %v436_v12, %v482_v40  ;;  %v558_v6 = vld [vmem:[#allocation2 + $0x60] sm:$0xff] }
 0x102   :  { %v522_v19 = vadd.f32 %v502_v18, %v224_v16  ;;  %v561_v11 = vld [vmem:[#allocation2 + $0x78] sm:$0xff] }
 0x103   :  { %545 = vst.msk [vmem:[#allocation2 + $0x98] sm:$0xf] %vm544_vm8, %v523_v44  ;;  %v7812_v20 = vld [vmem:[#allocation2 + $0x74] sm:$0xff]  ;;  %v7814_v21 = vld [vmem:[#allocation2 + $0x6c] sm:$0xff] }
 0x104   :  { %543 = vst.msk [vmem:[#allocation2 + $0x90] sm:$0xff] %vm524_vm4, %v522_v19  ;;  %v560_v13 = vld [vmem:[#allocation2 + $0x70] sm:$0xff] }
 0x105   :  { %626 = vrot.lane.b32.xlu1 %v7812_v20, %s7489_s1  ;;  %624 = vrot.lane.b32.xlu0 %v7814_v21, %s7489_s1 }
 0x106   :  { %v563_v16 = vld [vmem:[#allocation2 + $0x88] sm:$0xff] }
 0x107   :  { %v579_v45 = vld [vmem:[#allocation2 + $0x84] sm:$0xff]  ;;  %v578_v22 = vld [vmem:[#allocation2 + $0x7c] sm:$0xff] }
 0x108   :  { %v562_v44 = vld [vmem:[#allocation2 + $0x80] sm:$0xff] }
 0x109   :  { %630 = vrot.lane.b32.xlu1 %v579_v45, %s7489_s1  ;;  %628 = vrot.lane.b32.xlu0 %v578_v22, %s7489_s1  ;;  %v1109_v22 = vld [vmem:[%s10003_s7] sm:$0xff] }
 0x10b   :  { %v581_v23 = vld [vmem:[#allocation2 + $0x94] sm:$0xff]  ;;  %v580_v24 = vld [vmem:[#allocation2 + $0x8c] sm:$0xff] }
 0x10d   :  { %634 = vrot.lane.b32.xlu1 %v581_v23, %s7489_s1  ;;  %632 = vrot.lane.b32.xlu0 %v580_v24, %s7489_s1  ;;  %v1110_v23 = vld [vmem:[%s10003_s7 + $0x8] sm:$0xff] }
 0x10e   :  { %v6887_v24 = vpack.c.bf16 %v1110_v23, %v1109_v22 }
 0x110   :  { %6888 = vmatprep.subr.bf16.mxu0 %v6887_v24 }
 0x111   :  { %6890 = vmatpush3.bf16.msra.mxu0 %v6887_v24 }
 0x15e   :  { %v603_v26 = vpop.permute.xlu1 %602  ;;  %v601_v27 = vpop.permute.xlu0 %600 }
 0x15f   :  { %v655_v29 = vsel %vm524_vm4, %v547_v25, %v603_v26  ;;  %v654_v35 = vsel %vm524_vm4, %v546_v28, %v601_v27  ;;  %v7870_v25 = vld [vmem:[%s10004_s6] ss:$0 sm:$0xff] }
 0x160   :  { %6413 = vmatprep.mubr.msk.f32.mxu1 %vm683_vm9, %v654_v35 }
 0x161   :  { %6414 = vmatmul.mubr.msk.f32.vlgmr.msra.gmra.mrb[0].mxu1 %vm683_vm9, %v655_v29 }
 0x162   :  { %v607_v39 = vpop.permute.xlu1 %606  ;;  %v605_v41 = vpop.permute.xlu0 %604 }
 0x163   :  { %v657_v30 = vsel %vm524_vm4, %v549_v37, %v607_v39  ;;  %v656_v43 = vsel %vm524_vm4, %v548_v42, %v605_v41 }
 0x164   :  { %6416 = vmatprep.mubr.msk.f32.mxu1 %vm683_vm9, %v656_v43 }
 0x165   :  { %6417 = vmatmul.mubr.msk.f32.gmra.mrb[2].mxu1 %vm683_vm9, %v657_v30 }
 0x166   :  { %v611_v47 = vpop.permute.xlu1 %610  ;;  %v609_v48 = vpop.permute.xlu0 %608 }
 0x167   :  { %v659_v31 = vsel %vm524_vm4, %v551_v46, %v611_v47  ;;  %v658_v49 = vsel %vm524_vm4, %v550_v34, %v609_v48 }
 0x168   :  { %6419 = vmatprep.mubr.msk.f32.mxu1 %vm683_vm9, %v658_v49 }
 0x169   :  { %6420 = vmatmul.mubr.msk.f32.gmra.mrb[4].mxu1 %vm683_vm9, %v659_v31 }
 0x16a   :  { %v615_v51 = vpop.permute.xlu1 %614  ;;  %v613_v54 = vpop.permute.xlu0 %612 }
 0x16b   :  { %v661_v53 = vsel %vm524_vm4, %v553_v50, %v615_v51  ;;  %v660_v36 = vsel %vm524_vm4, %v552_v52, %v613_v54 }
 0x16c   :  { %6422 = vmatprep.mubr.msk.f32.mxu1 %vm683_vm9, %v660_v36 }
 0x16d   :  { %6423 = vmatmul.mubr.msk.f32.gmra.mrb[6].mxu1 %vm683_vm9, %v661_v53 }
 0x16f   :  { %v619_v56 = vpop.permute.xlu1 %618  ;;  %v617_v58 = vpop.permute.xlu0 %616 }
 0x170   :  { %v663_v60 = vsel %vm524_vm4, %v555_v55, %v619_v56  ;;  %v662_v61 = vsel %vm524_vm4, %v554_v57, %v617_v58 }
 0x171   :  { %6425 = vmatprep.mubr.msk.f32.mxu1 %vm683_vm9, %v662_v61 }
 0x172   :  { %6426 = vmatmul.mubr.msk.f32.gmra.mrb[8].mxu1 %vm683_vm9, %v663_v60 }
 0x173   :  { %v623_v63 = vpop.permute.xlu1 %622  ;;  %v621_v1 = vpop.permute.xlu0 %620 }
 0x174   :  { %v665_v2 = vsel %vm524_vm4, %v557_v62, %v623_v63  ;;  %v664_v3 = vsel %vm524_vm4, %v556_v0, %v621_v1 }
 0x175   :  { %6428 = vmatprep.mubr.msk.f32.mxu1 %vm683_vm9, %v664_v3 }
 0x176   :  { %6429 = vmatmul.mubr.msk.f32.gmra.mrb[10].mxu1 %vm683_vm9, %v665_v2 }
 0x177   :  { %v627_v32 = vpop.permute.xlu1 %626  ;;  %v625_v7 = vpop.permute.xlu0 %624 }
 0x178   :  { %v667_v8 = vsel %vm524_vm4, %v559_v5, %v627_v32  ;;  %v666_v9 = vsel %vm524_vm4, %v558_v6, %v625_v7 }
 0x179   :  { %6431 = vmatprep.mubr.msk.f32.mxu1 %vm683_vm9, %v666_v9 }
 0x17a   :  { %6432 = vmatmul.mubr.msk.f32.gmra.mrb[12].mxu1 %vm683_vm9, %v667_v8 }
 0x17b   :  { %v631_v12 = vpop.permute.xlu1 %630  ;;  %v629_v14 = vpop.permute.xlu0 %628 }
 0x17c   :  { %v669_v38 = vsel %vm524_vm4, %v561_v11, %v631_v12  ;;  %v668_v40 = vsel %vm524_vm4, %v560_v13, %v629_v14 }
 0x17d   :  { %6434 = vmatprep.mubr.msk.f32.mxu1 %vm683_vm9, %v668_v40 }
 0x17e   :  { %6435 = vmatmul.mubr.msk.f32.gmra.mrb[14].mxu1 %vm683_vm9, %v669_v38 }
 0x17f   :  { %v635_v17 = vpop.permute.xlu1 %634  ;;  %v633_v18 = vpop.permute.xlu0 %632 }
 0x180   :  { %v671_v19 = vsel %vm524_vm4, %v563_v16, %v635_v17  ;;  %v670_v45 = vsel %vm524_vm4, %v562_v44, %v633_v18 }
 0x181   :  { %6437 = vmatprep.mubr.msk.f32.mxu1 %vm683_vm9, %v670_v45 }
 0x182   :  { %6438 = vmatmul.mubr.msk.f32.gmra.mrb[16].mxu1 %vm683_vm9, %v671_v19 }
 0x234   :  { %v6415_v26 = vpop.f32.mrb[0].mxu1 }
 0x235   :  { %v7873_v27 = vadd.f32 %v6415_v26, %v7870_v25  ;;  %v804_v28 = vpop.f32.mrb[1].mxu1 }
 0x236   :  { %v7876_v29 = vadd.f32 %v7870_v25, %v804_v28 }
 0x237   :  { %v5810_v35 = vmul.f32 -1.442695, %v7873_v27 }
 0x238   :  { %v5809_v37 = vmul.f32 -1.442695, %v7876_v29  ;;  %v6418_v39 = vpop.f32.mrb[2].mxu1 }
 0x239   :  { %6984 = vpow2.f32 %v5810_v35  ;;  %v7881_v41 = vadd.f32 %v6418_v39, %v7870_v25  ;;  %v814_v42 = vpop.f32.mrb[3].mxu1 }
 0x23a   :  { %6986 = vpow2.f32 %v5809_v37  ;;  %v7884_v30 = vadd.f32 %v7870_v25, %v814_v42 }
 0x23b   :  { %v5812_v43 = vmul.f32 -1.442695, %v7881_v41 }
 0x23c   :  { %v5811_v46 = vmul.f32 -1.442695, %v7884_v30  ;;  %v6421_v47 = vpop.f32.mrb[4].mxu1 }
 0x23d   :  { %6988 = vpow2.f32 %v5812_v43  ;;  %v7889_v34 = vadd.f32 %v6421_v47, %v7870_v25  ;;  %v824_v48 = vpop.f32.mrb[5].mxu1 }
 0x23e   :  { %6990 = vpow2.f32 %v5811_v46  ;;  %v7892_v31 = vadd.f32 %v7870_v25, %v824_v48 }
 0x23f   :  { %v5814_v49 = vmul.f32 -1.442695, %v7889_v34 }
 0x240   :  { %v5813_v50 = vmul.f32 -1.442695, %v7892_v31  ;;  %v6424_v51 = vpop.f32.mrb[6].mxu1 }
 0x241   :  { %6992 = vpow2.f32 %v5814_v49  ;;  %v7897_v52 = vadd.f32 %v6424_v51, %v7870_v25  ;;  %v834_v54 = vpop.f32.mrb[7].mxu1 }
 0x242   :  { %6994 = vpow2.f32 %v5813_v50  ;;  %v7900_v53 = vadd.f32 %v7870_v25, %v834_v54 }
 0x243   :  { %v6985_v36 = vpop.eup %6984  ;;  %v5816_v55 = vmul.f32 -1.442695, %v7897_v52 }
 0x244   :  { %v6987_v56 = vpop.eup %6986  ;;  %v966_v57 = vadd.f32 1.0, %v6985_v36  ;;  %v5815_v58 = vmul.f32 -1.442695, %v7900_v53 }
 0x245   :  { %v6427_v60 = vpop.f32.mrb[8].mxu1  ;;  %v965_v61 = vadd.f32 1.0, %v6987_v56  ;;  %6996 = vpow2.f32 %v5816_v55 }
 0x246   :  { %v7905_v62 = vadd.f32 %v6427_v60, %v7870_v25  ;;  %v844_v63 = vpop.f32.mrb[9].mxu1  ;;  %6998 = vrcp.f32 %v966_v57 }
 0x247   :  { %v6989_v0 = vpop.eup %6988  ;;  %7000 = vrcp.f32 %v965_v61  ;;  %v7909_v5 = vadd.f32 %v7870_v25, %v844_v63 }
 0x248   :  { %v6991_v1 = vpop.eup %6990  ;;  %v968_v2 = vadd.f32 1.0, %v6989_v0  ;;  %7002 = vpow2.f32 %v5815_v58  ;;  %v5818_v3 = vmul.f32 -1.442695, %v7905_v62 }
 0x249   :  { %v6430_v32 = vpop.f32.mrb[10].mxu1  ;;  %v967_v6 = vadd.f32 1.0, %v6991_v1  ;;  %v5817_v13 = vmul.f32 -1.442695, %v7909_v5 }
 0x24a   :  { %v854_v7 = vpop.f32.mrb[11].mxu1  ;;  %7004 = vrcp.f32 %v968_v2  ;;  %v7912_v9 = vadd.f32 %v6430_v32, %v7870_v25 }
 0x24b   :  { %v6993_v8 = vpop.eup %6992  ;;  %7006 = vrcp.f32 %v967_v6  ;;  %v7916_v16 = vadd.f32 %v7870_v25, %v854_v7 }
 0x24c   :  { %v6995_v11 = vpop.eup %6994  ;;  %v970_v12 = vadd.f32 1.0, %v6993_v8  ;;  %7008 = vpow2.f32 %v5818_v3  ;;  %v5820_v44 = vmul.f32 -1.442695, %v7912_v9 }
 0x24d   :  { %v6433_v14 = vpop.f32.mrb[12].mxu1  ;;  %v969_v38 = vadd.f32 1.0, %v6995_v11  ;;  %v5819_v28 = vmul.f32 -1.442695, %v7916_v16 }
 0x24e   :  { %v864_v40 = vpop.f32.mrb[13].mxu1  ;;  %7010 = vrcp.f32 %v970_v12  ;;  %v7920_v45 = vadd.f32 %v6433_v14, %v7870_v25 }
 0x24f   :  { %v6997_v17 = vpop.eup %6996  ;;  %7012 = vrcp.f32 %v969_v38  ;;  %v7926_v37 = vadd.f32 %v7870_v25, %v864_v40 }
 0x250   :  { %v6999_v18 = vpop.eup %6998  ;;  %v972_v19 = vadd.f32 1.0, %v6997_v17  ;;  %7014 = vpow2.f32 %v5817_v13  ;;  %v5822_v42 = vmul.f32 -1.442695, %v7920_v45 }
 0x251   :  { %v6436_v22 = vpop.f32.mrb[14].mxu1  ;;  %v7001_v23 = vpop.eup %7000  ;;  %1039 = vrot.lane.b32.xlu1 %v6999_v18, %s7490_s28  ;;  %v5821_v51 = vmul.f32 -1.442695, %v7926_v37 }
 0x252   :  { %v874_v24 = vpop.f32.mrb[15].mxu1  ;;  %v7003_v26 = vpop.eup %7002  ;;  %7016 = vrcp.f32 %v972_v19  ;;  %1037 = vrot.lane.b32.xlu0 %v7001_v23, %s7490_s28  ;;  %v7931_v49 = vadd.f32 %v6436_v22, %v7870_v25 }
 0x253   :  { %v971_v35 = vadd.f32 1.0, %v7003_v26  ;;  %7018 = vpow2.f32 %v5820_v44  ;;  %v7936_v55 = vadd.f32 %v7870_v25, %v874_v24 }
 0x254   :  { %v7005_v39 = vpop.eup %7004  ;;  %v5824_v57 = vmul.f32 -1.442695, %v7931_v49 }
 0x255   :  { %v6439_v43 = vpop.f32.mrb[16].mxu1  ;;  %v7007_v46 = vpop.eup %7006  ;;  %7020 = vrcp.f32 %v971_v35  ;;  %1043 = vrot.lane.b32.xlu1 %v7005_v39, %s7490_s28  ;;  %v5823_v0 = vmul.f32 -1.442695, %v7936_v55 }
 0x256   :  { %v884_v47 = vpop.f32.mrb[17].mxu1  ;;  %v7009_v48 = vpop.eup %7008  ;;  %7022 = vpow2.f32 %v5819_v28  ;;  %1041 = vrot.lane.b32.xlu0 %v7007_v46, %s7490_s28  ;;  %v7942_v61 = vadd.f32 %v6439_v43, %v7870_v25 }
 0x257   :  { %v974_v50 = vadd.f32 1.0, %v7009_v48  ;;  %7024 = vpow2.f32 %v5822_v42  ;;  %v7947_v3 = vadd.f32 %v7870_v25, %v884_v47 }
 0x258   :  { %v7011_v54 = vpop.eup %7010  ;;  %v5826_v6 = vmul.f32 -1.442695, %v7942_v61 }
 0x259   :  { %v7013_v36 = vpop.eup %7012  ;;  %7026 = vrcp.f32 %v974_v50  ;;  %1047 = vrot.lane.b32.xlu1 %v7011_v54, %s7490_s28  ;;  %v5825_v13 = vmul.f32 -1.442695, %v7947_v3 }
 0x25a   :  { %v7015_v56 = vpop.eup %7014  ;;  %1045 = vrot.lane.b32.xlu0 %v7013_v36, %s7490_s28  ;;  %7028 = vpow2.f32 %v5821_v51 }
 0x25b   :  { %v973_v58 = vadd.f32 1.0, %v7015_v56 }
 0x25c   :  { %v7017_v60 = vpop.eup %7016 }
 0x25d   :  { %v7019_v63 = vpop.eup %7018  ;;  %7030 = vrcp.f32 %v973_v58  ;;  %1051 = vrot.lane.b32.xlu1 %v7017_v60, %s7490_s28 }
 0x25e   :  { %v976_v1 = vadd.f32 1.0, %v7019_v63  ;;  %7032 = vpow2.f32 %v5824_v57 }
 0x25f   :  { %v7021_v2 = vpop.eup %7020 }
 0x260   :  { %v7023_v32 = vpop.eup %7022  ;;  %7034 = vrcp.f32 %v976_v1  ;;  %1049 = vrot.lane.b32.xlu0 %v7021_v2, %s7490_s28 }
 0x261   :  { %v975_v7 = vadd.f32 1.0, %v7023_v32  ;;  %7036 = vpow2.f32 %v5823_v0  ;;  %v7025_v8 = vpop.eup %7024 }
 0x262   :  { %v978_v12 = vadd.f32 1.0, %v7025_v8 }
 0x263   :  { %v7027_v11 = vpop.eup %7026  ;;  %7038 = vrcp.f32 %v975_v7 }
 0x264   :  { %7040 = vpow2.f32 %v5826_v6  ;;  %1055 = vrot.lane.b32.xlu1 %v7027_v11, %s7490_s28  ;;  %v7029_v14 = vpop.eup %7028 }
 0x265   :  { %7042 = vrcp.f32 %v978_v12  ;;  %v977_v25 = vadd.f32 1.0, %v7029_v14 }
 0x266   :  { %7044 = vpow2.f32 %v5825_v13 }
 0x267   :  { %v7031_v38 = vpop.eup %7030  ;;  %7046 = vrcp.f32 %v977_v25 }
 0x268   :  { %v7033_v40 = vpop.eup %7032  ;;  %1053 = vrot.lane.b32.xlu0 %v7031_v38, %s7490_s28 }
 0x269   :  { %v980_v17 = vadd.f32 1.0, %v7033_v40 }
 0x26a   :  { %v7035_v44 = vpop.eup %7034 }
 0x26b   :  { %v7037_v18 = vpop.eup %7036  ;;  %7048 = vrcp.f32 %v980_v17  ;;  %1059 = vrot.lane.b32.xlu1 %v7035_v44, %s7490_s28 }
 0x26c   :  { %v979_v19 = vadd.f32 1.0, %v7037_v18 }
 0x26d   :  { %v7039_v22 = vpop.eup %7038 }
 0x26e   :  { %v7041_v23 = vpop.eup %7040  ;;  %7050 = vrcp.f32 %v979_v19  ;;  %1057 = vrot.lane.b32.xlu0 %v7039_v22, %s7490_s28 }
 0x26f   :  { %v7043_v24 = vpop.eup %7042  ;;  %v982_v26 = vadd.f32 1.0, %v7041_v23 }
 0x270   :  { %1063 = vrot.lane.b32.xlu1 %v7043_v24, %s7490_s28  ;;  %v7045_v28 = vpop.eup %7044 }
 0x271   :  { %7052 = vrcp.f32 %v982_v26  ;;  %v7047_v35 = vpop.eup %7046  ;;  %v981_v39 = vadd.f32 1.0, %v7045_v28 }
 0x272   :  { %1061 = vrot.lane.b32.xlu0 %v7047_v35, %s7490_s28 }
 0x273   :  { %7054 = vrcp.f32 %v981_v39 }
 0x274   :  { %7056 = vtanh.f32 %v7876_v29 }
 0x275   :  { %v7049_v42 = vpop.eup %7048  ;;  %7058 = vtanh.f32 %v7873_v27 }
 0x276   :  { %1067 = vrot.lane.b32.xlu1 %v7049_v42, %s7490_s28  ;;  %7060 = vtanh.f32 %v7884_v30 }
 0x277   :  { %7062 = vtanh.f32 %v7881_v41 }
 0x278   :  { %v7051_v43 = vpop.eup %7050  ;;  %7064 = vtanh.f32 %v7892_v31 }
 0x279   :  { %1065 = vrot.lane.b32.xlu0 %v7051_v43, %s7490_s28  ;;  %7066 = vtanh.f32 %v7889_v34  ;;  %v8055_v43 = vld [vmem:[%s10005_s8] ss:$0 sm:$0xff] }
 0x27a   :  { %7068 = vtanh.f32 %v7900_v53 }
 0x27b   :  { %v7053_v46 = vpop.eup %7052  ;;  %7070 = vtanh.f32 %v7897_v52 }
 0x27c   :  { %1071 = vrot.lane.b32.xlu1 %v7053_v46, %s7490_s28  ;;  %7072 = vtanh.f32 %v7909_v5 }
 0x27d   :  { %v7055_v47 = vpop.eup %7054  ;;  %7074 = vtanh.f32 %v7905_v62 }
 0x27e   :  { %1069 = vrot.lane.b32.xlu0 %v7055_v47, %s7490_s28  ;;  %v7057_v50 = vpop.eup %7056  ;;  %7076 = vtanh.f32 %v7916_v16 }
 0x27f   :  { %v7059_v54 = vpop.eup %7058  ;;  %7078 = vtanh.f32 %v7912_v9 }
 0x280   :  { %v7061_v27 = vpop.eup %7060  ;;  %7080 = vtanh.f32 %v7926_v37 }
 0x281   :  { %v7063_v41 = vpop.eup %7062  ;;  %7082 = vtanh.f32 %v7920_v45 }
 0x282   :  { %v7065_v58 = vpop.eup %7064  ;;  %7084 = vtanh.f32 %v7936_v55 }
 0x283   :  { %v7067_v53 = vpop.eup %7066  ;;  %7086 = vtanh.f32 %v7931_v49 }
 0x284   :  { %v7069_v1 = vpop.eup %7068  ;;  %7088 = vtanh.f32 %v7947_v3 }
 0x285   :  { %v7071_v32 = vpop.eup %7070  ;;  %7090 = vtanh.f32 %v7942_v61 }
 0x286   :  { %v7073_v62 = vpop.eup %7072 }
 0x287   :  { %v7075_v11 = vpop.eup %7074 }
 0x288   :  { %v7077_v9 = vpop.eup %7076 }
 0x289   :  { %v7079_v25 = vpop.eup %7078 }
 0x28a   :  { %v7081_v40 = vpop.eup %7080 }
 0x28b   :  { %v7083_v44 = vpop.eup %7082 }
 0x28c   :  { %v7085_v19 = vpop.eup %7084 }
 0x28d   :  { %v7087_v23 = vpop.eup %7086 }
 0x28e   :  { %v7089_v3 = vpop.eup %7088 }
 0x28f   :  { %v7091_v35 = vpop.eup %7090 }
 0x2c3   :  { %v1040_v48 = vpop.permute.xlu1 %1039 }
 0x2c4   :  { %v1038_v51 = vpop.permute.xlu0 %1037  ;;  %v7970_v56 = vmul.f32 %v7059_v54, %v1040_v48 }
 0x2c5   :  { %v7968_v36 = vmul.f32 %v7057_v50, %v1038_v51 }
 0x2c7   :  { %v1044_v57 = vpop.permute.xlu1 %1043  ;;  %6444 = vmatprep.mubr.msk.f32.mxu0 %vm524_vm4, %v7968_v36 }
 0x2c8   :  { %v1042_v29 = vpop.permute.xlu0 %1041  ;;  %6445 = vmatmul.mubr.msk.f32.vlgmr.msra.gmra.mrb[20].mxu0 %vm524_vm4, %v7970_v56  ;;  %v7980_v34 = vmul.f32 %v7063_v41, %v1044_v57 }
 0x2c9   :  { %v7978_v30 = vmul.f32 %v7061_v27, %v1042_v29 }
 0x2cb   :  { %v1048_v31 = vpop.permute.xlu1 %1047  ;;  %6447 = vmatprep.mubr.msk.f32.mxu0 %vm524_vm4, %v7978_v30 }
 0x2cc   :  { %v1046_v60 = vpop.permute.xlu0 %1045  ;;  %6448 = vmatmul.mubr.msk.f32.gmra.mrb[22].mxu0 %vm524_vm4, %v7980_v34  ;;  %v7988_v0 = vmul.f32 %v7067_v53, %v1048_v31 }
 0x2cd   :  { %v7986_v63 = vmul.f32 %v7065_v58, %v1046_v60 }
 0x2cf   :  { %6450 = vmatprep.mubr.msk.f32.mxu0 %vm524_vm4, %v7986_v63  ;;  %v1052_v52 = vpop.permute.xlu1 %1051 }
 0x2d0   :  { %6451 = vmatmul.mubr.msk.f32.gmra.mrb[24].mxu0 %vm524_vm4, %v7988_v0  ;;  %v7998_v7 = vmul.f32 %v7071_v32, %v1052_v52 }
 0x2d2   :  { %v1050_v2 = vpop.permute.xlu0 %1049 }
 0x2d3   :  { %v7996_v6 = vmul.f32 %v7069_v1, %v1050_v2 }
 0x2d5   :  { %6453 = vmatprep.mubr.msk.f32.mxu0 %vm524_vm4, %v7996_v6 }
 0x2d6   :  { %6454 = vmatmul.mubr.msk.f32.gmra.mrb[26].mxu0 %vm524_vm4, %v7998_v7  ;;  %v1056_v5 = vpop.permute.xlu1 %1055 }
 0x2d7   :  { %v8010_v13 = vmul.f32 %v7075_v11, %v1056_v5 }
 0x2da   :  { %v1054_v8 = vpop.permute.xlu0 %1053 }
 0x2db   :  { %v8007_v12 = vmul.f32 %v7073_v62, %v1054_v8 }
 0x2dd   :  { %6456 = vmatprep.mubr.msk.f32.mxu0 %vm524_vm4, %v8007_v12  ;;  %v1060_v16 = vpop.permute.xlu1 %1059 }
 0x2de   :  { %6457 = vmatmul.mubr.msk.f32.gmra.mrb[28].mxu0 %vm524_vm4, %v8010_v13  ;;  %v8020_v37 = vmul.f32 %v7079_v25, %v1060_v16 }
 0x2e0   :  { %v1058_v14 = vpop.permute.xlu0 %1057 }
 0x2e1   :  { %v8017_v38 = vmul.f32 %v7077_v9, %v1058_v14 }
 0x2e2   :  { %v1064_v45 = vpop.permute.xlu1 %1063 }
 0x2e3   :  { %6459 = vmatprep.mubr.msk.f32.mxu0 %vm524_vm4, %v8017_v38  ;;  %v8029_v55 = vmul.f32 %v7083_v44, %v1064_v45 }
 0x2e4   :  { %6460 = vmatmul.mubr.msk.f32.gmra.mrb[30].mxu0 %vm524_vm4, %v8020_v37  ;;  %v1062_v17 = vpop.permute.xlu0 %1061 }
 0x2e5   :  { %v8026_v18 = vmul.f32 %v7081_v40, %v1062_v17 }
 0x2e7   :  { %6462 = vmatprep.mubr.msk.f32.mxu0 %vm524_vm4, %v8026_v18 }
 0x2e8   :  { %6463 = vmatmul.mubr.msk.f32.gmra.mrb[32].mxu0 %vm524_vm4, %v8029_v55  ;;  %v1068_v49 = vpop.permute.xlu1 %1067 }
 0x2e9   :  { %v8038_v26 = vmul.f32 %v7087_v23, %v1068_v49 }
 0x2eb   :  { %v1066_v22 = vpop.permute.xlu0 %1065 }
 0x2ec   :  { %v8036_v24 = vmul.f32 %v7085_v19, %v1066_v22 }
 0x2ee   :  { %6465 = vmatprep.mubr.msk.f32.mxu0 %vm524_vm4, %v8036_v24  ;;  %v1072_v61 = vpop.permute.xlu1 %1071 }
 0x2ef   :  { %6466 = vmatmul.mubr.msk.f32.gmra.mrb[34].mxu0 %vm524_vm4, %v8038_v26  ;;  %v8046_v42 = vmul.f32 %v7091_v35, %v1072_v61  ;;  %v5849_v35 = vld [vmem:[%s9999_s5 + $0x28] sm:$0xff] }
 0x2f0   :  { %v1070_v28 = vpop.permute.xlu0 %1069 }
 0x2f1   :  { %v8044_v39 = vmul.f32 %v7089_v3, %v1070_v28  ;;  %v5848_v28 = vld [vmem:[%s9999_s5 + $0x20] sm:$0xff] }
 0x2f3   :  { %6468 = vmatprep.mubr.msk.f32.mxu0 %vm524_vm4, %v8044_v39 }
 0x2f4   :  { %6469 = vmatmul.mubr.msk.f32.gmra.mrb[36].mxu0 %vm524_vm4, %v8046_v42 }
 0x39b   :  { %v6446_v46 = vpop.f32.mrb[20].mxu0 }
 0x39c   :  { %v8058_v47 = vadd.f32 %v6446_v46, %v8055_v43  ;;  %v1238_v48 = vpop.f32.mrb[21].mxu0  ;;  %v7492_v46 = vmov 0.0|0.0  }
 0x39d   :  { %v1239_v50 = vadd.f32 %v8055_v43, %v1238_v48  ;;  %6891 = vmatprep.subr.bf16.mxu1 %v7492_v46  ;;  %v5851_v48 = vld [vmem:[%s9999_s5 + $0x38] sm:$0xff]  ;;  %6897 = vmatprep.subr.bf16.mxu0 %v7492_v46 }
 0x39e   :  { %1328 = vst.msk [vmem:[#allocation3 + $0x8] sm:$0xff] %vm683_vm9, %v8058_v47 }
 0x39f   :  { %1327 = vst.msk [vmem:[#allocation3] sm:$0xff] %vm683_vm9, %v1239_v50  ;;  %v6449_v51 = vpop.f32.mrb[22].mxu0 }
 0x3a0   :  { %v1254_v54 = vadd.f32 %v6449_v51, %v8055_v43  ;;  %v1248_v57 = vpop.f32.mrb[23].mxu0 }
 0x3a1   :  { %v8066_v27 = vadd.f32 %v8055_v43, %v1248_v57  ;;  %v8138_v57 = vld [vmem:[%s10006_s9] ss:$0 sm:$0xff] }
 0x3a2   :  { %1330 = vst.msk [vmem:[#allocation3 + $0x18] sm:$0xff] %vm683_vm9, %v1254_v54  ;;  %1369 = vrot.lane.b32.xlu0 %v1254_v54, %s7491_s16 }
 0x3a3   :  { %1329 = vst.msk [vmem:[#allocation3 + $0x10] sm:$0xff] %vm683_vm9, %v8066_v27  ;;  %v6452_v29 = vpop.f32.mrb[24].mxu0 }
 0x3a4   :  { %v1264_v41 = vadd.f32 %v6452_v29, %v8055_v43  ;;  %v1258_v31 = vpop.f32.mrb[25].mxu0 }
 0x3a5   :  { %v1259_v58 = vadd.f32 %v8055_v43, %v1258_v31 }
 0x3a6   :  { %1332 = vst.msk [vmem:[#allocation3 + $0x28] sm:$0xff] %vm683_vm9, %v1264_v41  ;;  %1373 = vrot.lane.b32.xlu0 %v1264_v41, %s7491_s16  ;;  %v8143_v41 = vld [vmem:[%s10007_s10] ss:$0 sm:$0xff] }
 0x3a7   :  { %1331 = vst.msk [vmem:[#allocation3 + $0x20] sm:$0xff] %vm683_vm9, %v1259_v58  ;;  %1371 = vrot.lane.b32.xlu1 %v1259_v58, %s7491_s16 }
 0x3a9   :  { %v6455_v60 = vpop.f32.mrb[26].mxu0 }
 0x3aa   :  { %v1274_v53 = vadd.f32 %v6455_v60, %v8055_v43  ;;  %v1268_v52 = vpop.f32.mrb[27].mxu0 }
 0x3ab   :  { %v1269_v1 = vadd.f32 %v8055_v43, %v1268_v52 }
 0x3ac   :  { %1334 = vst.msk [vmem:[#allocation3 + $0x38] sm:$0xff] %vm683_vm9, %v1274_v53  ;;  %1377 = vrot.lane.b32.xlu0 %v1274_v53, %s7491_s16 }
 0x3ad   :  { %1333 = vst.msk [vmem:[#allocation3 + $0x30] sm:$0xff] %vm683_vm9, %v1269_v1  ;;  %1375 = vrot.lane.b32.xlu1 %v1269_v1, %s7491_s16 }
 0x3b1   :  { %v6458_v2 = vpop.f32.mrb[28].mxu0 }
 0x3b2   :  { %v1284_v32 = vadd.f32 %v6458_v2, %v8055_v43  ;;  %v1278_v5 = vpop.f32.mrb[29].mxu0  ;;  %v7465_v2 = vld [vmem:[#allocation2 + $0x34] sm:$0xff] }
 0x3b3   :  { %v1279_v62 = vadd.f32 %v8055_v43, %v1278_v5  ;;  %v7466_v5 = vld [vmem:[#allocation2 + $0x2c] sm:$0xff] }
 0x3b4   :  { %1336 = vst.msk [vmem:[#allocation3 + $0x48] sm:$0xff] %vm683_vm9, %v1284_v32  ;;  %1381 = vrot.lane.b32.xlu0 %v1284_v32, %s7491_s16 }
 0x3b5   :  { %1335 = vst.msk [vmem:[#allocation3 + $0x40] sm:$0xff] %vm683_vm9, %v1279_v62  ;;  %1379 = vrot.lane.b32.xlu1 %v1279_v62, %s7491_s16 }
 0x3b7   :  { %v6461_v8 = vpop.f32.mrb[30].mxu0 }
 0x3b8   :  { %v1294_v11 = vadd.f32 %v6461_v8, %v8055_v43  ;;  %v1288_v16 = vpop.f32.mrb[31].mxu0 }
 0x3b9   :  { %v1289_v9 = vadd.f32 %v8055_v43, %v1288_v16 }
 0x3ba   :  { %1338 = vst.msk [vmem:[#allocation3 + $0x58] sm:$0xff] %vm683_vm9, %v1294_v11  ;;  %1385 = vrot.lane.b32.xlu0 %v1294_v11, %s7491_s16 }
 0x3bb   :  { %1337 = vst.msk [vmem:[#allocation3 + $0x50] sm:$0xff] %vm683_vm9, %v1289_v9  ;;  %1383 = vrot.lane.b32.xlu1 %v1289_v9, %s7491_s16  ;;  %v6464_v14 = vpop.f32.mrb[32].mxu0 }
 0x3bc   :  { %v1304_v25 = vadd.f32 %v6464_v14, %v8055_v43  ;;  %v1298_v45 = vpop.f32.mrb[33].mxu0 }
 0x3bd   :  { %v1299_v40 = vadd.f32 %v8055_v43, %v1298_v45  ;;  %v7467_v45 = vld [vmem:[#allocation2 + $0x44] sm:$0xff] }
 0x3be   :  { %1340 = vst.msk [vmem:[#allocation3 + $0x68] sm:$0xff] %vm683_vm9, %v1304_v25  ;;  %1389 = vrot.lane.b32.xlu0 %v1304_v25, %s7491_s16 }
 0x3bf   :  { %1339 = vst.msk [vmem:[#allocation3 + $0x60] sm:$0xff] %vm683_vm9, %v1299_v40  ;;  %1387 = vrot.lane.b32.xlu1 %v1299_v40, %s7491_s16 }
 0x3c2   :  { %v6467_v17 = vpop.f32.mrb[34].mxu0 }
 0x3c3   :  { %v1314_v44 = vadd.f32 %v6467_v17, %v8055_v43  ;;  %v1308_v49 = vpop.f32.mrb[35].mxu0  ;;  %v7468_v17 = vld [vmem:[#allocation2 + $0x3c] sm:$0xff] }
 0x3c4   :  { %v1309_v19 = vadd.f32 %v8055_v43, %v1308_v49 }
 0x3c5   :  { %1342 = vst.msk [vmem:[#allocation3 + $0x78] sm:$0xff] %vm683_vm9, %v1314_v44  ;;  %1393 = vrot.lane.b32.xlu0 %v1314_v44, %s7491_s16 }
 0x3c6   :  { %1341 = vst.msk [vmem:[#allocation3 + $0x70] sm:$0xff] %vm683_vm9, %v1309_v19  ;;  %1391 = vrot.lane.b32.xlu1 %v1309_v19, %s7491_s16 }
 0x3c7   :  { %v6470_v22 = vpop.f32.mrb[36].mxu0 }
 0x3c8   :  { %v1324_v23 = vadd.f32 %v6470_v22, %v8055_v43  ;;  %v1318_v61 = vpop.f32.mrb[37].mxu0 }
 0x3c9   :  { %1363 = vrot.lane.b32.xlu0 %v1239_v50, %s7491_s16  ;;  %v1319_v3 = vadd.f32 %v8055_v43, %v1318_v61  ;;  %v5850_v43 = vld [vmem:[%s9999_s5 + $0x30] sm:$0xff] }
 0x3ca   :  { %1344 = vst.msk [vmem:[#allocation3 + $0x88] sm:$0xff] %vm683_vm9, %v1324_v23  ;;  %v6895_v50 = vpack.c.bf16 %v5851_v48, %v5850_v43  ;;  %v7469_v48 = vld [vmem:[#allocation2 + $0x4c] sm:$0xff] }
 0x3cb   :  { %1343 = vst.msk [vmem:[#allocation3 + $0x80] sm:$0xff] %vm683_vm9, %v1319_v3  ;;  %1395 = vrot.lane.b32.xlu1 %v1319_v3, %s7491_s16 }
 0x3cd   :  { %1365 = vrot.lane.b32.xlu0 %v8058_v47, %s7491_s16  ;;  %v6892_v47 = vpack.c.bf16 %v5849_v35, %v5848_v28 }
 0x3cf   :  { %1397 = vrot.lane.b32.xlu1 %v1324_v23, %s7491_s16  ;;  %6893 = vmatpush3.bf16.msra.mxu1 %v6892_v47 }
 0x3d0   :  { %6894 = vmatprep.subr.bf16.mxu1 %v7492_v46 }
 0x3d3   :  { %1367 = vrot.lane.b32.xlu1 %v8066_v27, %s7491_s16  ;;  %6896 = vmatpush3.bf16.msra.mxu1 %v6895_v50  ;;  %v7464_v27 = vld [vmem:[#allocation2 + $0x24] sm:$0xff] }
 0x414   :  { %v1370_v51 = vpop.permute.xlu0 %1369 }
 0x415   :  { %v1420_v54 = vadd.f32 %v1370_v51, %v7980_v34  ;;  %v7494_v34 = vmov 0.0  }
 0x416   :  { %6479 = vmatprep.mubr.msk.f32.mxu1 %vm7493_vm10, %v7494_v34  ;;  %6528 = vmatprep.mubr.msk.f32.mxu0 %vm7493_vm10, %v7494_v34 }
 0x417   :  { %v1438_v29 = vadd.f32 %v7464_v27, %v1420_v54 }
 0x418   :  { %v1374_v31 = vpop.permute.xlu0 %1373 }
 0x419   :  { %v1463_v58 = vmul.f32 %v8138_v57, %v1438_v29  ;;  %v1422_v60 = vadd.f32 %v1374_v31, %v7988_v0  ;;  %v1372_v53 = vpop.permute.xlu1 %1371 }
 0x41a   :  { %v1421_v52 = vadd.f32 %v1372_v53, %v7986_v63 }
 0x41b   :  { %v1488_v1 = vadd.f32 %v8143_v41, %v1463_v58  ;;  %v1440_v32 = vadd.f32 %v7465_v2, %v1422_v60 }
 0x41c   :  { %v1439_v62 = vadd.f32 %v7466_v5, %v1421_v52 }
 0x41d   :  { %1506 = vst.msk [vmem:[#allocation2 + $0x18] sm:$0xff] %vm524_vm4, %v1488_v1  ;;  %v1465_v0 = vmul.f32 %v8138_v57, %v1440_v32 }
 0x41e   :  { %v1464_v8 = vmul.f32 %v8138_v57, %v1439_v62  ;;  %v1378_v11 = vpop.permute.xlu0 %1377 }
 0x41f   :  { %v1490_v16 = vadd.f32 %v8143_v41, %v1465_v0  ;;  %v1424_v9 = vadd.f32 %v1378_v11, %v7998_v7  ;;  %v1376_v14 = vpop.permute.xlu1 %1375 }
 0x420   :  { %v1489_v63 = vadd.f32 %v8143_v41, %v1464_v8  ;;  %v1423_v25 = vadd.f32 %v1376_v14, %v7996_v6 }
 0x421   :  { %1508 = vst.msk [vmem:[#allocation2 + $0x28] sm:$0xff] %vm524_vm4, %v1490_v16  ;;  %v1442_v40 = vadd.f32 %v7467_v45, %v1424_v9 }
 0x422   :  { %1507 = vst.msk [vmem:[#allocation2 + $0x20] sm:$0xff] %vm524_vm4, %v1489_v63  ;;  %v1441_v44 = vadd.f32 %v7468_v17, %v1423_v25  ;;  %v7470_v25 = vld [vmem:[#allocation2 + $0x84] sm:$0xff] }
 0x423   :  { %v1467_v49 = vmul.f32 %v8138_v57, %v1442_v40  ;;  %v7471_v40 = vld [vmem:[#allocation2 + $0x7c] sm:$0xff] }
 0x424   :  { %v1466_v19 = vmul.f32 %v8138_v57, %v1441_v44  ;;  %v8164_v22 = vld [vmem:[#allocation2 + $0x18] sm:$0xff] }
 0x425   :  { %v1492_v7 = vadd.f32 %v8143_v41, %v1467_v49  ;;  %1554 = vrot.lane.b32.xlu0 %v8164_v22, %s7489_s1 }
 0x426   :  { %v1491_v6 = vadd.f32 %v8143_v41, %v1466_v19  ;;  %v1382_v23 = vpop.permute.xlu0 %1381 }
 0x427   :  { %1510 = vst.msk [vmem:[#allocation2 + $0x38] sm:$0xff] %vm524_vm4, %v1492_v7  ;;  %v1426_v61 = vadd.f32 %v1382_v23, %v8010_v13  ;;  %v1380_v3 = vpop.permute.xlu1 %1379  ;;  %v7472_v23 = vld [vmem:[#allocation2 + $0xc] sm:$0xff] }
 0x428   :  { %1509 = vst.msk [vmem:[#allocation2 + $0x30] sm:$0xff] %vm524_vm4, %v1491_v6  ;;  %v1425_v28 = vadd.f32 %v1380_v3, %v8007_v12  ;;  %v8174_v35 = vld [vmem:[#allocation2 + $0x28] sm:$0xff] }
 0x429   :  { %v1444_v43 = vadd.f32 %v1426_v61, %v7789_v4  ;;  %1558 = vrot.lane.b32.xlu0 %v8174_v35, %s7489_s1  ;;  %v8179_v47 = vld [vmem:[#allocation2 + $0x20] sm:$0xff] }
 0x42a   :  { %v1443_v50 = vadd.f32 %v7469_v48, %v1425_v28  ;;  %1556 = vrot.lane.b32.xlu1 %v8179_v47, %s7489_s1 }
 0x42b   :  { %v1469_v13 = vmul.f32 %v8138_v57, %v1444_v43 }
 0x42c   :  { %v1468_v51 = vmul.f32 %v8138_v57, %v1443_v50  ;;  %v1386_v54 = vpop.permute.xlu0 %1385 }
 0x42d   :  { %v1494_v12 = vadd.f32 %v8143_v41, %v1469_v13  ;;  %v1428_v27 = vadd.f32 %v1386_v54, %v8020_v37  ;;  %v1384_v4 = vpop.permute.xlu1 %1383  ;;  %v7473_v13 = vld [vmem:[#allocation2 + $0x8c] sm:$0xff] }
 0x42e   :  { %v1493_v29 = vadd.f32 %v8143_v41, %v1468_v51  ;;  %v1427_v31 = vadd.f32 %v1384_v4, %v8017_v38  ;;  %v8189_v58 = vld [vmem:[#allocation2 + $0x38] sm:$0xff] }
 0x42f   :  { %1512 = vst.msk [vmem:[#allocation2 + $0x48] sm:$0xff] %vm524_vm4, %v1494_v12  ;;  %v1446_v60 = vadd.f32 %v1428_v27, %v7801_v33  ;;  %1562 = vrot.lane.b32.xlu0 %v8189_v58, %s7489_s1  ;;  %v8195_v53 = vld [vmem:[#allocation2 + $0x30] sm:$0xff] }
 0x430   :  { %1511 = vst.msk [vmem:[#allocation2 + $0x40] sm:$0xff] %vm524_vm4, %v1493_v29  ;;  %v1445_v37 = vadd.f32 %v1427_v31, %v7803_v15  ;;  %1560 = vrot.lane.b32.xlu1 %v8195_v53, %s7489_s1  ;;  %v1390_v52 = vpop.permute.xlu0 %1389 }
 0x431   :  { %v1471_v38 = vmul.f32 %v8138_v57, %v1446_v60  ;;  %v1430_v2 = vadd.f32 %v1390_v52, %v8029_v55  ;;  %v1388_v33 = vpop.permute.xlu1 %1387 }
 0x432   :  { %v1470_v1 = vmul.f32 %v8138_v57, %v1445_v37  ;;  %v1429_v5 = vadd.f32 %v1388_v33, %v8026_v18 }
 0x433   :  { %v1496_v32 = vadd.f32 %v8143_v41, %v1471_v38  ;;  %v1448_v0 = vadd.f32 %v1430_v2, %v7812_v20 }
 0x434   :  { %v1495_v62 = vadd.f32 %v8143_v41, %v1470_v1  ;;  %v1447_v15 = vadd.f32 %v1429_v5, %v7814_v21 }
 0x435   :  { %1514 = vst.msk [vmem:[#allocation2 + $0x58] sm:$0xff] %vm524_vm4, %v1496_v32  ;;  %v1473_v8 = vmul.f32 %v8138_v57, %v1448_v0 }
 0x436   :  { %1513 = vst.msk [vmem:[#allocation2 + $0x50] sm:$0xff] %vm524_vm4, %v1495_v62  ;;  %v8212_v11 = vld [vmem:[#allocation2 + $0x48] sm:$0xff]  ;;  %v1472_v55 = vmul.f32 %v8138_v57, %v1447_v15 }
 0x437   :  { %v1394_v16 = vpop.permute.xlu0 %1393  ;;  %1566 = vrot.lane.b32.xlu0 %v8212_v11, %s7489_s1  ;;  %v8217_v18 = vld [vmem:[#allocation2 + $0x40] sm:$0xff]  ;;  %v1498_v20 = vadd.f32 %v8143_v41, %v1473_v8 }
 0x438   :  { %v1432_v9 = vadd.f32 %v1394_v16, %v8038_v26  ;;  %v1392_v14 = vpop.permute.xlu1 %1391  ;;  %1564 = vrot.lane.b32.xlu1 %v8217_v18, %s7489_s1  ;;  %v1497_v21 = vadd.f32 %v8143_v41, %v1472_v55 }
 0x439   :  { %v1431_v63 = vadd.f32 %v1392_v14, %v8036_v24  ;;  %1516 = vst.msk [vmem:[#allocation2 + $0x68] sm:$0xff] %vm524_vm4, %v1498_v20 }
 0x43a   :  { %v1450_v45 = vadd.f32 %v7470_v25, %v1432_v9  ;;  %1515 = vst.msk [vmem:[#allocation2 + $0x60] sm:$0xff] %vm524_vm4, %v1497_v21 }
 0x43b   :  { %v1449_v17 = vadd.f32 %v7471_v40, %v1431_v63  ;;  %v1364_v44 = vpop.permute.xlu0 %1363 }
 0x43c   :  { %v1475_v49 = vmul.f32 %v8138_v57, %v1450_v45  ;;  %v1417_v26 = vadd.f32 %v1364_v44, %v7968_v36  ;;  %v8229_v19 = vld [vmem:[#allocation2 + $0x58] sm:$0xff] }
 0x43d   :  { %v1474_v7 = vmul.f32 %v8138_v57, %v1449_v17  ;;  %1570 = vrot.lane.b32.xlu0 %v8229_v19, %s7489_s1  ;;  %v8234_v24 = vld [vmem:[#allocation2 + $0x50] sm:$0xff]  ;;  %v1396_v3 = vpop.permute.xlu1 %1395 }
 0x43e   :  { %v1500_v6 = vadd.f32 %v8143_v41, %v1475_v49  ;;  %v1435_v61 = vadd.f32 %v7472_v23, %v1417_v26  ;;  %1568 = vrot.lane.b32.xlu1 %v8234_v24, %s7489_s1  ;;  %v1433_v36 = vadd.f32 %v1396_v3, %v8044_v39 }
 0x43f   :  { %v1499_v28 = vadd.f32 %v8143_v41, %v1474_v7  ;;  %v1366_v43 = vpop.permute.xlu0 %1365 }
 0x440   :  { %1518 = vst.msk [vmem:[#allocation2 + $0x78] sm:$0xff] %vm524_vm4, %v1500_v6  ;;  %v1460_v48 = vmul.f32 %v8138_v57, %v1435_v61  ;;  %v1418_v50 = vadd.f32 %v1366_v43, %v7970_v56  ;;  %v1451_v51 = vadd.f32 %v7473_v13, %v1433_v36  ;;  %v8245_v54 = vld [vmem:[#allocation2 + $0x68] sm:$0xff]  ;;  %v5884_v43 = vld [vmem:[%s10003_s7 + $0x10] sm:$0xff]  ;;  %v8358_v13 = vld [vmem:[%s10004_s6 + $0x1] ss:$0 sm:$0xff] }
 0x441   :  { %1517 = vst.msk [vmem:[#allocation2 + $0x70] sm:$0xff] %vm524_vm4, %v1499_v28  ;;  %v1398_v4 = vpop.permute.xlu1 %1397  ;;  %1574 = vrot.lane.b32.xlu0 %v8245_v54, %s7489_s1  ;;  %v8251_v39 = vld [vmem:[#allocation2 + $0x60] sm:$0xff] }
 0x442   :  { %v1485_v12 = vadd.f32 %v8143_v41, %v1460_v48  ;;  %v1436_v27 = vadd.f32 %v1418_v50, %v7738_v59  ;;  %v1476_v29 = vmul.f32 %v8138_v57, %v1451_v51  ;;  %v1434_v56 = vadd.f32 %v1398_v4, %v8046_v42  ;;  %1572 = vrot.lane.b32.xlu1 %v8251_v39, %s7489_s1  ;;  %v7474_v59 = vld [vmem:[#allocation2 + $0x94] sm:$0xff] }
 0x443   :  { %v5885_v48 = vld [vmem:[%s10003_s7 + $0x18] sm:$0xff] }
 0x444   :  { %1503 = vst.msk [vmem:[#allocation2] sm:$0xff] %vm524_vm4, %v1485_v12  ;;  %v1461_v31 = vmul.f32 %v8138_v57, %v1436_v27  ;;  %v1501_v60 = vadd.f32 %v8143_v41, %v1476_v29  ;;  %v1452_v37 = vadd.f32 %v7474_v59, %v1434_v56  ;;  %v6898_v50 = vpack.c.bf16 %v5885_v48, %v5884_v43 }
 0x445   :  { %v1368_v52 = vpop.permute.xlu1 %1367 }
 0x446   :  { %v1486_v38 = vadd.f32 %v8143_v41, %v1461_v31  ;;  %1519 = vst.msk [vmem:[#allocation2 + $0x80] sm:$0xff] %vm524_vm4, %v1501_v60  ;;  %v1477_v1 = vmul.f32 %v8138_v57, %v1452_v37  ;;  %v1419_v42 = vadd.f32 %v1368_v52, %v7978_v30  ;;  %6899 = vmatpush3.bf16.msra.mxu0 %v6898_v50 }
 0x447   :  { %v1536_v2 = vld [vmem:[#allocation2 + $0x78] sm:$0xff]  ;;  %6912 = vmatprep.subr.bf16.mxu0 %v7492_v46 }
 0x448   :  { %1504 = vst.msk [vmem:[#allocation2 + $0x8] sm:$0xff] %vm524_vm4, %v1486_v38  ;;  %1578 = vrot.lane.b32.xlu0 %v1536_v2, %s7489_s1  ;;  %v8266_v33 = vld [vmem:[#allocation2 + $0x70] sm:$0xff]  ;;  %v1502_v32 = vadd.f32 %v8143_v41, %v1477_v1  ;;  %v1437_v5 = vadd.f32 %v1419_v42, %v7753_v10 }
 0x449   :  { %1576 = vrot.lane.b32.xlu1 %v8266_v33, %s7489_s1 }
 0x44a   :  { %1520 = vst.msk [vmem:[#allocation2 + $0x88] sm:$0xff] %vm524_vm4, %v1502_v32  ;;  %v1462_v62 = vmul.f32 %v8138_v57, %v1437_v5 }
 0x44b   :  { %v1521_v8 = vld [vmem:[#allocation2] sm:$0xff] }
 0x44c   :  { %v1487_v30 = vadd.f32 %v8143_v41, %v1462_v62 }
 0x44d   :  { %v1537_v0 = vld [vmem:[#allocation2 + $0x80] sm:$0xff] }
 0x44e   :  { %1505 = vst.msk [vmem:[#allocation2 + $0x10] sm:$0xff] %vm524_vm4, %v1487_v30  ;;  %1580 = vrot.lane.b32.xlu1 %v1537_v0, %s7489_s1 }
 0x44f   :  { %v1522_v16 = vld [vmem:[#allocation2 + $0x8] sm:$0xff] }
 0x451   :  { %v1538_v15 = vld [vmem:[#allocation2 + $0x88] sm:$0xff] }
 0x452   :  { %1582 = vrot.lane.b32.xlu0 %v1538_v15, %s7489_s1 }
 0x455   :  { %v1523_v9 = vld [vmem:[#allocation2 + $0x10] sm:$0xff] }
 0x497   :  { %v1555_v55 = vpop.permute.xlu0 %1554 }
 0x498   :  { %v1599_v10 = vsel %vm524_vm4, %v1521_v8, %v1555_v55 }
 0x499   :  { %6480 = vmatmul.mubr.msk.f32.vlgmr.msra.gmra.mrb[18].mxu1 %vm683_vm9, %v1599_v10 }
 0x49a   :  { %6482 = vmatprep.mubr.msk.f32.mxu1 %vm7493_vm10, %v7494_v34 }
 0x49b   :  { %v1559_v20 = vpop.permute.xlu0 %1558 }
 0x49c   :  { %v1557_v57 = vpop.permute.xlu1 %1556  ;;  %v1601_v14 = vsel %vm524_vm4, %v1523_v9, %v1559_v20 }
 0x49d   :  { %v1600_v41 = vsel %vm524_vm4, %v1522_v16, %v1557_v57 }
 0x49e   :  { %6483 = vmatmul.mubr.msk.f32.gmra.mrb[20].mxu1 %vm683_vm9, %v1600_v41 }
 0x49f   :  { %6485 = vmatprep.mubr.msk.f32.mxu1 %vm7493_vm10, %v7494_v34 }
 0x4a1   :  { %v1563_v25 = vpop.permute.xlu0 %1562 }
 0x4a2   :  { %v1561_v21 = vpop.permute.xlu1 %1560  ;;  %6486 = vmatmul.mubr.msk.f32.gmra.mrb[22].mxu1 %vm683_vm9, %v1601_v14  ;;  %v1603_v45 = vsel %vm524_vm4, %v8179_v47, %v1563_v25 }
 0x4a3   :  { %6488 = vmatprep.mubr.msk.f32.mxu1 %vm7493_vm10, %v7494_v34  ;;  %v1602_v63 = vsel %vm524_vm4, %v8164_v22, %v1561_v21 }
 0x4a6   :  { %6489 = vmatmul.mubr.msk.f32.gmra.mrb[24].mxu1 %vm683_vm9, %v1602_v63 }
 0x4a7   :  { %6491 = vmatprep.mubr.msk.f32.mxu1 %vm7493_vm10, %v7494_v34 }
 0x4a9   :  { %v1567_v44 = vpop.permute.xlu0 %1566 }
 0x4aa   :  { %v1565_v40 = vpop.permute.xlu1 %1564  ;;  %6492 = vmatmul.mubr.msk.f32.gmra.mrb[26].mxu1 %vm683_vm9, %v1603_v45  ;;  %v1605_v49 = vsel %vm524_vm4, %v8195_v53, %v1567_v44 }
 0x4ab   :  { %6494 = vmatprep.mubr.msk.f32.mxu1 %vm7493_vm10, %v7494_v34  ;;  %v1604_v17 = vsel %vm524_vm4, %v8174_v35, %v1565_v40 }
 0x4ae   :  { %6495 = vmatmul.mubr.msk.f32.gmra.mrb[28].mxu1 %vm683_vm9, %v1604_v17 }
 0x4af   :  { %6497 = vmatprep.mubr.msk.f32.mxu1 %vm7493_vm10, %v7494_v34  ;;  %v1571_v7 = vpop.permute.xlu0 %1570 }
 0x4b0   :  { %v1569_v26 = vpop.permute.xlu1 %1568  ;;  %v1607_v35 = vsel %vm524_vm4, %v8217_v18, %v1571_v7 }
 0x4b1   :  { %v1606_v47 = vsel %vm524_vm4, %v8189_v58, %v1569_v26 }
 0x4b2   :  { %6498 = vmatmul.mubr.msk.f32.gmra.mrb[30].mxu1 %vm683_vm9, %v1605_v49 }
 0x4b3   :  { %6500 = vmatprep.mubr.msk.f32.mxu1 %vm7493_vm10, %v7494_v34  ;;  %v1575_v23 = vpop.permute.xlu0 %1574 }
 0x4b4   :  { %v1573_v6 = vpop.permute.xlu1 %1572  ;;  %v1609_v58 = vsel %vm524_vm4, %v8234_v24, %v1575_v23 }
 0x4b5   :  { %v1608_v53 = vsel %vm524_vm4, %v8212_v11, %v1573_v6 }
 0x4b6   :  { %6501 = vmatmul.mubr.msk.f32.gmra.mrb[32].mxu1 %vm683_vm9, %v1606_v47 }
 0x4b7   :  { %6503 = vmatprep.mubr.msk.f32.mxu1 %vm7493_vm10, %v7494_v34 }
 0x4ba   :  { %6504 = vmatmul.mubr.msk.f32.gmra.mrb[34].mxu1 %vm683_vm9, %v1607_v35  ;;  %v1579_v3 = vpop.permute.xlu0 %1578 }
 0x4bb   :  { %6506 = vmatprep.mubr.msk.f32.mxu1 %vm7493_vm10, %v7494_v34  ;;  %v1577_v61 = vpop.permute.xlu1 %1576  ;;  %v1611_v11 = vsel %vm524_vm4, %v8251_v39, %v1579_v3 }
 0x4bc   :  { %v1610_v18 = vsel %vm524_vm4, %v8229_v19, %v1577_v61 }
 0x4be   :  { %6507 = vmatmul.mubr.msk.f32.gmra.mrb[36].mxu1 %vm683_vm9, %v1608_v53 }
 0x4bf   :  { %6509 = vmatprep.mubr.msk.f32.mxu1 %vm7493_vm10, %v7494_v34 }
 0x4c0   :  { %v1581_v28 = vpop.permute.xlu1 %1580 }
 0x4c1   :  { %v1612_v24 = vsel %vm524_vm4, %v8245_v54, %v1581_v28 }
 0x4c2   :  { %6510 = vmatmul.mubr.msk.f32.gmra.mrb[38].mxu1 %vm683_vm9, %v1609_v58 }
 0x4c3   :  { %6512 = vmatprep.mubr.msk.f32.mxu1 %vm7493_vm10, %v7494_v34 }
 0x4c4   :  { %v1583_v36 = vpop.permute.xlu0 %1582 }
 0x4c5   :  { %v1613_v19 = vsel %vm524_vm4, %v8266_v33, %v1583_v36 }
 0x4c6   :  { %6513 = vmatmul.mubr.msk.f32.gmra.mrb[40].mxu1 %vm683_vm9, %v1610_v18 }
 0x4c7   :  { %6515 = vmatprep.mubr.msk.f32.mxu1 %vm7493_vm10, %v7494_v34 }
 0x4ca   :  { %6516 = vmatmul.mubr.msk.f32.gmra.mrb[42].mxu1 %vm683_vm9, %v1611_v11 }
 0x4cb   :  { %6518 = vmatprep.mubr.msk.f32.mxu1 %vm7493_vm10, %v7494_v34 }
 0x4ce   :  { %6519 = vmatmul.mubr.msk.f32.gmra.mrb[44].mxu1 %vm683_vm9, %v1612_v24 }
 0x4cf   :  { %6521 = vmatprep.mubr.msk.f32.mxu1 %vm7493_vm10, %v7494_v34 }
 0x4d2   :  { %6522 = vmatmul.mubr.msk.f32.gmra.mrb[46].mxu1 %vm683_vm9, %v1613_v19 }
 0x56c   :  { %v1738_v51 = vpop.f32.mrb[18].mxu1 }
 0x56d   :  { %v8361_v54 = vadd.f32 %v8358_v13, %v1738_v51  ;;  %v6481_v12 = vpop.f32.mrb[19].mxu1 }
 0x56f   :  { %v5869_v27 = vmul.f32 -1.442695, %v8361_v54 }
 0x571   :  { %7092 = vpow2.f32 %v5869_v27  ;;  %v1743_v4 = vpop.f32.mrb[20].mxu1 }
 0x572   :  { %v8365_v29 = vadd.f32 %v8358_v13, %v1743_v4  ;;  %v6484_v56 = vpop.f32.mrb[21].mxu1 }
 0x574   :  { %v5870_v31 = vmul.f32 -1.442695, %v8365_v29 }
 0x575   :  { %v1748_v60 = vpop.f32.mrb[22].mxu1 }
 0x576   :  { %7094 = vpow2.f32 %v5870_v31  ;;  %v8369_v59 = vadd.f32 %v8358_v13, %v1748_v60  ;;  %v6487_v37 = vpop.f32.mrb[23].mxu1 }
 0x578   :  { %v5871_v38 = vmul.f32 -1.442695, %v8369_v59 }
 0x579   :  { %v1753_v52 = vpop.f32.mrb[24].mxu1 }
 0x57a   :  { %7096 = vpow2.f32 %v5871_v38  ;;  %v8373_v1 = vadd.f32 %v8358_v13, %v1753_v52  ;;  %v6490_v42 = vpop.f32.mrb[25].mxu1 }
 0x57b   :  { %v7093_v2 = vpop.eup %7092 }
 0x57c   :  { %v1872_v32 = vadd.f32 1.0, %v7093_v2  ;;  %v5872_v5 = vmul.f32 -1.442695, %v8373_v1 }
 0x57d   :  { %v1758_v62 = vpop.f32.mrb[26].mxu1 }
 0x57e   :  { %7098 = vrcp.f32 %v1872_v32  ;;  %v8377_v30 = vadd.f32 %v8358_v13, %v1758_v62  ;;  %v6493_v0 = vpop.f32.mrb[27].mxu1 }
 0x57f   :  { %7100 = vpow2.f32 %v5872_v5 }
 0x580   :  { %v7095_v15 = vpop.eup %7094  ;;  %v5873_v8 = vmul.f32 -1.442695, %v8377_v30 }
 0x581   :  { %v1873_v55 = vadd.f32 1.0, %v7095_v15  ;;  %v1763_v10 = vpop.f32.mrb[28].mxu1 }
 0x582   :  { %7102 = vpow2.f32 %v5873_v8  ;;  %v8381_v57 = vadd.f32 %v8358_v13, %v1763_v10  ;;  %v6496_v16 = vpop.f32.mrb[29].mxu1 }
 0x583   :  { %7104 = vrcp.f32 %v1873_v55 }
 0x584   :  { %v7097_v41 = vpop.eup %7096  ;;  %v5874_v20 = vmul.f32 -1.442695, %v8381_v57 }
 0x585   :  { %v1874_v9 = vadd.f32 1.0, %v7097_v41  ;;  %v1768_v14 = vpop.f32.mrb[30].mxu1 }
 0x586   :  { %7106 = vpow2.f32 %v5874_v20  ;;  %v8385_v21 = vadd.f32 %v8358_v13, %v1768_v14  ;;  %v6499_v63 = vpop.f32.mrb[31].mxu1 }
 0x587   :  { %7108 = vrcp.f32 %v1874_v9 }
 0x588   :  { %v7099_v25 = vpop.eup %7098  ;;  %v5875_v45 = vmul.f32 -1.442695, %v8385_v21 }
 0x589   :  { %v7101_v40 = vpop.eup %7100  ;;  %1932 = vrot.lane.b32.xlu1 %v7099_v25, %s7490_s28  ;;  %v1773_v17 = vpop.f32.mrb[32].mxu1 }
 0x58a   :  { %v1875_v44 = vadd.f32 1.0, %v7101_v40  ;;  %7110 = vpow2.f32 %v5875_v45  ;;  %v8390_v49 = vadd.f32 %v8358_v13, %v1773_v17  ;;  %v6502_v26 = vpop.f32.mrb[33].mxu1 }
 0x58c   :  { %v7103_v47 = vpop.eup %7102  ;;  %7112 = vrcp.f32 %v1875_v44  ;;  %v5876_v7 = vmul.f32 -1.442695, %v8390_v49 }
 0x58d   :  { %v7105_v35 = vpop.eup %7104  ;;  %v1876_v6 = vadd.f32 1.0, %v7103_v47  ;;  %v1778_v53 = vpop.f32.mrb[34].mxu1 }
 0x58e   :  { %7114 = vpow2.f32 %v5876_v7  ;;  %v8394_v23 = vadd.f32 %v8358_v13, %v1778_v53  ;;  %1934 = vrot.lane.b32.xlu0 %v7105_v35, %s7490_s28  ;;  %v6505_v58 = vpop.f32.mrb[35].mxu1 }
 0x58f   :  { %7116 = vrcp.f32 %v1876_v6 }
 0x590   :  { %v7107_v61 = vpop.eup %7106  ;;  %v5877_v18 = vmul.f32 -1.442695, %v8394_v23 }
 0x591   :  { %v7109_v3 = vpop.eup %7108  ;;  %v1877_v11 = vadd.f32 1.0, %v7107_v61  ;;  %v1783_v28 = vpop.f32.mrb[36].mxu1 }
 0x592   :  { %7118 = vpow2.f32 %v5877_v18  ;;  %v8399_v24 = vadd.f32 %v8358_v13, %v1783_v28  ;;  %1936 = vrot.lane.b32.xlu1 %v7109_v3, %s7490_s28  ;;  %v6508_v36 = vpop.f32.mrb[37].mxu1 }
 0x593   :  { %7120 = vrcp.f32 %v1877_v11 }
 0x594   :  { %v7111_v19 = vpop.eup %7110  ;;  %v5878_v43 = vmul.f32 -1.442695, %v8399_v24 }
 0x595   :  { %v1878_v48 = vadd.f32 1.0, %v7111_v19  ;;  %v1788_v50 = vpop.f32.mrb[38].mxu1 }
 0x596   :  { %v7113_v51 = vpop.eup %7112  ;;  %7122 = vpow2.f32 %v5878_v43  ;;  %v8404_v12 = vadd.f32 %v8358_v13, %v1788_v50  ;;  %v6511_v27 = vpop.f32.mrb[39].mxu1 }
 0x597   :  { %7124 = vrcp.f32 %v1878_v48  ;;  %1938 = vrot.lane.b32.xlu0 %v7113_v51, %s7490_s28 }
 0x598   :  { %v7115_v4 = vpop.eup %7114  ;;  %v5879_v56 = vmul.f32 -1.442695, %v8404_v12 }
 0x599   :  { %v7117_v31 = vpop.eup %7116  ;;  %v1879_v60 = vadd.f32 1.0, %v7115_v4  ;;  %v1793_v37 = vpop.f32.mrb[40].mxu1 }
 0x59a   :  { %7126 = vpow2.f32 %v5879_v56  ;;  %v8409_v38 = vadd.f32 %v8358_v13, %v1793_v37  ;;  %1940 = vrot.lane.b32.xlu1 %v7117_v31, %s7490_s28  ;;  %v6514_v52 = vpop.f32.mrb[41].mxu1 }
 0x59b   :  { %7128 = vrcp.f32 %v1879_v60 }
 0x59c   :  { %v7119_v42 = vpop.eup %7118  ;;  %v5880_v2 = vmul.f32 -1.442695, %v8409_v38 }
 0x59d   :  { %v7121_v32 = vpop.eup %7120  ;;  %v1880_v5 = vadd.f32 1.0, %v7119_v42  ;;  %v1798_v62 = vpop.f32.mrb[42].mxu1 }
 0x59e   :  { %7130 = vpow2.f32 %v5880_v2  ;;  %v8414_v0 = vadd.f32 %v8358_v13, %v1798_v62  ;;  %1942 = vrot.lane.b32.xlu0 %v7121_v32, %s7490_s28  ;;  %v6517_v15 = vpop.f32.mrb[43].mxu1 }
 0x59f   :  { %7132 = vrcp.f32 %v1880_v5 }
 0x5a0   :  { %v7123_v8 = vpop.eup %7122  ;;  %v5881_v55 = vmul.f32 -1.442695, %v8414_v0 }
 0x5a1   :  { %v7125_v10 = vpop.eup %7124  ;;  %v1881_v16 = vadd.f32 1.0, %v7123_v8  ;;  %v1803_v41 = vpop.f32.mrb[44].mxu1 }
 0x5a2   :  { %7134 = vpow2.f32 %v5881_v55  ;;  %v8419_v20 = vadd.f32 %v8358_v13, %v1803_v41  ;;  %1944 = vrot.lane.b32.xlu1 %v7125_v10, %s7490_s28  ;;  %v6520_v9 = vpop.f32.mrb[45].mxu1 }
 0x5a3   :  { %7136 = vrcp.f32 %v1881_v16 }
 0x5a4   :  { %v7127_v14 = vpop.eup %7126  ;;  %v5882_v63 = vmul.f32 -1.442695, %v8419_v20 }
 0x5a5   :  { %v7129_v25 = vpop.eup %7128  ;;  %v1882_v45 = vadd.f32 1.0, %v7127_v14  ;;  %v1808_v40 = vpop.f32.mrb[46].mxu1 }
 0x5a6   :  { %7138 = vpow2.f32 %v5882_v63  ;;  %v8424_v17 = vadd.f32 %v8358_v13, %v1808_v40  ;;  %1946 = vrot.lane.b32.xlu0 %v7129_v25, %s7490_s28  ;;  %v6523_v44 = vpop.f32.mrb[47].mxu1 }
 0x5a7   :  { %7140 = vrcp.f32 %v1882_v45 }
 0x5a8   :  { %v7131_v26 = vpop.eup %7130  ;;  %v5883_v47 = vmul.f32 -1.442695, %v8424_v17 }
 0x5a9   :  { %v7133_v7 = vpop.eup %7132  ;;  %v1883_v35 = vadd.f32 1.0, %v7131_v26 }
 0x5aa   :  { %7142 = vpow2.f32 %v5883_v47  ;;  %1948 = vrot.lane.b32.xlu1 %v7133_v7, %s7490_s28  ;;  %v8543_v7 = vld [vmem:[%s10005_s8 + $0x1] ss:$0 sm:$0xff] }
 0x5ab   :  { %7144 = vrcp.f32 %v1883_v35 }
 0x5ac   :  { %v7135_v6 = vpop.eup %7134 }
 0x5ad   :  { %v7137_v53 = vpop.eup %7136  ;;  %v1884_v58 = vadd.f32 1.0, %v7135_v6 }
 0x5ae   :  { %1950 = vrot.lane.b32.xlu0 %v7137_v53, %s7490_s28 }
 0x5af   :  { %7146 = vrcp.f32 %v1884_v58  ;;  %v2188_v58 = vld [vmem:[#allocation3 + $0x18] sm:$0xff] }
 0x5b0   :  { %v7139_v13 = vpop.eup %7138 }
 0x5b1   :  { %v7141_v61 = vpop.eup %7140  ;;  %v1885_v18 = vadd.f32 1.0, %v7139_v13 }
 0x5b2   :  { %1952 = vrot.lane.b32.xlu1 %v7141_v61, %s7490_s28 }
 0x5b3   :  { %7148 = vrcp.f32 %v1885_v18 }
 0x5b4   :  { %v7143_v3 = vpop.eup %7142 }
 0x5b5   :  { %v7145_v11 = vpop.eup %7144  ;;  %v1886_v28 = vadd.f32 1.0, %v7143_v3 }
 0x5b6   :  { %1954 = vrot.lane.b32.xlu0 %v7145_v11, %s7490_s28  ;;  %v2189_v11 = vld [vmem:[#allocation3 + $0x20] sm:$0xff] }
 0x5b7   :  { %7150 = vrcp.f32 %v1886_v28 }
 0x5b8   :  { %7152 = vtanh.f32 %v8361_v54 }
 0x5b9   :  { %v7147_v36 = vpop.eup %7146  ;;  %7154 = vtanh.f32 %v8365_v29 }
 0x5ba   :  { %1956 = vrot.lane.b32.xlu1 %v7147_v36, %s7490_s28  ;;  %7156 = vtanh.f32 %v8369_v59 }
 0x5bb   :  { %7158 = vtanh.f32 %v8373_v1 }
 0x5bc   :  { %7160 = vtanh.f32 %v8377_v30 }
 0x5bd   :  { %v7149_v19 = vpop.eup %7148  ;;  %7162 = vtanh.f32 %v8381_v57 }
 0x5be   :  { %1958 = vrot.lane.b32.xlu0 %v7149_v19, %s7490_s28  ;;  %7164 = vtanh.f32 %v8385_v21 }
 0x5bf   :  { %7166 = vtanh.f32 %v8390_v49 }
 0x5c0   :  { %7168 = vtanh.f32 %v8394_v23 }
 0x5c1   :  { %v7151_v43 = vpop.eup %7150  ;;  %7170 = vtanh.f32 %v8399_v24 }
 0x5c2   :  { %1960 = vrot.lane.b32.xlu1 %v7151_v43, %s7490_s28  ;;  %v7153_v48 = vpop.eup %7152  ;;  %7172 = vtanh.f32 %v8404_v12 }
 0x5c3   :  { %v7155_v27 = vpop.eup %7154  ;;  %7174 = vtanh.f32 %v8409_v38 }
 0x5c4   :  { %v7157_v54 = vpop.eup %7156  ;;  %7176 = vtanh.f32 %v8414_v0 }
 0x5c5   :  { %v7159_v1 = vpop.eup %7158  ;;  %7178 = vtanh.f32 %v8419_v20 }
 0x5c6   :  { %v7161_v60 = vpop.eup %7160  ;;  %7180 = vtanh.f32 %v8424_v17 }
 0x5c7   :  { %v7163_v57 = vpop.eup %7162 }
 0x5c8   :  { %v7165_v2 = vpop.eup %7164 }
 0x5c9   :  { %v7167_v49 = vpop.eup %7166 }
 0x5ca   :  { %v7169_v23 = vpop.eup %7168 }
 0x5cb   :  { %v7171_v24 = vpop.eup %7170 }
 0x5cc   :  { %v7173_v12 = vpop.eup %7172 }
 0x5cd   :  { %v7175_v38 = vpop.eup %7174 }
 0x5ce   :  { %v7177_v0 = vpop.eup %7176 }
 0x5cf   :  { %v7179_v20 = vpop.eup %7178 }
 0x5d0   :  { %v7181_v17 = vpop.eup %7180 }
 0x5fb   :  { %v1933_v50 = vpop.permute.xlu1 %1932 }
 0x5fc   :  { %v8438_v51 = vmul.f32 %v7153_v48, %v1933_v50  ;;  %v2190_v48 = vld [vmem:[#allocation3 + $0x28] sm:$0xff] }
 0x5fe   :  { %6529 = vmatmul.mubr.msk.f32.vlgmr.msra.gmra.mrb[38].mxu0 %vm524_vm4, %v8438_v51 }
 0x5ff   :  { %6531 = vmatprep.mubr.msk.f32.mxu0 %vm7493_vm10, %v7494_v34 }
 0x600   :  { %v1935_v4 = vpop.permute.xlu0 %1934 }
 0x601   :  { %v8445_v56 = vmul.f32 %v7155_v27, %v1935_v4 }
 0x603   :  { %6532 = vmatmul.mubr.msk.f32.gmra.mrb[40].mxu0 %vm524_vm4, %v8445_v56 }
 0x604   :  { %v1937_v29 = vpop.permute.xlu1 %1936  ;;  %6534 = vmatprep.mubr.msk.f32.mxu0 %vm7493_vm10, %v7494_v34 }
 0x605   :  { %v8452_v59 = vmul.f32 %v7157_v54, %v1937_v29  ;;  %v2191_v29 = vld [vmem:[#allocation3 + $0x30] sm:$0xff] }
 0x607   :  { %6535 = vmatmul.mubr.msk.f32.gmra.mrb[42].mxu0 %vm524_vm4, %v8452_v59 }
 0x608   :  { %6537 = vmatprep.mubr.msk.f32.mxu0 %vm7493_vm10, %v7494_v34 }
 0x609   :  { %v1939_v30 = vpop.permute.xlu0 %1938 }
 0x60a   :  { %v8460_v31 = vmul.f32 %v7159_v1, %v1939_v30 }
 0x60c   :  { %6538 = vmatmul.mubr.msk.f32.gmra.mrb[44].mxu0 %vm524_vm4, %v8460_v31  ;;  %v1941_v37 = vpop.permute.xlu1 %1940 }
 0x60d   :  { %v8464_v52 = vmul.f32 %v7161_v60, %v1941_v37  ;;  %6540 = vmatprep.mubr.msk.f32.mxu0 %vm7493_vm10, %v7494_v34 }
 0x610   :  { %6541 = vmatmul.mubr.msk.f32.gmra.mrb[46].mxu0 %vm524_vm4, %v8464_v52  ;;  %v1943_v42 = vpop.permute.xlu0 %1942 }
 0x611   :  { %v8471_v21 = vmul.f32 %v7163_v57, %v1943_v42  ;;  %6543 = vmatprep.mubr.msk.f32.mxu0 %vm7493_vm10, %v7494_v34  ;;  %v2192_v57 = vld [vmem:[#allocation3 + $0x38] sm:$0xff] }
 0x614   :  { %6544 = vmatmul.mubr.msk.f32.gmra.mrb[48].mxu0 %vm524_vm4, %v8471_v21  ;;  %v1945_v32 = vpop.permute.xlu1 %1944 }
 0x615   :  { %v8478_v5 = vmul.f32 %v7165_v2, %v1945_v32  ;;  %6546 = vmatprep.mubr.msk.f32.mxu0 %vm7493_vm10, %v7494_v34 }
 0x618   :  { %6547 = vmatmul.mubr.msk.f32.gmra.mrb[50].mxu0 %vm524_vm4, %v8478_v5  ;;  %v1947_v62 = vpop.permute.xlu0 %1946 }
 0x619   :  { %v8485_v15 = vmul.f32 %v7167_v49, %v1947_v62  ;;  %6549 = vmatprep.mubr.msk.f32.mxu0 %vm7493_vm10, %v7494_v34  ;;  %v2193_v62 = vld [vmem:[#allocation3 + $0x40] sm:$0xff] }
 0x61c   :  { %6550 = vmatmul.mubr.msk.f32.gmra.mrb[52].mxu0 %vm524_vm4, %v8485_v15  ;;  %v1949_v8 = vpop.permute.xlu1 %1948 }
 0x61d   :  { %v8492_v55 = vmul.f32 %v7169_v23, %v1949_v8  ;;  %6552 = vmatprep.mubr.msk.f32.mxu0 %vm7493_vm10, %v7494_v34 }
 0x620   :  { %6553 = vmatmul.mubr.msk.f32.gmra.mrb[54].mxu0 %vm524_vm4, %v8492_v55  ;;  %v1951_v10 = vpop.permute.xlu0 %1950 }
 0x621   :  { %v8499_v16 = vmul.f32 %v7171_v24, %v1951_v10  ;;  %6555 = vmatprep.mubr.msk.f32.mxu0 %vm7493_vm10, %v7494_v34 }
 0x624   :  { %6556 = vmatmul.mubr.msk.f32.gmra.mrb[56].mxu0 %vm524_vm4, %v8499_v16  ;;  %v1953_v41 = vpop.permute.xlu1 %1952 }
 0x625   :  { %v8506_v9 = vmul.f32 %v7173_v12, %v1953_v41  ;;  %6558 = vmatprep.mubr.msk.f32.mxu0 %vm7493_vm10, %v7494_v34  ;;  %v2194_v12 = vld [vmem:[#allocation3 + $0x48] sm:$0xff] }
 0x628   :  { %6559 = vmatmul.mubr.msk.f32.gmra.mrb[58].mxu0 %vm524_vm4, %v8506_v9  ;;  %v1955_v14 = vpop.permute.xlu0 %1954 }
 0x629   :  { %v8513_v63 = vmul.f32 %v7175_v38, %v1955_v14  ;;  %6561 = vmatprep.mubr.msk.f32.mxu0 %vm7493_vm10, %v7494_v34 }
 0x62c   :  { %6562 = vmatmul.mubr.msk.f32.gmra.mrb[60].mxu0 %vm524_vm4, %v8513_v63  ;;  %v1957_v25 = vpop.permute.xlu1 %1956 }
 0x62d   :  { %v8520_v45 = vmul.f32 %v7177_v0, %v1957_v25  ;;  %6564 = vmatprep.mubr.msk.f32.mxu0 %vm7493_vm10, %v7494_v34  ;;  %v2195_v25 = vld [vmem:[#allocation3 + $0x50] sm:$0xff] }
 0x630   :  { %6565 = vmatmul.mubr.msk.f32.gmra.mrb[62].mxu0 %vm524_vm4, %v8520_v45  ;;  %v1959_v40 = vpop.permute.xlu0 %1958 }
 0x631   :  { %v8526_v44 = vmul.f32 %v7179_v20, %v1959_v40  ;;  %6567 = vmatprep.mubr.msk.f32.mxu0 %vm7493_vm10, %v7494_v34 }
 0x634   :  { %6568 = vmatmul.mubr.msk.f32.gmra.mrb[64].mxu0 %vm524_vm4, %v8526_v44  ;;  %v1961_v26 = vpop.permute.xlu1 %1960 }
 0x635   :  { %v8532_v47 = vmul.f32 %v7181_v17, %v1961_v26  ;;  %6570 = vmatprep.mubr.msk.f32.mxu0 %vm7493_vm10, %v7494_v34 }
 0x638   :  { %6571 = vmatmul.mubr.msk.f32.gmra.mrb[66].mxu0 %vm524_vm4, %v8532_v47 }
 0x639   :  { %6635 = vmatprep.mubr.msk.f32.mxu0 %vm7493_vm10, %v7494_v34 }
 0x6d1   :  { %v2114_v35 = vpop.f32.mrb[38].mxu0 }
 0x6d2   :  { %v8546_v6 = vadd.f32 %v8543_v7, %v2114_v35  ;;  %v6530_v53 = vpop.f32.mrb[39].mxu0  ;;  %v2196_v35 = vld [vmem:[#allocation3 + $0x58] sm:$0xff] }
 0x6d4   :  { %v2203_v13 = vadd.f32 %v2188_v58, %v8546_v6 }
 0x6d6   :  { %2218 = vst.msk [vmem:[#allocation3] sm:$0xff] %vm683_vm9, %v2203_v13  ;;  %v2119_v61 = vpop.f32.mrb[40].mxu0 }
 0x6d7   :  { %v2120_v18 = vadd.f32 %v8543_v7, %v2119_v61  ;;  %v6533_v3 = vpop.f32.mrb[41].mxu0 }
 0x6d9   :  { %v2204_v28 = vadd.f32 %v2189_v11, %v2120_v18  ;;  %2250 = vrot.lane.b32.xlu0 %v2120_v18, %s7491_s16  ;;  %v2197_v18 = vld [vmem:[#allocation3 + $0x60] sm:$0xff] }
 0x6da   :  { %v2124_v36 = vpop.f32.mrb[42].mxu0 }
 0x6db   :  { %2219 = vst.msk [vmem:[#allocation3 + $0x8] sm:$0xff] %vm683_vm9, %v2204_v28  ;;  %v2125_v19 = vadd.f32 %v8543_v7, %v2124_v36  ;;  %v6536_v43 = vpop.f32.mrb[43].mxu0 }
 0x6dd   :  { %v2205_v50 = vadd.f32 %v2190_v48, %v2125_v19  ;;  %2252 = vrot.lane.b32.xlu1 %v2125_v19, %s7491_s16  ;;  %v2198_v19 = vld [vmem:[#allocation3 + $0x68] sm:$0xff] }
 0x6df   :  { %2220 = vst.msk [vmem:[#allocation3 + $0x10] sm:$0xff] %vm683_vm9, %v2205_v50  ;;  %v2129_v27 = vpop.f32.mrb[44].mxu0 }
 0x6e0   :  { %v2130_v4 = vadd.f32 %v8543_v7, %v2129_v27  ;;  %v6539_v54 = vpop.f32.mrb[45].mxu0 }
 0x6e2   :  { %v2206_v1 = vadd.f32 %v2191_v29, %v2130_v4  ;;  %2254 = vrot.lane.b32.xlu0 %v2130_v4, %s7491_s16  ;;  %v2199_v4 = vld [vmem:[#allocation3 + $0x70] sm:$0xff] }
 0x6e3   :  { %v2134_v30 = vpop.f32.mrb[46].mxu0 }
 0x6e4   :  { %2221 = vst.msk [vmem:[#allocation3 + $0x18] sm:$0xff] %vm683_vm9, %v2206_v1  ;;  %v2135_v60 = vadd.f32 %v8543_v7, %v2134_v30  ;;  %v6542_v37 = vpop.f32.mrb[47].mxu0 }
 0x6e6   :  { %v2207_v42 = vadd.f32 %v2192_v57, %v2135_v60  ;;  %2256 = vrot.lane.b32.xlu1 %v2135_v60, %s7491_s16  ;;  %v2200_v60 = vld [vmem:[#allocation3 + $0x78] sm:$0xff] }
 0x6e7   :  { %v2139_v2 = vpop.f32.mrb[48].mxu0 }
 0x6e8   :  { %2222 = vst.msk [vmem:[#allocation3 + $0x20] sm:$0xff] %vm683_vm9, %v2207_v42  ;;  %v2140_v32 = vadd.f32 %v8543_v7, %v2139_v2  ;;  %v6545_v49 = vpop.f32.mrb[49].mxu0 }
 0x6ea   :  { %v2208_v23 = vadd.f32 %v2193_v62, %v2140_v32  ;;  %2258 = vrot.lane.b32.xlu0 %v2140_v32, %s7491_s16  ;;  %v2201_v32 = vld [vmem:[#allocation3 + $0x80] sm:$0xff] }
 0x6eb   :  { %v2144_v8 = vpop.f32.mrb[50].mxu0 }
 0x6ec   :  { %2223 = vst.msk [vmem:[#allocation3 + $0x28] sm:$0xff] %vm683_vm9, %v2208_v23  ;;  %v2145_v24 = vadd.f32 %v8543_v7, %v2144_v8  ;;  %v6548_v10 = vpop.f32.mrb[51].mxu0 }
 0x6ee   :  { %v2209_v41 = vadd.f32 %v2194_v12, %v2145_v24  ;;  %2260 = vrot.lane.b32.xlu1 %v2145_v24, %s7491_s16  ;;  %v2202_v24 = vld [vmem:[#allocation3 + $0x88] sm:$0xff]  ;;  %v5907_v12 = vld [vmem:[%s9999_s5 + $0x40] sm:$0xff] }
 0x6ef   :  { %v2149_v38 = vpop.f32.mrb[52].mxu0 }
 0x6f0   :  { %2224 = vst.msk [vmem:[#allocation3 + $0x30] sm:$0xff] %vm683_vm9, %v2209_v41  ;;  %v2150_v14 = vadd.f32 %v8543_v7, %v2149_v38  ;;  %v6551_v0 = vpop.f32.mrb[53].mxu0  ;;  %v5908_v41 = vld [vmem:[%s9999_s5 + $0x48] sm:$0xff] }
 0x6f1   :  { %v6900_v38 = vpack.c.bf16 %v5908_v41, %v5907_v12 }
 0x6f2   :  { %v2210_v20 = vadd.f32 %v2195_v25, %v2150_v14  ;;  %2262 = vrot.lane.b32.xlu0 %v2150_v14, %s7491_s16 }
 0x6f3   :  { %v2154_v40 = vpop.f32.mrb[54].mxu0  ;;  %6901 = vmatprep.subr.bf16.mxu1 %v6900_v38 }
 0x6f4   :  { %2225 = vst.msk [vmem:[#allocation3 + $0x38] sm:$0xff] %vm683_vm9, %v2210_v20  ;;  %v2155_v17 = vadd.f32 %v8543_v7, %v2154_v40  ;;  %v6554_v26 = vpop.f32.mrb[55].mxu0  ;;  %6903 = vmatpush3.bf16.msra.mxu1 %v6900_v38  ;;  %v8610_v20 = vld [vmem:[%s10006_s9 + $0x1] ss:$0 sm:$0xff] }
 0x6f5   :  { %v7475_v40 = vld [vmem:[#allocation2 + $0x20] sm:$0xff] }
 0x6f6   :  { %v2211_v53 = vadd.f32 %v2196_v35, %v2155_v17  ;;  %2264 = vrot.lane.b32.xlu1 %v2155_v17, %s7491_s16  ;;  %v8615_v26 = vld [vmem:[%s10007_s10 + $0x1] ss:$0 sm:$0xff] }
 0x6f7   :  { %v2159_v58 = vpop.f32.mrb[56].mxu0 }
 0x6f8   :  { %2226 = vst.msk [vmem:[#allocation3 + $0x40] sm:$0xff] %vm683_vm9, %v2211_v53  ;;  %v2160_v13 = vadd.f32 %v8543_v7, %v2159_v58  ;;  %v6557_v61 = vpop.f32.mrb[57].mxu0 }
 0x6fa   :  { %v2212_v3 = vadd.f32 %v2197_v18, %v2160_v13  ;;  %2266 = vrot.lane.b32.xlu0 %v2160_v13, %s7491_s16 }
 0x6fb   :  { %v2164_v11 = vpop.f32.mrb[58].mxu0 }
 0x6fc   :  { %2227 = vst.msk [vmem:[#allocation3 + $0x48] sm:$0xff] %vm683_vm9, %v2212_v3  ;;  %v2165_v28 = vadd.f32 %v8543_v7, %v2164_v11  ;;  %v6560_v36 = vpop.f32.mrb[59].mxu0 }
 0x6fd   :  { %v7477_v36 = vld [vmem:[#allocation2 + $0x30] sm:$0xff] }
 0x6fe   :  { %v2213_v43 = vadd.f32 %v2198_v19, %v2165_v28  ;;  %2268 = vrot.lane.b32.xlu1 %v2165_v28, %s7491_s16 }
 0x6ff   :  { %v2169_v48 = vpop.f32.mrb[60].mxu0 }
 0x700   :  { %2228 = vst.msk [vmem:[#allocation3 + $0x50] sm:$0xff] %vm683_vm9, %v2213_v43  ;;  %v2170_v50 = vadd.f32 %v8543_v7, %v2169_v48  ;;  %v6563_v27 = vpop.f32.mrb[61].mxu0 }
 0x701   :  { %v7478_v27 = vld [vmem:[#allocation2 + $0x38] sm:$0xff] }
 0x702   :  { %v2214_v54 = vadd.f32 %v2199_v4, %v2170_v50  ;;  %2270 = vrot.lane.b32.xlu0 %v2170_v50, %s7491_s16 }
 0x703   :  { %v2174_v29 = vpop.f32.mrb[62].mxu0 }
 0x704   :  { %2229 = vst.msk [vmem:[#allocation3 + $0x58] sm:$0xff] %vm683_vm9, %v2214_v54  ;;  %v2175_v1 = vadd.f32 %v8543_v7, %v2174_v29  ;;  %v6566_v30 = vpop.f32.mrb[63].mxu0 }
 0x705   :  { %v7479_v30 = vld [vmem:[#allocation2 + $0x40] sm:$0xff] }
 0x706   :  { %v2215_v37 = vadd.f32 %v2200_v60, %v2175_v1  ;;  %2272 = vrot.lane.b32.xlu1 %v2175_v1, %s7491_s16 }
 0x707   :  { %v2179_v57 = vpop.f32.mrb[64].mxu0 }
 0x708   :  { %2230 = vst.msk [vmem:[#allocation3 + $0x60] sm:$0xff] %vm683_vm9, %v2215_v37  ;;  %v2180_v42 = vadd.f32 %v8543_v7, %v2179_v57  ;;  %v6569_v2 = vpop.f32.mrb[65].mxu0 }
 0x70a   :  { %v2216_v49 = vadd.f32 %v2201_v32, %v2180_v42  ;;  %2274 = vrot.lane.b32.xlu0 %v2180_v42, %s7491_s16  ;;  %v7480_v32 = vld [vmem:[#allocation2 + $0x48] sm:$0xff] }
 0x70b   :  { %v2184_v62 = vpop.f32.mrb[66].mxu0 }
 0x70c   :  { %2231 = vst.msk [vmem:[#allocation3 + $0x68] sm:$0xff] %vm683_vm9, %v2216_v49  ;;  %v2185_v23 = vadd.f32 %v8543_v7, %v2184_v62  ;;  %v6572_v8 = vpop.f32.mrb[67].mxu0  ;;  %v5909_v7 = vld [vmem:[%s9999_s5 + $0x50] sm:$0xff] }
 0x70e   :  { %v2217_v10 = vadd.f32 %v2202_v24, %v2185_v23  ;;  %2248 = vrot.lane.b32.xlu0 %v8546_v6, %s7491_s16  ;;  %2276 = vrot.lane.b32.xlu1 %v2185_v23, %s7491_s16  ;;  %v5910_v6 = vld [vmem:[%s9999_s5 + $0x58] sm:$0xff] }
 0x70f   :  { %v6904_v14 = vpack.c.bf16 %v5910_v6, %v5909_v7  ;;  %v7482_v6 = vld [vmem:[#allocation2 + $0x58] sm:$0xff] }
 0x710   :  { %2232 = vst.msk [vmem:[#allocation3 + $0x70] sm:$0xff] %vm683_vm9, %v2217_v10  ;;  %v7481_v10 = vld [vmem:[#allocation2 + $0x50] sm:$0xff] }
 0x711   :  { %6905 = vmatprep.subr.bf16.mxu1 %v6904_v14 }
 0x712   :  { %6907 = vmatpush3.bf16.msra.mxu1 %v6904_v14 }
 0x74b   :  { %v2251_v0 = vpop.permute.xlu0 %2250 }
 0x74c   :  { %v2294_v25 = vadd.f32 %v2251_v0, %v8445_v56  ;;  %v7476_v56 = vld [vmem:[#allocation2 + $0x28] sm:$0xff] }
 0x74e   :  { %v2309_v17 = vadd.f32 %v7475_v40, %v2294_v25 }
 0x74f   :  { %v2253_v35 = vpop.permute.xlu1 %2252 }
 0x750   :  { %v2332_v53 = vmul.f32 %v8610_v20, %v2309_v17  ;;  %v2295_v58 = vadd.f32 %v2253_v35, %v8452_v59 }
 0x752   :  { %v2355_v13 = vadd.f32 %v8615_v26, %v2332_v53  ;;  %v2310_v61 = vadd.f32 %v7476_v56, %v2295_v58 }
 0x754   :  { %2370 = vst.msk [vmem:[#allocation2 + $0x8] sm:$0xff] %vm524_vm4, %v2355_v13  ;;  %v2333_v18 = vmul.f32 %v8610_v20, %v2310_v61  ;;  %v2255_v3 = vpop.permute.xlu0 %2254  ;;  %v7483_v61 = vld [vmem:[#allocation2 + $0x68] sm:$0xff] }
 0x755   :  { %v2296_v11 = vadd.f32 %v2255_v3, %v8460_v31 }
 0x756   :  { %v2356_v28 = vadd.f32 %v8615_v26, %v2333_v18 }
 0x757   :  { %v2311_v19 = vadd.f32 %v7477_v36, %v2296_v11 }
 0x758   :  { %2371 = vst.msk [vmem:[#allocation2 + $0x10] sm:$0xff] %vm524_vm4, %v2356_v28  ;;  %v2257_v43 = vpop.permute.xlu1 %2256 }
 0x759   :  { %v2334_v59 = vmul.f32 %v8610_v20, %v2311_v19  ;;  %v2297_v48 = vadd.f32 %v2257_v43, %v8464_v52 }
 0x75b   :  { %v2357_v50 = vadd.f32 %v8615_v26, %v2334_v59  ;;  %v2312_v4 = vadd.f32 %v7478_v27, %v2297_v48 }
 0x75c   :  { %v2259_v54 = vpop.permute.xlu0 %2258 }
 0x75d   :  { %2372 = vst.msk [vmem:[#allocation2 + $0x18] sm:$0xff] %vm524_vm4, %v2357_v50  ;;  %v2335_v31 = vmul.f32 %v8610_v20, %v2312_v4  ;;  %v2298_v29 = vadd.f32 %v2259_v54, %v8471_v21  ;;  %v7484_v50 = vld [vmem:[#allocation2 + $0x78] sm:$0xff] }
 0x75f   :  { %v2358_v1 = vadd.f32 %v8615_v26, %v2335_v31  ;;  %v2313_v60 = vadd.f32 %v7479_v30, %v2298_v29  ;;  %v2398_v37 = vld [vmem:[#allocation2 + $0xc] sm:$0xff]  ;;  %v7485_v29 = vld [vmem:[#allocation2 + $0x80] sm:$0xff] }
 0x760   :  { %v2261_v57 = vpop.permute.xlu1 %2260  ;;  %2426 = vrot.lane.b32.xlu1 %v2398_v37, %s7489_s1 }
 0x761   :  { %2373 = vst.msk [vmem:[#allocation2 + $0x20] sm:$0xff] %vm524_vm4, %v2358_v1  ;;  %v2336_v52 = vmul.f32 %v8610_v20, %v2313_v60  ;;  %v2299_v42 = vadd.f32 %v2261_v57, %v8478_v5 }
 0x763   :  { %v2359_v2 = vadd.f32 %v8615_v26, %v2336_v52  ;;  %v2314_v49 = vadd.f32 %v7480_v32, %v2299_v42 }
 0x764   :  { %v2263_v62 = vpop.permute.xlu0 %2262  ;;  %v8637_v21 = vld [vmem:[#allocation2 + $0x14] sm:$0xff] }
 0x765   :  { %2374 = vst.msk [vmem:[#allocation2 + $0x28] sm:$0xff] %vm524_vm4, %v2359_v2  ;;  %v2337_v23 = vmul.f32 %v8610_v20, %v2314_v49  ;;  %v2300_v8 = vadd.f32 %v2263_v62, %v8485_v15  ;;  %2428 = vrot.lane.b32.xlu0 %v8637_v21, %s7489_s1  ;;  %v7486_v2 = vld [vmem:[#allocation2 + $0x88] sm:$0xff] }
 0x767   :  { %v2360_v24 = vadd.f32 %v8615_v26, %v2337_v23  ;;  %v2315_v5 = vadd.f32 %v7481_v10, %v2300_v8 }
 0x768   :  { %v2265_v12 = vpop.permute.xlu1 %2264  ;;  %v8645_v41 = vld [vmem:[#allocation2 + $0x1c] sm:$0xff] }
 0x769   :  { %2375 = vst.msk [vmem:[#allocation2 + $0x30] sm:$0xff] %vm524_vm4, %v2360_v24  ;;  %v2338_v7 = vmul.f32 %v8610_v20, %v2315_v5  ;;  %v2301_v38 = vadd.f32 %v2265_v12, %v8492_v55  ;;  %2430 = vrot.lane.b32.xlu1 %v8645_v41, %s7489_s1 }
 0x76b   :  { %v2361_v15 = vadd.f32 %v8615_v26, %v2338_v7  ;;  %v2316_v14 = vadd.f32 %v7482_v6, %v2301_v38  ;;  %v2385_v7 = vld [vmem:[#allocation2 + $0x8] sm:$0xff]  ;;  %v2386_v6 = vld [vmem:[#allocation2 + $0x10] sm:$0xff] }
 0x76c   :  { %v2267_v0 = vpop.permute.xlu0 %2266  ;;  %v8653_v25 = vld [vmem:[#allocation2 + $0x24] sm:$0xff] }
 0x76d   :  { %2376 = vst.msk [vmem:[#allocation2 + $0x38] sm:$0xff] %vm524_vm4, %v2361_v15  ;;  %v2339_v40 = vmul.f32 %v8610_v20, %v2316_v14  ;;  %v2302_v17 = vadd.f32 %v2267_v0, %v8499_v16  ;;  %2432 = vrot.lane.b32.xlu0 %v8653_v25, %s7489_s1 }
 0x76f   :  { %v2362_v55 = vadd.f32 %v8615_v26, %v2339_v40  ;;  %v2317_v35 = vadd.f32 %v2302_v17, %v8251_v39  ;;  %v2387_v40 = vld [vmem:[#allocation2 + $0x18] sm:$0xff] }
 0x770   :  { %v2269_v53 = vpop.permute.xlu1 %2268  ;;  %v8662_v58 = vld [vmem:[#allocation2 + $0x2c] sm:$0xff] }
 0x771   :  { %2377 = vst.msk [vmem:[#allocation2 + $0x40] sm:$0xff] %vm524_vm4, %v2362_v55  ;;  %v2340_v13 = vmul.f32 %v8610_v20, %v2317_v35  ;;  %v2303_v56 = vadd.f32 %v2269_v53, %v8506_v9  ;;  %2434 = vrot.lane.b32.xlu1 %v8662_v58, %s7489_s1  ;;  %v2388_v35 = vld [vmem:[#allocation2 + $0x20] sm:$0xff] }
 0x773   :  { %v2363_v16 = vadd.f32 %v8615_v26, %v2340_v13  ;;  %v2318_v18 = vadd.f32 %v7483_v61, %v2303_v56  ;;  %v2389_v56 = vld [vmem:[#allocation2 + $0x28] sm:$0xff] }
 0x774   :  { %v2271_v3 = vpop.permute.xlu0 %2270  ;;  %v8670_v11 = vld [vmem:[#allocation2 + $0x34] sm:$0xff] }
 0x775   :  { %2378 = vst.msk [vmem:[#allocation2 + $0x48] sm:$0xff] %vm524_vm4, %v2363_v16  ;;  %v2341_v39 = vmul.f32 %v8610_v20, %v2318_v18  ;;  %v2304_v28 = vadd.f32 %v2271_v3, %v8513_v63  ;;  %2436 = vrot.lane.b32.xlu0 %v8670_v11, %s7489_s1  ;;  %v2390_v18 = vld [vmem:[#allocation2 + $0x30] sm:$0xff] }
 0x777   :  { %v2364_v9 = vadd.f32 %v8615_v26, %v2341_v39  ;;  %v2319_v36 = vadd.f32 %v2304_v28, %v8266_v33  ;;  %v2391_v28 = vld [vmem:[#allocation2 + $0x38] sm:$0xff] }
 0x778   :  { %v2273_v19 = vpop.permute.xlu1 %2272  ;;  %v8679_v43 = vld [vmem:[#allocation2 + $0x3c] sm:$0xff] }
 0x779   :  { %2379 = vst.msk [vmem:[#allocation2 + $0x50] sm:$0xff] %vm524_vm4, %v2364_v9  ;;  %v2342_v59 = vmul.f32 %v8610_v20, %v2319_v36  ;;  %v2305_v48 = vadd.f32 %v2273_v19, %v8520_v45  ;;  %2438 = vrot.lane.b32.xlu1 %v8679_v43, %s7489_s1  ;;  %v2392_v19 = vld [vmem:[#allocation2 + $0x40] sm:$0xff] }
 0x77b   :  { %v2365_v63 = vadd.f32 %v8615_v26, %v2342_v59  ;;  %v2320_v27 = vadd.f32 %v7484_v50, %v2305_v48 }
 0x77c   :  { %v2275_v4 = vpop.permute.xlu0 %2274  ;;  %v8687_v54 = vld [vmem:[#allocation2 + $0x44] sm:$0xff] }
 0x77d   :  { %2380 = vst.msk [vmem:[#allocation2 + $0x58] sm:$0xff] %vm524_vm4, %v2365_v63  ;;  %v2343_v33 = vmul.f32 %v8610_v20, %v2320_v27  ;;  %v2306_v31 = vadd.f32 %v2275_v4, %v8526_v44  ;;  %2440 = vrot.lane.b32.xlu0 %v8687_v54, %s7489_s1  ;;  %v2393_v63 = vld [vmem:[#allocation2 + $0x48] sm:$0xff] }
 0x77f   :  { %v2366_v45 = vadd.f32 %v8615_v26, %v2343_v33  ;;  %v2321_v1 = vadd.f32 %v7485_v29, %v2306_v31 }
 0x780   :  { %v2277_v30 = vpop.permute.xlu1 %2276  ;;  %v2249_v60 = vpop.permute.xlu0 %2248  ;;  %v8695_v37 = vld [vmem:[#allocation2 + $0x4c] sm:$0xff] }
 0x781   :  { %2381 = vst.msk [vmem:[#allocation2 + $0x60] sm:$0xff] %vm524_vm4, %v2366_v45  ;;  %v2344_v57 = vmul.f32 %v8610_v20, %v2321_v1  ;;  %v2307_v52 = vadd.f32 %v2277_v30, %v8532_v47  ;;  %v2293_v42 = vadd.f32 %v2249_v60, %v8438_v51  ;;  %2442 = vrot.lane.b32.xlu1 %v8695_v37, %s7489_s1  ;;  %v2394_v4 = vld [vmem:[#allocation2 + $0x50] sm:$0xff] }
 0x783   :  { %v2367_v44 = vadd.f32 %v8615_v26, %v2344_v57  ;;  %v2322_v32 = vadd.f32 %v7486_v2, %v2307_v52  ;;  %v2308_v49 = vadd.f32 %v2293_v42, %v8164_v22  ;;  %v5941_v2 = vld [vmem:[%s10003_s7 + $0x20] sm:$0xff] }
 0x784   :  { %v8705_v62 = vld [vmem:[#allocation2 + $0x54] sm:$0xff] }
 0x785   :  { %2382 = vst.msk [vmem:[#allocation2 + $0x68] sm:$0xff] %vm524_vm4, %v2367_v44  ;;  %v2345_v23 = vmul.f32 %v8610_v20, %v2322_v32  ;;  %v2331_v8 = vmul.f32 %v8610_v20, %v2308_v49  ;;  %2444 = vrot.lane.b32.xlu0 %v8705_v62, %s7489_s1  ;;  %v2395_v45 = vld [vmem:[#allocation2 + $0x58] sm:$0xff]  ;;  %v5942_v32 = vld [vmem:[%s10003_s7 + $0x28] sm:$0xff] }
 0x786   :  { %v6908_v49 = vpack.c.bf16 %v5942_v32, %v5941_v2 }
 0x787   :  { %v2368_v51 = vadd.f32 %v8615_v26, %v2345_v23  ;;  %v2354_v47 = vadd.f32 %v8615_v26, %v2331_v8  ;;  %v8770_v23 = vld [vmem:[%s10004_s6 + $0x2] ss:$0 sm:$0xff] }
 0x788   :  { %v8714_v24 = vld [vmem:[#allocation2 + $0x5c] sm:$0xff]  ;;  %6909 = vmatprep.subr.bf16.mxu1 %v6908_v49 }
 0x789   :  { %2383 = vst.msk [vmem:[#allocation2 + $0x70] sm:$0xff] %vm524_vm4, %v2368_v51  ;;  %2369 = vst.msk [vmem:[#allocation2] sm:$0xff] %vm524_vm4, %v2354_v47  ;;  %2446 = vrot.lane.b32.xlu1 %v8714_v24, %s7489_s1  ;;  %v2396_v30 = vld [vmem:[#allocation2 + $0x60] sm:$0xff] }
 0x78c   :  { %v8720_v22 = vld [vmem:[#allocation2 + $0x64] sm:$0xff] }
 0x78d   :  { %2448 = vrot.lane.b32.xlu0 %v8720_v22, %s7489_s1  ;;  %v2397_v57 = vld [vmem:[#allocation2 + $0x68] sm:$0xf] }
 0x790   :  { %v8724_v20 = vld [vmem:[#allocation2 + $0x6c] sm:$0xff]  ;;  %v8726_v10 = vld [vmem:[#allocation2 + $0x74] sm:$0xf]  ;;  %v2384_v5 = vld [vmem:[#allocation2] sm:$0xff] }
 0x791   :  { %2450 = vrot.lane.b32.xlu1 %v8724_v20, %s7489_s1  ;;  %2452 = vrot.lane.b32.xlu0 %v8726_v10, %s7489_s1 }
 0x7d2   :  { %v2427_v26 = vpop.permute.xlu1 %2426 }
 0x7d3   :  { %v2468_v12 = vsel %vm524_vm4, %v2384_v5, %v2427_v26 }
 0x7d4   :  { %6581 = vmatprep.mubr.msk.f32.mxu1 %vm683_vm9, %v2468_v12 }
 0x7d7   :  { %v2429_v38 = vpop.permute.xlu0 %2428 }
 0x7d8   :  { %v2469_v15 = vsel %vm524_vm4, %v2385_v7, %v2429_v38 }
 0x7d9   :  { %6582 = vmatmul.mubr.msk.f32.vlgmr.msra.gmra.mrb[48].mxu1 %vm683_vm9, %v2469_v15 }
 0x7da   :  { %6911 = vmatpush3.bf16.msra.mxu1 %v6908_v49 }
 0x7db   :  { %v2431_v14 = vpop.permute.xlu1 %2430  ;;  %6918 = vmatprep.subr.bf16.mxu1 %v7492_v46 }
 0x7dc   :  { %v2470_v0 = vsel %vm524_vm4, %v2386_v6, %v2431_v14 }
 0x7dd   :  { %6584 = vmatprep.mubr.msk.f32.mxu1 %vm683_vm9, %v2470_v0 }
 0x7df   :  { %v2433_v17 = vpop.permute.xlu0 %2432 }
 0x7e0   :  { %v2471_v55 = vsel %vm524_vm4, %v2387_v40, %v2433_v17 }
 0x7e1   :  { %6585 = vmatmul.mubr.msk.f32.gmra.mrb[50].mxu1 %vm683_vm9, %v2471_v55 }
 0x7e3   :  { %v2435_v53 = vpop.permute.xlu1 %2434 }
 0x7e4   :  { %v2472_v13 = vsel %vm524_vm4, %v2388_v35, %v2435_v53 }
 0x7e5   :  { %6587 = vmatprep.mubr.msk.f32.mxu1 %vm683_vm9, %v2472_v13 }
 0x7e7   :  { %v2437_v16 = vpop.permute.xlu0 %2436 }
 0x7e8   :  { %v2473_v61 = vsel %vm524_vm4, %v2389_v56, %v2437_v16 }
 0x7e9   :  { %6588 = vmatmul.mubr.msk.f32.gmra.mrb[52].mxu1 %vm683_vm9, %v2473_v61 }
 0x7eb   :  { %v2439_v3 = vpop.permute.xlu1 %2438 }
 0x7ec   :  { %v2474_v39 = vsel %vm524_vm4, %v2390_v18, %v2439_v3 }
 0x7ed   :  { %6590 = vmatprep.mubr.msk.f32.mxu1 %vm683_vm9, %v2474_v39 }
 0x7ef   :  { %v2441_v9 = vpop.permute.xlu0 %2440 }
 0x7f0   :  { %v2475_v36 = vsel %vm524_vm4, %v2391_v28, %v2441_v9 }
 0x7f1   :  { %6591 = vmatmul.mubr.msk.f32.gmra.mrb[54].mxu1 %vm683_vm9, %v2475_v36 }
 0x7f3   :  { %v2443_v59 = vpop.permute.xlu1 %2442 }
 0x7f4   :  { %v2476_v48 = vsel %vm524_vm4, %v2392_v19, %v2443_v59 }
 0x7f5   :  { %6593 = vmatprep.mubr.msk.f32.mxu1 %vm683_vm9, %v2476_v48 }
 0x7f7   :  { %v2445_v50 = vpop.permute.xlu0 %2444 }
 0x7f8   :  { %v2477_v27 = vsel %vm524_vm4, %v2393_v63, %v2445_v50 }
 0x7f9   :  { %6594 = vmatmul.mubr.msk.f32.gmra.mrb[56].mxu1 %vm683_vm9, %v2477_v27 }
 0x7fb   :  { %v2447_v33 = vpop.permute.xlu1 %2446 }
 0x7fc   :  { %v2478_v31 = vsel %vm524_vm4, %v2394_v4, %v2447_v33 }
 0x7fd   :  { %6596 = vmatprep.mubr.msk.f32.mxu1 %vm683_vm9, %v2478_v31 }
 0x7ff   :  { %v2449_v29 = vpop.permute.xlu0 %2448 }
 0x800   :  { %v2479_v1 = vsel %vm524_vm4, %v2395_v45, %v2449_v29 }
 0x801   :  { %6597 = vmatmul.mubr.msk.f32.gmra.mrb[58].mxu1 %vm683_vm9, %v2479_v1 }
 0x803   :  { %v2451_v60 = vpop.permute.xlu1 %2450  ;;  %v2453_v52 = vpop.permute.xlu0 %2452 }
 0x804   :  { %v2480_v42 = vsel %vm524_vm4, %v2396_v30, %v2451_v60  ;;  %v2481_v44 = vsel %vm524_vm4, %v2397_v57, %v2453_v52 }
 0x805   :  { %6599 = vmatprep.mubr.msk.f32.mxu1 %vm683_vm9, %v2480_v42 }
 0x806   :  { %6600 = vmatmul.mubr.msk.f32.gmra.mrb[60].mxu1 %vm683_vm9, %v2481_v44 }
 0x8ac   :  { %v6583_v8 = vpop.f32.mrb[48].mxu1 }
 0x8ad   :  { %v8773_v51 = vadd.f32 %v6583_v8, %v8770_v23  ;;  %v2603_v47 = vpop.f32.mrb[49].mxu1 }
 0x8ae   :  { %v8776_v26 = vadd.f32 %v8770_v23, %v2603_v47 }
 0x8af   :  { %v5928_v5 = vmul.f32 -1.442695, %v8773_v51 }
 0x8b0   :  { %v5927_v12 = vmul.f32 -1.442695, %v8776_v26 }
 0x8b1   :  { %7182 = vpow2.f32 %v5928_v5 }
 0x8b2   :  { %7184 = vpow2.f32 %v5927_v12 }
 0x8b4   :  { %v6586_v7 = vpop.f32.mrb[50].mxu1 }
 0x8b5   :  { %v8781_v38 = vadd.f32 %v6586_v7, %v8770_v23  ;;  %v2613_v15 = vpop.f32.mrb[51].mxu1 }
 0x8b6   :  { %v8784_v6 = vadd.f32 %v8770_v23, %v2613_v15 }
 0x8b7   :  { %v5930_v14 = vmul.f32 -1.442695, %v8781_v38 }
 0x8b8   :  { %v5929_v0 = vmul.f32 -1.442695, %v8784_v6 }
 0x8b9   :  { %7186 = vpow2.f32 %v5930_v14 }
 0x8ba   :  { %7188 = vpow2.f32 %v5929_v0 }
 0x8bb   :  { %v7183_v40 = vpop.eup %7182 }
 0x8bc   :  { %v7185_v17 = vpop.eup %7184  ;;  %v2729_v55 = vadd.f32 1.0, %v7183_v40  ;;  %v6589_v35 = vpop.f32.mrb[52].mxu1 }
 0x8bd   :  { %v2728_v53 = vadd.f32 1.0, %v7185_v17  ;;  %v8789_v13 = vadd.f32 %v6589_v35, %v8770_v23  ;;  %v2623_v56 = vpop.f32.mrb[53].mxu1 }
 0x8be   :  { %7190 = vrcp.f32 %v2729_v55  ;;  %v8792_v16 = vadd.f32 %v8770_v23, %v2623_v56 }
 0x8bf   :  { %7192 = vrcp.f32 %v2728_v53  ;;  %v5932_v61 = vmul.f32 -1.442695, %v8789_v13 }
 0x8c0   :  { %v5931_v18 = vmul.f32 -1.442695, %v8792_v16 }
 0x8c1   :  { %7194 = vpow2.f32 %v5932_v61 }
 0x8c2   :  { %7196 = vpow2.f32 %v5931_v18 }
 0x8c3   :  { %v7187_v3 = vpop.eup %7186 }
 0x8c4   :  { %v7189_v39 = vpop.eup %7188  ;;  %v2731_v28 = vadd.f32 1.0, %v7187_v3  ;;  %v6592_v9 = vpop.f32.mrb[54].mxu1 }
 0x8c5   :  { %v2730_v36 = vadd.f32 1.0, %v7189_v39  ;;  %v8797_v19 = vadd.f32 %v6592_v9, %v8770_v23  ;;  %v2633_v59 = vpop.f32.mrb[55].mxu1 }
 0x8c6   :  { %7198 = vrcp.f32 %v2731_v28  ;;  %v8800_v48 = vadd.f32 %v8770_v23, %v2633_v59 }
 0x8c7   :  { %7200 = vrcp.f32 %v2730_v36  ;;  %v5934_v63 = vmul.f32 -1.442695, %v8797_v19 }
 0x8c8   :  { %v7191_v50 = vpop.eup %7190  ;;  %v5933_v27 = vmul.f32 -1.442695, %v8800_v48 }
 0x8c9   :  { %v7193_v4 = vpop.eup %7192  ;;  %7202 = vpow2.f32 %v5934_v63  ;;  %2786 = vrot.lane.b32.xlu0 %v7191_v50, %s7490_s28 }
 0x8ca   :  { %2784 = vrot.lane.b32.xlu1 %v7193_v4, %s7490_s28  ;;  %7204 = vpow2.f32 %v5933_v27 }
 0x8cb   :  { %v7195_v33 = vpop.eup %7194 }
 0x8cc   :  { %v2733_v31 = vadd.f32 1.0, %v7195_v33  ;;  %v6595_v45 = vpop.f32.mrb[56].mxu1  ;;  %v7197_v29 = vpop.eup %7196 }
 0x8cd   :  { %v8807_v1 = vadd.f32 %v6595_v45, %v8770_v23  ;;  %v2643_v30 = vpop.f32.mrb[57].mxu1  ;;  %v2732_v60 = vadd.f32 1.0, %v7197_v29 }
 0x8ce   :  { %7206 = vrcp.f32 %v2733_v31  ;;  %v8810_v57 = vadd.f32 %v8770_v23, %v2643_v30 }
 0x8cf   :  { %v5936_v52 = vmul.f32 -1.442695, %v8807_v1  ;;  %7208 = vrcp.f32 %v2732_v60 }
 0x8d0   :  { %v7199_v42 = vpop.eup %7198  ;;  %v5935_v44 = vmul.f32 -1.442695, %v8810_v57 }
 0x8d1   :  { %v7201_v2 = vpop.eup %7200  ;;  %7210 = vpow2.f32 %v5936_v52  ;;  %2790 = vrot.lane.b32.xlu0 %v7199_v42, %s7490_s28 }
 0x8d2   :  { %2788 = vrot.lane.b32.xlu1 %v7201_v2, %s7490_s28  ;;  %7212 = vpow2.f32 %v5935_v44 }
 0x8d3   :  { %v7203_v32 = vpop.eup %7202 }
 0x8d4   :  { %v2735_v49 = vadd.f32 1.0, %v7203_v32  ;;  %v6598_v8 = vpop.f32.mrb[58].mxu1  ;;  %v7205_v47 = vpop.eup %7204 }
 0x8d5   :  { %v8817_v5 = vadd.f32 %v6598_v8, %v8770_v23  ;;  %v2653_v12 = vpop.f32.mrb[59].mxu1  ;;  %v2734_v7 = vadd.f32 1.0, %v7205_v47 }
 0x8d6   :  { %7214 = vrcp.f32 %v2735_v49  ;;  %v8820_v15 = vadd.f32 %v8770_v23, %v2653_v12 }
 0x8d7   :  { %v5938_v14 = vmul.f32 -1.442695, %v8817_v5  ;;  %7216 = vrcp.f32 %v2734_v7 }
 0x8d8   :  { %v7207_v0 = vpop.eup %7206  ;;  %v5937_v40 = vmul.f32 -1.442695, %v8820_v15 }
 0x8d9   :  { %7218 = vpow2.f32 %v5938_v14  ;;  %2794 = vrot.lane.b32.xlu0 %v7207_v0, %s7490_s28  ;;  %v6601_v17 = vpop.f32.mrb[60].mxu1  ;;  %v7209_v55 = vpop.eup %7208 }
 0x8da   :  { %v8826_v35 = vadd.f32 %v6601_v17, %v8770_v23  ;;  %v2663_v53 = vpop.f32.mrb[61].mxu1  ;;  %7220 = vpow2.f32 %v5937_v40  ;;  %2792 = vrot.lane.b32.xlu1 %v7209_v55, %s7490_s28 }
 0x8db   :  { %v7211_v56 = vpop.eup %7210  ;;  %v8830_v61 = vadd.f32 %v8770_v23, %v2663_v53 }
 0x8dc   :  { %v2737_v18 = vadd.f32 1.0, %v7211_v56  ;;  %v5940_v3 = vmul.f32 -1.442695, %v8826_v35  ;;  %v7213_v39 = vpop.eup %7212 }
 0x8dd   :  { %v5939_v28 = vmul.f32 -1.442695, %v8830_v61  ;;  %v2736_v9 = vadd.f32 1.0, %v7213_v39 }
 0x8de   :  { %7222 = vrcp.f32 %v2737_v18 }
 0x8df   :  { %7224 = vpow2.f32 %v5940_v3 }
 0x8e0   :  { %v7215_v36 = vpop.eup %7214  ;;  %7226 = vrcp.f32 %v2736_v9 }
 0x8e1   :  { %7228 = vpow2.f32 %v5939_v28  ;;  %2798 = vrot.lane.b32.xlu0 %v7215_v36, %s7490_s28  ;;  %v7217_v59 = vpop.eup %7216 }
 0x8e2   :  { %2796 = vrot.lane.b32.xlu1 %v7217_v59, %s7490_s28 }
 0x8e3   :  { %v7219_v63 = vpop.eup %7218 }
 0x8e4   :  { %v2739_v23 = vadd.f32 1.0, %v7219_v63  ;;  %v7221_v50 = vpop.eup %7220 }
 0x8e5   :  { %v2738_v27 = vadd.f32 1.0, %v7221_v50 }
 0x8e6   :  { %7230 = vrcp.f32 %v2739_v23 }
 0x8e7   :  { %7232 = vrcp.f32 %v2738_v27 }
 0x8e8   :  { %v7223_v4 = vpop.eup %7222 }
 0x8e9   :  { %v7225_v33 = vpop.eup %7224  ;;  %2802 = vrot.lane.b32.xlu0 %v7223_v4, %s7490_s28 }
 0x8ea   :  { %v7227_v31 = vpop.eup %7226  ;;  %v2741_v45 = vadd.f32 1.0, %v7225_v33 }
 0x8eb   :  { %v7229_v29 = vpop.eup %7228  ;;  %2800 = vrot.lane.b32.xlu1 %v7227_v31, %s7490_s28 }
 0x8ec   :  { %7234 = vrcp.f32 %v2741_v45  ;;  %v2740_v30 = vadd.f32 1.0, %v7229_v29  ;;  %v8917_v45 = vld [vmem:[%s10005_s8 + $0x2] ss:$0 sm:$0xff] }
 0x8ee   :  { %7236 = vrcp.f32 %v2740_v30 }
 0x8ef   :  { %7238 = vtanh.f32 %v8776_v26 }
 0x8f0   :  { %v7231_v60 = vpop.eup %7230  ;;  %7240 = vtanh.f32 %v8773_v51 }
 0x8f1   :  { %2806 = vrot.lane.b32.xlu0 %v7231_v60, %s7490_s28  ;;  %v7233_v52 = vpop.eup %7232  ;;  %7242 = vtanh.f32 %v8784_v6 }
 0x8f2   :  { %2804 = vrot.lane.b32.xlu1 %v7233_v52, %s7490_s28  ;;  %7244 = vtanh.f32 %v8781_v38  ;;  %v3029_v52 = vld [vmem:[#allocation3 + $0x14] sm:$0xff] }
 0x8f3   :  { %7246 = vtanh.f32 %v8792_v16 }
 0x8f4   :  { %7248 = vtanh.f32 %v8789_v13 }
 0x8f5   :  { %7250 = vtanh.f32 %v8800_v48 }
 0x8f6   :  { %v7235_v42 = vpop.eup %7234  ;;  %7252 = vtanh.f32 %v8797_v19 }
 0x8f7   :  { %2810 = vrot.lane.b32.xlu0 %v7235_v42, %s7490_s28  ;;  %7254 = vtanh.f32 %v8810_v57 }
 0x8f8   :  { %v7237_v44 = vpop.eup %7236  ;;  %7256 = vtanh.f32 %v8807_v1 }
 0x8f9   :  { %2808 = vrot.lane.b32.xlu1 %v7237_v44, %s7490_s28  ;;  %v7239_v32 = vpop.eup %7238  ;;  %7258 = vtanh.f32 %v8820_v15  ;;  %v3028_v44 = vld [vmem:[#allocation3 + $0xc] sm:$0xff] }
 0x8fa   :  { %v7241_v8 = vpop.eup %7240  ;;  %7260 = vtanh.f32 %v8817_v5 }
 0x8fb   :  { %v7243_v26 = vpop.eup %7242  ;;  %7262 = vtanh.f32 %v8830_v61 }
 0x8fc   :  { %v7245_v6 = vpop.eup %7244  ;;  %7264 = vtanh.f32 %v8826_v35 }
 0x8fd   :  { %v7247_v0 = vpop.eup %7246 }
 0x8fe   :  { %v7249_v13 = vpop.eup %7248 }
 0x8ff   :  { %v7251_v19 = vpop.eup %7250 }
 0x900   :  { %v7253_v56 = vpop.eup %7252 }
 0x901   :  { %v7255_v1 = vpop.eup %7254 }
 0x902   :  { %v7257_v28 = vpop.eup %7256 }
 0x903   :  { %v7259_v5 = vpop.eup %7258 }
 0x904   :  { %v7261_v63 = vpop.eup %7260 }
 0x905   :  { %v7263_v27 = vpop.eup %7262 }
 0x906   :  { %v7265_v33 = vpop.eup %7264 }
 0x93b   :  { %v2787_v2 = vpop.permute.xlu0 %2786 }
 0x93c   :  { %v2785_v49 = vpop.permute.xlu1 %2784  ;;  %v8848_v12 = vmul.f32 %v7241_v8, %v2787_v2 }
 0x93d   :  { %v8846_v47 = vmul.f32 %v7239_v32, %v2785_v49 }
 0x93f   :  { %6606 = vmatprep.mubr.msk.f32.mxu1 %vm524_vm4, %v8846_v47 }
 0x940   :  { %6607 = vmatmul.mubr.msk.f32.vlgmr.msra.gmra.mrb[62].mxu1 %vm524_vm4, %v8848_v12 }
 0x943   :  { %v2791_v51 = vpop.permute.xlu0 %2790 }
 0x944   :  { %v2789_v38 = vpop.permute.xlu1 %2788  ;;  %v8858_v14 = vmul.f32 %v7245_v6, %v2791_v51  ;;  %v3030_v6 = vld [vmem:[#allocation3 + $0x1c] sm:$0xff] }
 0x945   :  { %v8856_v7 = vmul.f32 %v7243_v26, %v2789_v38  ;;  %v3031_v26 = vld [vmem:[#allocation3 + $0x24] sm:$0xff] }
 0x947   :  { %6609 = vmatprep.mubr.msk.f32.mxu1 %vm524_vm4, %v8856_v7 }
 0x948   :  { %6610 = vmatmul.mubr.msk.f32.gmra.mrb[64].mxu1 %vm524_vm4, %v8858_v14 }
 0x94b   :  { %v2795_v16 = vpop.permute.xlu0 %2794 }
 0x94c   :  { %v2793_v40 = vpop.permute.xlu1 %2792  ;;  %v8868_v55 = vmul.f32 %v7249_v13, %v2795_v16 }
 0x94d   :  { %v8866_v17 = vmul.f32 %v7247_v0, %v2793_v40 }
 0x94f   :  { %6612 = vmatprep.mubr.msk.f32.mxu1 %vm524_vm4, %v8866_v17 }
 0x950   :  { %6613 = vmatmul.mubr.msk.f32.gmra.mrb[66].mxu1 %vm524_vm4, %v8868_v55 }
 0x953   :  { %v2799_v48 = vpop.permute.xlu0 %2798 }
 0x954   :  { %v2797_v53 = vpop.permute.xlu1 %2796  ;;  %v8878_v3 = vmul.f32 %v7253_v56, %v2799_v48  ;;  %v3032_v56 = vld [vmem:[#allocation3 + $0x2c] sm:$0xff] }
 0x955   :  { %v8876_v18 = vmul.f32 %v7251_v19, %v2797_v53  ;;  %v3033_v19 = vld [vmem:[#allocation3 + $0x34] sm:$0xff] }
 0x957   :  { %6615 = vmatprep.mubr.msk.f32.mxu1 %vm524_vm4, %v8876_v18 }
 0x958   :  { %6616 = vmatmul.mubr.msk.f32.gmra.mrb[68].mxu1 %vm524_vm4, %v8878_v3 }
 0x95b   :  { %v2803_v57 = vpop.permute.xlu0 %2802 }
 0x95c   :  { %v8888_v36 = vmul.f32 %v7257_v28, %v2803_v57 }
 0x95d   :  { %v2801_v39 = vpop.permute.xlu1 %2800 }
 0x95e   :  { %v8886_v9 = vmul.f32 %v7255_v1, %v2801_v39 }
 0x960   :  { %6618 = vmatprep.mubr.msk.f32.mxu1 %vm524_vm4, %v8886_v9 }
 0x961   :  { %6619 = vmatmul.mubr.msk.f32.gmra.mrb[70].mxu1 %vm524_vm4, %v8888_v36 }
 0x963   :  { %v2807_v15 = vpop.permute.xlu0 %2806 }
 0x964   :  { %v2805_v59 = vpop.permute.xlu1 %2804  ;;  %v8898_v50 = vmul.f32 %v7261_v63, %v2807_v15  ;;  %v3034_v63 = vld [vmem:[#allocation3 + $0x3c] sm:$0xff] }
 0x965   :  { %v8896_v23 = vmul.f32 %v7259_v5, %v2805_v59  ;;  %v3035_v5 = vld [vmem:[#allocation3 + $0x44] sm:$0xff] }
 0x967   :  { %6621 = vmatprep.mubr.msk.f32.mxu1 %vm524_vm4, %v8896_v23 }
 0x968   :  { %6622 = vmatmul.mubr.msk.f32.gmra.mrb[72].mxu1 %vm524_vm4, %v8898_v50 }
 0x969   :  { %v2811_v61 = vpop.permute.xlu0 %2810 }
 0x96a   :  { %v8906_v35 = vmul.f32 %v7265_v33, %v2811_v61 }
 0x96b   :  { %v2809_v4 = vpop.permute.xlu1 %2808 }
 0x96c   :  { %v8904_v31 = vmul.f32 %v7263_v27, %v2809_v4 }
 0x96e   :  { %6624 = vmatprep.mubr.msk.f32.mxu1 %vm524_vm4, %v8904_v31 }
 0x96f   :  { %6625 = vmatmul.mubr.msk.f32.gmra.mrb[74].mxu1 %vm524_vm4, %v8906_v35 }
 0x970   :  { %6672 = vmatprep.mubr.msk.f32.mxu1 %vm7493_vm10, %v7494_v34 }
 0xa13   :  { %v6608_v29 = vpop.f32.mrb[62].mxu1 }
 0xa14   :  { %v8920_v30 = vadd.f32 %v6608_v29, %v8917_v45  ;;  %v2959_v60 = vpop.f32.mrb[63].mxu1 }
 0xa15   :  { %v8923_v42 = vadd.f32 %v8917_v45, %v2959_v60  ;;  %v3037_v60 = vld [vmem:[#allocation3 + $0x54] sm:$0xff] }
 0xa16   :  { %v3043_v2 = vadd.f32 %v3029_v52, %v8920_v30 }
 0xa17   :  { %v3042_v32 = vadd.f32 %v3028_v44, %v8923_v42  ;;  %v3036_v44 = vld [vmem:[#allocation3 + $0x4c] sm:$0xff] }
 0xa18   :  { %3057 = vst.msk [vmem:[#allocation3 + $0x8] sm:$0xff] %vm683_vm9, %v3043_v2 }
 0xa19   :  { %3056 = vst.msk [vmem:[#allocation3] sm:$0xff] %vm683_vm9, %v3042_v32 }
 0xa1b   :  { %v6611_v49 = vpop.f32.mrb[64].mxu1 }
 0xa1c   :  { %v2975_v8 = vadd.f32 %v6611_v49, %v8917_v45  ;;  %v2969_v51 = vpop.f32.mrb[65].mxu1 }
 0xa1d   :  { %v8931_v38 = vadd.f32 %v8917_v45, %v2969_v51 }
 0xa1e   :  { %v3045_v16 = vadd.f32 %v3031_v26, %v2975_v8  ;;  %3091 = vrot.lane.b32.xlu1 %v2975_v8, %s7491_s16  ;;  %v3039_v26 = vld [vmem:[#allocation3 + $0x64] sm:$0xff] }
 0xa1f   :  { %v3044_v0 = vadd.f32 %v3030_v6, %v8931_v38 }
 0xa20   :  { %3059 = vst.msk [vmem:[#allocation3 + $0x18] sm:$0xff] %vm683_vm9, %v3045_v16  ;;  %v3038_v16 = vld [vmem:[#allocation3 + $0x5c] sm:$0xff] }
 0xa21   :  { %3058 = vst.msk [vmem:[#allocation3 + $0x10] sm:$0xff] %vm683_vm9, %v3044_v0 }
 0xa23   :  { %v6614_v40 = vpop.f32.mrb[66].mxu1 }
 0xa24   :  { %v2985_v13 = vadd.f32 %v6614_v40, %v8917_v45  ;;  %v2979_v48 = vpop.f32.mrb[67].mxu1 }
 0xa25   :  { %v2980_v53 = vadd.f32 %v8917_v45, %v2979_v48 }
 0xa26   :  { %v3047_v57 = vadd.f32 %v3033_v19, %v2985_v13  ;;  %3095 = vrot.lane.b32.xlu1 %v2985_v13, %s7491_s16 }
 0xa27   :  { %v3046_v1 = vadd.f32 %v3032_v56, %v2980_v53  ;;  %3093 = vrot.lane.b32.xlu0 %v2980_v53, %s7491_s16  ;;  %v3041_v53 = vld [vmem:[#allocation3 + $0x74] sm:$0xf] }
 0xa28   :  { %3061 = vst.msk [vmem:[#allocation3 + $0x28] sm:$0xff] %vm683_vm9, %v3047_v57 }
 0xa29   :  { %3060 = vst.msk [vmem:[#allocation3 + $0x20] sm:$0xff] %vm683_vm9, %v3046_v1  ;;  %v3040_v1 = vld [vmem:[#allocation3 + $0x6c] sm:$0xff] }
 0xa2b   :  { %v6617_v39 = vpop.f32.mrb[68].mxu1 }
 0xa2c   :  { %v2995_v28 = vadd.f32 %v6617_v39, %v8917_v45  ;;  %v2989_v15 = vpop.f32.mrb[69].mxu1 }
 0xa2d   :  { %v2990_v59 = vadd.f32 %v8917_v45, %v2989_v15  ;;  %v5965_v15 = vld [vmem:[%s9999_s5 + $0x70] sm:$0xff] }
 0xa2e   :  { %v3049_v61 = vadd.f32 %v3035_v5, %v2995_v28  ;;  %3099 = vrot.lane.b32.xlu1 %v2995_v28, %s7491_s16  ;;  %v5963_v28 = vld [vmem:[%s9999_s5 + $0x60] sm:$0xff] }
 0xa2f   :  { %v3048_v27 = vadd.f32 %v3034_v63, %v2990_v59  ;;  %3097 = vrot.lane.b32.xlu0 %v2990_v59, %s7491_s16 }
 0xa30   :  { %3063 = vst.msk [vmem:[#allocation3 + $0x38] sm:$0xff] %vm683_vm9, %v3049_v61 }
 0xa31   :  { %3062 = vst.msk [vmem:[#allocation3 + $0x30] sm:$0xff] %vm683_vm9, %v3048_v27 }
 0xa34   :  { %v6620_v4 = vpop.f32.mrb[70].mxu1 }
 0xa35   :  { %v3005_v33 = vadd.f32 %v6620_v4, %v8917_v45  ;;  %v2999_v29 = vpop.f32.mrb[71].mxu1  ;;  %v8997_v4 = vld [vmem:[%s10007_s10 + $0x2] ss:$0 sm:$0xff] }
 0xa36   :  { %v3000_v52 = vadd.f32 %v8917_v45, %v2999_v29 }
 0xa37   :  { %v3051_v2 = vadd.f32 %v3037_v60, %v3005_v33  ;;  %3103 = vrot.lane.b32.xlu1 %v3005_v33, %s7491_s16 }
 0xa38   :  { %v3050_v32 = vadd.f32 %v3036_v44, %v3000_v52  ;;  %3101 = vrot.lane.b32.xlu0 %v3000_v52, %s7491_s16 }
 0xa39   :  { %3065 = vst.msk [vmem:[#allocation3 + $0x48] sm:$0xff] %vm683_vm9, %v3051_v2 }
 0xa3a   :  { %3064 = vst.msk [vmem:[#allocation3 + $0x40] sm:$0xff] %vm683_vm9, %v3050_v32 }
 0xa3b   :  { %v6623_v49 = vpop.f32.mrb[72].mxu1 }
 0xa3c   :  { %v3015_v8 = vadd.f32 %v6623_v49, %v8917_v45  ;;  %v3009_v51 = vpop.f32.mrb[73].mxu1 }
 0xa3d   :  { %v3010_v6 = vadd.f32 %v8917_v45, %v3009_v51 }
 0xa3e   :  { %v3053_v0 = vadd.f32 %v3039_v26, %v3015_v8  ;;  %3107 = vrot.lane.b32.xlu1 %v3015_v8, %s7491_s16 }
 0xa3f   :  { %v3052_v40 = vadd.f32 %v3038_v16, %v3010_v6  ;;  %3105 = vrot.lane.b32.xlu0 %v3010_v6, %s7491_s16 }
 0xa40   :  { %3067 = vst.msk [vmem:[#allocation3 + $0x58] sm:$0xff] %vm683_vm9, %v3053_v0 }
 0xa41   :  { %3066 = vst.msk [vmem:[#allocation3 + $0x50] sm:$0xff] %vm683_vm9, %v3052_v40 }
 0xa42   :  { %v6626_v13 = vpop.f32.mrb[74].mxu1 }
 0xa43   :  { %v3025_v48 = vadd.f32 %v6626_v13, %v8917_v45  ;;  %v3019_v19 = vpop.f32.mrb[75].mxu1 }
 0xa44   :  { %v3020_v56 = vadd.f32 %v8917_v45, %v3019_v19  ;;  %v5964_v45 = vld [vmem:[%s9999_s5 + $0x68] sm:$0xff] }
 0xa45   :  { %v3055_v57 = vadd.f32 %v3041_v53, %v3025_v48  ;;  %3111 = vrot.lane.b32.xlu1 %v3025_v48, %s7491_s16  ;;  %v6913_v5 = vpack.c.bf16 %v5964_v45, %v5963_v28 }
 0xa46   :  { %v3054_v39 = vadd.f32 %v3040_v1, %v3020_v56  ;;  %3109 = vrot.lane.b32.xlu0 %v3020_v56, %s7491_s16 }
 0xa47   :  { %3070 = vst.msk [vmem:[#allocation3 + $0x68] sm:$0xf] %vm3069_vm11, %v3055_v57  ;;  %6914 = vmatpush3.bf16.msra.mxu0 %v6913_v5 }
 0xa48   :  { %3068 = vst.msk [vmem:[#allocation3 + $0x60] sm:$0xff] %vm683_vm9, %v3054_v39  ;;  %6915 = vmatprep.subr.bf16.mxu0 %v7492_v46 }
 0xa49   :  { %3087 = vrot.lane.b32.xlu1 %v8920_v30, %s7491_s16  ;;  %v5966_v30 = vld [vmem:[%s9999_s5 + $0x78] sm:$0xff] }
 0xa4a   :  { %3085 = vrot.lane.b32.xlu0 %v8923_v42, %s7491_s16  ;;  %v6916_v59 = vpack.c.bf16 %v5966_v30, %v5965_v15  ;;  %v8991_v42 = vld [vmem:[%s10006_s9 + $0x2] ss:$0 sm:$0xff] }
 0xa4c   :  { %6917 = vmatpush3.bf16.msra.mxu0 %v6916_v59 }
 0xa4d   :  { %6921 = vmatprep.subr.bf16.mxu0 %v7492_v46 }
 0xa4e   :  { %3089 = vrot.lane.b32.xlu0 %v8931_v38, %s7491_s16 }
 0xa90   :  { %v3092_v63 = vpop.permute.xlu1 %3091 }
 0xa91   :  { %v3130_v61 = vadd.f32 %v3092_v63, %v8858_v14 }
 0xa93   :  { %v3144_v27 = vadd.f32 %v3130_v61, %v8653_v25 }
 0xa95   :  { %v3166_v38 = vmul.f32 %v8991_v42, %v3144_v27 }
 0xa97   :  { %v3188_v33 = vadd.f32 %v8997_v4, %v3166_v38 }
 0xa98   :  { %v3096_v29 = vpop.permute.xlu1 %3095 }
 0xa99   :  { %3202 = vst.msk [vmem:[#allocation2 + $0x18] sm:$0xff] %vm524_vm4, %v3188_v33  ;;  %v3132_v14 = vadd.f32 %v3096_v29, %v8868_v55  ;;  %v3094_v60 = vpop.permute.xlu0 %3093 }
 0xa9a   :  { %v3131_v52 = vadd.f32 %v3094_v60, %v8866_v17 }
 0xa9b   :  { %v3146_v44 = vadd.f32 %v3132_v14, %v8670_v11 }
 0xa9c   :  { %v3145_v25 = vadd.f32 %v3131_v52, %v8662_v58 }
 0xa9d   :  { %v3168_v2 = vmul.f32 %v8991_v42, %v3146_v44 }
 0xa9e   :  { %v3167_v32 = vmul.f32 %v8991_v42, %v3145_v25 }
 0xa9f   :  { %v3190_v49 = vadd.f32 %v8997_v4, %v3168_v2 }
 0xaa0   :  { %v9009_v8 = vld [vmem:[#allocation2 + $0x18] sm:$0xff]  ;;  %v3189_v51 = vadd.f32 %v8997_v4, %v3167_v32  ;;  %v3100_v26 = vpop.permute.xlu1 %3099 }
 0xaa1   :  { %3239 = vrot.lane.b32.xlu1 %v9009_v8, %s7489_s1  ;;  %3204 = vst.msk [vmem:[#allocation2 + $0x28] sm:$0xff] %vm524_vm4, %v3190_v49  ;;  %v3134_v11 = vadd.f32 %v3100_v26, %v8878_v3  ;;  %v3098_v17 = vpop.permute.xlu0 %3097 }
 0xaa2   :  { %3203 = vst.msk [vmem:[#allocation2 + $0x20] sm:$0xff] %vm524_vm4, %v3189_v51  ;;  %v3133_v58 = vadd.f32 %v3098_v17, %v8876_v18 }
 0xaa3   :  { %v3148_v55 = vadd.f32 %v3134_v11, %v8687_v54 }
 0xaa4   :  { %v3147_v6 = vadd.f32 %v3133_v58, %v8679_v43 }
 0xaa5   :  { %v3170_v16 = vmul.f32 %v8991_v42, %v3148_v55 }
 0xaa6   :  { %v3169_v0 = vmul.f32 %v8991_v42, %v3147_v6 }
 0xaa7   :  { %v3192_v40 = vadd.f32 %v8997_v4, %v3170_v16 }
 0xaa8   :  { %v3191_v13 = vadd.f32 %v8997_v4, %v3169_v0  ;;  %v9024_v19 = vld [vmem:[#allocation2 + $0x28] sm:$0xff] }
 0xaa9   :  { %v3104_v48 = vpop.permute.xlu1 %3103  ;;  %3206 = vst.msk [vmem:[#allocation2 + $0x38] sm:$0xff] %vm524_vm4, %v3192_v40  ;;  %3243 = vrot.lane.b32.xlu1 %v9024_v19, %s7489_s1  ;;  %v9030_v43 = vld [vmem:[#allocation2 + $0x20] sm:$0xff] }
 0xaaa   :  { %v3136_v3 = vadd.f32 %v3104_v48, %v8888_v36  ;;  %v3102_v54 = vpop.permute.xlu0 %3101  ;;  %3205 = vst.msk [vmem:[#allocation2 + $0x30] sm:$0xff] %vm524_vm4, %v3191_v13  ;;  %3241 = vrot.lane.b32.xlu0 %v9030_v43, %s7489_s1 }
 0xaab   :  { %v3135_v18 = vadd.f32 %v3102_v54, %v8886_v9 }
 0xaac   :  { %v3150_v53 = vadd.f32 %v3136_v3, %v8705_v62 }
 0xaad   :  { %v3149_v56 = vadd.f32 %v3135_v18, %v8695_v37 }
 0xaae   :  { %v3172_v57 = vmul.f32 %v8991_v42, %v3150_v53 }
 0xaaf   :  { %v3171_v36 = vmul.f32 %v8991_v42, %v3149_v56 }
 0xab0   :  { %v3194_v1 = vadd.f32 %v8997_v4, %v3172_v57  ;;  %v3108_v28 = vpop.permute.xlu1 %3107  ;;  %v9042_v45 = vld [vmem:[#allocation2 + $0x38] sm:$0xff] }
 0xab1   :  { %v3193_v39 = vadd.f32 %v8997_v4, %v3171_v36  ;;  %v3138_v9 = vadd.f32 %v3108_v28, %v8898_v50  ;;  %3247 = vrot.lane.b32.xlu1 %v9042_v45, %s7489_s1  ;;  %v3106_v62 = vpop.permute.xlu0 %3105  ;;  %v9048_v37 = vld [vmem:[#allocation2 + $0x30] sm:$0xff] }
 0xab2   :  { %3208 = vst.msk [vmem:[#allocation2 + $0x48] sm:$0xff] %vm524_vm4, %v3194_v1  ;;  %v3137_v15 = vadd.f32 %v3106_v62, %v8896_v23  ;;  %3245 = vrot.lane.b32.xlu0 %v9048_v37, %s7489_s1 }
 0xab3   :  { %3207 = vst.msk [vmem:[#allocation2 + $0x40] sm:$0xff] %vm524_vm4, %v3193_v39  ;;  %v3152_v5 = vadd.f32 %v3138_v9, %v8720_v22 }
 0xab4   :  { %v3151_v30 = vadd.f32 %v3137_v15, %v8714_v24 }
 0xab5   :  { %v3174_v59 = vmul.f32 %v8991_v42, %v3152_v5 }
 0xab6   :  { %v3173_v50 = vmul.f32 %v8991_v42, %v3151_v30 }
 0xab7   :  { %v3112_v63 = vpop.permute.xlu1 %3111  ;;  %v3196_v61 = vadd.f32 %v8997_v4, %v3174_v59 }
 0xab8   :  { %v3140_v27 = vadd.f32 %v3112_v63, %v8906_v35  ;;  %v3110_v38 = vpop.permute.xlu0 %3109  ;;  %v3195_v33 = vadd.f32 %v8997_v4, %v3173_v50 }
 0xab9   :  { %v3139_v23 = vadd.f32 %v3110_v38, %v8904_v31  ;;  %v9062_v29 = vld [vmem:[#allocation2 + $0x48] sm:$0xff]  ;;  %3210 = vst.msk [vmem:[#allocation2 + $0x58] sm:$0xff] %vm524_vm4, %v3196_v61  ;;  %v5991_v38 = vld [vmem:[%s10003_s7 + $0x30] sm:$0xff] }
 0xaba   :  { %v3154_v24 = vadd.f32 %v3140_v27, %v8726_v10  ;;  %3251 = vrot.lane.b32.xlu1 %v9062_v29, %s7489_s1  ;;  %v9068_v22 = vld [vmem:[#allocation2 + $0x40] sm:$0xff]  ;;  %3209 = vst.msk [vmem:[#allocation2 + $0x50] sm:$0xff] %vm524_vm4, %v3195_v33  ;;  %v5992_v33 = vld [vmem:[%s10003_s7 + $0x38] sm:$0xff] }
 0xabb   :  { %v3153_v35 = vadd.f32 %v3139_v23, %v8724_v20  ;;  %v3088_v14 = vpop.permute.xlu1 %3087  ;;  %3249 = vrot.lane.b32.xlu0 %v9068_v22, %s7489_s1  ;;  %v7487_v20 = vld [vmem:[#allocation2 + $0xc] sm:$0xff]  ;;  %v6919_v23 = vpack.c.bf16 %v5992_v33, %v5991_v38 }
 0xabc   :  { %v3176_v31 = vmul.f32 %v8991_v42, %v3154_v24  ;;  %v3128_v60 = vadd.f32 %v3088_v14, %v8848_v12  ;;  %v3086_v52 = vpop.permute.xlu0 %3085  ;;  %v9171_v24 = vld [vmem:[%s10004_s6 + $0x3] ss:$0 sm:$0xff] }
 0xabd   :  { %v3175_v10 = vmul.f32 %v8991_v42, %v3153_v35  ;;  %v3127_v44 = vadd.f32 %v3086_v52, %v8846_v47  ;;  %6920 = vmatpush3.bf16.msra.mxu1 %v6919_v23 }
 0xabe   :  { %v3198_v25 = vadd.f32 %v8997_v4, %v3176_v31  ;;  %v3142_v2 = vadd.f32 %v3128_v60, %v8637_v21  ;;  %6927 = vmatprep.subr.bf16.mxu1 %v7492_v46 }
 0xabf   :  { %v3197_v32 = vadd.f32 %v8997_v4, %v3175_v10  ;;  %v3141_v49 = vadd.f32 %v7487_v20, %v3127_v44 }
 0xac0   :  { %3212 = vst.msk [vmem:[#allocation2 + $0x68] sm:$0xf] %vm544_vm8, %v3198_v25  ;;  %v3164_v51 = vmul.f32 %v8991_v42, %v3142_v2  ;;  %v3090_v26 = vpop.permute.xlu0 %3089  ;;  %v9086_v47 = vld [vmem:[#allocation2 + $0x58] sm:$0xff] }
 0xac1   :  { %3211 = vst.msk [vmem:[#allocation2 + $0x60] sm:$0xff] %vm524_vm4, %v3197_v32  ;;  %v3163_v12 = vmul.f32 %v8991_v42, %v3141_v49  ;;  %v3129_v11 = vadd.f32 %v3090_v26, %v8856_v7  ;;  %3255 = vrot.lane.b32.xlu1 %v9086_v47, %s7489_s1  ;;  %v9091_v21 = vld [vmem:[#allocation2 + $0x50] sm:$0xff] }
 0xac2   :  { %v3186_v17 = vadd.f32 %v8997_v4, %v3164_v51  ;;  %3253 = vrot.lane.b32.xlu0 %v9091_v21, %s7489_s1  ;;  %v3223_v61 = vld [vmem:[#allocation2 + $0x50] sm:$0xf] }
 0xac3   :  { %v3185_v58 = vadd.f32 %v8997_v4, %v3163_v12  ;;  %v3143_v55 = vadd.f32 %v3129_v11, %v8645_v41 }
 0xac4   :  { %3200 = vst.msk [vmem:[#allocation2 + $0x8] sm:$0xff] %vm524_vm4, %v3186_v17 }
 0xac5   :  { %3199 = vst.msk [vmem:[#allocation2] sm:$0xff] %vm524_vm4, %v3185_v58  ;;  %v3165_v7 = vmul.f32 %v8991_v42, %v3143_v55 }
 0xac7   :  { %v3187_v6 = vadd.f32 %v8997_v4, %v3165_v7  ;;  %v9101_v16 = vld [vmem:[#allocation2 + $0x68] sm:$0xf] }
 0xac8   :  { %3259 = vrot.lane.b32.xlu1 %v9101_v16, %s7489_s1  ;;  %v9105_v0 = vld [vmem:[#allocation2 + $0x60] sm:$0xff] }
 0xac9   :  { %3201 = vst.msk [vmem:[#allocation2 + $0x10] sm:$0xff] %vm524_vm4, %v3187_v6  ;;  %3257 = vrot.lane.b32.xlu0 %v9105_v0, %s7489_s1 }
 0xacb   :  { %v3214_v42 = vld [vmem:[#allocation2 + $0x8] sm:$0xff] }
 0xacc   :  { %v3213_v40 = vld [vmem:[#allocation2] sm:$0xff] }
 0xad0   :  { %v3215_v54 = vld [vmem:[#allocation2 + $0x10] sm:$0xff] }
 0xb13   :  { %v3240_v41 = vpop.permute.xlu1 %3239 }
 0xb14   :  { %v3272_v13 = vsel %vm524_vm4, %v3213_v40, %v3240_v41 }
 0xb15   :  { %6636 = vmatmul.mubr.msk.f32.vlgmr.msra.gmra.mrb[68].mxu0 %vm683_vm9, %v3272_v13 }
 0xb16   :  { %6638 = vmatprep.mubr.msk.f32.mxu0 %vm7493_vm10, %v7494_v34 }
 0xb1b   :  { %v3244_v3 = vpop.permute.xlu1 %3243 }
 0xb1c   :  { %v3242_v4 = vpop.permute.xlu0 %3241  ;;  %v3274_v18 = vsel %vm524_vm4, %v3215_v54, %v3244_v3 }
 0xb1d   :  { %v3273_v48 = vsel %vm524_vm4, %v3214_v42, %v3242_v4 }
 0xb1e   :  { %6639 = vmatmul.mubr.msk.f32.gmra.mrb[70].mxu0 %vm683_vm9, %v3273_v48 }
 0xb1f   :  { %6641 = vmatprep.mubr.msk.f32.mxu0 %vm7493_vm10, %v7494_v34 }
 0xb22   :  { %6642 = vmatmul.mubr.msk.f32.gmra.mrb[72].mxu0 %vm683_vm9, %v3274_v18 }
 0xb23   :  { %6644 = vmatprep.mubr.msk.f32.mxu0 %vm7493_vm10, %v7494_v34  ;;  %v3248_v57 = vpop.permute.xlu1 %3247 }
 0xb24   :  { %v3246_v53 = vpop.permute.xlu0 %3245  ;;  %v3276_v36 = vsel %vm524_vm4, %v9030_v43, %v3248_v57 }
 0xb25   :  { %v3275_v56 = vsel %vm524_vm4, %v9009_v8, %v3246_v53 }
 0xb26   :  { %6645 = vmatmul.mubr.msk.f32.gmra.mrb[74].mxu0 %vm683_vm9, %v3275_v56 }
 0xb27   :  { %6647 = vmatprep.mubr.msk.f32.mxu0 %vm7493_vm10, %v7494_v34 }
 0xb2a   :  { %6648 = vmatmul.mubr.msk.f32.gmra.mrb[76].mxu0 %vm683_vm9, %v3276_v36 }
 0xb2b   :  { %6650 = vmatprep.mubr.msk.f32.mxu0 %vm7493_vm10, %v7494_v34 }
 0xb2c   :  { %v3252_v28 = vpop.permute.xlu1 %3251 }
 0xb2d   :  { %v3250_v1 = vpop.permute.xlu0 %3249  ;;  %v3278_v9 = vsel %vm524_vm4, %v9048_v37, %v3252_v28 }
 0xb2e   :  { %v3277_v39 = vsel %vm524_vm4, %v9024_v19, %v3250_v1 }
 0xb2f   :  { %6651 = vmatmul.mubr.msk.f32.gmra.mrb[78].mxu0 %vm683_vm9, %v3277_v39 }
 0xb30   :  { %6653 = vmatprep.mubr.msk.f32.mxu0 %vm7493_vm10, %v7494_v34 }
 0xb33   :  { %6654 = vmatmul.mubr.msk.f32.gmra.mrb[80].mxu0 %vm683_vm9, %v3278_v9  ;;  %v3256_v5 = vpop.permute.xlu1 %3255 }
 0xb34   :  { %6656 = vmatprep.mubr.msk.f32.mxu0 %vm7493_vm10, %v7494_v34  ;;  %v3254_v62 = vpop.permute.xlu0 %3253  ;;  %v3280_v30 = vsel %vm524_vm4, %v9068_v22, %v3256_v5 }
 0xb35   :  { %v3279_v15 = vsel %vm524_vm4, %v9042_v45, %v3254_v62 }
 0xb37   :  { %6657 = vmatmul.mubr.msk.f32.gmra.mrb[82].mxu0 %vm683_vm9, %v3279_v15 }
 0xb38   :  { %6659 = vmatprep.mubr.msk.f32.mxu0 %vm7493_vm10, %v7494_v34 }
 0xb3a   :  { %v3260_v63 = vpop.permute.xlu1 %3259 }
 0xb3b   :  { %v3258_v59 = vpop.permute.xlu0 %3257  ;;  %6660 = vmatmul.mubr.msk.f32.gmra.mrb[84].mxu0 %vm683_vm9, %v3280_v30  ;;  %v3282_v27 = vsel %vm524_vm4, %v3223_v61, %v3260_v63 }
 0xb3c   :  { %6662 = vmatprep.mubr.msk.f32.mxu0 %vm7493_vm10, %v7494_v34  ;;  %v3281_v50 = vsel %vm524_vm4, %v9062_v29, %v3258_v59 }
 0xb3f   :  { %6663 = vmatmul.mubr.msk.f32.gmra.mrb[86].mxu0 %vm683_vm9, %v3281_v50 }
 0xb40   :  { %6665 = vmatprep.mubr.msk.f32.mxu0 %vm7493_vm10, %v7494_v34 }
 0xb43   :  { %6666 = vmatmul.mubr.msk.f32.gmra.mrb[88].mxu0 %vm683_vm9, %v3282_v27 }
 0xb44   :  { %6713 = vmatprep.mubr.msk.f32.mxu0 %vm7493_vm10, %v7494_v34 }
 0xbe8   :  { %v3395_v35 = vpop.f32.mrb[68].mxu0 }
 0xbe9   :  { %v9174_v14 = vadd.f32 %v9171_v24, %v3395_v35  ;;  %v6637_v31 = vpop.f32.mrb[69].mxu0 }
 0xbeb   :  { %v5980_v60 = vmul.f32 -1.442695, %v9174_v14 }
 0xbed   :  { %7266 = vpow2.f32 %v5980_v60 }
 0xbf1   :  { %v3400_v52 = vpop.f32.mrb[70].mxu0 }
 0xbf2   :  { %v9178_v10 = vadd.f32 %v9171_v24, %v3400_v52  ;;  %v6640_v44 = vpop.f32.mrb[71].mxu0 }
 0xbf4   :  { %v5981_v25 = vmul.f32 -1.442695, %v9178_v10 }
 0xbf5   :  { %v3405_v2 = vpop.f32.mrb[72].mxu0 }
 0xbf6   :  { %7268 = vpow2.f32 %v5981_v25  ;;  %v9182_v20 = vadd.f32 %v9171_v24, %v3405_v2  ;;  %v6643_v49 = vpop.f32.mrb[73].mxu0 }
 0xbf7   :  { %v7267_v32 = vpop.eup %7266 }
 0xbf8   :  { %v3493_v51 = vadd.f32 1.0, %v7267_v32  ;;  %v5982_v26 = vmul.f32 -1.442695, %v9182_v20 }
 0xbf9   :  { %v3410_v12 = vpop.f32.mrb[74].mxu0 }
 0xbfa   :  { %7270 = vrcp.f32 %v3493_v51  ;;  %v9186_v11 = vadd.f32 %v9171_v24, %v3410_v12  ;;  %v6646_v17 = vpop.f32.mrb[75].mxu0 }
 0xbfb   :  { %7272 = vpow2.f32 %v5982_v26 }
 0xbfc   :  { %v5983_v58 = vmul.f32 -1.442695, %v9186_v11 }
 0xbfd   :  { %v3415_v55 = vpop.f32.mrb[76].mxu0 }
 0xbfe   :  { %7274 = vpow2.f32 %v5983_v58  ;;  %v9190_v7 = vadd.f32 %v9171_v24, %v3415_v55  ;;  %v6649_v6 = vpop.f32.mrb[77].mxu0 }
 0xc00   :  { %v7269_v41 = vpop.eup %7268  ;;  %v5984_v40 = vmul.f32 -1.442695, %v9190_v7 }
 0xc01   :  { %v3494_v13 = vadd.f32 1.0, %v7269_v41 }
 0xc02   :  { %v3420_v42 = vpop.f32.mrb[78].mxu0  ;;  %7276 = vpow2.f32 %v5984_v40 }
 0xc03   :  { %v9194_v4 = vadd.f32 %v9171_v24, %v3420_v42  ;;  %v6652_v48 = vpop.f32.mrb[79].mxu0  ;;  %7278 = vrcp.f32 %v3494_v13 }
 0xc04   :  { %v7271_v3 = vpop.eup %7270 }
 0xc05   :  { %v7273_v54 = vpop.eup %7272  ;;  %v5985_v18 = vmul.f32 -1.442695, %v9194_v4  ;;  %3537 = vrot.lane.b32.xlu0 %v7271_v3, %s7490_s28 }
 0xc06   :  { %v3495_v53 = vadd.f32 1.0, %v7273_v54  ;;  %v3425_v56 = vpop.f32.mrb[80].mxu0 }
 0xc07   :  { %7280 = vpow2.f32 %v5985_v18  ;;  %v9199_v57 = vadd.f32 %v9171_v24, %v3425_v56  ;;  %v6655_v36 = vpop.f32.mrb[81].mxu0 }
 0xc08   :  { %7282 = vrcp.f32 %v3495_v53  ;;  %v7275_v1 = vpop.eup %7274 }
 0xc09   :  { %v5986_v39 = vmul.f32 -1.442695, %v9199_v57  ;;  %v3496_v28 = vadd.f32 1.0, %v7275_v1 }
 0xc0a   :  { %v3430_v9 = vpop.f32.mrb[82].mxu0 }
 0xc0b   :  { %7284 = vpow2.f32 %v5986_v39  ;;  %v9203_v62 = vadd.f32 %v9171_v24, %v3430_v9  ;;  %v6658_v15 = vpop.f32.mrb[83].mxu0 }
 0xc0c   :  { %7286 = vrcp.f32 %v3496_v28  ;;  %v7277_v5 = vpop.eup %7276 }
 0xc0d   :  { %v5987_v30 = vmul.f32 -1.442695, %v9203_v62  ;;  %v7279_v59 = vpop.eup %7278  ;;  %v3497_v50 = vadd.f32 1.0, %v7277_v5 }
 0xc0e   :  { %v3435_v63 = vpop.f32.mrb[84].mxu0  ;;  %3539 = vrot.lane.b32.xlu1 %v7279_v59, %s7490_s28 }
 0xc0f   :  { %7288 = vpow2.f32 %v5987_v30  ;;  %v9207_v61 = vadd.f32 %v9171_v24, %v3435_v63  ;;  %v6661_v27 = vpop.f32.mrb[85].mxu0 }
 0xc10   :  { %7290 = vrcp.f32 %v3497_v50 }
 0xc11   :  { %v7281_v38 = vpop.eup %7280  ;;  %v5988_v33 = vmul.f32 -1.442695, %v9207_v61 }
 0xc12   :  { %v7283_v23 = vpop.eup %7282  ;;  %v3498_v35 = vadd.f32 1.0, %v7281_v38  ;;  %v3440_v31 = vpop.f32.mrb[86].mxu0 }
 0xc13   :  { %7292 = vpow2.f32 %v5988_v33  ;;  %v9212_v60 = vadd.f32 %v9171_v24, %v3440_v31  ;;  %3541 = vrot.lane.b32.xlu0 %v7283_v23, %s7490_s28  ;;  %v6664_v52 = vpop.f32.mrb[87].mxu0 }
 0xc14   :  { %7294 = vrcp.f32 %v3498_v35 }
 0xc15   :  { %v7285_v44 = vpop.eup %7284  ;;  %v5989_v25 = vmul.f32 -1.442695, %v9212_v60 }
 0xc16   :  { %v7287_v2 = vpop.eup %7286  ;;  %v3499_v32 = vadd.f32 1.0, %v7285_v44  ;;  %v3445_v49 = vpop.f32.mrb[88].mxu0 }
 0xc17   :  { %7296 = vpow2.f32 %v5989_v25  ;;  %v9217_v51 = vadd.f32 %v9171_v24, %v3445_v49  ;;  %3543 = vrot.lane.b32.xlu1 %v7287_v2, %s7490_s28  ;;  %v6667_v26 = vpop.f32.mrb[89].mxu0 }
 0xc18   :  { %7298 = vrcp.f32 %v3499_v32 }
 0xc19   :  { %v7289_v12 = vpop.eup %7288  ;;  %v5990_v17 = vmul.f32 -1.442695, %v9217_v51 }
 0xc1a   :  { %v7291_v58 = vpop.eup %7290  ;;  %v3500_v55 = vadd.f32 1.0, %v7289_v12 }
 0xc1b   :  { %7300 = vpow2.f32 %v5990_v17  ;;  %3545 = vrot.lane.b32.xlu0 %v7291_v58, %s7490_s28  ;;  %v3745_v58 = vld [vmem:[#allocation3 + $0x18] sm:$0xff] }
 0xc1c   :  { %7302 = vrcp.f32 %v3500_v55 }
 0xc1d   :  { %v7293_v6 = vpop.eup %7292 }
 0xc1e   :  { %v7295_v41 = vpop.eup %7294  ;;  %v3501_v40 = vadd.f32 1.0, %v7293_v6 }
 0xc1f   :  { %3547 = vrot.lane.b32.xlu1 %v7295_v41, %s7490_s28 }
 0xc20   :  { %7304 = vrcp.f32 %v3501_v40 }
 0xc21   :  { %v7297_v24 = vpop.eup %7296 }
 0xc22   :  { %v7299_v13 = vpop.eup %7298  ;;  %v3502_v42 = vadd.f32 1.0, %v7297_v24  ;;  %v3746_v24 = vld [vmem:[#allocation3 + $0x20] sm:$0xff] }
 0xc23   :  { %3549 = vrot.lane.b32.xlu0 %v7299_v13, %s7490_s28 }
 0xc24   :  { %7306 = vrcp.f32 %v3502_v42 }
 0xc25   :  { %v7301_v48 = vpop.eup %7300 }
 0xc26   :  { %v7303_v3 = vpop.eup %7302  ;;  %v3503_v54 = vadd.f32 1.0, %v7301_v48 }
 0xc27   :  { %3551 = vrot.lane.b32.xlu1 %v7303_v3, %s7490_s28 }
 0xc28   :  { %7308 = vrcp.f32 %v3503_v54  ;;  %v3747_v54 = vld [vmem:[#allocation3 + $0x28] sm:$0xff] }
 0xc29   :  { %7310 = vtanh.f32 %v9174_v14 }
 0xc2a   :  { %v7305_v18 = vpop.eup %7304  ;;  %7312 = vtanh.f32 %v9178_v10 }
 0xc2b   :  { %3553 = vrot.lane.b32.xlu0 %v7305_v18, %s7490_s28  ;;  %7314 = vtanh.f32 %v9182_v20 }
 0xc2c   :  { %7316 = vtanh.f32 %v9186_v11 }
 0xc2d   :  { %7318 = vtanh.f32 %v9190_v7 }
 0xc2e   :  { %v7307_v53 = vpop.eup %7306  ;;  %7320 = vtanh.f32 %v9194_v4 }
 0xc2f   :  { %3555 = vrot.lane.b32.xlu1 %v7307_v53, %s7490_s28  ;;  %7322 = vtanh.f32 %v9199_v57 }
 0xc30   :  { %7324 = vtanh.f32 %v9203_v62 }
 0xc31   :  { %7326 = vtanh.f32 %v9207_v61 }
 0xc32   :  { %v7309_v56 = vpop.eup %7308  ;;  %7328 = vtanh.f32 %v9212_v60 }
 0xc33   :  { %3557 = vrot.lane.b32.xlu0 %v7309_v56, %s7490_s28  ;;  %v7311_v36 = vpop.eup %7310  ;;  %7330 = vtanh.f32 %v9217_v51  ;;  %v9308_v51 = vld [vmem:[%s10005_s8 + $0x3] ss:$0 sm:$0xff] }
 0xc34   :  { %v7313_v28 = vpop.eup %7312 }
 0xc35   :  { %v7315_v14 = vpop.eup %7314 }
 0xc36   :  { %v7317_v11 = vpop.eup %7316 }
 0xc37   :  { %v7319_v30 = vpop.eup %7318 }
 0xc38   :  { %v7321_v50 = vpop.eup %7320 }
 0xc39   :  { %v7323_v27 = vpop.eup %7322 }
 0xc3a   :  { %v7325_v33 = vpop.eup %7324 }
 0xc3b   :  { %v7327_v35 = vpop.eup %7326 }
 0xc3c   :  { %v7329_v52 = vpop.eup %7328 }
 0xc3d   :  { %v7331_v2 = vpop.eup %7330 }
 0xc77   :  { %v3538_v1 = vpop.permute.xlu0 %3537 }
 0xc78   :  { %v9230_v39 = vmul.f32 %v7311_v36, %v3538_v1  ;;  %v3748_v1 = vld [vmem:[#allocation3 + $0x30] sm:$0xff] }
 0xc7a   :  { %6673 = vmatmul.mubr.msk.f32.vlgmr.msra.gmra.mrb[76].mxu1 %vm524_vm4, %v9230_v39 }
 0xc7b   :  { %6675 = vmatprep.mubr.msk.f32.mxu1 %vm7493_vm10, %v7494_v34 }
 0xc80   :  { %v3540_v9 = vpop.permute.xlu1 %3539 }
 0xc81   :  { %v9238_v15 = vmul.f32 %v7313_v28, %v3540_v9 }
 0xc83   :  { %6676 = vmatmul.mubr.msk.f32.gmra.mrb[78].mxu1 %vm524_vm4, %v9238_v15 }
 0xc84   :  { %6678 = vmatprep.mubr.msk.f32.mxu1 %vm7493_vm10, %v7494_v34 }
 0xc85   :  { %v3542_v10 = vpop.permute.xlu0 %3541 }
 0xc86   :  { %v9245_v20 = vmul.f32 %v7315_v14, %v3542_v10 }
 0xc88   :  { %6679 = vmatmul.mubr.msk.f32.gmra.mrb[80].mxu1 %vm524_vm4, %v9245_v20 }
 0xc89   :  { %v3544_v5 = vpop.permute.xlu1 %3543  ;;  %6681 = vmatprep.mubr.msk.f32.mxu1 %vm7493_vm10, %v7494_v34 }
 0xc8a   :  { %v9252_v7 = vmul.f32 %v7317_v11, %v3544_v5  ;;  %v3749_v11 = vld [vmem:[#allocation3 + $0x38] sm:$0xff] }
 0xc8c   :  { %6682 = vmatmul.mubr.msk.f32.gmra.mrb[82].mxu1 %vm524_vm4, %v9252_v7 }
 0xc8d   :  { %v3546_v59 = vpop.permute.xlu0 %3545  ;;  %6684 = vmatprep.mubr.msk.f32.mxu1 %vm7493_vm10, %v7494_v34 }
 0xc8e   :  { %v9259_v4 = vmul.f32 %v7319_v30, %v3546_v59 }
 0xc90   :  { %6685 = vmatmul.mubr.msk.f32.gmra.mrb[84].mxu1 %vm524_vm4, %v9259_v4 }
 0xc91   :  { %v3548_v63 = vpop.permute.xlu1 %3547  ;;  %6687 = vmatprep.mubr.msk.f32.mxu1 %vm7493_vm10, %v7494_v34 }
 0xc92   :  { %v9266_v57 = vmul.f32 %v7321_v50, %v3548_v63  ;;  %v3750_v63 = vld [vmem:[#allocation3 + $0x40] sm:$0xff] }
 0xc94   :  { %6688 = vmatmul.mubr.msk.f32.gmra.mrb[86].mxu1 %vm524_vm4, %v9266_v57 }
 0xc95   :  { %v3550_v38 = vpop.permute.xlu0 %3549  ;;  %6690 = vmatprep.mubr.msk.f32.mxu1 %vm7493_vm10, %v7494_v34 }
 0xc96   :  { %v9273_v62 = vmul.f32 %v7323_v27, %v3550_v38 }
 0xc98   :  { %6691 = vmatmul.mubr.msk.f32.gmra.mrb[88].mxu1 %vm524_vm4, %v9273_v62 }
 0xc99   :  { %v3552_v23 = vpop.permute.xlu1 %3551  ;;  %6693 = vmatprep.mubr.msk.f32.mxu1 %vm7493_vm10, %v7494_v34 }
 0xc9a   :  { %v9280_v61 = vmul.f32 %v7325_v33, %v3552_v23 }
 0xc9c   :  { %6694 = vmatmul.mubr.msk.f32.gmra.mrb[90].mxu1 %vm524_vm4, %v9280_v61 }
 0xc9d   :  { %v3554_v31 = vpop.permute.xlu0 %3553  ;;  %6696 = vmatprep.mubr.msk.f32.mxu1 %vm7493_vm10, %v7494_v34 }
 0xc9e   :  { %v9287_v60 = vmul.f32 %v7327_v35, %v3554_v31  ;;  %v3751_v35 = vld [vmem:[#allocation3 + $0x48] sm:$0xff] }
 0xca0   :  { %6697 = vmatmul.mubr.msk.f32.gmra.mrb[92].mxu1 %vm524_vm4, %v9287_v60 }
 0xca1   :  { %v3556_v44 = vpop.permute.xlu1 %3555  ;;  %6699 = vmatprep.mubr.msk.f32.mxu1 %vm7493_vm10, %v7494_v34 }
 0xca2   :  { %v9293_v25 = vmul.f32 %v7329_v52, %v3556_v44 }
 0xca4   :  { %6700 = vmatmul.mubr.msk.f32.gmra.mrb[94].mxu1 %vm524_vm4, %v9293_v25 }
 0xca5   :  { %v3558_v32 = vpop.permute.xlu0 %3557  ;;  %6702 = vmatprep.mubr.msk.f32.mxu1 %vm7493_vm10, %v7494_v34 }
 0xca6   :  { %v9299_v49 = vmul.f32 %v7331_v2, %v3558_v32  ;;  %v3752_v32 = vld [vmem:[#allocation3 + $0x50] sm:$0xff] }
 0xca8   :  { %6703 = vmatmul.mubr.msk.f32.gmra.mrb[96].mxu1 %vm524_vm4, %v9299_v49 }
 0xca9   :  { %6744 = vmatprep.mubr.msk.f32.mxu1 %vm7493_vm10, %v7494_v34 }
 0xd4d   :  { %v3691_v26 = vpop.f32.mrb[76].mxu1 }
 0xd4e   :  { %v9311_v12 = vadd.f32 %v9308_v51, %v3691_v26  ;;  %v6674_v17 = vpop.f32.mrb[77].mxu1 }
 0xd50   :  { %v3756_v55 = vadd.f32 %v3745_v58, %v9311_v12 }
 0xd52   :  { %3767 = vst.msk [vmem:[#allocation3] sm:$0xff] %vm683_vm9, %v3756_v55 }
 0xd56   :  { %v3696_v6 = vpop.f32.mrb[78].mxu1 }
 0xd57   :  { %v3697_v41 = vadd.f32 %v9308_v51, %v3696_v6  ;;  %v6677_v40 = vpop.f32.mrb[79].mxu1  ;;  %v3753_v6 = vld [vmem:[#allocation3 + $0x58] sm:$0xff] }
 0xd59   :  { %v3757_v13 = vadd.f32 %v3746_v24, %v3697_v41  ;;  %3791 = vrot.lane.b32.xlu1 %v3697_v41, %s7491_s16 }
 0xd5b   :  { %v3701_v42 = vpop.f32.mrb[80].mxu1  ;;  %3768 = vst.msk [vmem:[#allocation3 + $0x8] sm:$0xff] %vm683_vm9, %v3757_v13 }
 0xd5c   :  { %v3702_v48 = vadd.f32 %v9308_v51, %v3701_v42  ;;  %v6680_v3 = vpop.f32.mrb[81].mxu1  ;;  %v3754_v42 = vld [vmem:[#allocation3 + $0x60] sm:$0xff] }
 0xd5e   :  { %v3758_v18 = vadd.f32 %v3747_v54, %v3702_v48  ;;  %3793 = vrot.lane.b32.xlu0 %v3702_v48, %s7491_s16 }
 0xd5f   :  { %v3706_v53 = vpop.f32.mrb[82].mxu1 }
 0xd60   :  { %3769 = vst.msk [vmem:[#allocation3 + $0x10] sm:$0xff] %vm683_vm9, %v3758_v18  ;;  %v3707_v56 = vadd.f32 %v9308_v51, %v3706_v53  ;;  %v6683_v36 = vpop.f32.mrb[83].mxu1  ;;  %v3755_v53 = vld [vmem:[#allocation3 + $0x68] sm:$0xf] }
 0xd61   :  { %v6010_v36 = vld [vmem:[%s9999_s5 + $0x80] sm:$0xff] }
 0xd62   :  { %v3759_v28 = vadd.f32 %v3748_v1, %v3707_v56  ;;  %3795 = vrot.lane.b32.xlu1 %v3707_v56, %s7491_s16  ;;  %v6011_v1 = vld [vmem:[%s9999_s5 + $0x88] sm:$0xff] }
 0xd63   :  { %v3711_v9 = vpop.f32.mrb[84].mxu1 }
 0xd64   :  { %3770 = vst.msk [vmem:[#allocation3 + $0x18] sm:$0xff] %vm683_vm9, %v3759_v28  ;;  %v3712_v14 = vadd.f32 %v9308_v51, %v3711_v9  ;;  %v6686_v10 = vpop.f32.mrb[85].mxu1  ;;  %v6922_v28 = vpack.c.bf16 %v6011_v1, %v6010_v36 }
 0xd66   :  { %v3760_v5 = vadd.f32 %v3749_v11, %v3712_v14  ;;  %3797 = vrot.lane.b32.xlu0 %v3712_v14, %s7491_s16  ;;  %6923 = vmatpush3.bf16.msra.mxu0 %v6922_v28  ;;  %v9364_v11 = vld [vmem:[%s10006_s9 + $0x3] ss:$0 sm:$0xff] }
 0xd67   :  { %v3716_v30 = vpop.f32.mrb[86].mxu1  ;;  %6924 = vmatprep.subr.bf16.mxu0 %v7492_v46 }
 0xd68   :  { %3771 = vst.msk [vmem:[#allocation3 + $0x20] sm:$0xff] %vm683_vm9, %v3760_v5  ;;  %v3717_v59 = vadd.f32 %v9308_v51, %v3716_v30  ;;  %v6689_v50 = vpop.f32.mrb[87].mxu1  ;;  %v9370_v30 = vld [vmem:[%s10007_s10 + $0x3] ss:$0 sm:$0xff] }
 0xd6a   :  { %v3761_v27 = vadd.f32 %v3750_v63, %v3717_v59  ;;  %3799 = vrot.lane.b32.xlu1 %v3717_v59, %s7491_s16 }
 0xd6b   :  { %v3721_v38 = vpop.f32.mrb[88].mxu1 }
 0xd6c   :  { %3772 = vst.msk [vmem:[#allocation3 + $0x28] sm:$0xff] %vm683_vm9, %v3761_v27  ;;  %v3722_v33 = vadd.f32 %v9308_v51, %v3721_v38  ;;  %v6692_v23 = vpop.f32.mrb[89].mxu1 }
 0xd6e   :  { %v3762_v31 = vadd.f32 %v3751_v35, %v3722_v33  ;;  %3801 = vrot.lane.b32.xlu0 %v3722_v33, %s7491_s16 }
 0xd6f   :  { %v3726_v52 = vpop.f32.mrb[90].mxu1 }
 0xd70   :  { %3773 = vst.msk [vmem:[#allocation3 + $0x30] sm:$0xff] %vm683_vm9, %v3762_v31  ;;  %v3727_v44 = vadd.f32 %v9308_v51, %v3726_v52  ;;  %v6695_v2 = vpop.f32.mrb[91].mxu1 }
 0xd72   :  { %v3763_v26 = vadd.f32 %v3752_v32, %v3727_v44  ;;  %3803 = vrot.lane.b32.xlu1 %v3727_v44, %s7491_s16 }
 0xd73   :  { %v3731_v17 = vpop.f32.mrb[92].mxu1 }
 0xd74   :  { %3774 = vst.msk [vmem:[#allocation3 + $0x38] sm:$0xff] %vm683_vm9, %v3763_v26  ;;  %v3732_v58 = vadd.f32 %v9308_v51, %v3731_v17  ;;  %v6698_v55 = vpop.f32.mrb[93].mxu1 }
 0xd76   :  { %v3764_v41 = vadd.f32 %v3753_v6, %v3732_v58  ;;  %3805 = vrot.lane.b32.xlu0 %v3732_v58, %s7491_s16 }
 0xd77   :  { %v3736_v40 = vpop.f32.mrb[94].mxu1 }
 0xd78   :  { %3775 = vst.msk [vmem:[#allocation3 + $0x40] sm:$0xff] %vm683_vm9, %v3764_v41  ;;  %v3737_v24 = vadd.f32 %v9308_v51, %v3736_v40  ;;  %v6701_v13 = vpop.f32.mrb[95].mxu1 }
 0xd7a   :  { %v3765_v48 = vadd.f32 %v3754_v42, %v3737_v24  ;;  %3807 = vrot.lane.b32.xlu1 %v3737_v24, %s7491_s16 }
 0xd7b   :  { %v3741_v3 = vpop.f32.mrb[96].mxu1 }
 0xd7c   :  { %3776 = vst.msk [vmem:[#allocation3 + $0x48] sm:$0xff] %vm683_vm9, %v3765_v48  ;;  %v3742_v54 = vadd.f32 %v9308_v51, %v3741_v3  ;;  %v6704_v18 = vpop.f32.mrb[97].mxu1  ;;  %v6012_v51 = vld [vmem:[%s9999_s5 + $0x90] sm:$0xff] }
 0xd7e   :  { %v3766_v56 = vadd.f32 %v3755_v53, %v3742_v54  ;;  %3789 = vrot.lane.b32.xlu1 %v9311_v12, %s7491_s16  ;;  %3809 = vrot.lane.b32.xlu0 %v3742_v54, %s7491_s16  ;;  %v6013_v12 = vld [vmem:[%s9999_s5 + $0x98] sm:$0xff] }
 0xd7f   :  { %v6925_v9 = vpack.c.bf16 %v6013_v12, %v6012_v51 }
 0xd80   :  { %3777 = vst.msk [vmem:[#allocation3 + $0x50] sm:$0xf] %vm3069_vm11, %v3766_v56 }
 0xd81   :  { %6926 = vmatpush3.bf16.msra.mxu0 %v6925_v9 }
 0xdcb   :  { %v3792_v14 = vpop.permute.xlu1 %3791 }
 0xdcc   :  { %v3823_v10 = vadd.f32 %v3792_v14, %v9238_v15 }
 0xdce   :  { %v3834_v5 = vadd.f32 %v3823_v10, %v9030_v43 }
 0xdd0   :  { %v3794_v59 = vpop.permute.xlu0 %3793  ;;  %v3853_v50 = vmul.f32 %v9364_v11, %v3834_v5 }
 0xdd1   :  { %v3824_v63 = vadd.f32 %v3794_v59, %v9245_v20 }
 0xdd2   :  { %v3872_v27 = vadd.f32 %v9370_v30, %v3853_v50 }
 0xdd3   :  { %v3835_v15 = vadd.f32 %v3824_v63, %v9024_v19 }
 0xdd4   :  { %v3796_v38 = vpop.permute.xlu1 %3795  ;;  %3883 = vst.msk [vmem:[#allocation2 + $0x8] sm:$0xff] %vm524_vm4, %v3872_v27 }
 0xdd5   :  { %v3854_v33 = vmul.f32 %v9364_v11, %v3835_v15  ;;  %v3825_v43 = vadd.f32 %v3796_v38, %v9252_v7 }
 0xdd7   :  { %v3873_v23 = vadd.f32 %v9370_v30, %v3854_v33  ;;  %v3836_v35 = vadd.f32 %v3825_v43, %v9048_v37 }
 0xdd8   :  { %v3798_v31 = vpop.permute.xlu0 %3797 }
 0xdd9   :  { %3884 = vst.msk [vmem:[#allocation2 + $0x10] sm:$0xff] %vm524_vm4, %v3873_v23  ;;  %v3855_v20 = vmul.f32 %v9364_v11, %v3836_v35  ;;  %v3826_v52 = vadd.f32 %v3798_v31, %v9259_v4 }
 0xddb   :  { %v3874_v19 = vadd.f32 %v9370_v30, %v3855_v20  ;;  %v3837_v44 = vadd.f32 %v3826_v52, %v9042_v45  ;;  %v3894_v63 = vld [vmem:[#allocation2 + $0x8] sm:$0xff] }
 0xddc   :  { %v3800_v2 = vpop.permute.xlu1 %3799 }
 0xddd   :  { %3885 = vst.msk [vmem:[#allocation2 + $0x18] sm:$0xff] %vm524_vm4, %v3874_v19  ;;  %v3856_v7 = vmul.f32 %v9364_v11, %v3837_v44  ;;  %v3827_v32 = vadd.f32 %v3800_v2, %v9266_v57 }
 0xddf   :  { %v3875_v37 = vadd.f32 %v9370_v30, %v3856_v7  ;;  %v3838_v26 = vadd.f32 %v3827_v32, %v9068_v22 }
 0xde0   :  { %v3802_v17 = vpop.permute.xlu0 %3801  ;;  %v9391_v58 = vld [vmem:[#allocation2 + $0xc] sm:$0xff] }
 0xde1   :  { %3886 = vst.msk [vmem:[#allocation2 + $0x20] sm:$0xff] %vm524_vm4, %v3875_v37  ;;  %v3857_v4 = vmul.f32 %v9364_v11, %v3838_v26  ;;  %v3828_v45 = vadd.f32 %v3802_v17, %v9273_v62  ;;  %3920 = vrot.lane.b32.xlu0 %v9391_v58, %s7489_s1  ;;  %v3895_v38 = vld [vmem:[#allocation2 + $0x10] sm:$0xff] }
 0xde3   :  { %v3876_v55 = vadd.f32 %v9370_v30, %v3857_v4  ;;  %v3839_v57 = vadd.f32 %v3828_v45, %v9062_v29 }
 0xde4   :  { %v3804_v6 = vpop.permute.xlu1 %3803  ;;  %v9400_v41 = vld [vmem:[#allocation2 + $0x14] sm:$0xff] }
 0xde5   :  { %3887 = vst.msk [vmem:[#allocation2 + $0x28] sm:$0xff] %vm524_vm4, %v3876_v55  ;;  %v3858_v22 = vmul.f32 %v9364_v11, %v3839_v57  ;;  %v3829_v40 = vadd.f32 %v3804_v6, %v9280_v61  ;;  %3922 = vrot.lane.b32.xlu1 %v9400_v41, %s7489_s1  ;;  %v3896_v23 = vld [vmem:[#allocation2 + $0x18] sm:$0xff] }
 0xde7   :  { %v3877_v62 = vadd.f32 %v9370_v30, %v3858_v22  ;;  %v3840_v24 = vadd.f32 %v3829_v40, %v9091_v21  ;;  %v6034_v22 = vld [vmem:[%s10003_s7 + $0x40] sm:$0xff]  ;;  %v6035_v40 = vld [vmem:[%s10003_s7 + $0x48] sm:$0xff] }
 0xde8   :  { %v3806_v13 = vpop.permute.xlu0 %3805  ;;  %v9409_v42 = vld [vmem:[#allocation2 + $0x1c] sm:$0xff] }
 0xde9   :  { %3888 = vst.msk [vmem:[#allocation2 + $0x30] sm:$0xff] %vm524_vm4, %v3877_v62  ;;  %v3859_v29 = vmul.f32 %v9364_v11, %v3840_v24  ;;  %v3830_v48 = vadd.f32 %v3806_v13, %v9287_v60  ;;  %3924 = vrot.lane.b32.xlu0 %v9409_v42, %s7489_s1  ;;  %v3897_v20 = vld [vmem:[#allocation2 + $0x20] sm:$0xff]  ;;  %v6928_v62 = vpack.c.bf16 %v6035_v40, %v6034_v22 }
 0xdea   :  { %v6015_v24 = vld [vmem:[%s10004_s6 + $0x4] ss:$0 sm:$0xff] }
 0xdeb   :  { %v3878_v61 = vadd.f32 %v9370_v30, %v3859_v29  ;;  %v3841_v3 = vadd.f32 %v3830_v48, %v9086_v47  ;;  %6929 = vmatpush3.bf16.msra.mxu1 %v6928_v62 }
 0xdec   :  { %v3808_v54 = vpop.permute.xlu1 %3807  ;;  %v9418_v18 = vld [vmem:[#allocation2 + $0x24] sm:$0xff]  ;;  %6942 = vmatprep.subr.bf16.mxu1 %v7492_v46 }
 0xded   :  { %3889 = vst.msk [vmem:[#allocation2 + $0x38] sm:$0xff] %vm524_vm4, %v3878_v61  ;;  %v3860_v21 = vmul.f32 %v9364_v11, %v3841_v3  ;;  %v3831_v53 = vadd.f32 %v3808_v54, %v9293_v25  ;;  %3926 = vrot.lane.b32.xlu1 %v9418_v18, %s7489_s1  ;;  %v3898_v44 = vld [vmem:[#allocation2 + $0x28] sm:$0xff] }
 0xdef   :  { %v3879_v60 = vadd.f32 %v9370_v30, %v3860_v21  ;;  %v3842_v56 = vadd.f32 %v3831_v53, %v9105_v0 }
 0xdf0   :  { %v3790_v36 = vpop.permute.xlu1 %3789  ;;  %v3810_v1 = vpop.permute.xlu0 %3809  ;;  %v9427_v51 = vld [vmem:[#allocation2 + $0x2c] sm:$0xff] }
 0xdf1   :  { %3890 = vst.msk [vmem:[#allocation2 + $0x40] sm:$0xff] %vm524_vm4, %v3879_v60  ;;  %v3861_v47 = vmul.f32 %v9364_v11, %v3842_v56  ;;  %v3822_v28 = vadd.f32 %v3790_v36, %v9230_v39  ;;  %v3832_v12 = vadd.f32 %v3810_v1, %v9299_v49  ;;  %3928 = vrot.lane.b32.xlu0 %v9427_v51, %s7489_s1  ;;  %v3899_v32 = vld [vmem:[#allocation2 + $0x30] sm:$0xff] }
 0xdf3   :  { %v3880_v25 = vadd.f32 %v9370_v30, %v3861_v47  ;;  %v3833_v9 = vadd.f32 %v3822_v28, %v9009_v8  ;;  %v3843_v0 = vadd.f32 %v3832_v12, %v9101_v16 }
 0xdf4   :  { %v9438_v14 = vld [vmem:[#allocation2 + $0x34] sm:$0xff] }
 0xdf5   :  { %3891 = vst.msk [vmem:[#allocation2 + $0x48] sm:$0xff] %vm524_vm4, %v3880_v25  ;;  %v3852_v10 = vmul.f32 %v9364_v11, %v3833_v9  ;;  %v3862_v5 = vmul.f32 %v9364_v11, %v3843_v0  ;;  %3930 = vrot.lane.b32.xlu1 %v9438_v14, %s7489_s1  ;;  %v3900_v17 = vld [vmem:[#allocation2 + $0x38] sm:$0xff] }
 0xdf7   :  { %v3871_v39 = vadd.f32 %v9370_v30, %v3852_v10  ;;  %v3881_v49 = vadd.f32 %v9370_v30, %v3862_v5 }
 0xdf8   :  { %v9447_v59 = vld [vmem:[#allocation2 + $0x3c] sm:$0xff] }
 0xdf9   :  { %3882 = vst.msk [vmem:[#allocation2] sm:$0xff] %vm524_vm4, %v3871_v39  ;;  %3932 = vrot.lane.b32.xlu0 %v9447_v59, %s7489_s1  ;;  %v3901_v55 = vld [vmem:[#allocation2 + $0x40] sm:$0xff] }
 0xdfa   :  { %3892 = vst.msk [vmem:[#allocation2 + $0x50] sm:$0xf] %vm544_vm8, %v3881_v49 }
 0xdfc   :  { %v9453_v8 = vld [vmem:[#allocation2 + $0x44] sm:$0xff] }
 0xdfd   :  { %3934 = vrot.lane.b32.xlu1 %v9453_v8, %s7489_s1 }
 0xe00   :  { %v3893_v11 = vld [vmem:[#allocation2] sm:$0xff] }
 0xe01   :  { %v9457_v16 = vld [vmem:[#allocation2 + $0x4c] sm:$0xff] }
 0xe02   :  { %3936 = vrot.lane.b32.xlu0 %v9457_v16, %s7489_s1 }
 0xe53   :  { %v3921_v30 = vpop.permute.xlu0 %3920 }
 0xe54   :  { %v3947_v50 = vsel %vm524_vm4, %v3893_v11, %v3921_v30 }
 0xe55   :  { %6714 = vmatmul.mubr.msk.f32.vlgmr.msra.gmra.mrb[90].mxu0 %vm683_vm9, %v3947_v50 }
 0xe56   :  { %6716 = vmatprep.mubr.msk.f32.mxu0 %vm7493_vm10, %v7494_v34 }
 0xe57   :  { %v3923_v27 = vpop.permute.xlu1 %3922 }
 0xe58   :  { %v3948_v15 = vsel %vm524_vm4, %v3894_v63, %v3923_v27 }
 0xe59   :  { %6717 = vmatmul.mubr.msk.f32.gmra.mrb[92].mxu0 %vm683_vm9, %v3948_v15 }
 0xe5a   :  { %6719 = vmatprep.mubr.msk.f32.mxu0 %vm7493_vm10, %v7494_v34 }
 0xe5b   :  { %v3925_v33 = vpop.permute.xlu0 %3924 }
 0xe5c   :  { %v3949_v43 = vsel %vm524_vm4, %v3895_v38, %v3925_v33 }
 0xe5d   :  { %6720 = vmatmul.mubr.msk.f32.gmra.mrb[94].mxu0 %vm683_vm9, %v3949_v43 }
 0xe5e   :  { %6722 = vmatprep.mubr.msk.f32.mxu0 %vm7493_vm10, %v7494_v34 }
 0xe5f   :  { %v3927_v35 = vpop.permute.xlu1 %3926 }
 0xe60   :  { %v3950_v31 = vsel %vm524_vm4, %v3896_v23, %v3927_v35 }
 0xe61   :  { %6723 = vmatmul.mubr.msk.f32.gmra.mrb[96].mxu0 %vm683_vm9, %v3950_v31 }
 0xe62   :  { %6725 = vmatprep.mubr.msk.f32.mxu0 %vm7493_vm10, %v7494_v34 }
 0xe63   :  { %v3929_v52 = vpop.permute.xlu0 %3928 }
 0xe64   :  { %v3951_v19 = vsel %vm524_vm4, %v3897_v20, %v3929_v52 }
 0xe65   :  { %6726 = vmatmul.mubr.msk.f32.gmra.mrb[98].mxu0 %vm683_vm9, %v3951_v19 }
 0xe66   :  { %6728 = vmatprep.mubr.msk.f32.mxu0 %vm7493_vm10, %v7494_v34 }
 0xe67   :  { %v3931_v2 = vpop.permute.xlu1 %3930 }
 0xe68   :  { %v3952_v7 = vsel %vm524_vm4, %v3898_v44, %v3931_v2 }
 0xe69   :  { %6729 = vmatmul.mubr.msk.f32.gmra.mrb[100].mxu0 %vm683_vm9, %v3952_v7 }
 0xe6a   :  { %6731 = vmatprep.mubr.msk.f32.mxu0 %vm7493_vm10, %v7494_v34 }
 0xe6b   :  { %v3933_v37 = vpop.permute.xlu0 %3932 }
 0xe6c   :  { %v3953_v26 = vsel %vm524_vm4, %v3899_v32, %v3933_v37 }
 0xe6d   :  { %6732 = vmatmul.mubr.msk.f32.gmra.mrb[102].mxu0 %vm683_vm9, %v3953_v26 }
 0xe6e   :  { %6734 = vmatprep.mubr.msk.f32.mxu0 %vm7493_vm10, %v7494_v34 }
 0xe6f   :  { %v3935_v4 = vpop.permute.xlu1 %3934 }
 0xe70   :  { %v3954_v45 = vsel %vm524_vm4, %v3900_v17, %v3935_v4 }
 0xe71   :  { %6735 = vmatmul.mubr.msk.f32.gmra.mrb[104].mxu0 %vm683_vm9, %v3954_v45 }
 0xe72   :  { %6737 = vmatprep.mubr.msk.f32.mxu0 %vm7493_vm10, %v7494_v34 }
 0xe74   :  { %v3937_v57 = vpop.permute.xlu0 %3936 }
 0xe75   :  { %v3955_v6 = vsel %vm524_vm4, %v3901_v55, %v3937_v57 }
 0xe76   :  { %6738 = vmatmul.mubr.msk.f32.gmra.mrb[106].mxu0 %vm683_vm9, %v3955_v6 }
 0xf28   :  { %v4062_v13 = vpop.f32.mrb[90].mxu0 }
 0xf29   :  { %v9505_v29 = vadd.f32 %v6015_v24, %v4062_v13  ;;  %v6715_v48 = vpop.f32.mrb[91].mxu0 }
 0xf2b   :  { %v6025_v61 = vmul.f32 -1.442695, %v9505_v29 }
 0xf2c   :  { %v4067_v3 = vpop.f32.mrb[92].mxu0 }
 0xf2d   :  { %7332 = vpow2.f32 %v6025_v61  ;;  %v9508_v54 = vadd.f32 %v6015_v24, %v4067_v3  ;;  %v6718_v21 = vpop.f32.mrb[93].mxu0 }
 0xf2f   :  { %v6026_v53 = vmul.f32 -1.442695, %v9508_v54 }
 0xf30   :  { %v4072_v60 = vpop.f32.mrb[94].mxu0 }
 0xf31   :  { %7334 = vpow2.f32 %v6026_v53  ;;  %v9511_v56 = vadd.f32 %v6015_v24, %v4072_v60  ;;  %v6721_v36 = vpop.f32.mrb[95].mxu0 }
 0xf33   :  { %v6027_v1 = vmul.f32 -1.442695, %v9511_v56 }
 0xf34   :  { %v4077_v47 = vpop.f32.mrb[96].mxu0 }
 0xf35   :  { %7336 = vpow2.f32 %v6027_v1  ;;  %v9514_v28 = vadd.f32 %v6015_v24, %v4077_v47  ;;  %v6724_v12 = vpop.f32.mrb[97].mxu0 }
 0xf37   :  { %v7333_v25 = vpop.eup %7332  ;;  %v6028_v9 = vmul.f32 -1.442695, %v9514_v28 }
 0xf38   :  { %v4142_v0 = vadd.f32 1.0, %v7333_v25  ;;  %v4082_v10 = vpop.f32.mrb[98].mxu0 }
 0xf39   :  { %7338 = vpow2.f32 %v6028_v9  ;;  %v9517_v5 = vadd.f32 %v6015_v24, %v4082_v10  ;;  %v6727_v39 = vpop.f32.mrb[99].mxu0 }
 0xf3a   :  { %7340 = vrcp.f32 %v4142_v0 }
 0xf3b   :  { %v7335_v49 = vpop.eup %7334  ;;  %v6029_v11 = vmul.f32 -1.442695, %v9517_v5 }
 0xf3c   :  { %v4143_v30 = vadd.f32 1.0, %v7335_v49  ;;  %v4087_v50 = vpop.f32.mrb[100].mxu0 }
 0xf3d   :  { %7342 = vpow2.f32 %v6029_v11  ;;  %v9520_v63 = vadd.f32 %v6015_v24, %v4087_v50  ;;  %v6730_v27 = vpop.f32.mrb[101].mxu0 }
 0xf3e   :  { %7344 = vrcp.f32 %v4143_v30 }
 0xf3f   :  { %v7337_v15 = vpop.eup %7336  ;;  %v6030_v38 = vmul.f32 -1.442695, %v9520_v63 }
 0xf40   :  { %v4144_v33 = vadd.f32 1.0, %v7337_v15  ;;  %v4092_v43 = vpop.f32.mrb[102].mxu0 }
 0xf41   :  { %7346 = vpow2.f32 %v6030_v38  ;;  %v9523_v23 = vadd.f32 %v6015_v24, %v4092_v43  ;;  %v6733_v35 = vpop.f32.mrb[103].mxu0 }
 0xf42   :  { %7348 = vrcp.f32 %v4144_v33 }
 0xf43   :  { %v7339_v31 = vpop.eup %7338  ;;  %v6031_v20 = vmul.f32 -1.442695, %v9523_v23 }
 0xf44   :  { %v7341_v52 = vpop.eup %7340  ;;  %v4145_v19 = vadd.f32 1.0, %v7339_v31  ;;  %v4097_v44 = vpop.f32.mrb[104].mxu0 }
 0xf45   :  { %7350 = vpow2.f32 %v6031_v20  ;;  %v9526_v2 = vadd.f32 %v6015_v24, %v4097_v44  ;;  %4178 = vrot.lane.b32.xlu1 %v7341_v52, %s7490_s28  ;;  %v6736_v7 = vpop.f32.mrb[105].mxu0  ;;  %v6037_v44 = vld [vmem:[%s10005_s8 + $0x4] ss:$0 sm:$0xff] }
 0xf46   :  { %7352 = vrcp.f32 %v4145_v19 }
 0xf47   :  { %v7343_v32 = vpop.eup %7342  ;;  %v6032_v37 = vmul.f32 -1.442695, %v9526_v2 }
 0xf48   :  { %v7345_v26 = vpop.eup %7344  ;;  %v4146_v17 = vadd.f32 1.0, %v7343_v32 }
 0xf49   :  { %v4102_v4 = vpop.f32.mrb[106].mxu0  ;;  %7354 = vpow2.f32 %v6032_v37  ;;  %4180 = vrot.lane.b32.xlu0 %v7345_v26, %s7490_s28  ;;  %v4362_v37 = vld [vmem:[#allocation3 + $0xc] sm:$0xff] }
 0xf4a   :  { %v9530_v45 = vadd.f32 %v6015_v24, %v4102_v4  ;;  %v6739_v55 = vpop.f32.mrb[107].mxu0  ;;  %7356 = vrcp.f32 %v4146_v17 }
 0xf4b   :  { %v7347_v57 = vpop.eup %7346  ;;  %v4363_v55 = vld [vmem:[#allocation3 + $0x14] sm:$0xff] }
 0xf4c   :  { %v6033_v6 = vmul.f32 -1.442695, %v9530_v45  ;;  %v7349_v22 = vpop.eup %7348  ;;  %v4147_v40 = vadd.f32 1.0, %v7347_v57 }
 0xf4d   :  { %4182 = vrot.lane.b32.xlu1 %v7349_v22, %s7490_s28 }
 0xf4e   :  { %7358 = vpow2.f32 %v6033_v6 }
 0xf4f   :  { %7360 = vrcp.f32 %v4147_v40  ;;  %v7351_v62 = vpop.eup %7350 }
 0xf50   :  { %v7353_v13 = vpop.eup %7352  ;;  %v4148_v48 = vadd.f32 1.0, %v7351_v62  ;;  %v4364_v62 = vld [vmem:[#allocation3 + $0x1c] sm:$0xff] }
 0xf51   :  { %4184 = vrot.lane.b32.xlu0 %v7353_v13, %s7490_s28 }
 0xf52   :  { %7362 = vrcp.f32 %v4148_v48 }
 0xf53   :  { %v7355_v24 = vpop.eup %7354 }
 0xf54   :  { %v7357_v61 = vpop.eup %7356  ;;  %v4149_v3 = vadd.f32 1.0, %v7355_v24 }
 0xf55   :  { %4186 = vrot.lane.b32.xlu1 %v7357_v61, %s7490_s28 }
 0xf56   :  { %7364 = vrcp.f32 %v4149_v3  ;;  %v4365_v3 = vld [vmem:[#allocation3 + $0x24] sm:$0xff] }
 0xf58   :  { %v7359_v21 = vpop.eup %7358 }
 0xf59   :  { %v7361_v53 = vpop.eup %7360  ;;  %v4150_v60 = vadd.f32 1.0, %v7359_v21 }
 0xf5a   :  { %4188 = vrot.lane.b32.xlu0 %v7361_v53, %s7490_s28 }
 0xf5b   :  { %7366 = vrcp.f32 %v4150_v60 }
 0xf5c   :  { %v7363_v36 = vpop.eup %7362  ;;  %7368 = vtanh.f32 %v9505_v29 }
 0xf5d   :  { %4190 = vrot.lane.b32.xlu1 %v7363_v36, %s7490_s28  ;;  %7370 = vtanh.f32 %v9508_v54 }
 0xf5e   :  { %7372 = vtanh.f32 %v9511_v56 }
 0xf5f   :  { %7374 = vtanh.f32 %v9514_v28 }
 0xf60   :  { %v7365_v1 = vpop.eup %7364  ;;  %7376 = vtanh.f32 %v9517_v5 }
 0xf61   :  { %4192 = vrot.lane.b32.xlu0 %v7365_v1, %s7490_s28  ;;  %7378 = vtanh.f32 %v9520_v63  ;;  %v4366_v1 = vld [vmem:[#allocation3 + $0x2c] sm:$0xff] }
 0xf62   :  { %7380 = vtanh.f32 %v9523_v23 }
 0xf63   :  { %7382 = vtanh.f32 %v9526_v2 }
 0xf64   :  { %7384 = vtanh.f32 %v9530_v45 }
 0xf65   :  { %v7367_v47 = vpop.eup %7366 }
 0xf66   :  { %4194 = vrot.lane.b32.xlu1 %v7367_v47, %s7490_s28  ;;  %v7369_v12 = vpop.eup %7368 }
 0xf67   :  { %v7371_v0 = vpop.eup %7370 }
 0xf68   :  { %v7373_v29 = vpop.eup %7372 }
 0xf69   :  { %v7375_v28 = vpop.eup %7374 }
 0xf6a   :  { %v7377_v11 = vpop.eup %7376 }
 0xf6b   :  { %v7379_v63 = vpop.eup %7378 }
 0xf6c   :  { %v7381_v38 = vpop.eup %7380 }
 0xf6d   :  { %v7383_v23 = vpop.eup %7382 }
 0xf6e   :  { %v7385_v20 = vpop.eup %7384 }
 0xfb7   :  { %v4179_v25 = vpop.permute.xlu1 %4178 }
 0xfb8   :  { %v9544_v9 = vmul.f32 %v7369_v12, %v4179_v25 }
 0xfba   :  { %6745 = vmatmul.mubr.msk.f32.vlgmr.msra.gmra.mrb[98].mxu1 %vm524_vm4, %v9544_v9 }
 0xfbb   :  { %v4181_v10 = vpop.permute.xlu0 %4180  ;;  %6747 = vmatprep.mubr.msk.f32.mxu1 %vm7493_vm10, %v7494_v34 }
 0xfbc   :  { %v9551_v39 = vmul.f32 %v7371_v0, %v4181_v10  ;;  %v4367_v10 = vld [vmem:[#allocation3 + $0x34] sm:$0xff] }
 0xfbe   :  { %6748 = vmatmul.mubr.msk.f32.gmra.mrb[100].mxu1 %vm524_vm4, %v9551_v39 }
 0xfbf   :  { %v4183_v54 = vpop.permute.xlu1 %4182  ;;  %6750 = vmatprep.mubr.msk.f32.mxu1 %vm7493_vm10, %v7494_v34 }
 0xfc0   :  { %v9558_v56 = vmul.f32 %v7373_v29, %v4183_v54 }
 0xfc2   :  { %6751 = vmatmul.mubr.msk.f32.gmra.mrb[102].mxu1 %vm524_vm4, %v9558_v56 }
 0xfc3   :  { %v4185_v49 = vpop.permute.xlu0 %4184  ;;  %6753 = vmatprep.mubr.msk.f32.mxu1 %vm7493_vm10, %v7494_v34 }
 0xfc4   :  { %v9565_v5 = vmul.f32 %v7375_v28, %v4185_v49 }
 0xfc6   :  { %6754 = vmatmul.mubr.msk.f32.gmra.mrb[104].mxu1 %vm524_vm4, %v9565_v5 }
 0xfc7   :  { %v4187_v30 = vpop.permute.xlu1 %4186  ;;  %6756 = vmatprep.mubr.msk.f32.mxu1 %vm7493_vm10, %v7494_v34 }
 0xfc8   :  { %v9572_v50 = vmul.f32 %v7377_v11, %v4187_v30  ;;  %v4368_v11 = vld [vmem:[#allocation3 + $0x3c] sm:$0xff] }
 0xfca   :  { %6757 = vmatmul.mubr.msk.f32.gmra.mrb[106].mxu1 %vm524_vm4, %v9572_v50 }
 0xfcb   :  { %6759 = vmatprep.mubr.msk.f32.mxu1 %vm7493_vm10, %v7494_v34 }
 0xfcc   :  { %v4189_v27 = vpop.permute.xlu0 %4188 }
 0xfcd   :  { %v9579_v15 = vmul.f32 %v7379_v63, %v4189_v27 }
 0xfcf   :  { %6760 = vmatmul.mubr.msk.f32.gmra.mrb[108].mxu1 %vm524_vm4, %v9579_v15  ;;  %v4191_v33 = vpop.permute.xlu1 %4190 }
 0xfd0   :  { %6762 = vmatprep.mubr.msk.f32.mxu1 %vm7493_vm10, %v7494_v34  ;;  %v9586_v43 = vmul.f32 %v7381_v38, %v4191_v33  ;;  %v4369_v33 = vld [vmem:[#allocation3 + $0x44] sm:$0xff] }
 0xfd3   :  { %6763 = vmatmul.mubr.msk.f32.gmra.mrb[110].mxu1 %vm524_vm4, %v9586_v43  ;;  %v4193_v35 = vpop.permute.xlu0 %4192 }
 0xfd4   :  { %6765 = vmatprep.mubr.msk.f32.mxu1 %vm7493_vm10, %v7494_v34  ;;  %v9592_v31 = vmul.f32 %v7383_v23, %v4193_v35 }
 0xfd7   :  { %6766 = vmatmul.mubr.msk.f32.gmra.mrb[112].mxu1 %vm524_vm4, %v9592_v31 }
 0xfd8   :  { %v4195_v52 = vpop.permute.xlu1 %4194  ;;  %6768 = vmatprep.mubr.msk.f32.mxu1 %vm7493_vm10, %v7494_v34 }
 0xfd9   :  { %v9598_v19 = vmul.f32 %v7385_v20, %v4195_v52 }
 0xfdb   :  { %6769 = vmatmul.mubr.msk.f32.gmra.mrb[114].mxu1 %vm524_vm4, %v9598_v19 }
 0xfdc   :  { %6809 = vmatprep.mubr.msk.f32.mxu1 %vm7493_vm10, %v7494_v34 }
0x108d   :  { %v4318_v2 = vpop.f32.mrb[98].mxu1 }
0x108e   :  { %v4319_v7 = vadd.f32 %v6037_v44, %v4318_v2  ;;  %v6746_v32 = vpop.f32.mrb[99].mxu1  ;;  %v4370_v2 = vld [vmem:[#allocation3 + $0x4c] sm:$0xff] }
0x1090   :  { %v4371_v26 = vadd.f32 %v4362_v37, %v4319_v7  ;;  %v6051_v37 = vld [vmem:[%s9999_s5 + $0xa0] sm:$0xff] }
0x1091   :  { %v4323_v17 = vpop.f32.mrb[100].mxu1 }
0x1092   :  { %4380 = vst.msk [vmem:[#allocation3] sm:$0xff] %vm683_vm9, %v4371_v26  ;;  %v4324_v4 = vadd.f32 %v6037_v44, %v4323_v17  ;;  %v6749_v45 = vpop.f32.mrb[101].mxu1  ;;  %v6052_v26 = vld [vmem:[%s9999_s5 + $0xa8] sm:$0xff]  ;;  %v6054_v17 = vld [vmem:[%s9999_s5 + $0xb8] sm:$0xff] }
0x1094   :  { %v4372_v57 = vadd.f32 %v4363_v55, %v4324_v4 }
0x1095   :  { %v4328_v6 = vpop.f32.mrb[102].mxu1 }
0x1096   :  { %4381 = vst.msk [vmem:[#allocation3 + $0x8] sm:$0xff] %vm683_vm9, %v4372_v57  ;;  %v4329_v22 = vadd.f32 %v6037_v44, %v4328_v6  ;;  %v6752_v40 = vpop.f32.mrb[103].mxu1  ;;  %v6048_v6 = vld [vmem:[%s10006_s9 + $0x4] ss:$0 sm:$0xff] }
0x1098   :  { %v4373_v13 = vadd.f32 %v4364_v62, %v4329_v22 }
0x1099   :  { %v4333_v48 = vpop.f32.mrb[104].mxu1 }
0x109a   :  { %4382 = vst.msk [vmem:[#allocation3 + $0x10] sm:$0xff] %vm683_vm9, %v4373_v13  ;;  %v4334_v24 = vadd.f32 %v6037_v44, %v4333_v48  ;;  %v6755_v61 = vpop.f32.mrb[105].mxu1 }
0x109c   :  { %v4374_v21 = vadd.f32 %v4365_v3, %v4334_v24  ;;  %4404 = vrot.lane.b32.xlu0 %v4334_v24, %s7491_s16 }
0x109d   :  { %v4338_v53 = vpop.f32.mrb[106].mxu1 }
0x109e   :  { %4383 = vst.msk [vmem:[#allocation3 + $0x18] sm:$0xff] %vm683_vm9, %v4374_v21  ;;  %v4339_v60 = vadd.f32 %v6037_v44, %v4338_v53  ;;  %v6758_v36 = vpop.f32.mrb[107].mxu1 }
0x10a0   :  { %v4375_v47 = vadd.f32 %v4366_v1, %v4339_v60  ;;  %4406 = vrot.lane.b32.xlu1 %v4339_v60, %s7491_s16 }
0x10a2   :  { %v4343_v12 = vpop.f32.mrb[108].mxu1  ;;  %4384 = vst.msk [vmem:[#allocation3 + $0x20] sm:$0xff] %vm683_vm9, %v4375_v47 }
0x10a3   :  { %v4344_v25 = vadd.f32 %v6037_v44, %v4343_v12  ;;  %v6761_v0 = vpop.f32.mrb[109].mxu1 }
0x10a5   :  { %v4376_v29 = vadd.f32 %v4367_v10, %v4344_v25  ;;  %4408 = vrot.lane.b32.xlu0 %v4344_v25, %s7491_s16 }
0x10a6   :  { %v4348_v54 = vpop.f32.mrb[110].mxu1 }
0x10a7   :  { %4385 = vst.msk [vmem:[#allocation3 + $0x28] sm:$0xff] %vm683_vm9, %v4376_v29  ;;  %v4349_v28 = vadd.f32 %v6037_v44, %v4348_v54  ;;  %v6764_v49 = vpop.f32.mrb[111].mxu1 }
0x10a9   :  { %v4377_v30 = vadd.f32 %v4368_v11, %v4349_v28  ;;  %4410 = vrot.lane.b32.xlu1 %v4349_v28, %s7491_s16 }
0x10aa   :  { %v4353_v63 = vpop.f32.mrb[112].mxu1 }
0x10ab   :  { %4386 = vst.msk [vmem:[#allocation3 + $0x30] sm:$0xff] %vm683_vm9, %v4377_v30  ;;  %v4354_v27 = vadd.f32 %v6037_v44, %v4353_v63  ;;  %v6767_v38 = vpop.f32.mrb[113].mxu1 }
0x10ad   :  { %v4378_v23 = vadd.f32 %v4369_v33, %v4354_v27  ;;  %4412 = vrot.lane.b32.xlu0 %v4354_v27, %s7491_s16 }
0x10ae   :  { %v4358_v35 = vpop.f32.mrb[114].mxu1 }
0x10af   :  { %4387 = vst.msk [vmem:[#allocation3 + $0x38] sm:$0xff] %vm683_vm9, %v4378_v23  ;;  %v4359_v20 = vadd.f32 %v6037_v44, %v4358_v35  ;;  %v6770_v52 = vpop.f32.mrb[115].mxu1  ;;  %v6053_v44 = vld [vmem:[%s9999_s5 + $0xb0] sm:$0xff] }
0x10b0   :  { %v6934_v45 = vpack.c.bf16 %v6054_v17, %v6053_v44 }
0x10b1   :  { %v4379_v32 = vadd.f32 %v4370_v2, %v4359_v20  ;;  %4398 = vrot.lane.b32.xlu0 %v4319_v7, %s7491_s16  ;;  %4414 = vrot.lane.b32.xlu1 %v4359_v20, %s7491_s16  ;;  %v6930_v7 = vpack.c.bf16 %v6052_v26, %v6051_v37 }
0x10b3   :  { %4388 = vst.msk [vmem:[#allocation3 + $0x40] sm:$0xff] %vm683_vm9, %v4379_v32  ;;  %6931 = vmatprep.subr.bf16.mxu0 %v6930_v7 }
0x10b4   :  { %6933 = vmatpush3.bf16.msra.mxu0 %v6930_v7 }
0x10b5   :  { %4402 = vrot.lane.b32.xlu0 %v4329_v22, %s7491_s16  ;;  %4400 = vrot.lane.b32.xlu1 %v4324_v4, %s7491_s16  ;;  %v6050_v4 = vld [vmem:[%s10007_s10 + $0x4] ss:$0 sm:$0xff] }
0x10b6   :  { %6935 = vmatprep.subr.bf16.mxu0 %v6934_v45 }
0x10b8   :  { %6937 = vmatpush3.bf16.msra.mxu0 %v6934_v45 }
0x110e   :  { %v4405_v55 = vpop.permute.xlu0 %4404 }
0x110f   :  { %v4428_v57 = vadd.f32 %v4405_v55, %v9565_v5 }
0x1111   :  { %v4437_v22 = vadd.f32 %v4428_v57, %v9418_v18 }
0x1112   :  { %v4407_v40 = vpop.permute.xlu1 %4406 }
0x1113   :  { %v4454_v62 = vmul.f32 %v6048_v6, %v4437_v22  ;;  %v4429_v13 = vadd.f32 %v4407_v40, %v9572_v50 }
0x1115   :  { %v4471_v48 = vadd.f32 %v6050_v4, %v4454_v62  ;;  %v4438_v24 = vadd.f32 %v4429_v13, %v9427_v51  ;;  %v6069_v62 = vld [vmem:[%s10003_s7 + $0x50] sm:$0xff]  ;;  %v6070_v13 = vld [vmem:[%s10003_s7 + $0x58] sm:$0xff] }
0x1117   :  { %v4409_v61 = vpop.permute.xlu0 %4408  ;;  %4480 = vst.msk [vmem:[#allocation2 + $0x18] sm:$0xff] %vm524_vm4, %v4471_v48  ;;  %v4455_v5 = vmul.f32 %v6048_v6, %v4438_v24  ;;  %v6938_v48 = vpack.c.bf16 %v6070_v13, %v6069_v62  ;;  %v6056_v24 = vld [vmem:[%s10004_s6 + $0x5] ss:$0 sm:$0xff] }
0x1118   :  { %v4430_v3 = vadd.f32 %v4409_v61, %v9579_v15 }
0x1119   :  { %v4472_v21 = vadd.f32 %v6050_v4, %v4455_v5  ;;  %6939 = vmatprep.subr.bf16.mxu0 %v6938_v48 }
0x111a   :  { %v4439_v18 = vadd.f32 %v4430_v3, %v9438_v14 }
0x111b   :  { %v4411_v53 = vpop.permute.xlu1 %4410  ;;  %4481 = vst.msk [vmem:[#allocation2 + $0x20] sm:$0xff] %vm524_vm4, %v4472_v21 }
0x111c   :  { %v4456_v60 = vmul.f32 %v6048_v6, %v4439_v18  ;;  %v4431_v36 = vadd.f32 %v4411_v53, %v9586_v43 }
0x111e   :  { %v4473_v1 = vadd.f32 %v6050_v4, %v4456_v60  ;;  %v4440_v50 = vadd.f32 %v4431_v36, %v9447_v59  ;;  %v9653_v51 = vld [vmem:[#allocation2 + $0x18] sm:$0xff] }
0x111f   :  { %v4413_v47 = vpop.permute.xlu0 %4412  ;;  %4501 = vrot.lane.b32.xlu1 %v9653_v51, %s7489_s1 }
0x1120   :  { %4482 = vst.msk [vmem:[#allocation2 + $0x28] sm:$0xff] %vm524_vm4, %v4473_v1  ;;  %v4457_v12 = vmul.f32 %v6048_v6, %v4440_v50  ;;  %v4432_v15 = vadd.f32 %v4413_v47, %v9592_v31 }
0x1122   :  { %v4474_v14 = vadd.f32 %v6050_v4, %v4457_v12  ;;  %v4441_v25 = vadd.f32 %v4432_v15, %v9453_v8  ;;  %v9660_v43 = vld [vmem:[#allocation2 + $0x20] sm:$0xff] }
0x1123   :  { %v4415_v0 = vpop.permute.xlu1 %4414  ;;  %v4399_v10 = vpop.permute.xlu0 %4398  ;;  %4503 = vrot.lane.b32.xlu0 %v9660_v43, %s7489_s1 }
0x1124   :  { %4483 = vst.msk [vmem:[#allocation2 + $0x30] sm:$0xff] %vm524_vm4, %v4474_v14  ;;  %v4458_v59 = vmul.f32 %v6048_v6, %v4441_v25  ;;  %v4433_v29 = vadd.f32 %v4415_v0, %v9598_v19  ;;  %v4425_v54 = vadd.f32 %v4399_v10, %v9544_v9 }
0x1126   :  { %v4475_v31 = vadd.f32 %v6050_v4, %v4458_v59  ;;  %v4442_v28 = vadd.f32 %v4433_v29, %v9457_v16  ;;  %v4434_v49 = vadd.f32 %v4425_v54, %v9391_v58 }
0x1127   :  { %v4401_v8 = vpop.permute.xlu1 %4400  ;;  %v4403_v11 = vpop.permute.xlu0 %4402  ;;  %v9669_v30 = vld [vmem:[#allocation2 + $0x28] sm:$0xff] }
0x1128   :  { %4484 = vst.msk [vmem:[#allocation2 + $0x38] sm:$0xff] %vm524_vm4, %v4475_v31  ;;  %v4459_v63 = vmul.f32 %v6048_v6, %v4442_v28  ;;  %v4451_v27 = vmul.f32 %v6048_v6, %v4434_v49  ;;  %v4426_v19 = vadd.f32 %v4401_v8, %v9551_v39  ;;  %v4427_v9 = vadd.f32 %v4403_v11, %v9558_v56 }
0x1129   :  { %4505 = vrot.lane.b32.xlu1 %v9669_v30, %s7489_s1 }
0x112a   :  { %v4476_v38 = vadd.f32 %v6050_v4, %v4459_v63  ;;  %v4468_v33 = vadd.f32 %v6050_v4, %v4451_v27  ;;  %v4435_v16 = vadd.f32 %v4426_v19, %v9400_v41  ;;  %v4436_v58 = vadd.f32 %v4427_v9, %v9409_v42 }
0x112b   :  { %v9678_v23 = vld [vmem:[#allocation2 + $0x30] sm:$0xff] }
0x112c   :  { %4485 = vst.msk [vmem:[#allocation2 + $0x40] sm:$0xff] %vm524_vm4, %v4476_v38  ;;  %4477 = vst.msk [vmem:[#allocation2] sm:$0xff] %vm524_vm4, %v4468_v33  ;;  %v4452_v35 = vmul.f32 %v6048_v6, %v4435_v16  ;;  %v4453_v20 = vmul.f32 %v6048_v6, %v4436_v58  ;;  %4507 = vrot.lane.b32.xlu0 %v9678_v23, %s7489_s1 }
0x112e   :  { %v4469_v39 = vadd.f32 %v6050_v4, %v4452_v35  ;;  %v4470_v56 = vadd.f32 %v6050_v4, %v4453_v20 }
0x112f   :  { %v9684_v52 = vld [vmem:[#allocation2 + $0x38] sm:$0xff] }
0x1130   :  { %4478 = vst.msk [vmem:[#allocation2 + $0x8] sm:$0xff] %vm524_vm4, %v4469_v39  ;;  %4479 = vst.msk [vmem:[#allocation2 + $0x10] sm:$0xff] %vm524_vm4, %v4470_v56  ;;  %4509 = vrot.lane.b32.xlu1 %v9684_v52, %s7489_s1 }
0x1133   :  { %v9690_v41 = vld [vmem:[#allocation2 + $0x40] sm:$0xff] }
0x1134   :  { %4511 = vrot.lane.b32.xlu0 %v9690_v41, %s7489_s1  ;;  %v4486_v2 = vld [vmem:[#allocation2] sm:$0xff] }
0x1137   :  { %v4487_v37 = vld [vmem:[#allocation2 + $0x8] sm:$0xff]  ;;  %v4488_v17 = vld [vmem:[#allocation2 + $0x10] sm:$0xff] }
0x1191   :  { %v4502_v42 = vpop.permute.xlu1 %4501 }
0x1192   :  { %v4519_v32 = vsel %vm524_vm4, %v4486_v2, %v4502_v42 }
0x1193   :  { %6779 = vmatprep.mubr.msk.f32.mxu0 %vm683_vm9, %v4519_v32 }
0x1195   :  { %v4504_v26 = vpop.permute.xlu0 %4503 }
0x1196   :  { %v4520_v44 = vsel %vm524_vm4, %v4487_v37, %v4504_v26 }
0x1197   :  { %6780 = vmatmul.mubr.msk.f32.vlgmr.msra.gmra.mrb[108].mxu0 %vm683_vm9, %v4520_v44 }
0x1198   :  { %6941 = vmatpush3.bf16.msra.mxu0 %v6938_v48  ;;  %v6072_v48 = vld [vmem:[%s10005_s8 + $0x5] ss:$0 sm:$0xff] }
0x1199   :  { %6948 = vmatprep.subr.bf16.mxu0 %v7492_v46 }
0x119b   :  { %v4506_v7 = vpop.permute.xlu1 %4505 }
0x119c   :  { %v4521_v45 = vsel %vm524_vm4, %v4488_v17, %v4506_v7 }
0x119d   :  { %6782 = vmatprep.mubr.msk.f32.mxu0 %vm683_vm9, %v4521_v45 }
0x119e   :  { %v4508_v55 = vpop.permute.xlu0 %4507 }
0x119f   :  { %v4522_v57 = vsel %vm524_vm4, %v9653_v51, %v4508_v55 }
0x11a0   :  { %6783 = vmatmul.mubr.msk.f32.gmra.mrb[110].mxu0 %vm683_vm9, %v4522_v57 }
0x11a2   :  { %v4510_v6 = vpop.permute.xlu1 %4509 }
0x11a3   :  { %v4523_v22 = vsel %vm524_vm4, %v9660_v43, %v4510_v6 }
0x11a4   :  { %6785 = vmatprep.mubr.msk.f32.mxu0 %vm683_vm9, %v4523_v22 }
0x11a6   :  { %v4512_v4 = vpop.permute.xlu0 %4511 }
0x11a7   :  { %v4524_v40 = vsel %vm524_vm4, %v9669_v30, %v4512_v4 }
0x11a8   :  { %6786 = vmatmul.mubr.msk.f32.gmra.mrb[112].mxu0 %vm683_vm9, %v4524_v40 }
0x126a   :  { %v6781_v61 = vpop.f32.mrb[108].mxu0 }
0x126b   :  { %v4628_v5 = vadd.f32 %v6781_v61, %v6056_v24  ;;  %v4622_v3 = vpop.f32.mrb[109].mxu0 }
0x126c   :  { %v4623_v21 = vadd.f32 %v6056_v24, %v4622_v3  ;;  %v4848_v3 = vld [vmem:[#allocation3 + $0x20] sm:$0xff] }
0x126d   :  { %v6064_v18 = vmul.f32 -1.442695, %v4628_v5 }
0x126e   :  { %v6063_v53 = vmul.f32 -1.442695, %v4623_v21 }
0x126f   :  { %7386 = vpow2.f32 %v6064_v18 }
0x1270   :  { %7388 = vpow2.f32 %v6063_v53  ;;  %v4847_v53 = vld [vmem:[#allocation3 + $0x18] sm:$0xff] }
0x1273   :  { %v6784_v60 = vpop.f32.mrb[110].mxu0 }
0x1274   :  { %v4638_v36 = vadd.f32 %v6784_v60, %v6056_v24  ;;  %v4632_v1 = vpop.f32.mrb[111].mxu0 }
0x1275   :  { %v4633_v50 = vadd.f32 %v6056_v24, %v4632_v1 }
0x1276   :  { %v6066_v47 = vmul.f32 -1.442695, %v4638_v36 }
0x1277   :  { %v6065_v12 = vmul.f32 -1.442695, %v4633_v50 }
0x1278   :  { %7390 = vpow2.f32 %v6066_v47  ;;  %v4850_v47 = vld [vmem:[#allocation3 + $0x30] sm:$0xff] }
0x1279   :  { %7392 = vpow2.f32 %v6065_v12  ;;  %v7387_v15 = vpop.eup %7386 }
0x127a   :  { %v7389_v14 = vpop.eup %7388  ;;  %v4676_v25 = vadd.f32 1.0, %v7387_v15 }
0x127b   :  { %v6787_v0 = vpop.f32.mrb[112].mxu0  ;;  %v4675_v10 = vadd.f32 1.0, %v7389_v14  ;;  %v4849_v14 = vld [vmem:[#allocation3 + $0x28] sm:$0xff] }
0x127c   :  { %v4648_v59 = vadd.f32 %v6787_v0, %v6056_v24  ;;  %v4642_v29 = vpop.f32.mrb[113].mxu0  ;;  %7394 = vrcp.f32 %v4676_v25 }
0x127d   :  { %v4643_v54 = vadd.f32 %v6056_v24, %v4642_v29  ;;  %7396 = vrcp.f32 %v4675_v10  ;;  %v4852_v29 = vld [vmem:[#allocation3 + $0x40] sm:$0xff] }
0x127e   :  { %v6068_v31 = vmul.f32 -1.442695, %v4648_v59 }
0x127f   :  { %v6067_v28 = vmul.f32 -1.442695, %v4643_v54 }
0x1280   :  { %7398 = vpow2.f32 %v6068_v31 }
0x1281   :  { %7400 = vpow2.f32 %v6067_v28  ;;  %v4851_v28 = vld [vmem:[#allocation3 + $0x38] sm:$0xff] }
0x1282   :  { %v7391_v49 = vpop.eup %7390 }
0x1283   :  { %v7393_v8 = vpop.eup %7392  ;;  %v4678_v11 = vadd.f32 1.0, %v7391_v49 }
0x1284   :  { %v4677_v63 = vadd.f32 1.0, %v7393_v8  ;;  %v6083_v8 = vld [vmem:[%s9999_s5 + $0xc0] sm:$0xff] }
0x1285   :  { %7402 = vrcp.f32 %v4678_v11  ;;  %v6084_v11 = vld [vmem:[%s9999_s5 + $0xc8] sm:$0xff] }
0x1286   :  { %7404 = vrcp.f32 %v4677_v63  ;;  %v7395_v27 = vpop.eup %7394  ;;  %v6085_v63 = vld [vmem:[%s9999_s5 + $0xd0] sm:$0xff] }
0x1287   :  { %v7397_v19 = vpop.eup %7396  ;;  %4701 = vrot.lane.b32.xlu0 %v7395_v27, %s7490_s28  ;;  %v6943_v27 = vpack.c.bf16 %v6084_v11, %v6083_v8 }
0x1288   :  { %4699 = vrot.lane.b32.xlu1 %v7397_v19, %s7490_s28  ;;  %v6086_v19 = vld [vmem:[%s9999_s5 + $0xd8] sm:$0xff] }
0x1289   :  { %6944 = vmatpush3.bf16.msra.mxu1 %v6943_v27 }
0x128a   :  { %v7399_v9 = vpop.eup %7398  ;;  %6945 = vmatprep.subr.bf16.mxu1 %v7492_v46 }
0x128b   :  { %v4680_v38 = vadd.f32 1.0, %v7399_v9  ;;  %v7401_v33 = vpop.eup %7400  ;;  %v6946_v9 = vpack.c.bf16 %v6086_v19, %v6085_v63 }
0x128c   :  { %v4679_v16 = vadd.f32 1.0, %v7401_v33 }
0x128d   :  { %7406 = vrcp.f32 %v4680_v38  ;;  %6947 = vmatpush3.bf16.msra.mxu1 %v6946_v9 }
0x128e   :  { %7408 = vrcp.f32 %v4679_v16  ;;  %v6080_v16 = vld [vmem:[%s10006_s9 + $0x5] ss:$0 sm:$0xff] }
0x128f   :  { %v7403_v58 = vpop.eup %7402  ;;  %7410 = vtanh.f32 %v4623_v21 }
0x1290   :  { %v7405_v35 = vpop.eup %7404  ;;  %4705 = vrot.lane.b32.xlu0 %v7403_v58, %s7490_s28  ;;  %7412 = vtanh.f32 %v4628_v5 }
0x1291   :  { %4703 = vrot.lane.b32.xlu1 %v7405_v35, %s7490_s28  ;;  %7414 = vtanh.f32 %v4633_v50  ;;  %v6082_v35 = vld [vmem:[%s10007_s10 + $0x5] ss:$0 sm:$0xff] }
0x1292   :  { %7416 = vtanh.f32 %v4638_v36 }
0x1293   :  { %7418 = vtanh.f32 %v4643_v54 }
0x1294   :  { %7420 = vtanh.f32 %v4648_v59 }
0x1297   :  { %v7407_v20 = vpop.eup %7406 }
0x1298   :  { %4709 = vrot.lane.b32.xlu0 %v7407_v20, %s7490_s28  ;;  %v7409_v39 = vpop.eup %7408 }
0x1299   :  { %4707 = vrot.lane.b32.xlu1 %v7409_v39, %s7490_s28  ;;  %v7411_v42 = vpop.eup %7410 }
0x129a   :  { %v7413_v32 = vpop.eup %7412 }
0x129b   :  { %v7415_v7 = vpop.eup %7414 }
0x129c   :  { %v7417_v45 = vpop.eup %7416 }
0x129d   :  { %v7419_v22 = vpop.eup %7418 }
0x129e   :  { %v7421_v40 = vpop.eup %7420 }
0x12f9   :  { %v4702_v56 = vpop.permute.xlu0 %4701 }
0x12fa   :  { %v4700_v2 = vpop.permute.xlu1 %4699  ;;  %v9727_v26 = vmul.f32 %v7413_v32, %v4702_v56 }
0x12fb   :  { %v9725_v37 = vmul.f32 %v7411_v42, %v4700_v2 }
0x12fd   :  { %6792 = vmatprep.mubr.msk.f32.mxu0 %vm524_vm4, %v9725_v37 }
0x12fe   :  { %6793 = vmatmul.mubr.msk.f32.vlgmr.msra.gmra.mrb[114].mxu0 %vm524_vm4, %v9727_v26 }
0x1302   :  { %v4706_v44 = vpop.permute.xlu0 %4705 }
0x1303   :  { %v4704_v17 = vpop.permute.xlu1 %4703  ;;  %v9735_v57 = vmul.f32 %v7417_v45, %v4706_v44 }
0x1304   :  { %v9733_v55 = vmul.f32 %v7415_v7, %v4704_v17 }
0x1306   :  { %6795 = vmatprep.mubr.msk.f32.mxu0 %vm524_vm4, %v9733_v55 }
0x1307   :  { %6796 = vmatmul.mubr.msk.f32.gmra.mrb[116].mxu0 %vm524_vm4, %v9735_v57 }
0x130a   :  { %v4710_v6 = vpop.permute.xlu0 %4709 }
0x130b   :  { %v4708_v4 = vpop.permute.xlu1 %4707  ;;  %v9743_v13 = vmul.f32 %v7421_v40, %v4710_v6 }
0x130c   :  { %v9741_v62 = vmul.f32 %v7419_v22, %v4708_v4 }
0x130e   :  { %6798 = vmatprep.mubr.msk.f32.mxu0 %vm524_vm4, %v9741_v62 }
0x130f   :  { %6799 = vmatmul.mubr.msk.f32.gmra.mrb[118].mxu0 %vm524_vm4, %v9743_v13 }
0x1310   :  { %6828 = vmatprep.mubr.msk.f32.mxu0 %vm7493_vm10, %v7494_v34 }
0x13d1   :  { %v6794_v24 = vpop.f32.mrb[114].mxu0 }
0x13d2   :  { %v4824_v61 = vadd.f32 %v6794_v24, %v6072_v48  ;;  %v4818_v5 = vpop.f32.mrb[115].mxu0 }
0x13d3   :  { %v4819_v21 = vadd.f32 %v6072_v48, %v4818_v5 }
0x13d4   :  { %v4854_v18 = vadd.f32 %v4848_v3, %v4824_v61  ;;  %4873 = vrot.lane.b32.xlu1 %v4824_v61, %s7491_s16 }
0x13d5   :  { %v4853_v60 = vadd.f32 %v4847_v53, %v4819_v21 }
0x13d6   :  { %4860 = vst.msk [vmem:[#allocation3 + $0x8] sm:$0xff] %vm683_vm9, %v4854_v18 }
0x13d7   :  { %4859 = vst.msk [vmem:[#allocation3] sm:$0xff] %vm683_vm9, %v4853_v60 }
0x13da   :  { %v6797_v36 = vpop.f32.mrb[116].mxu0 }
0x13db   :  { %v4834_v1 = vadd.f32 %v6797_v36, %v6072_v48  ;;  %v4828_v50 = vpop.f32.mrb[117].mxu0 }
0x13dc   :  { %v4829_v12 = vadd.f32 %v6072_v48, %v4828_v50 }
0x13dd   :  { %v4856_v15 = vadd.f32 %v4850_v47, %v4834_v1  ;;  %4877 = vrot.lane.b32.xlu1 %v4834_v1, %s7491_s16 }
0x13de   :  { %v4855_v25 = vadd.f32 %v4849_v14, %v4829_v12  ;;  %4875 = vrot.lane.b32.xlu0 %v4829_v12, %s7491_s16 }
0x13df   :  { %4862 = vst.msk [vmem:[#allocation3 + $0x18] sm:$0xff] %vm683_vm9, %v4856_v15 }
0x13e0   :  { %4861 = vst.msk [vmem:[#allocation3 + $0x10] sm:$0xff] %vm683_vm9, %v4855_v25 }
0x13e2   :  { %v6800_v0 = vpop.f32.mrb[118].mxu0 }
0x13e3   :  { %v4844_v10 = vadd.f32 %v6800_v0, %v6072_v48  ;;  %v4838_v59 = vpop.f32.mrb[119].mxu0 }
0x13e4   :  { %v4839_v54 = vadd.f32 %v6072_v48, %v4838_v59 }
0x13e5   :  { %v4858_v31 = vadd.f32 %v4852_v29, %v4844_v10  ;;  %4881 = vrot.lane.b32.xlu1 %v4844_v10, %s7491_s16  ;;  %v6099_v29 = vld [vmem:[%s10003_s7 + $0x60] sm:$0xff] }
0x13e6   :  { %v4857_v49 = vadd.f32 %v4851_v28, %v4839_v54  ;;  %4879 = vrot.lane.b32.xlu0 %v4839_v54, %s7491_s16  ;;  %v6100_v54 = vld [vmem:[%s10003_s7 + $0x68] sm:$0xff]  ;;  %v6088_v28 = vld [vmem:[%s10004_s6 + $0x6] ss:$0 sm:$0xff] }
0x13e7   :  { %4864 = vst.msk [vmem:[#allocation3 + $0x28] sm:$0xff] %vm683_vm9, %v4858_v31  ;;  %v6949_v31 = vpack.c.bf16 %v6100_v54, %v6099_v29  ;;  %v5264_v29 = vld [vmem:[#allocation3 + $0xc] sm:$0xff] }
0x13e8   :  { %4863 = vst.msk [vmem:[#allocation3 + $0x20] sm:$0xff] %vm683_vm9, %v4857_v49 }
0x13e9   :  { %6950 = vmatpush3.bf16.msra.mxu0 %v6949_v31 }
0x13ea   :  { %4871 = vrot.lane.b32.xlu0 %v4819_v21, %s7491_s16 }
0x1446   :  { %v4874_v38 = vpop.permute.xlu1 %4873 }
0x1447   :  { %v4890_v33 = vadd.f32 %v4874_v38, %v9727_v26 }
0x1449   :  { %v4896_v58 = vadd.f32 %v4890_v33, %v9660_v43 }
0x144b   :  { %v4910_v20 = vmul.f32 %v6080_v16, %v4896_v58 }
0x144d   :  { %v4924_v39 = vadd.f32 %v6082_v35, %v4910_v20 }
0x144f   :  { %v4878_v56 = vpop.permute.xlu1 %4877  ;;  %4930 = vst.msk [vmem:[#allocation2 + $0x8] sm:$0xff] %vm524_vm4, %v4924_v39 }
0x1450   :  { %v4892_v46 = vadd.f32 %v4878_v56, %v9735_v57  ;;  %v4876_v42 = vpop.permute.xlu0 %4875 }
0x1451   :  { %v4891_v2 = vadd.f32 %v4876_v42, %v9733_v55 }
0x1452   :  { %v4898_v32 = vadd.f32 %v4892_v46, %v9678_v23 }
0x1453   :  { %v4897_v26 = vadd.f32 %v4891_v2, %v9669_v30 }
0x1454   :  { %v4912_v44 = vmul.f32 %v6080_v16, %v4898_v32 }
0x1455   :  { %v4911_v43 = vmul.f32 %v6080_v16, %v4897_v26 }
0x1456   :  { %v4926_v7 = vadd.f32 %v6082_v35, %v4912_v44  ;;  %v4936_v36 = vld [vmem:[#allocation2 + $0x8] sm:$0xff] }
0x1457   :  { %v4925_v17 = vadd.f32 %v6082_v35, %v4911_v43  ;;  %v4882_v45 = vpop.permute.xlu1 %4881 }
0x1458   :  { %4932 = vst.msk [vmem:[#allocation2 + $0x18] sm:$0xff] %vm524_vm4, %v4926_v7  ;;  %v4894_v6 = vadd.f32 %v4882_v45, %v9743_v13  ;;  %v4880_v22 = vpop.permute.xlu0 %4879 }
0x1459   :  { %4931 = vst.msk [vmem:[#allocation2 + $0x10] sm:$0xff] %vm524_vm4, %v4925_v17  ;;  %v4893_v57 = vadd.f32 %v4880_v22, %v9741_v62 }
0x145a   :  { %v4900_v55 = vadd.f32 %v4894_v6, %v9690_v41 }
0x145b   :  { %v4899_v23 = vadd.f32 %v4893_v57, %v9684_v52 }
0x145c   :  { %v4914_v4 = vmul.f32 %v6080_v16, %v4900_v55  ;;  %v4872_v30 = vpop.permute.xlu0 %4871 }
0x145d   :  { %v4913_v40 = vmul.f32 %v6080_v16, %v4899_v23  ;;  %v4889_v48 = vadd.f32 %v4872_v30, %v9725_v37 }
0x145e   :  { %v4928_v24 = vadd.f32 %v6082_v35, %v4914_v4 }
0x145f   :  { %v4927_v61 = vadd.f32 %v6082_v35, %v4913_v40  ;;  %v4895_v5 = vadd.f32 %v4889_v48, %v9653_v51  ;;  %v4938_v14 = vld [vmem:[#allocation2 + $0x18] sm:$0xff] }
0x1460   :  { %v9800_v3 = vld [vmem:[#allocation2 + $0x14] sm:$0xff]  ;;  %v9802_v21 = vld [vmem:[#allocation2 + $0xc] sm:$0xff]  ;;  %4934 = vst.msk [vmem:[#allocation2 + $0x28] sm:$0xff] %vm524_vm4, %v4928_v24 }
0x1461   :  { %4952 = vrot.lane.b32.xlu0 %v9800_v3, %s7489_s1  ;;  %4950 = vrot.lane.b32.xlu1 %v9802_v21, %s7489_s1  ;;  %4933 = vst.msk [vmem:[#allocation2 + $0x20] sm:$0xff] %vm524_vm4, %v4927_v61  ;;  %v4909_v52 = vmul.f32 %v6080_v16, %v4895_v5  ;;  %v4937_v50 = vld [vmem:[#allocation2 + $0x10] sm:$0xff] }
0x1463   :  { %v4923_v41 = vadd.f32 %v6082_v35, %v4909_v52 }
0x1465   :  { %4929 = vst.msk [vmem:[#allocation2] sm:$0xff] %vm524_vm4, %v4923_v41 }
0x1467   :  { %v9819_v62 = vld [vmem:[#allocation2 + $0x2c] sm:$0xf] }
0x1468   :  { %v9811_v37 = vld [vmem:[#allocation2 + $0x24] sm:$0xff]  ;;  %v9813_v51 = vld [vmem:[#allocation2 + $0x1c] sm:$0xff] }
0x1469   :  { %4956 = vrot.lane.b32.xlu0 %v9811_v37, %s7489_s1  ;;  %4954 = vrot.lane.b32.xlu1 %v9813_v51, %s7489_s1  ;;  %v4939_v10 = vld [vmem:[#allocation2 + $0x20] sm:$0xf] }
0x146c   :  { %v4935_v18 = vld [vmem:[#allocation2] sm:$0xff] }
0x146d   :  { %4958 = vrot.lane.b32.xlu1 %v9819_v62, %s7489_s1 }
0x14d3   :  { %v4951_v13 = vpop.permute.xlu1 %4950  ;;  %v4953_v60 = vpop.permute.xlu0 %4952 }
0x14d4   :  { %v4965_v53 = vsel %vm524_vm4, %v4935_v18, %v4951_v13  ;;  %v4966_v1 = vsel %vm524_vm4, %v4936_v36, %v4953_v60 }
0x14d5   :  { %6810 = vmatmul.mubr.msk.f32.vlgmr.msra.gmra.mrb[116].mxu1 %vm683_vm9, %v4965_v53 }
0x14d6   :  { %6812 = vmatprep.mubr.msk.f32.mxu1 %vm7493_vm10, %v7494_v34 }
0x14d9   :  { %6813 = vmatmul.mubr.msk.f32.gmra.mrb[118].mxu1 %vm683_vm9, %v4966_v1 }
0x14da   :  { %6815 = vmatprep.mubr.msk.f32.mxu1 %vm7493_vm10, %v7494_v34 }
0x14db   :  { %v4955_v47 = vpop.permute.xlu1 %4954  ;;  %v4957_v15 = vpop.permute.xlu0 %4956 }
0x14dc   :  { %v4967_v12 = vsel %vm524_vm4, %v4937_v50, %v4955_v47  ;;  %v4968_v25 = vsel %vm524_vm4, %v4938_v14, %v4957_v15 }
0x14dd   :  { %6816 = vmatmul.mubr.msk.f32.gmra.mrb[120].mxu1 %vm683_vm9, %v4967_v12 }
0x14de   :  { %6818 = vmatprep.mubr.msk.f32.mxu1 %vm7493_vm10, %v7494_v34 }
0x14df   :  { %v4959_v0 = vpop.permute.xlu1 %4958 }
0x14e0   :  { %v4969_v59 = vsel %vm524_vm4, %v4939_v10, %v4959_v0 }
0x14e1   :  { %6819 = vmatmul.mubr.msk.f32.gmra.mrb[122].mxu1 %vm683_vm9, %v4968_v25  ;;  %v6102_v25 = vld [vmem:[%s10005_s8 + $0x6] ss:$0 sm:$0xff] }
0x14e2   :  { %6821 = vmatprep.mubr.msk.f32.mxu1 %vm7493_vm10, %v7494_v34 }
0x14e5   :  { %6822 = vmatmul.mubr.msk.f32.gmra.mrb[124].mxu1 %vm683_vm9, %v4969_v59 }
0x15a8   :  { %v5064_v49 = vpop.f32.mrb[116].mxu1 }
0x15a9   :  { %v5065_v8 = vadd.f32 %v6088_v28, %v5064_v49  ;;  %v6811_v11 = vpop.f32.mrb[117].mxu1 }
0x15ab   :  { %v6094_v63 = vmul.f32 -1.442695, %v5065_v8 }
0x15ac   :  { %v5069_v27 = vpop.f32.mrb[118].mxu1 }
0x15ad   :  { %7422 = vpow2.f32 %v6094_v63  ;;  %v5070_v19 = vadd.f32 %v6088_v28, %v5069_v27  ;;  %v6814_v9 = vpop.f32.mrb[119].mxu1 }
0x15af   :  { %v6095_v38 = vmul.f32 -1.442695, %v5070_v19 }
0x15b0   :  { %v5074_v33 = vpop.f32.mrb[120].mxu1 }
0x15b1   :  { %7424 = vpow2.f32 %v6095_v38  ;;  %v5075_v16 = vadd.f32 %v6088_v28, %v5074_v33  ;;  %v6817_v58 = vpop.f32.mrb[121].mxu1 }
0x15b2   :  { %v5267_v58 = vld [vmem:[#allocation3 + $0x24] sm:$0xff] }
0x15b3   :  { %v6096_v35 = vmul.f32 -1.442695, %v5075_v16 }
0x15b4   :  { %v5079_v20 = vpop.f32.mrb[122].mxu1 }
0x15b5   :  { %7426 = vpow2.f32 %v6096_v35  ;;  %v5080_v39 = vadd.f32 %v6088_v28, %v5079_v20  ;;  %v6820_v56 = vpop.f32.mrb[123].mxu1 }
0x15b7   :  { %v7423_v46 = vpop.eup %7422  ;;  %v6097_v2 = vmul.f32 -1.442695, %v5080_v39 }
0x15b8   :  { %v5108_v42 = vadd.f32 1.0, %v7423_v46  ;;  %v5084_v32 = vpop.f32.mrb[124].mxu1  ;;  %v5268_v46 = vld [vmem:[#allocation3 + $0x2c] sm:$0xf] }
0x15b9   :  { %v5085_v26 = vadd.f32 %v6088_v28, %v5084_v32  ;;  %v6823_v44 = vpop.f32.mrb[125].mxu1  ;;  %v6113_v32 = vld [vmem:[%s9999_s5 + $0xe8] sm:$0xff] }
0x15ba   :  { %7428 = vrcp.f32 %v5108_v42 }
0x15bb   :  { %v7425_v43 = vpop.eup %7424  ;;  %7430 = vpow2.f32 %v6097_v2  ;;  %v6098_v17 = vmul.f32 -1.442695, %v5085_v26  ;;  %v6112_v2 = vld [vmem:[%s9999_s5 + $0xe0] sm:$0xff] }
0x15bc   :  { %v5109_v7 = vadd.f32 1.0, %v7425_v43  ;;  %v6951_v44 = vpack.c.bf16 %v6113_v32, %v6112_v2  ;;  %v6115_v43 = vld [vmem:[%s9999_s5 + $0xf8] sm:$0xff]  ;;  %v5574_v32 = vld [vmem:[%s10008_s11] sm:$0xff] }
0x15be   :  { %7432 = vrcp.f32 %v5109_v7  ;;  %6952 = vmatprep.subr.bf16.mxu1 %v6951_v44 }
0x15bf   :  { %7434 = vpow2.f32 %v6098_v17  ;;  %v7427_v45 = vpop.eup %7426  ;;  %6954 = vmatpush3.bf16.msra.mxu1 %v6951_v44 }
0x15c0   :  { %v5110_v6 = vadd.f32 1.0, %v7427_v45 }
0x15c2   :  { %7436 = vrcp.f32 %v5110_v6  ;;  %v9907_v6 = vld [vmem:[%s10006_s9 + $0x6] ss:$0 sm:$0xff] }
0x15c4   :  { %v7429_v22 = vpop.eup %7428 }
0x15c5   :  { %v7431_v57 = vpop.eup %7430  ;;  %5128 = vrot.lane.b32.xlu0 %v7429_v22, %s7490_s28 }
0x15c6   :  { %v5111_v55 = vadd.f32 1.0, %v7431_v57  ;;  %v9913_v57 = vld [vmem:[%s10007_s10 + $0x6] ss:$0 sm:$0xff] }
0x15c8   :  { %v7433_v23 = vpop.eup %7432  ;;  %7438 = vrcp.f32 %v5111_v55 }
0x15c9   :  { %v7435_v4 = vpop.eup %7434  ;;  %5130 = vrot.lane.b32.xlu1 %v7433_v23, %s7490_s28 }
0x15ca   :  { %v5112_v30 = vadd.f32 1.0, %v7435_v4 }
0x15cc   :  { %7440 = vrcp.f32 %v5112_v30  ;;  %v7437_v40 = vpop.eup %7436 }
0x15cd   :  { %5132 = vrot.lane.b32.xlu0 %v7437_v40, %s7490_s28  ;;  %7442 = vtanh.f32 %v5065_v8  ;;  %v5265_v8 = vld [vmem:[#allocation3 + $0x14] sm:$0xff] }
0x15ce   :  { %7444 = vtanh.f32 %v5070_v19  ;;  %v5266_v19 = vld [vmem:[#allocation3 + $0x1c] sm:$0xff] }
0x15cf   :  { %7446 = vtanh.f32 %v5075_v16 }
0x15d0   :  { %7448 = vtanh.f32 %v5080_v39 }
0x15d1   :  { %7450 = vtanh.f32 %v5085_v26  ;;  %v6114_v26 = vld [vmem:[%s9999_s5 + $0xf0] sm:$0xff] }
0x15d2   :  { %v7439_v48 = vpop.eup %7438  ;;  %v6955_v7 = vpack.c.bf16 %v6115_v43, %v6114_v26  ;;  %v5575_v26 = vld [vmem:[%s10008_s11 + $0x8] sm:$0xff] }
0x15d3   :  { %5134 = vrot.lane.b32.xlu1 %v7439_v48, %s7490_s28  ;;  %v6963_v44 = vpack.c.bf16 %v5575_v26, %v5574_v32 }
0x15d4   :  { %6956 = vmatprep.subr.bf16.mxu1 %v6955_v7 }
0x15d5   :  { %6958 = vmatpush3.bf16.msra.mxu1 %v6955_v7  ;;  %v6125_v7 = vld [vmem:[%s10005_s8 + $0x7] ss:$0 sm:$0xff] }
0x15d6   :  { %v7441_v24 = vpop.eup %7440  ;;  %6964 = vmatprep.subr.bf16.mxu1 %v6963_v44 }
0x15d7   :  { %5136 = vrot.lane.b32.xlu0 %v7441_v24, %s7490_s28  ;;  %v7443_v61 = vpop.eup %7442 }
0x15d8   :  { %v7445_v41 = vpop.eup %7444 }
0x15d9   :  { %v7447_v53 = vpop.eup %7446 }
0x15da   :  { %v7449_v1 = vpop.eup %7448 }
0x15db   :  { %v7451_v12 = vpop.eup %7450 }
0x1637   :  { %v5129_v5 = vpop.permute.xlu0 %5128 }
0x1638   :  { %v9855_v52 = vmul.f32 %v7443_v61, %v5129_v5 }
0x163a   :  { %6829 = vmatmul.mubr.msk.f32.vlgmr.msra.gmra.mrb[120].mxu0 %vm524_vm4, %v9855_v52 }
0x163b   :  { %v5131_v13 = vpop.permute.xlu1 %5130  ;;  %6831 = vmatprep.mubr.msk.f32.mxu0 %vm7493_vm10, %v7494_v34 }
0x163c   :  { %v9861_v18 = vmul.f32 %v7445_v41, %v5131_v13 }
0x163e   :  { %6832 = vmatmul.mubr.msk.f32.gmra.mrb[122].mxu0 %vm524_vm4, %v9861_v18 }
0x163f   :  { %6834 = vmatprep.mubr.msk.f32.mxu0 %vm7493_vm10, %v7494_v34  ;;  %v5133_v60 = vpop.permute.xlu0 %5132 }
0x1640   :  { %v9867_v36 = vmul.f32 %v7447_v53, %v5133_v60 }
0x1642   :  { %6835 = vmatmul.mubr.msk.f32.gmra.mrb[124].mxu0 %vm524_vm4, %v9867_v36 }
0x1643   :  { %6837 = vmatprep.mubr.msk.f32.mxu0 %vm7493_vm10, %v7494_v34 }
0x1645   :  { %v5135_v50 = vpop.permute.xlu1 %5134 }
0x1646   :  { %v5146_v47 = vmul.f32 %v7449_v1, %v5135_v50 }
0x1648   :  { %6838 = vmatmul.mubr.msk.f32.gmra.mrb[126].mxu0 %vm524_vm4, %v5146_v47 }
0x1649   :  { %v5137_v15 = vpop.permute.xlu0 %5136  ;;  %6840 = vmatprep.mubr.msk.f32.mxu0 %vm7493_vm10, %v7494_v34 }
0x164a   :  { %v5147_v14 = vmul.f32 %v7451_v12, %v5137_v15 }
0x164c   :  { %6841 = vmatmul.mubr.msk.f32.gmra.mrb[128].mxu0 %vm524_vm4, %v5147_v14 }
0x170d   :  { %v5240_v0 = vpop.f32.mrb[120].mxu0 }
0x170e   :  { %v5241_v10 = vadd.f32 %v6102_v25, %v5240_v0  ;;  %v6830_v59 = vpop.f32.mrb[121].mxu0  ;;  %v6123_v0 = vld [vmem:[%s10003_s7 + $0x78] sm:$0xff] }
0x170f   :  { %v6117_v59 = vld [vmem:[%s10004_s6 + $0x7] ss:$0 sm:$0xff] }
0x1710   :  { %v5269_v54 = vadd.f32 %v5264_v29, %v5241_v10 }
0x1711   :  { %v5245_v31 = vpop.f32.mrb[122].mxu0 }
0x1712   :  { %5274 = vst.msk [vmem:[#allocation3] sm:$0xff] %vm683_vm9, %v5269_v54  ;;  %v5246_v28 = vadd.f32 %v6102_v25, %v5245_v31  ;;  %v6833_v49 = vpop.f32.mrb[123].mxu0 }
0x1714   :  { %v5270_v11 = vadd.f32 %v5265_v8, %v5246_v28 }
0x1715   :  { %v5250_v34 = vpop.f32.mrb[124].mxu0 }
0x1716   :  { %5275 = vst.msk [vmem:[#allocation3 + $0x8] sm:$0xff] %vm683_vm9, %v5270_v11  ;;  %v9882_v63 = vadd.f32 %v6102_v25, %v5250_v34  ;;  %v6836_v27 = vpop.f32.mrb[125].mxu0 }
0x1718   :  { %v5271_v9 = vadd.f32 %v5266_v19, %v9882_v63 }
0x171a   :  { %5276 = vst.msk [vmem:[#allocation3 + $0x10] sm:$0xff] %vm683_vm9, %v5271_v9 }
0x171b   :  { %v5255_v38 = vpop.f32.mrb[126].mxu0 }
0x171c   :  { %v5256_v33 = vadd.f32 %v6102_v25, %v5255_v38  ;;  %v6839_v16 = vpop.f32.mrb[127].mxu0 }
0x171e   :  { %v5272_v35 = vadd.f32 %v5267_v58, %v5256_v33  ;;  %5290 = vrot.lane.b32.xlu1 %v5256_v33, %s7491_s16 }
0x171f   :  { %v5260_v20 = vpop.f32.mrb[128].mxu0 }
0x1720   :  { %5277 = vst.msk [vmem:[#allocation3 + $0x18] sm:$0xff] %vm683_vm9, %v5272_v35  ;;  %v5261_v39 = vadd.f32 %v6102_v25, %v5260_v20  ;;  %v6842_v56 = vpop.f32.mrb[129].mxu0  ;;  %v6122_v25 = vld [vmem:[%s10003_s7 + $0x70] sm:$0xff] }
0x1722   :  { %v5273_v42 = vadd.f32 %v5268_v46, %v5261_v39  ;;  %5284 = vrot.lane.b32.xlu1 %v5241_v10, %s7491_s16  ;;  %5292 = vrot.lane.b32.xlu0 %v5261_v39, %s7491_s16  ;;  %v6959_v10 = vpack.c.bf16 %v6123_v0, %v6122_v25 }
0x1724   :  { %5278 = vst.msk [vmem:[#allocation3 + $0x20] sm:$0xf] %vm3069_vm11, %v5273_v42  ;;  %6960 = vmatprep.subr.bf16.mxu0 %v6959_v10 }
0x1725   :  { %6962 = vmatpush3.bf16.msra.mxu0 %v6959_v10 }
0x1726   :  { %5286 = vrot.lane.b32.xlu0 %v5246_v28, %s7491_s16 }
0x1790   :  { %v5291_v17 = vpop.permute.xlu1 %5290 }
0x1791   :  { %v5302_v45 = vadd.f32 %v5291_v17, %v5146_v47 }
0x1793   :  { %v5307_v22 = vadd.f32 %v5302_v45, %v9811_v37 }
0x1794   :  { %v5285_v55 = vpop.permute.xlu1 %5284  ;;  %v5293_v23 = vpop.permute.xlu0 %5292 }
0x1795   :  { %v5320_v4 = vmul.f32 %v9907_v6, %v5307_v22  ;;  %v5299_v30 = vadd.f32 %v5285_v55, %v9855_v52  ;;  %v5303_v40 = vadd.f32 %v5293_v23, %v5147_v14  ;;  %v5565_v22 = vld [vmem:[#allocation3 + $0x20] sm:$0xf]  ;;  %v5564_v23 = vld [vmem:[#allocation3 + $0x18] sm:$0xff] }
0x1797   :  { %v5333_v48 = vadd.f32 %v9913_v57, %v5320_v4  ;;  %v5304_v24 = vadd.f32 %v5299_v30, %v9802_v21  ;;  %v5308_v61 = vadd.f32 %v5303_v40, %v9819_v62 }
0x1798   :  { %v5287_v5 = vpop.permute.xlu0 %5286 }
0x1799   :  { %5338 = vst.msk [vmem:[#allocation2 + $0x18] sm:$0xff] %vm524_vm4, %v5333_v48  ;;  %v5317_v37 = vmul.f32 %v9907_v6, %v5304_v24  ;;  %v5321_v41 = vmul.f32 %v9907_v6, %v5308_v61  ;;  %v5300_v13 = vadd.f32 %v5287_v5, %v9861_v18  ;;  %v5668_v61 = vld [vmem:[%s10009_s13] sm:$0xff]  ;;  %v5669_v5 = vld [vmem:[%s10009_s13 + $0x8] sm:$0xff] }
0x179b   :  { %v5330_v53 = vadd.f32 %v9913_v57, %v5317_v37  ;;  %v5334_v52 = vadd.f32 %v9913_v57, %v5321_v41  ;;  %v5305_v60 = vadd.f32 %v5300_v13, %v9800_v3  ;;  %v6971_v37 = vpack.c.bf16 %v5669_v5, %v5668_v61  ;;  %v6128_v13 = vld [vmem:[%s10011_s12] ss:$0 sm:$0xff] }
0x179c   :  { %v20_v41 = vstv %s10010_s14 }
0x179d   :  { %5335 = vst.msk [vmem:[#allocation2] sm:$0xff] %vm524_vm4, %v5330_v53  ;;  %v5318_v21 = vmul.f32 %v9907_v6, %v5305_v60  ;;  %6972 = vmatprep.subr.bf16.mxu0 %v6971_v37  ;;  %21 = vst [vmem:[#allocation4] sm:$0x1] %v20_v41 }
0x179e   :  { %5339 = vst.msk [vmem:[#allocation2 + $0x20] sm:$0xf] %vm544_vm8, %v5334_v52 }
0x179f   :  { %v5331_v62 = vadd.f32 %v9913_v57, %v5318_v21 }
0x17a0   :  { %v5342_v1 = vld [vmem:[#allocation2 + $0x18] sm:$0xff] }
0x17a1   :  { %5336 = vst.msk [vmem:[#allocation2 + $0x8] sm:$0xff] %vm524_vm4, %v5331_v62  ;;  %5346 = vrot.lane.b32.xlu1 %v5342_v1, %s7489_s1 }
0x17a4   :  { %v5340_v50 = vld [vmem:[#allocation2] sm:$0xff] }
0x17a5   :  { %v5343_v18 = vld [vmem:[#allocation2 + $0x20] sm:$0xf] }
0x17a6   :  { %5348 = vrot.lane.b32.xlu0 %v5343_v18, %s7489_s1  ;;  %v6131_v18 = vld [vmem:[#allocation4] ss:$0 sm:$0xff] }
0x17a8   :  { %v5341_v12 = vld [vmem:[#allocation2 + $0x8] sm:$0xf] }
0x1813   :  { %v5347_v47 = vpop.permute.xlu1 %5346 }
0x1814   :  { %v5352_v3 = vsel %vm524_vm4, %v5340_v50, %v5347_v47 }
0x1815   :  { %6851 = vmatprep.mubr.msk.f32.mxu1 %vm683_vm9, %v5352_v3 }
0x1818   :  { %v5349_v15 = vpop.permute.xlu0 %5348 }
0x1819   :  { %v5353_v14 = vsel %vm524_vm4, %v5341_v12, %v5349_v15 }
0x181a   :  { %6852 = vmatmul.mubr.msk.f32.vlgmr.msra.gmra.mrb[126].mxu1 %vm683_vm9, %v5353_v14 }
0x181b   :  { %6966 = vmatpush3.bf16.msra.mxu1 %v6963_v44 }
0x18ed   :  { %v6853_v29 = vpop.f32.mrb[126].mxu1 }
0x18ee   :  { %v5445_v54 = vadd.f32 %v6853_v29, %v6117_v59  ;;  %v5439_v31 = vpop.f32.mrb[127].mxu1 }
0x18ef   :  { %v5440_v28 = vadd.f32 %v6117_v59, %v5439_v31 }
0x18f0   :  { %v6121_v49 = vmul.f32 -1.442695, %v5445_v54 }
0x18f1   :  { %v6120_v8 = vmul.f32 -1.442695, %v5440_v28 }
0x18f2   :  { %7452 = vpow2.f32 %v6121_v49 }
0x18f3   :  { %7454 = vpow2.f32 %v6120_v8 }
0x18fc   :  { %v7453_v11 = vpop.eup %7452 }
0x18fd   :  { %v7455_v34 = vpop.eup %7454  ;;  %v5457_v27 = vadd.f32 1.0, %v7453_v11 }
0x18fe   :  { %v5456_v19 = vadd.f32 1.0, %v7455_v34 }
0x18ff   :  { %7456 = vrcp.f32 %v5457_v27 }
0x1900   :  { %7458 = vrcp.f32 %v5456_v19 }
0x1901   :  { %7460 = vtanh.f32 %v5440_v28 }
0x1902   :  { %7462 = vtanh.f32 %v5445_v54 }
0x1909   :  { %v7457_v9 = vpop.eup %7456 }
0x190a   :  { %v7459_v38 = vpop.eup %7458  ;;  %5466 = vrot.lane.b32.xlu0 %v7457_v9, %s7490_s28 }
0x190b   :  { %5464 = vrot.lane.b32.xlu1 %v7459_v38, %s7490_s28  ;;  %v7461_v16 = vpop.eup %7460 }
0x190c   :  { %v7463_v35 = vpop.eup %7462 }
0x190f   :  { %5288 = vrot.lane.b32.xlu1 %v9882_v63, %s7491_s16 }
0x197c   :  { %v5467_v33 = vpop.permute.xlu0 %5466 }
0x197d   :  { %v5465_v58 = vpop.permute.xlu1 %5464  ;;  %v5471_v39 = vmul.f32 %v7463_v35, %v5467_v33 }
0x197e   :  { %v5470_v20 = vmul.f32 %v7461_v16, %v5465_v58 }
0x1980   :  { %6858 = vmatprep.mubr.msk.f32.mxu0 %vm524_vm4, %v5470_v20 }
0x1981   :  { %v5289_v56 = vpop.permute.xlu1 %5288  ;;  %6859 = vmatmul.mubr.msk.f32.vlgmr.msra.gmra.mrb[130].mxu0 %vm524_vm4, %v5471_v39 }
0x1982   :  { %v5301_v46 = vadd.f32 %v5289_v56, %v9867_v36  ;;  %v5576_v36 = vld [vmem:[%s10008_s11 + $0x10] sm:$0xff]  ;;  %6974 = vmatpush3.bf16.msra.mxu0 %v6971_v37 }
0x1984   :  { %v5306_v42 = vadd.f32 %v5301_v46, %v9813_v51  ;;  %v5577_v51 = vld [vmem:[%s10008_s11 + $0x18] sm:$0xff] }
0x1985   :  { %v6967_v43 = vpack.c.bf16 %v5577_v51, %v5576_v36 }
0x1986   :  { %v5319_v2 = vmul.f32 %v9907_v6, %v5306_v42 }
0x1987   :  { %6968 = vmatprep.subr.bf16.mxu1 %v6967_v43 }
0x1988   :  { %v5332_v63 = vadd.f32 %v9913_v57, %v5319_v2  ;;  %6970 = vmatpush3.bf16.msra.mxu1 %v6967_v43 }
0x198a   :  { %5337 = vst.msk [vmem:[#allocation2 + $0x10] sm:$0xff] %vm524_vm4, %v5332_v63 }
0x1a54   :  { %v6860_v17 = vpop.f32.mrb[130].mxu0 }
0x1a55   :  { %v5561_v45 = vadd.f32 %v6860_v17, %v6125_v7  ;;  %v5555_v6 = vpop.f32.mrb[131].mxu0 }
0x1a56   :  { %v5556_v57 = vadd.f32 %v6125_v7, %v5555_v6 }
0x1a57   :  { %v5567_v55 = vadd.f32 %v5565_v22, %v5561_v45 }
0x1a58   :  { %v5566_v4 = vadd.f32 %v5564_v23, %v5556_v57 }
0x1a59   :  { %5569 = vst.msk [vmem:[#allocation3 + $0x8] sm:$0xf] %vm3069_vm11, %v5567_v55 }
0x1a5a   :  { %5568 = vst.msk [vmem:[#allocation3] sm:$0xff] %vm683_vm9, %v5566_v4 }
0x1a60   :  { %v5571_v30 = vld [vmem:[#allocation3 + $0x8] sm:$0xf] }
0x1a61   :  { %v5570_v40 = vld [vmem:[#allocation3] sm:$0xff]  ;;  %v5573_v24 = vmax.f32 %v5571_v30, 0.0 }
0x1a62   :  { %v5572_v48 = vmax.f32 %v5570_v40, 0.0 }
0x1a64   :  { %6869 = vmatprep.mubr.msk.f32.mxu1 %vm683_vm9, %v5572_v48 }
0x1a65   :  { %6870 = vmatmul.mubr.msk.f32.vlgmr.msra.gmra.mrb[128].mxu1 %vm683_vm9, %v5573_v24 }
0x1b38   :  { %v6871_v53 = vpop.f32.mrb[128].mxu1 }
0x1b39   :  { %v5663_v52 = vadd.f32 %v6871_v53, %v6128_v13  ;;  %v5657_v60 = vpop.f32.mrb[129].mxu1 }
0x1b3a   :  { %v5658_v21 = vadd.f32 %v6128_v13, %v5657_v60 }
0x1b3b   :  { %v5667_v1 = vmax.f32 %v5663_v52, 0.0 }
0x1b3c   :  { %v5666_v62 = vmax.f32 %v5658_v21, 0.0 }
0x1b3e   :  { %6876 = vmatprep.mubr.msk.f32.mxu0 %vm524_vm4, %v5666_v62 }
0x1b3f   :  { %6877 = vmatmul.mubr.msk.f32.vlgmr.msra.gmra.mrb[132].mxu0 %vm524_vm4, %v5667_v1 }
0x1c12   :  { %v6878_v50 = vpop.f32.mrb[132].mxu0 }
0x1c13   :  { %v5755_v47 = vadd.f32 %v6878_v50, %v6131_v18  ;;  %v5749_v3 = vpop.f32.mrb[133].mxu0 }
0x1c14   :  { %v5750_v12 = vadd.f32 %v6131_v18, %v5749_v3 }
0x1c15   :  { %5761 = vst.msk [vmem:[%s10012_s15 + $0x8] sm:$0xf] %vm5760_vm12, %v5755_v47 }
0x1c16   :  { %5759 = vst.msk [vmem:[%s10012_s15] sm:$0xff] %vm5758_vm13, %v5750_v12 }

</bundles_post_ra>
